<compile_context>
chip_gen: v6e
topology: v6e:2x2x1
jax: 0.10.0
libtpu: 0.0.40
codegen_flags: <defaults>
</compile_context>

<pallas_src>
import numpy as np
import jax
import jax.numpy as jnp
from jax.experimental import pallas as pl
from jax.experimental.pallas import tpu as pltpu

BN_EPS = 1e-5


def _round_up(v, m):
    return ((v + m - 1) // m) * m


# ----------------------------------------------------------------------------
# Pallas kernel: one tile of a fused RepVGG block.
#   x_ref: (TM, 9*Cinp) bf16   w_ref: (9*Cinp, Coutp) bf16
#   b_ref: (1, Coutp) f32      o_ref: (TM, Coutp) bf16
# One deep-K MXU matmul, f32 accumulate, bias + ReLU epilogue in f32.
# ----------------------------------------------------------------------------
def _block_kernel(x_ref, w_ref, b_ref, o_ref):
    acc = jnp.dot(x_ref[...], w_ref[...], preferred_element_type=jnp.float32)
    o_ref[...] = jnp.maximum(acc + b_ref[...], 0.0).astype(o_ref.dtype)


def repvgg_block_apply(x_nhwc, wmat, bias, stride, cin, cinp, cout, coutp):
    """Apply one re-parameterized RepVGG block.

    x_nhwc: (N, H, W, cin) bf16.  wmat: (9*cinp, coutp) bf16.  bias: (1, coutp) f32.
    Returns (N, Ho, Wo, cout) bf16.
    """
    N, H, W, _ = x_nhwc.shape
    Ho = (H + 2 - 3) // stride + 1
    Wo = (W + 2 - 3) // stride + 1
    M = N * Ho * Wo
    Kp = 9 * cinp

    # im2col emitted directly in (M, 9*cinp) layout: tap-major, channel-minor
    # on the lane axis, matching the weight row layout. Fused by jit.
    xp = jnp.pad(x_nhwc, ((0, 0), (1, 1), (1, 1), (0, cinp - cin)))
    taps = []
    for kh in range(3):
        for kw in range(3):
            sl = xp[:,
                    kh:kh + stride * (Ho - 1) + 1:stride,
                    kw:kw + stride * (Wo - 1) + 1:stride, :]
            taps.append(sl.reshape(M, cinp))
    x2d = jnp.concatenate(taps, axis=-1)  # (M, 9*cinp), bf16

    # Tile over M; pad rows with zeros (sliced off afterwards).
    TM = 512
    if M < TM:
        TM = _round_up(M, 8)
    Mp = _round_up(M, TM)
    if Mp != M:
        x2d = jnp.pad(x2d, ((0, Mp - M), (0, 0)))

    flops = 2 * Mp * Kp * coutp
    bytes_accessed = Mp * Kp * 2 + Kp * coutp * 2 + coutp * 4 + Mp * coutp * 2

    out = pl.pallas_call(
        _block_kernel,
        out_shape=jax.ShapeDtypeStruct((Mp, coutp), jnp.bfloat16),
        grid=(Mp // TM,),
        in_specs=[
            pl.BlockSpec((TM, Kp), lambda i: (i, 0)),       # activation tiles
            pl.BlockSpec((Kp, coutp), lambda i: (0, 0)),    # weights resident
            pl.BlockSpec((1, coutp), lambda i: (0, 0)),     # bias resident
        ],
        out_specs=pl.BlockSpec((TM, coutp), lambda i: (i, 0)),
        compiler_params=pltpu.CompilerParams(
            dimension_semantics=("parallel",),              # split M across TCs (v7x)
            vmem_limit_bytes=48 << 20,                      # v7x-safe (64 MiB phys)
        ),
        cost_estimate=pl.CostEstimate(
            flops=flops, transcendentals=0, bytes_accessed=bytes_accessed),
    )(x2d, wmat, bias)

    return out[:M, :cout].reshape(N, Ho, Wo, cout)


# ----------------------------------------------------------------------------
# Parameter construction (deterministic, in-script) + BN folding (glue).
# ----------------------------------------------------------------------------
def _bn_fold(gamma, beta, mean, var):
    std = jnp.sqrt(var + BN_EPS)
    return gamma / std, beta - mean * gamma / std


def _fuse_block(W3, W1, cin, cout, has_identity):
    # Default-initialized BN params (gamma=1, beta=0, running_mean=0, running_var=1).
    g = jnp.ones((cout,), jnp.float32)
    b = jnp.zeros((cout,), jnp.float32)
    m = jnp.zeros((cout,), jnp.float32)
    v = jnp.ones((cout,), jnp.float32)

    t3, b3 = _bn_fold(g, b, m, v)
    t1, b1 = _bn_fold(g, b, m, v)

    k = W3 * t3[:, None, None, None]                        # (Cout, Cin, 3, 3)
    k1 = W1 * t1[:, None, None, None]                       # (Cout, Cin, 1, 1)
    k = k.at[:, :, 1, 1].add(k1[:, :, 0, 0])                # 1x1 -> center tap
    bias = b3 + b1

    if has_identity:  # rbr_identity = BatchNorm2d(cin), cin == cout, groups == 1
        gi = jnp.ones((cin,), jnp.float32)
        bi = jnp.zeros((cin,), jnp.float32)
        mi = jnp.zeros((cin,), jnp.float32)
        vi = jnp.ones((cin,), jnp.float32)
        tid, bid = _bn_fold(gi, bi, mi, vi)
        id_k = jnp.eye(cout, cin, dtype=jnp.float32)
        k = k.at[:, :, 1, 1].add(id_k * tid[:, None])
        bias = bias + bid

    # (Cout, Cin, 3, 3) -> (3, 3, Cin, Cout) -> (9, Cin, Cout)
    w9 = jnp.transpose(k, (2, 3, 1, 0)).reshape(9, cin, cout)
    return w9, bias


def _prep_block(w9, bias, cin, cout):
    """Pad Cin->mult(8), Cout->mult(128); flatten to (9*Cinp, Coutp) bf16."""
    cinp = _round_up(cin, 8)
    coutp = _round_up(cout, 128)
    w = jnp.pad(w9, ((0, 0), (0, cinp - cin), (0, coutp - cout)))
    wmat = w.reshape(9 * cinp, coutp).astype(jnp.bfloat16)
    b = jnp.pad(bias, (0, coutp - cout)).reshape(1, coutp).astype(jnp.float32)
    return wmat, b, cinp, coutp


def build_repvgg_a0(key, in_channels=3):
    """Build fused, padded per-block parameters for RepVGG-A0."""
    num_blocks = [2, 4, 14, 1]
    wm = [0.75, 0.75, 0.75, 2.5]
    in_planes = min(64, int(64 * wm[0]))                    # 48
    planes = [int(64 * wm[0]), int(128 * wm[1]),
              int(256 * wm[2]), int(512 * wm[3])]           # 48, 96, 192, 1280

    block_defs = [(in_channels, in_planes, 2)]              # stage0
    stage_counts = [1]
    cur = in_planes
    for p, nb in zip(planes, num_blocks):
        for s in [2] + [1] * (nb - 1):
            block_defs.append((cur, p, s))
            cur = p
        stage_counts.append(nb)

    params = []
    for (cin, cout, stride) in block_defs:
        key, k3, k1 = jax.random.split(key, 3)
        # kaiming_normal_(mode='fan_out') -> std = sqrt(2 / (cout * kh * kw))
        W3 = jax.random.normal(k3, (cout, cin, 3, 3), jnp.float32) * np.sqrt(2.0 / (cout * 9))
        W1 = jax.random.normal(k1, (cout, cin, 1, 1), jnp.float32) * np.sqrt(2.0 / cout)
        has_id = (cin == cout) and (stride == 1)
        w9, bias = _fuse_block(W3, W1, cin, cout, has_id)
        wmat, b, cinp, coutp = _prep_block(w9, bias, cin, cout)
        params.append(dict(w=wmat, b=b, stride=stride,
                           cin=cin, cinp=cinp, cout=cout, coutp=coutp))
    return params, stage_counts


def make_forward(params, stage_counts):
    """Returns a jitted fn: NCHW input -> [stage1..stage4 outputs] in NCHW f32."""

    @jax.jit
    def fwd(x_nchw):
        x = jnp.transpose(x_nchw, (0, 2, 3, 1)).astype(jnp.bfloat16)  # NCHW->NHWC
        outs = []
        idx = 0
        for si, nb in enumerate(stage_counts):
            for _ in range(nb):
                p = params[idx]
                idx += 1
                x = repvgg_block_apply(x, p["w"], p["b"], p["stride"],
                                       p["cin"], p["cinp"], p["cout"], p["coutp"])
            if si > 0:  # collect outputs of stages 1..4
                outs.append(jnp.transpose(x, (0, 3, 1, 2)).astype(jnp.float32))
        return outs

    return fwd


if __name__ == "__main__":
    key = jax.random.PRNGKey(0)
    key, pkey, xkey = jax.random.split(key, 3)

    params, stage_counts = build_repvgg_a0(pkey, in_channels=3)
    forward = make_forward(params, stage_counts)

    # Small deterministic input: batch=2, C=3, 32x32 (stage4 output -> 1x1).
    x = jax.random.normal(xkey, (2, 3, 32, 32), jnp.float32)

    outs = forward(x)
    outs = [jax.block_until_ready(o) for o in outs]

    expected = [(2, 48, 8, 8), (2, 96, 4, 4), (2, 192, 2, 2), (2, 1280, 1, 1)]
    assert [tuple(o.shape) for o in outs] == expected, [o.shape for o in outs]
    assert all(bool(jnp.all(o >= 0.0)) for o in outs)       # ReLU outputs
    assert all(bool(jnp.all(jnp.isfinite(o))) for o in outs)
    print("KERNEL_OK")
</pallas_src>

<mosaic_0001>
module attributes {stable_mosaic.version = 11 : i64} {
  func.func @_block_kernel(%arg0: i32, %arg1: memref<512x72xbf16, #tpu.memory_space<vmem>>, %arg2: memref<72x128xbf16, #tpu.memory_space<vmem>>, %arg3: memref<1x128xf32, #tpu.memory_space<vmem>>, %arg4: memref<512x128xbf16, #tpu.memory_space<vmem>>) attributes {dimension_semantics = [#tpu.dimension_semantics<parallel>], iteration_bounds = array<i64: 1>, scalar_prefetch = 0 : i64, scratch_operands = 0 : i64, tpu.core_type = #tpu.core_type<tc>, window_params = [{transform_indices = @transform_0, window_bounds = array<i64: 512, 72>}, {pipeline_mode = #tpu.pipeline_mode<synchronous>, transform_indices = @transform_1, window_bounds = array<i64: 72, 128>}, {pipeline_mode = #tpu.pipeline_mode<synchronous>, transform_indices = @transform_2, window_bounds = array<i64: 1, 128>}, {transform_indices = @transform_3, window_bounds = array<i64: 512, 128>}]} {
    %c0 = arith.constant 0 : index
    %c0_0 = arith.constant 0 : index
    %0 = vector.load %arg1[%c0, %c0_0] : memref<512x72xbf16, #tpu.memory_space<vmem>>, vector<512x72xbf16>
    %c0_1 = arith.constant 0 : index
    %c0_2 = arith.constant 0 : index
    %1 = vector.load %arg2[%c0_1, %c0_2] : memref<72x128xbf16, #tpu.memory_space<vmem>>, vector<72x128xbf16>
    %cst = arith.constant dense<0.000000e+00> : vector<512x128xf32>
    %2 = tpu.matmul %0, %1, %cst {dimension_numbers = #tpu.dot_dimension_numbers<[1], [0], [0], [1], [0, 0, 1, 1], [], []>} : vector<512x72xbf16>, vector<72x128xbf16>, vector<512x128xf32> -> vector<512x128xf32>
    %c0_3 = arith.constant 0 : index
    %c0_4 = arith.constant 0 : index
    %3 = vector.load %arg3[%c0_3, %c0_4] : memref<1x128xf32, #tpu.memory_space<vmem>>, vector<1x128xf32>
    %4 = vector.broadcast %3 : vector<1x128xf32> to vector<512x128xf32>
    %5 = arith.addf %2, %4 : vector<512x128xf32>
    %cst_5 = arith.constant 0.000000e+00 : f32
    %6 = vector.broadcast %cst_5 : f32 to vector<512x128xf32>
    %7 = arith.maximumf %5, %6 : vector<512x128xf32>
    %8 = arith.truncf %7 : vector<512x128xf32> to vector<512x128xbf16>
    %c0_6 = arith.constant 0 : index
    %c0_7 = arith.constant 0 : index
    %9 = vector.load %arg4[%c0_6, %c0_7] : memref<512x128xbf16, #tpu.memory_space<vmem>>, vector<512x128xbf16>
    tpu.vector_store %arg4[%c0_6, %c0_7], %8 {strides = array<i32>} : memref<512x128xbf16, #tpu.memory_space<vmem>>, vector<512x128xbf16>,
    return
  }
  func.func @transform_0(%arg0: i32) -> (i32, i32) {
    %c0_i32 = arith.constant 0 : i32
    %c0_i32_0 = arith.constant 0 : i32
    return %arg0, %c0_i32 : i32, i32
  }
  func.func @transform_1(%arg0: i32) -> (i32, i32) {
    %c0_i32 = arith.constant 0 : i32
    %c0_i32_0 = arith.constant 0 : i32
    %c0_i32_1 = arith.constant 0 : i32
    return %c0_i32, %c0_i32_0 : i32, i32
  }
  func.func @transform_2(%arg0: i32) -> (i32, i32) {
    %c0_i32 = arith.constant 0 : i32
    %c0_i32_0 = arith.constant 0 : i32
    %c0_i32_1 = arith.constant 0 : i32
    return %c0_i32, %c0_i32_0 : i32, i32
  }
  func.func @transform_3(%arg0: i32) -> (i32, i32) {
    %c0_i32 = arith.constant 0 : i32
    %c0_i32_0 = arith.constant 0 : i32
    return %arg0, %c0_i32 : i32, i32
  }
}

module attributes {stable_mosaic.version = 11 : i64} {
  func.func @_block_kernel(%arg0: i32, %arg1: memref<128x432xbf16, #tpu.memory_space<vmem>>, %arg2: memref<432x128xbf16, #tpu.memory_space<vmem>>, %arg3: memref<1x128xf32, #tpu.memory_space<vmem>>, %arg4: memref<128x128xbf16, #tpu.memory_space<vmem>>) attributes {dimension_semantics = [#tpu.dimension_semantics<parallel>], iteration_bounds = array<i64: 1>, scalar_prefetch = 0 : i64, scratch_operands = 0 : i64, tpu.core_type = #tpu.core_type<tc>, window_params = [{transform_indices = @transform_0, window_bounds = array<i64: 128, 432>}, {pipeline_mode = #tpu.pipeline_mode<synchronous>, transform_indices = @transform_1, window_bounds = array<i64: 432, 128>}, {pipeline_mode = #tpu.pipeline_mode<synchronous>, transform_indices = @transform_2, window_bounds = array<i64: 1, 128>}, {transform_indices = @transform_3, window_bounds = array<i64: 128, 128>}]} {
    %c0 = arith.constant 0 : index
    %c0_0 = arith.constant 0 : index
    %0 = vector.load %arg1[%c0, %c0_0] : memref<128x432xbf16, #tpu.memory_space<vmem>>, vector<128x432xbf16>
    %c0_1 = arith.constant 0 : index
    %c0_2 = arith.constant 0 : index
    %1 = vector.load %arg2[%c0_1, %c0_2] : memref<432x128xbf16, #tpu.memory_space<vmem>>, vector<432x128xbf16>
    %cst = arith.constant dense<0.000000e+00> : vector<128x128xf32>
    %2 = tpu.matmul %0, %1, %cst {dimension_numbers = #tpu.dot_dimension_numbers<[1], [0], [0], [1], [0, 0, 1, 1], [], []>} : vector<128x432xbf16>, vector<432x128xbf16>, vector<128x128xf32> -> vector<128x128xf32>
    %c0_3 = arith.constant 0 : index
    %c0_4 = arith.constant 0 : index
    %3 = vector.load %arg3[%c0_3, %c0_4] : memref<1x128xf32, #tpu.memory_space<vmem>>, vector<1x128xf32>
    %4 = vector.broadcast %3 : vector<1x128xf32> to vector<128x128xf32>
    %5 = arith.addf %2, %4 : vector<128x128xf32>
    %cst_5 = arith.constant 0.000000e+00 : f32
    %6 = vector.broadcast %cst_5 : f32 to vector<128x128xf32>
    %7 = arith.maximumf %5, %6 : vector<128x128xf32>
    %8 = arith.truncf %7 : vector<128x128xf32> to vector<128x128xbf16>
    %c0_6 = arith.constant 0 : index
    %c0_7 = arith.constant 0 : index
    %9 = vector.load %arg4[%c0_6, %c0_7] : memref<128x128xbf16, #tpu.memory_space<vmem>>, vector<128x128xbf16>
    tpu.vector_store %arg4[%c0_6, %c0_7], %8 {strides = array<i32>} : memref<128x128xbf16, #tpu.memory_space<vmem>>, vector<128x128xbf16>,
    return
  }
  func.func @transform_0(%arg0: i32) -> (i32, i32) {
    %c0_i32 = arith.constant 0 : i32
    %c0_i32_0 = arith.constant 0 : i32
    return %arg0, %c0_i32 : i32, i32
  }
  func.func @transform_1(%arg0: i32) -> (i32, i32) {
    %c0_i32 = arith.constant 0 : i32
    %c0_i32_0 = arith.constant 0 : i32
    %c0_i32_1 = arith.constant 0 : i32
    return %c0_i32, %c0_i32_0 : i32, i32
  }
  func.func @transform_2(%arg0: i32) -> (i32, i32) {
    %c0_i32 = arith.constant 0 : i32
    %c0_i32_0 = arith.constant 0 : i32
    %c0_i32_1 = arith.constant 0 : i32
    return %c0_i32, %c0_i32_0 : i32, i32
  }
  func.func @transform_3(%arg0: i32) -> (i32, i32) {
    %c0_i32 = arith.constant 0 : i32
    %c0_i32_0 = arith.constant 0 : i32
    return %arg0, %c0_i32 : i32, i32
  }
}

module attributes {stable_mosaic.version = 11 : i64} {
  func.func @_block_kernel(%arg0: i32, %arg1: memref<32x432xbf16, #tpu.memory_space<vmem>>, %arg2: memref<432x128xbf16, #tpu.memory_space<vmem>>, %arg3: memref<1x128xf32, #tpu.memory_space<vmem>>, %arg4: memref<32x128xbf16, #tpu.memory_space<vmem>>) attributes {dimension_semantics = [#tpu.dimension_semantics<parallel>], iteration_bounds = array<i64: 1>, scalar_prefetch = 0 : i64, scratch_operands = 0 : i64, tpu.core_type = #tpu.core_type<tc>, window_params = [{transform_indices = @transform_0, window_bounds = array<i64: 32, 432>}, {pipeline_mode = #tpu.pipeline_mode<synchronous>, transform_indices = @transform_1, window_bounds = array<i64: 432, 128>}, {pipeline_mode = #tpu.pipeline_mode<synchronous>, transform_indices = @transform_2, window_bounds = array<i64: 1, 128>}, {transform_indices = @transform_3, window_bounds = array<i64: 32, 128>}]} {
    %c0 = arith.constant 0 : index
    %c0_0 = arith.constant 0 : index
    %0 = vector.load %arg1[%c0, %c0_0] : memref<32x432xbf16, #tpu.memory_space<vmem>>, vector<32x432xbf16>
    %c0_1 = arith.constant 0 : index
    %c0_2 = arith.constant 0 : index
    %1 = vector.load %arg2[%c0_1, %c0_2] : memref<432x128xbf16, #tpu.memory_space<vmem>>, vector<432x128xbf16>
    %cst = arith.constant dense<0.000000e+00> : vector<32x128xf32>
    %2 = tpu.matmul %0, %1, %cst {dimension_numbers = #tpu.dot_dimension_numbers<[1], [0], [0], [1], [0, 0, 1, 1], [], []>} : vector<32x432xbf16>, vector<432x128xbf16>, vector<32x128xf32> -> vector<32x128xf32>
    %c0_3 = arith.constant 0 : index
    %c0_4 = arith.constant 0 : index
    %3 = vector.load %arg3[%c0_3, %c0_4] : memref<1x128xf32, #tpu.memory_space<vmem>>, vector<1x128xf32>
    %4 = vector.broadcast %3 : vector<1x128xf32> to vector<32x128xf32>
    %5 = arith.addf %2, %4 : vector<32x128xf32>
    %cst_5 = arith.constant 0.000000e+00 : f32
    %6 = vector.broadcast %cst_5 : f32 to vector<32x128xf32>
    %7 = arith.maximumf %5, %6 : vector<32x128xf32>
    %8 = arith.truncf %7 : vector<32x128xf32> to vector<32x128xbf16>
    %c0_6 = arith.constant 0 : index
    %c0_7 = arith.constant 0 : index
    %9 = vector.load %arg4[%c0_6, %c0_7] : memref<32x128xbf16, #tpu.memory_space<vmem>>, vector<32x128xbf16>
    tpu.vector_store %arg4[%c0_6, %c0_7], %8 {strides = array<i32>} : memref<32x128xbf16, #tpu.memory_space<vmem>>, vector<32x128xbf16>,
    return
  }
  func.func @transform_0(%arg0: i32) -> (i32, i32) {
    %c0_i32 = arith.constant 0 : i32
    %c0_i32_0 = arith.constant 0 : i32
    return %arg0, %c0_i32 : i32, i32
  }
  func.func @transform_1(%arg0: i32) -> (i32, i32) {
    %c0_i32 = arith.constant 0 : i32
    %c0_i32_0 = arith.constant 0 : i32
    %c0_i32_1 = arith.constant 0 : i32
    return %c0_i32, %c0_i32_0 : i32, i32
  }
  func.func @transform_2(%arg0: i32) -> (i32, i32) {
    %c0_i32 = arith.constant 0 : i32
    %c0_i32_0 = arith.constant 0 : i32
    %c0_i32_1 = arith.constant 0 : i32
    return %c0_i32, %c0_i32_0 : i32, i32
  }
  func.func @transform_3(%arg0: i32) -> (i32, i32) {
    %c0_i32 = arith.constant 0 : i32
    %c0_i32_0 = arith.constant 0 : i32
    return %arg0, %c0_i32 : i32, i32
  }
}

module attributes {stable_mosaic.version = 11 : i64} {
  func.func @_block_kernel(%arg0: i32, %arg1: memref<32x864xbf16, #tpu.memory_space<vmem>>, %arg2: memref<864x128xbf16, #tpu.memory_space<vmem>>, %arg3: memref<1x128xf32, #tpu.memory_space<vmem>>, %arg4: memref<32x128xbf16, #tpu.memory_space<vmem>>) attributes {dimension_semantics = [#tpu.dimension_semantics<parallel>], iteration_bounds = array<i64: 1>, scalar_prefetch = 0 : i64, scratch_operands = 0 : i64, tpu.core_type = #tpu.core_type<tc>, window_params = [{transform_indices = @transform_0, window_bounds = array<i64: 32, 864>}, {pipeline_mode = #tpu.pipeline_mode<synchronous>, transform_indices = @transform_1, window_bounds = array<i64: 864, 128>}, {pipeline_mode = #tpu.pipeline_mode<synchronous>, transform_indices = @transform_2, window_bounds = array<i64: 1, 128>}, {transform_indices = @transform_3, window_bounds = array<i64: 32, 128>}]} {
    %c0 = arith.constant 0 : index
    %c0_0 = arith.constant 0 : index
    %0 = vector.load %arg1[%c0, %c0_0] : memref<32x864xbf16, #tpu.memory_space<vmem>>, vector<32x864xbf16>
    %c0_1 = arith.constant 0 : index
    %c0_2 = arith.constant 0 : index
    %1 = vector.load %arg2[%c0_1, %c0_2] : memref<864x128xbf16, #tpu.memory_space<vmem>>, vector<864x128xbf16>
    %cst = arith.constant dense<0.000000e+00> : vector<32x128xf32>
    %2 = tpu.matmul %0, %1, %cst {dimension_numbers = #tpu.dot_dimension_numbers<[1], [0], [0], [1], [0, 0, 1, 1], [], []>} : vector<32x864xbf16>, vector<864x128xbf16>, vector<32x128xf32> -> vector<32x128xf32>
    %c0_3 = arith.constant 0 : index
    %c0_4 = arith.constant 0 : index
    %3 = vector.load %arg3[%c0_3, %c0_4] : memref<1x128xf32, #tpu.memory_space<vmem>>, vector<1x128xf32>
    %4 = vector.broadcast %3 : vector<1x128xf32> to vector<32x128xf32>
    %5 = arith.addf %2, %4 : vector<32x128xf32>
    %cst_5 = arith.constant 0.000000e+00 : f32
    %6 = vector.broadcast %cst_5 : f32 to vector<32x128xf32>
    %7 = arith.maximumf %5, %6 : vector<32x128xf32>
    %8 = arith.truncf %7 : vector<32x128xf32> to vector<32x128xbf16>
    %c0_6 = arith.constant 0 : index
    %c0_7 = arith.constant 0 : index
    %9 = vector.load %arg4[%c0_6, %c0_7] : memref<32x128xbf16, #tpu.memory_space<vmem>>, vector<32x128xbf16>
    tpu.vector_store %arg4[%c0_6, %c0_7], %8 {strides = array<i32>} : memref<32x128xbf16, #tpu.memory_space<vmem>>, vector<32x128xbf16>,
    return
  }
  func.func @transform_0(%arg0: i32) -> (i32, i32) {
    %c0_i32 = arith.constant 0 : i32
    %c0_i32_0 = arith.constant 0 : i32
    return %arg0, %c0_i32 : i32, i32
  }
  func.func @transform_1(%arg0: i32) -> (i32, i32) {
    %c0_i32 = arith.constant 0 : i32
    %c0_i32_0 = arith.constant 0 : i32
    %c0_i32_1 = arith.constant 0 : i32
    return %c0_i32, %c0_i32_0 : i32, i32
  }
  func.func @transform_2(%arg0: i32) -> (i32, i32) {
    %c0_i32 = arith.constant 0 : i32
    %c0_i32_0 = arith.constant 0 : i32
    %c0_i32_1 = arith.constant 0 : i32
    return %c0_i32, %c0_i32_0 : i32, i32
  }
  func.func @transform_3(%arg0: i32) -> (i32, i32) {
    %c0_i32 = arith.constant 0 : i32
    %c0_i32_0 = arith.constant 0 : i32
    return %arg0, %c0_i32 : i32, i32
  }
}

module attributes {stable_mosaic.version = 11 : i64} {
  func.func @_block_kernel(%arg0: i32, %arg1: memref<8x864xbf16, #tpu.memory_space<vmem>>, %arg2: memref<864x256xbf16, #tpu.memory_space<vmem>>, %arg3: memref<1x256xf32, #tpu.memory_space<vmem>>, %arg4: memref<8x256xbf16, #tpu.memory_space<vmem>>) attributes {dimension_semantics = [#tpu.dimension_semantics<parallel>], iteration_bounds = array<i64: 1>, scalar_prefetch = 0 : i64, scratch_operands = 0 : i64, tpu.core_type = #tpu.core_type<tc>, window_params = [{transform_indices = @transform_0, window_bounds = array<i64: 8, 864>}, {pipeline_mode = #tpu.pipeline_mode<synchronous>, transform_indices = @transform_1, window_bounds = array<i64: 864, 256>}, {pipeline_mode = #tpu.pipeline_mode<synchronous>, transform_indices = @transform_2, window_bounds = array<i64: 1, 256>}, {transform_indices = @transform_3, window_bounds = array<i64: 8, 256>}]} {
    %c0 = arith.constant 0 : index
    %c0_0 = arith.constant 0 : index
    %0 = vector.load %arg1[%c0, %c0_0] : memref<8x864xbf16, #tpu.memory_space<vmem>>, vector<8x864xbf16>
    %c0_1 = arith.constant 0 : index
    %c0_2 = arith.constant 0 : index
    %1 = vector.load %arg2[%c0_1, %c0_2] : memref<864x256xbf16, #tpu.memory_space<vmem>>, vector<864x256xbf16>
    %cst = arith.constant dense<0.000000e+00> : vector<8x256xf32>
    %2 = tpu.matmul %0, %1, %cst {dimension_numbers = #tpu.dot_dimension_numbers<[1], [0], [0], [1], [0, 0, 1, 1], [], []>} : vector<8x864xbf16>, vector<864x256xbf16>, vector<8x256xf32> -> vector<8x256xf32>
    %c0_3 = arith.constant 0 : index
    %c0_4 = arith.constant 0 : index
    %3 = vector.load %arg3[%c0_3, %c0_4] : memref<1x256xf32, #tpu.memory_space<vmem>>, vector<1x256xf32>
    %4 = vector.broadcast %3 : vector<1x256xf32> to vector<8x256xf32>
    %5 = arith.addf %2, %4 : vector<8x256xf32>
    %cst_5 = arith.constant 0.000000e+00 : f32
    %6 = vector.broadcast %cst_5 : f32 to vector<8x256xf32>
    %7 = arith.maximumf %5, %6 : vector<8x256xf32>
    %8 = arith.truncf %7 : vector<8x256xf32> to vector<8x256xbf16>
    %c0_6 = arith.constant 0 : index
    %c0_7 = arith.constant 0 : index
    %9 = vector.load %arg4[%c0_6, %c0_7] : memref<8x256xbf16, #tpu.memory_space<vmem>>, vector<8x256xbf16>
    tpu.vector_store %arg4[%c0_6, %c0_7], %8 {strides = array<i32>} : memref<8x256xbf16, #tpu.memory_space<vmem>>, vector<8x256xbf16>,
    return
  }
  func.func @transform_0(%arg0: i32) -> (i32, i32) {
    %c0_i32 = arith.constant 0 : i32
    %c0_i32_0 = arith.constant 0 : i32
    return %arg0, %c0_i32 : i32, i32
  }
  func.func @transform_1(%arg0: i32) -> (i32, i32) {
    %c0_i32 = arith.constant 0 : i32
    %c0_i32_0 = arith.constant 0 : i32
    %c0_i32_1 = arith.constant 0 : i32
    return %c0_i32, %c0_i32_0 : i32, i32
  }
  func.func @transform_2(%arg0: i32) -> (i32, i32) {
    %c0_i32 = arith.constant 0 : i32
    %c0_i32_0 = arith.constant 0 : i32
    %c0_i32_1 = arith.constant 0 : i32
    return %c0_i32, %c0_i32_0 : i32, i32
  }
  func.func @transform_3(%arg0: i32) -> (i32, i32) {
    %c0_i32 = arith.constant 0 : i32
    %c0_i32_0 = arith.constant 0 : i32
    return %arg0, %c0_i32 : i32, i32
  }
}

module attributes {stable_mosaic.version = 11 : i64} {
  func.func @_block_kernel(%arg0: i32, %arg1: memref<8x1728xbf16, #tpu.memory_space<vmem>>, %arg2: memref<1728x256xbf16, #tpu.memory_space<vmem>>, %arg3: memref<1x256xf32, #tpu.memory_space<vmem>>, %arg4: memref<8x256xbf16, #tpu.memory_space<vmem>>) attributes {dimension_semantics = [#tpu.dimension_semantics<parallel>], iteration_bounds = array<i64: 1>, scalar_prefetch = 0 : i64, scratch_operands = 0 : i64, tpu.core_type = #tpu.core_type<tc>, window_params = [{transform_indices = @transform_0, window_bounds = array<i64: 8, 1728>}, {pipeline_mode = #tpu.pipeline_mode<synchronous>, transform_indices = @transform_1, window_bounds = array<i64: 1728, 256>}, {pipeline_mode = #tpu.pipeline_mode<synchronous>, transform_indices = @transform_2, window_bounds = array<i64: 1, 256>}, {transform_indices = @transform_3, window_bounds = array<i64: 8, 256>}]} {
    %c0 = arith.constant 0 : index
    %c0_0 = arith.constant 0 : index
    %0 = vector.load %arg1[%c0, %c0_0] : memref<8x1728xbf16, #tpu.memory_space<vmem>>, vector<8x1728xbf16>
    %c0_1 = arith.constant 0 : index
    %c0_2 = arith.constant 0 : index
    %1 = vector.load %arg2[%c0_1, %c0_2] : memref<1728x256xbf16, #tpu.memory_space<vmem>>, vector<1728x256xbf16>
    %cst = arith.constant dense<0.000000e+00> : vector<8x256xf32>
    %2 = tpu.matmul %0, %1, %cst {dimension_numbers = #tpu.dot_dimension_numbers<[1], [0], [0], [1], [0, 0, 1, 1], [], []>} : vector<8x1728xbf16>, vector<1728x256xbf16>, vector<8x256xf32> -> vector<8x256xf32>
    %c0_3 = arith.constant 0 : index
    %c0_4 = arith.constant 0 : index
    %3 = vector.load %arg3[%c0_3, %c0_4] : memref<1x256xf32, #tpu.memory_space<vmem>>, vector<1x256xf32>
    %4 = vector.broadcast %3 : vector<1x256xf32> to vector<8x256xf32>
    %5 = arith.addf %2, %4 : vector<8x256xf32>
    %cst_5 = arith.constant 0.000000e+00 : f32
    %6 = vector.broadcast %cst_5 : f32 to vector<8x256xf32>
    %7 = arith.maximumf %5, %6 : vector<8x256xf32>
    %8 = arith.truncf %7 : vector<8x256xf32> to vector<8x256xbf16>
    %c0_6 = arith.constant 0 : index
    %c0_7 = arith.constant 0 : index
    %9 = vector.load %arg4[%c0_6, %c0_7] : memref<8x256xbf16, #tpu.memory_space<vmem>>, vector<8x256xbf16>
    tpu.vector_store %arg4[%c0_6, %c0_7], %8 {strides = array<i32>} : memref<8x256xbf16, #tpu.memory_space<vmem>>, vector<8x256xbf16>,
    return
  }
  func.func @transform_0(%arg0: i32) -> (i32, i32) {
    %c0_i32 = arith.constant 0 : i32
    %c0_i32_0 = arith.constant 0 : i32
    return %arg0, %c0_i32 : i32, i32
  }
  func.func @transform_1(%arg0: i32) -> (i32, i32) {
    %c0_i32 = arith.constant 0 : i32
    %c0_i32_0 = arith.constant 0 : i32
    %c0_i32_1 = arith.constant 0 : i32
    return %c0_i32, %c0_i32_0 : i32, i32
  }
  func.func @transform_2(%arg0: i32) -> (i32, i32) {
    %c0_i32 = arith.constant 0 : i32
    %c0_i32_0 = arith.constant 0 : i32
    %c0_i32_1 = arith.constant 0 : i32
    return %c0_i32, %c0_i32_0 : i32, i32
  }
  func.func @transform_3(%arg0: i32) -> (i32, i32) {
    %c0_i32 = arith.constant 0 : i32
    %c0_i32_0 = arith.constant 0 : i32
    return %arg0, %c0_i32 : i32, i32
  }
}

module attributes {stable_mosaic.version = 11 : i64} {
  func.func @_block_kernel(%arg0: i32, %arg1: memref<8x1728xbf16, #tpu.memory_space<vmem>>, %arg2: memref<1728x1280xbf16, #tpu.memory_space<vmem>>, %arg3: memref<1x1280xf32, #tpu.memory_space<vmem>>, %arg4: memref<8x1280xbf16, #tpu.memory_space<vmem>>) attributes {dimension_semantics = [#tpu.dimension_semantics<parallel>], iteration_bounds = array<i64: 1>, scalar_prefetch = 0 : i64, scratch_operands = 0 : i64, tpu.core_type = #tpu.core_type<tc>, window_params = [{transform_indices = @transform_0, window_bounds = array<i64: 8, 1728>}, {pipeline_mode = #tpu.pipeline_mode<synchronous>, transform_indices = @transform_1, window_bounds = array<i64: 1728, 1280>}, {pipeline_mode = #tpu.pipeline_mode<synchronous>, transform_indices = @transform_2, window_bounds = array<i64: 1, 1280>}, {transform_indices = @transform_3, window_bounds = array<i64: 8, 1280>}]} {
    %c0 = arith.constant 0 : index
    %c0_0 = arith.constant 0 : index
    %0 = vector.load %arg1[%c0, %c0_0] : memref<8x1728xbf16, #tpu.memory_space<vmem>>, vector<8x1728xbf16>
    %c0_1 = arith.constant 0 : index
    %c0_2 = arith.constant 0 : index
    %1 = vector.load %arg2[%c0_1, %c0_2] : memref<1728x1280xbf16, #tpu.memory_space<vmem>>, vector<1728x1280xbf16>
    %cst = arith.constant dense<0.000000e+00> : vector<8x1280xf32>
    %2 = tpu.matmul %0, %1, %cst {dimension_numbers = #tpu.dot_dimension_numbers<[1], [0], [0], [1], [0, 0, 1, 1], [], []>} : vector<8x1728xbf16>, vector<1728x1280xbf16>, vector<8x1280xf32> -> vector<8x1280xf32>
    %c0_3 = arith.constant 0 : index
    %c0_4 = arith.constant 0 : index
    %3 = vector.load %arg3[%c0_3, %c0_4] : memref<1x1280xf32, #tpu.memory_space<vmem>>, vector<1x1280xf32>
    %4 = vector.broadcast %3 : vector<1x1280xf32> to vector<8x1280xf32>
    %5 = arith.addf %2, %4 : vector<8x1280xf32>
    %cst_5 = arith.constant 0.000000e+00 : f32
    %6 = vector.broadcast %cst_5 : f32 to vector<8x1280xf32>
    %7 = arith.maximumf %5, %6 : vector<8x1280xf32>
    %8 = arith.truncf %7 : vector<8x1280xf32> to vector<8x1280xbf16>
    %c0_6 = arith.constant 0 : index
    %c0_7 = arith.constant 0 : index
    %9 = vector.load %arg4[%c0_6, %c0_7] : memref<8x1280xbf16, #tpu.memory_space<vmem>>, vector<8x1280xbf16>
    tpu.vector_store %arg4[%c0_6, %c0_7], %8 {strides = array<i32>} : memref<8x1280xbf16, #tpu.memory_space<vmem>>, vector<8x1280xbf16>,
    return
  }
  func.func @transform_0(%arg0: i32) -> (i32, i32) {
    %c0_i32 = arith.constant 0 : i32
    %c0_i32_0 = arith.constant 0 : i32
    return %arg0, %c0_i32 : i32, i32
  }
  func.func @transform_1(%arg0: i32) -> (i32, i32) {
    %c0_i32 = arith.constant 0 : i32
    %c0_i32_0 = arith.constant 0 : i32
    %c0_i32_1 = arith.constant 0 : i32
    return %c0_i32, %c0_i32_0 : i32, i32
  }
  func.func @transform_2(%arg0: i32) -> (i32, i32) {
    %c0_i32 = arith.constant 0 : i32
    %c0_i32_0 = arith.constant 0 : i32
    %c0_i32_1 = arith.constant 0 : i32
    return %c0_i32, %c0_i32_0 : i32, i32
  }
  func.func @transform_3(%arg0: i32) -> (i32, i32) {
    %c0_i32 = arith.constant 0 : i32
    %c0_i32_0 = arith.constant 0 : i32
    return %arg0, %c0_i32 : i32, i32
  }
}

</mosaic_0001>

<bundles_post_ra>
// kernel: fwd.22
= control target key start
LH: loop header
LB: loop body
LE: loop exit
PB: predicated region body
PF: predicated region fallthrough
CT: control target
= control target key end

     0   :  { %vm379_vm0 = vcmask 1043456   ;;  %vm282_vm1 = vcmask 588800   ;;  %s1937_s1 = inlined_call_operand.vmem [shape: bf16[72,128], index: 1, kind: input, shape index: {}]   ;;  %s1938_s0 = inlined_call_operand.vmem [shape: bf16[512,72], index: 0, kind: input, shape index: {}]   ;;  %s1939_s2 = inlined_call_operand.vmem [shape: f32[1,128], index: 2, kind: input, shape index: {}]   ;;  %s1940_s3 = inlined_call_operand.vmem [shape: bf16[512,128], index: 3, kind: output, shape index: {}]  }
   0x1   :  { %v1572_v0 = vld [vmem:[%s1937_s1 + $0x20] ss:$0 sps:$4 sm:$0xff]   ;;  %v1573_v1 = vld [vmem:[%s1937_s1 + $0x18] sm:$0xff]   ;;  %v1574_v3 = vld [vmem:[%s1937_s1 + $0x10] sm:$0xff]  }
   0x2   :  { %1570 = vmatprep.subr.msk.bf16.mxu0 %vm379_vm0, %v1572_v0  ;;  %1571 = vmatprep.subr.msk.bf16.mxu1 %vm379_vm0, %v1572_v0  ;;  %v381_v2 = vsel %vm379_vm0, %v1572_v0, 0  ;;  %v1577_v4 = vld [vmem:[%s1938_s0] sm:$0xff]   ;;  %v1575_v6 = vld [vmem:[%s1937_s1 + $0x8] sm:$0xff]   ;;  %v1581_v10 = vld [vmem:[%s1938_s0 + $0x10] sm:$0xff]  }
   0x3   :  { %1487 = vmatpush3.bf16.msra.mxu0 %v381_v2  ;;  %1565 = vmatpush3.bf16.msra.mxu1 %v381_v2  ;;  %v1578_v5 = vld [vmem:[%s1938_s0 + $0x80] sm:$0xff]   ;;  %v1579_v8 = vld [vmem:[%s1938_s0 + $0x8] sm:$0xff]   ;;  %v1582_v11 = vld [vmem:[%s1938_s0 + $0x90] sm:$0xff]  }
   0x4   :  { %1488 = vmatprep.subr.bf16.mxu0 %v1573_v1  ;;  %1561 = vmatprep.subr.bf16.mxu1 %v1573_v1  ;;  %v1576_v7 = vld [vmem:[%s1937_s1] sm:$0xff]   ;;  %v1580_v9 = vld [vmem:[%s1938_s0 + $0x88] sm:$0xff]   ;;  %v1583_v12 = vld [vmem:[%s1938_s0 + $0x18] sm:$0xff]  }
   0x5   :  { %1496 = vmatprep.mubr.msk.bf16.mxu0 %vm282_vm1, %v1577_v4  ;;  %1528 = vmatprep.mubr.msk.bf16.mxu1 %vm282_vm1, %v1578_v5  ;;  %v1584_v13 = vld [vmem:[%s1938_s0 + $0x98] sm:$0xff]   ;;  %v1585_v14 = vld [vmem:[%s1938_s0 + $0x20] sm:$0xff]   ;;  %v1587_v16 = vld [vmem:[%s1938_s0 + $0x28] sm:$0xff]  }
   0x6   :  { %v1586_v15 = vld [vmem:[%s1938_s0 + $0xa0] sm:$0xff]   ;;  %v1588_v17 = vld [vmem:[%s1938_s0 + $0xa8] sm:$0xff]   ;;  %v1589_v18 = vld [vmem:[%s1938_s0 + $0x30] sm:$0xff]  }
   0x7   :  { %1489 = vmatpush3.bf16.msra.mxu0 %v1573_v1  ;;  %1566 = vmatpush3.bf16.msra.mxu1 %v1573_v1  ;;  %v1590_v19 = vld [vmem:[%s1938_s0 + $0xb0] sm:$0xff]   ;;  %v1591_v20 = vld [vmem:[%s1938_s0 + $0x38] sm:$0xff]   ;;  %v1593_v22 = vld [vmem:[%s1938_s0 + $0x40] sm:$0xff]  }
   0x8   :  { %1490 = vmatprep.subr.bf16.mxu0 %v1574_v3  ;;  %1562 = vmatprep.subr.bf16.mxu1 %v1574_v3  ;;  %v1592_v21 = vld [vmem:[%s1938_s0 + $0xb8] sm:$0xff]   ;;  %v1594_v23 = vld [vmem:[%s1938_s0 + $0xc0] sm:$0xff]   ;;  %v1595_v24 = vld [vmem:[%s1938_s0 + $0x48] sm:$0xff]  }
   0x9   :  { %v1596_v25 = vld [vmem:[%s1938_s0 + $0xc8] sm:$0xff]   ;;  %v1597_v26 = vld [vmem:[%s1938_s0 + $0x50] sm:$0xff]   ;;  %v1599_v28 = vld [vmem:[%s1938_s0 + $0x58] sm:$0xff]  }
   0xa   :  { %v1598_v27 = vld [vmem:[%s1938_s0 + $0xd0] sm:$0xff]   ;;  %v1600_v29 = vld [vmem:[%s1938_s0 + $0xd8] sm:$0xff]   ;;  %v1601_v30 = vld [vmem:[%s1938_s0 + $0x60] sm:$0xff]  }
   0xb   :  { %1491 = vmatpush3.bf16.msra.mxu0 %v1574_v3  ;;  %1567 = vmatpush3.bf16.msra.mxu1 %v1574_v3  ;;  %v1602_v31 = vld [vmem:[%s1938_s0 + $0xe0] sm:$0xff]   ;;  %v1603_v32 = vld [vmem:[%s1938_s0 + $0x68] sm:$0xff]   ;;  %v1605_v34 = vld [vmem:[%s1938_s0 + $0x70] sm:$0xff]  }
   0xc   :  { %1492 = vmatprep.subr.bf16.mxu0 %v1575_v6  ;;  %1563 = vmatprep.subr.bf16.mxu1 %v1575_v6  ;;  %v1604_v33 = vld [vmem:[%s1938_s0 + $0xe8] sm:$0xff]   ;;  %v1606_v35 = vld [vmem:[%s1938_s0 + $0xf0] sm:$0xff]   ;;  %v1607_v36 = vld [vmem:[%s1938_s0 + $0x78] sm:$0xff]  }
   0xd   :  { %v1608_v37 = vld [vmem:[%s1938_s0 + $0xf8] sm:$0xff]   ;;  %v1775_v38 = vld [vmem:[%s1939_s2] ss:$0 sm:$0xff] }
   0xf   :  { %1493 = vmatpush3.bf16.msra.mxu0 %v1575_v6  ;;  %1568 = vmatpush3.bf16.msra.mxu1 %v1575_v6 }
  0x10   :  { %1494 = vmatprep.subr.bf16.mxu0 %v1576_v7  ;;  %1564 = vmatprep.subr.bf16.mxu1 %v1576_v7 }
  0x13   :  { %1495 = vmatpush3.bf16.msra.mxu0 %v1576_v7  ;;  %1569 = vmatpush3.bf16.msra.mxu1 %v1576_v7 }
  0x16   :  { %1497 = vmatmul.mubr.msk.bf16.vlgmr.msra.gmra.mxu0 %vm282_vm1, %v1579_v8  ;;  %1529 = vmatmul.mubr.msk.bf16.vlgmr.msra.gmra.mxu1 %vm282_vm1, %v1580_v9 }
  0x17   :  { %1500 = vmatprep.mubr.msk.bf16.mxu0 %vm282_vm1, %v1581_v10  ;;  %1532 = vmatprep.mubr.msk.bf16.mxu1 %vm282_vm1, %v1582_v11 }
  0x1e   :  { %1501 = vmatmul.mubr.msk.bf16.gmra.mxu0 %vm282_vm1, %v1583_v12  ;;  %1533 = vmatmul.mubr.msk.bf16.gmra.mxu1 %vm282_vm1, %v1584_v13 }
  0x1f   :  { %1504 = vmatprep.mubr.msk.bf16.mxu0 %vm282_vm1, %v1585_v14  ;;  %1536 = vmatprep.mubr.msk.bf16.mxu1 %vm282_vm1, %v1586_v15 }
  0x26   :  { %1505 = vmatmul.mubr.msk.bf16.gmra.mxu0 %vm282_vm1, %v1587_v16  ;;  %1537 = vmatmul.mubr.msk.bf16.gmra.mxu1 %vm282_vm1, %v1588_v17 }
  0x27   :  { %1508 = vmatprep.mubr.msk.bf16.mxu0 %vm282_vm1, %v1589_v18  ;;  %1540 = vmatprep.mubr.msk.bf16.mxu1 %vm282_vm1, %v1590_v19 }
  0x2e   :  { %1509 = vmatmul.mubr.msk.bf16.gmra.mxu0 %vm282_vm1, %v1591_v20  ;;  %1541 = vmatmul.mubr.msk.bf16.gmra.mxu1 %vm282_vm1, %v1592_v21 }
  0x2f   :  { %1512 = vmatprep.mubr.msk.bf16.mxu0 %vm282_vm1, %v1593_v22  ;;  %1544 = vmatprep.mubr.msk.bf16.mxu1 %vm282_vm1, %v1594_v23 }
  0x36   :  { %1513 = vmatmul.mubr.msk.bf16.gmra.mxu0 %vm282_vm1, %v1595_v24  ;;  %1545 = vmatmul.mubr.msk.bf16.gmra.mxu1 %vm282_vm1, %v1596_v25 }
  0x37   :  { %1516 = vmatprep.mubr.msk.bf16.mxu0 %vm282_vm1, %v1597_v26  ;;  %1548 = vmatprep.mubr.msk.bf16.mxu1 %vm282_vm1, %v1598_v27 }
  0x3e   :  { %1517 = vmatmul.mubr.msk.bf16.gmra.mxu0 %vm282_vm1, %v1599_v28  ;;  %1549 = vmatmul.mubr.msk.bf16.gmra.mxu1 %vm282_vm1, %v1600_v29 }
  0x3f   :  { %1520 = vmatprep.mubr.msk.bf16.mxu0 %vm282_vm1, %v1601_v30  ;;  %1552 = vmatprep.mubr.msk.bf16.mxu1 %vm282_vm1, %v1602_v31 }
  0x46   :  { %1521 = vmatmul.mubr.msk.bf16.gmra.mxu0 %vm282_vm1, %v1603_v32  ;;  %1553 = vmatmul.mubr.msk.bf16.gmra.mxu1 %vm282_vm1, %v1604_v33 }
  0x47   :  { %1524 = vmatprep.mubr.msk.bf16.mxu0 %vm282_vm1, %v1605_v34  ;;  %1556 = vmatprep.mubr.msk.bf16.mxu1 %vm282_vm1, %v1606_v35 }
  0x4e   :  { %1525 = vmatmul.mubr.msk.bf16.gmra.mxu0 %vm282_vm1, %v1607_v36  ;;  %1557 = vmatmul.mubr.msk.bf16.gmra.mxu1 %vm282_vm1, %v1608_v37 }
  0xd6   :  { %v1498_v39 = vpop.f32.mrf.mxu0  ;;  %v1530_v40 = vpop.f32.mrf.mxu1 }
  0xd7   :  { %v426_v41 = vadd.f32 %v1498_v39, %v1775_v38  ;;  %v554_v42 = vadd.f32 %v1530_v40, %v1775_v38 }
  0xd8   :  { %v417_v43 = vpop.f32.mrf.mxu0  ;;  %v545_v44 = vpop.f32.mrf.mxu1 }
  0xd9   :  { %v418_v45 = vadd.f32 %v1775_v38, %v417_v43  ;;  %v546_v46 = vadd.f32 %v1775_v38, %v545_v44  ;;  %v674_v51 = vmax.f32 %v426_v41, 0.0  ;;  %v706_v52 = vmax.f32 %v554_v42, 0.0 }
  0xda   :  { %v1499_v47 = vpop.f32.mrf.mxu0  ;;  %v1531_v48 = vpop.f32.mrf.mxu1 }
  0xdb   :  { %v429_v49 = vadd.f32 %v1499_v47, %v1775_v38  ;;  %v557_v50 = vadd.f32 %v1531_v48, %v1775_v38  ;;  %v672_v59 = vmax.f32 %v418_v45, 0.0  ;;  %v704_v60 = vmax.f32 %v546_v46, 0.0 }
  0xdc   :  { %v420_v53 = vpop.f32.mrf.mxu0  ;;  %v548_v54 = vpop.f32.mrf.mxu1 }
  0xdd   :  { %v675_v55 = vmax.f32 %v429_v49, 0.0  ;;  %v707_v56 = vmax.f32 %v557_v50, 0.0  ;;  %v421_v57 = vadd.f32 %v1775_v38, %v420_v53  ;;  %v549_v58 = vadd.f32 %v1775_v38, %v548_v54 }
  0xde   :  { %v1502_v61 = vpop.f32.mrf.mxu0  ;;  %v1534_v62 = vpop.f32.mrf.mxu1 }
  0xdf   :  { %v1266_v63 = vpack.c.bf16 %v675_v55, %v674_v51  ;;  %v1346_v0 = vpack.c.bf16 %v707_v56, %v706_v52  ;;  %v673_v1 = vmax.f32 %v421_v57, 0.0  ;;  %v705_v2 = vmax.f32 %v549_v58, 0.0 }
  0xe0   :  { %v442_v3 = vadd.f32 %v1502_v61, %v1775_v38  ;;  %v570_v4 = vadd.f32 %v1534_v62, %v1775_v38  ;;  %v433_v5 = vpop.f32.mrf.mxu0  ;;  %v561_v6 = vpop.f32.mrf.mxu1 }
  0xe1   :  { %1418 = vst [vmem:[%s1940_s3 + $0x8] sm:$0xff] %v1266_v63   ;;  %1434 = vst [vmem:[%s1940_s3 + $0x88] sm:$0xff] %v1346_v0   ;;  %v1261_v7 = vpack.c.bf16 %v673_v1, %v672_v59  ;;  %v1341_v8 = vpack.c.bf16 %v705_v2, %v704_v60  ;;  %v434_v9 = vadd.f32 %v1775_v38, %v433_v5 }
  0xe2   :  { %v562_v10 = vadd.f32 %v1775_v38, %v561_v6  ;;  %v1503_v11 = vpop.f32.mrf.mxu0  ;;  %v1535_v12 = vpop.f32.mrf.mxu1  ;;  %v678_v15 = vmax.f32 %v442_v3, 0.0  ;;  %v710_v16 = vmax.f32 %v570_v4, 0.0 }
  0xe3   :  { %1262 = vst [vmem:[%s1940_s3] sm:$0xff] %v1261_v7   ;;  %1433 = vst [vmem:[%s1940_s3 + $0x80] sm:$0xff] %v1341_v8   ;;  %v445_v13 = vadd.f32 %v1503_v11, %v1775_v38  ;;  %v573_v14 = vadd.f32 %v1535_v12, %v1775_v38  ;;  %v676_v23 = vmax.f32 %v434_v9, 0.0 }
  0xe4   :  { %v436_v17 = vpop.f32.mrf.mxu0  ;;  %v564_v18 = vpop.f32.mrf.mxu1  ;;  %v708_v24 = vmax.f32 %v562_v10, 0.0 }
  0xe5   :  { %v679_v19 = vmax.f32 %v445_v13, 0.0  ;;  %v711_v20 = vmax.f32 %v573_v14, 0.0  ;;  %v437_v21 = vadd.f32 %v1775_v38, %v436_v17  ;;  %v565_v22 = vadd.f32 %v1775_v38, %v564_v18 }
  0xe6   :  { %v1506_v25 = vpop.f32.mrf.mxu0  ;;  %v1538_v26 = vpop.f32.mrf.mxu1 }
  0xe7   :  { %v1276_v27 = vpack.c.bf16 %v679_v19, %v678_v15  ;;  %v1356_v28 = vpack.c.bf16 %v711_v20, %v710_v16  ;;  %v677_v29 = vmax.f32 %v437_v21, 0.0  ;;  %v709_v30 = vmax.f32 %v565_v22, 0.0 }
  0xe8   :  { %v458_v31 = vadd.f32 %v1506_v25, %v1775_v38  ;;  %v586_v32 = vadd.f32 %v1538_v26, %v1775_v38  ;;  %v449_v33 = vpop.f32.mrf.mxu0  ;;  %v577_v34 = vpop.f32.mrf.mxu1 }
  0xe9   :  { %1420 = vst [vmem:[%s1940_s3 + $0x18] sm:$0xff] %v1276_v27   ;;  %1436 = vst [vmem:[%s1940_s3 + $0x98] sm:$0xff] %v1356_v28   ;;  %v1271_v35 = vpack.c.bf16 %v677_v29, %v676_v23  ;;  %v1351_v36 = vpack.c.bf16 %v709_v30, %v708_v24  ;;  %v450_v37 = vadd.f32 %v1775_v38, %v449_v33 }
  0xea   :  { %v578_v39 = vadd.f32 %v1775_v38, %v577_v34  ;;  %v1507_v40 = vpop.f32.mrf.mxu0  ;;  %v1539_v41 = vpop.f32.mrf.mxu1  ;;  %v682_v44 = vmax.f32 %v458_v31, 0.0  ;;  %v714_v45 = vmax.f32 %v586_v32, 0.0 }
  0xeb   :  { %1419 = vst [vmem:[%s1940_s3 + $0x10] sm:$0xff] %v1271_v35   ;;  %1435 = vst [vmem:[%s1940_s3 + $0x90] sm:$0xff] %v1351_v36   ;;  %v461_v42 = vadd.f32 %v1507_v40, %v1775_v38  ;;  %v589_v43 = vadd.f32 %v1539_v41, %v1775_v38  ;;  %v680_v52 = vmax.f32 %v450_v37, 0.0 }
  0xec   :  { %v452_v46 = vpop.f32.mrf.mxu0  ;;  %v580_v47 = vpop.f32.mrf.mxu1  ;;  %v712_v53 = vmax.f32 %v578_v39, 0.0 }
  0xed   :  { %v683_v48 = vmax.f32 %v461_v42, 0.0  ;;  %v715_v49 = vmax.f32 %v589_v43, 0.0  ;;  %v453_v50 = vadd.f32 %v1775_v38, %v452_v46  ;;  %v581_v51 = vadd.f32 %v1775_v38, %v580_v47 }
  0xee   :  { %v1510_v54 = vpop.f32.mrf.mxu0  ;;  %v1542_v55 = vpop.f32.mrf.mxu1 }
  0xef   :  { %v1286_v56 = vpack.c.bf16 %v683_v48, %v682_v44  ;;  %v1366_v57 = vpack.c.bf16 %v715_v49, %v714_v45  ;;  %v681_v58 = vmax.f32 %v453_v50, 0.0  ;;  %v713_v59 = vmax.f32 %v581_v51, 0.0 }
  0xf0   :  { %v474_v60 = vadd.f32 %v1510_v54, %v1775_v38  ;;  %v602_v61 = vadd.f32 %v1542_v55, %v1775_v38  ;;  %v465_v62 = vpop.f32.mrf.mxu0  ;;  %v593_v63 = vpop.f32.mrf.mxu1 }
  0xf1   :  { %1422 = vst [vmem:[%s1940_s3 + $0x28] sm:$0xff] %v1286_v56   ;;  %1438 = vst [vmem:[%s1940_s3 + $0xa8] sm:$0xff] %v1366_v57   ;;  %v1281_v0 = vpack.c.bf16 %v681_v58, %v680_v52  ;;  %v1361_v1 = vpack.c.bf16 %v713_v59, %v712_v53  ;;  %v466_v2 = vadd.f32 %v1775_v38, %v465_v62 }
  0xf2   :  { %v594_v3 = vadd.f32 %v1775_v38, %v593_v63  ;;  %v1511_v4 = vpop.f32.mrf.mxu0  ;;  %v1543_v5 = vpop.f32.mrf.mxu1  ;;  %v686_v8 = vmax.f32 %v474_v60, 0.0  ;;  %v718_v9 = vmax.f32 %v602_v61, 0.0 }
  0xf3   :  { %1421 = vst [vmem:[%s1940_s3 + $0x20] sm:$0xff] %v1281_v0   ;;  %1437 = vst [vmem:[%s1940_s3 + $0xa0] sm:$0xff] %v1361_v1   ;;  %v477_v6 = vadd.f32 %v1511_v4, %v1775_v38  ;;  %v605_v7 = vadd.f32 %v1543_v5, %v1775_v38  ;;  %v684_v16 = vmax.f32 %v466_v2, 0.0 }
  0xf4   :  { %v468_v10 = vpop.f32.mrf.mxu0  ;;  %v596_v11 = vpop.f32.mrf.mxu1  ;;  %v716_v17 = vmax.f32 %v594_v3, 0.0 }
  0xf5   :  { %v687_v12 = vmax.f32 %v477_v6, 0.0  ;;  %v719_v13 = vmax.f32 %v605_v7, 0.0  ;;  %v469_v14 = vadd.f32 %v1775_v38, %v468_v10  ;;  %v597_v15 = vadd.f32 %v1775_v38, %v596_v11 }
  0xf6   :  { %v1514_v18 = vpop.f32.mrf.mxu0  ;;  %v1546_v19 = vpop.f32.mrf.mxu1 }
  0xf7   :  { %v1296_v20 = vpack.c.bf16 %v687_v12, %v686_v8  ;;  %v1376_v21 = vpack.c.bf16 %v719_v13, %v718_v9  ;;  %v685_v22 = vmax.f32 %v469_v14, 0.0  ;;  %v717_v23 = vmax.f32 %v597_v15, 0.0 }
  0xf8   :  { %v490_v24 = vadd.f32 %v1514_v18, %v1775_v38  ;;  %v618_v25 = vadd.f32 %v1546_v19, %v1775_v38  ;;  %v481_v26 = vpop.f32.mrf.mxu0  ;;  %v609_v27 = vpop.f32.mrf.mxu1 }
  0xf9   :  { %1424 = vst [vmem:[%s1940_s3 + $0x38] sm:$0xff] %v1296_v20   ;;  %1440 = vst [vmem:[%s1940_s3 + $0xb8] sm:$0xff] %v1376_v21   ;;  %v1291_v28 = vpack.c.bf16 %v685_v22, %v684_v16  ;;  %v1371_v29 = vpack.c.bf16 %v717_v23, %v716_v17  ;;  %v482_v30 = vadd.f32 %v1775_v38, %v481_v26 }
  0xfa   :  { %v610_v31 = vadd.f32 %v1775_v38, %v609_v27  ;;  %v1515_v32 = vpop.f32.mrf.mxu0  ;;  %v1547_v33 = vpop.f32.mrf.mxu1  ;;  %v690_v36 = vmax.f32 %v490_v24, 0.0  ;;  %v722_v37 = vmax.f32 %v618_v25, 0.0 }
  0xfb   :  { %1423 = vst [vmem:[%s1940_s3 + $0x30] sm:$0xff] %v1291_v28   ;;  %1439 = vst [vmem:[%s1940_s3 + $0xb0] sm:$0xff] %v1371_v29   ;;  %v493_v34 = vadd.f32 %v1515_v32, %v1775_v38  ;;  %v621_v35 = vadd.f32 %v1547_v33, %v1775_v38  ;;  %v688_v45 = vmax.f32 %v482_v30, 0.0 }
  0xfc   :  { %v484_v39 = vpop.f32.mrf.mxu0  ;;  %v612_v40 = vpop.f32.mrf.mxu1  ;;  %v720_v46 = vmax.f32 %v610_v31, 0.0 }
  0xfd   :  { %v691_v41 = vmax.f32 %v493_v34, 0.0  ;;  %v723_v42 = vmax.f32 %v621_v35, 0.0  ;;  %v485_v43 = vadd.f32 %v1775_v38, %v484_v39  ;;  %v613_v44 = vadd.f32 %v1775_v38, %v612_v40 }
  0xfe   :  { %v1518_v47 = vpop.f32.mrf.mxu0  ;;  %v1550_v48 = vpop.f32.mrf.mxu1 }
  0xff   :  { %v1306_v49 = vpack.c.bf16 %v691_v41, %v690_v36  ;;  %v1386_v50 = vpack.c.bf16 %v723_v42, %v722_v37  ;;  %v689_v51 = vmax.f32 %v485_v43, 0.0  ;;  %v721_v52 = vmax.f32 %v613_v44, 0.0 }
 0x100   :  { %v506_v53 = vadd.f32 %v1518_v47, %v1775_v38  ;;  %v634_v54 = vadd.f32 %v1550_v48, %v1775_v38  ;;  %v497_v55 = vpop.f32.mrf.mxu0  ;;  %v625_v56 = vpop.f32.mrf.mxu1 }
 0x101   :  { %1426 = vst [vmem:[%s1940_s3 + $0x48] sm:$0xff] %v1306_v49   ;;  %1442 = vst [vmem:[%s1940_s3 + $0xc8] sm:$0xff] %v1386_v50   ;;  %v1301_v57 = vpack.c.bf16 %v689_v51, %v688_v45  ;;  %v1381_v58 = vpack.c.bf16 %v721_v52, %v720_v46  ;;  %v498_v59 = vadd.f32 %v1775_v38, %v497_v55 }
 0x102   :  { %v626_v60 = vadd.f32 %v1775_v38, %v625_v56  ;;  %v1519_v61 = vpop.f32.mrf.mxu0  ;;  %v1551_v62 = vpop.f32.mrf.mxu1  ;;  %v694_v1 = vmax.f32 %v506_v53, 0.0  ;;  %v726_v2 = vmax.f32 %v634_v54, 0.0 }
 0x103   :  { %1425 = vst [vmem:[%s1940_s3 + $0x40] sm:$0xff] %v1301_v57   ;;  %1441 = vst [vmem:[%s1940_s3 + $0xc0] sm:$0xff] %v1381_v58   ;;  %v509_v63 = vadd.f32 %v1519_v61, %v1775_v38  ;;  %v637_v0 = vadd.f32 %v1551_v62, %v1775_v38  ;;  %v692_v9 = vmax.f32 %v498_v59, 0.0 }
 0x104   :  { %v500_v3 = vpop.f32.mrf.mxu0  ;;  %v628_v4 = vpop.f32.mrf.mxu1  ;;  %v724_v10 = vmax.f32 %v626_v60, 0.0 }
 0x105   :  { %v695_v5 = vmax.f32 %v509_v63, 0.0  ;;  %v727_v6 = vmax.f32 %v637_v0, 0.0  ;;  %v501_v7 = vadd.f32 %v1775_v38, %v500_v3  ;;  %v629_v8 = vadd.f32 %v1775_v38, %v628_v4 }
 0x106   :  { %v1522_v11 = vpop.f32.mrf.mxu0  ;;  %v1554_v12 = vpop.f32.mrf.mxu1 }
 0x107   :  { %v1316_v13 = vpack.c.bf16 %v695_v5, %v694_v1  ;;  %v1396_v14 = vpack.c.bf16 %v727_v6, %v726_v2  ;;  %v693_v15 = vmax.f32 %v501_v7, 0.0  ;;  %v725_v16 = vmax.f32 %v629_v8, 0.0 }
 0x108   :  { %v522_v17 = vadd.f32 %v1522_v11, %v1775_v38  ;;  %v650_v18 = vadd.f32 %v1554_v12, %v1775_v38  ;;  %v513_v19 = vpop.f32.mrf.mxu0  ;;  %v641_v20 = vpop.f32.mrf.mxu1 }
 0x109   :  { %1428 = vst [vmem:[%s1940_s3 + $0x58] sm:$0xff] %v1316_v13   ;;  %1444 = vst [vmem:[%s1940_s3 + $0xd8] sm:$0xff] %v1396_v14   ;;  %v1311_v21 = vpack.c.bf16 %v693_v15, %v692_v9  ;;  %v1391_v22 = vpack.c.bf16 %v725_v16, %v724_v10  ;;  %v514_v23 = vadd.f32 %v1775_v38, %v513_v19 }
 0x10a   :  { %v642_v24 = vadd.f32 %v1775_v38, %v641_v20  ;;  %v1523_v25 = vpop.f32.mrf.mxu0  ;;  %v1555_v26 = vpop.f32.mrf.mxu1  ;;  %v698_v29 = vmax.f32 %v522_v17, 0.0  ;;  %v730_v30 = vmax.f32 %v650_v18, 0.0 }
 0x10b   :  { %1427 = vst [vmem:[%s1940_s3 + $0x50] sm:$0xff] %v1311_v21   ;;  %1443 = vst [vmem:[%s1940_s3 + $0xd0] sm:$0xff] %v1391_v22   ;;  %v525_v27 = vadd.f32 %v1523_v25, %v1775_v38  ;;  %v653_v28 = vadd.f32 %v1555_v26, %v1775_v38  ;;  %v696_v37 = vmax.f32 %v514_v23, 0.0 }
 0x10c   :  { %v516_v31 = vpop.f32.mrf.mxu0  ;;  %v644_v32 = vpop.f32.mrf.mxu1  ;;  %v728_v39 = vmax.f32 %v642_v24, 0.0 }
 0x10d   :  { %v699_v33 = vmax.f32 %v525_v27, 0.0  ;;  %v731_v34 = vmax.f32 %v653_v28, 0.0  ;;  %v517_v35 = vadd.f32 %v1775_v38, %v516_v31  ;;  %v645_v36 = vadd.f32 %v1775_v38, %v644_v32 }
 0x10e   :  { %v1526_v40 = vpop.f32.mrf.mxu0  ;;  %v1558_v41 = vpop.f32.mrf.mxu1 }
 0x10f   :  { %v1326_v42 = vpack.c.bf16 %v699_v33, %v698_v29  ;;  %v1406_v43 = vpack.c.bf16 %v731_v34, %v730_v30  ;;  %v697_v44 = vmax.f32 %v517_v35, 0.0  ;;  %v729_v45 = vmax.f32 %v645_v36, 0.0 }
 0x110   :  { %v538_v46 = vadd.f32 %v1526_v40, %v1775_v38  ;;  %v666_v47 = vadd.f32 %v1558_v41, %v1775_v38  ;;  %v529_v48 = vpop.f32.mrf.mxu0  ;;  %v657_v49 = vpop.f32.mrf.mxu1 }
 0x111   :  { %1430 = vst [vmem:[%s1940_s3 + $0x68] sm:$0xff] %v1326_v42   ;;  %1446 = vst [vmem:[%s1940_s3 + $0xe8] sm:$0xff] %v1406_v43   ;;  %v1321_v50 = vpack.c.bf16 %v697_v44, %v696_v37  ;;  %v1401_v51 = vpack.c.bf16 %v729_v45, %v728_v39  ;;  %v530_v52 = vadd.f32 %v1775_v38, %v529_v48 }
 0x112   :  { %v658_v53 = vadd.f32 %v1775_v38, %v657_v49  ;;  %v1527_v54 = vpop.f32.mrf.mxu0  ;;  %v1559_v55 = vpop.f32.mrf.mxu1  ;;  %v702_v58 = vmax.f32 %v538_v46, 0.0  ;;  %v734_v59 = vmax.f32 %v666_v47, 0.0 }
 0x113   :  { %1429 = vst [vmem:[%s1940_s3 + $0x60] sm:$0xff] %v1321_v50   ;;  %1445 = vst [vmem:[%s1940_s3 + $0xe0] sm:$0xff] %v1401_v51   ;;  %v541_v56 = vadd.f32 %v1527_v54, %v1775_v38  ;;  %v669_v57 = vadd.f32 %v1559_v55, %v1775_v38  ;;  %v700_v2 = vmax.f32 %v530_v52, 0.0 }
 0x114   :  { %v532_v60 = vpop.f32.mrf.mxu0  ;;  %v660_v61 = vpop.f32.mrf.mxu1  ;;  %v732_v3 = vmax.f32 %v658_v53, 0.0 }
 0x115   :  { %v703_v62 = vmax.f32 %v541_v56, 0.0  ;;  %v735_v63 = vmax.f32 %v669_v57, 0.0  ;;  %v533_v0 = vadd.f32 %v1775_v38, %v532_v60  ;;  %v661_v1 = vadd.f32 %v1775_v38, %v660_v61 }
 0x117   :  { %v1336_v4 = vpack.c.bf16 %v703_v62, %v702_v58  ;;  %v1416_v5 = vpack.c.bf16 %v735_v63, %v734_v59  ;;  %v701_v6 = vmax.f32 %v533_v0, 0.0  ;;  %v733_v7 = vmax.f32 %v661_v1, 0.0 }
 0x119   :  { %1432 = vst [vmem:[%s1940_s3 + $0x78] sm:$0xff] %v1336_v4   ;;  %1448 = vst [vmem:[%s1940_s3 + $0xf8] sm:$0xff] %v1416_v5   ;;  %v1331_v8 = vpack.c.bf16 %v701_v6, %v700_v2  ;;  %v1411_v9 = vpack.c.bf16 %v733_v7, %v732_v3 }
 0x11b   :  { %1431 = vst [vmem:[%s1940_s3 + $0x70] sm:$0xff] %v1331_v8   ;;  %1447 = vst [vmem:[%s1940_s3 + $0xf0] sm:$0xff] %v1411_v9  }

// kernel: fwd.23
= control target key start
LH: loop header
LB: loop body
LE: loop exit
PB: predicated region body
PF: predicated region fallthrough
CT: control target
= control target key end

     0   :  { %v1028_v0 = vmov 0   ;;  %vm422_vm0 = vcmask 392192   ;;  %s1290_s1 = inlined_call_operand.vmem [shape: bf16[432,128], index: 1, kind: input, shape index: {}]   ;;  %s1291_s0 = inlined_call_operand.vmem [shape: bf16[128,432], index: 0, kind: input, shape index: {}]   ;;  %s1292_s2 = inlined_call_operand.vmem [shape: f32[1,128], index: 2, kind: input, shape index: {}]   ;;  %s1293_s3 = inlined_call_operand.vmem [shape: bf16[128,128], index: 3, kind: output, shape index: {}]  }
   0x1   :  { %544 = vmatprep.subr.bf16.mxu1 %v1028_v0  ;;  %v953_v1 = vld [vmem:[%s1290_s1 + $0x78] sm:$0xff]   ;;  %v956_v4 = vld [vmem:[%s1290_s1 + $0x70] sm:$0xff]   ;;  %v959_v7 = vld [vmem:[%s1290_s1 + $0x68] sm:$0xff]  }
   0x2   :  { %v954_v2 = vld [vmem:[%s1290_s1 + $0xb8] sm:$0xff]   ;;  %888 = vmatprep.subr.bf16.mxu0 %v953_v1  ;;  %v957_v5 = vld [vmem:[%s1290_s1 + $0xb0] sm:$0xff]   ;;  %v960_v8 = vld [vmem:[%s1290_s1 + $0xa8] sm:$0xff]  }
   0x3   :  { %v955_v3 = vld [vmem:[%s1290_s1 + $0x38] sm:$0xff]   ;;  %545 = vmatpush1.bf16.msra.mxu1 %v954_v2  ;;  %v958_v6 = vld [vmem:[%s1290_s1 + $0x30] sm:$0xff]   ;;  %v961_v9 = vld [vmem:[%s1290_s1 + $0x28] sm:$0xff]  }
   0x4   :  { %889 = vmatpush3.bf16.msra.mxu0 %v955_v3  ;;  %546 = vmatprep.subr.bf16.mxu1 %v1028_v0  ;;  %v962_v10 = vld [vmem:[%s1290_s1 + $0x60] sm:$0xff]   ;;  %v965_v13 = vld [vmem:[%s1290_s1 + $0x58] sm:$0xff]   ;;  %v968_v16 = vld [vmem:[%s1290_s1 + $0x50] sm:$0xff]  }
   0x5   :  { %890 = vmatprep.subr.bf16.mxu0 %v956_v4  ;;  %v963_v11 = vld [vmem:[%s1290_s1 + $0xa0] sm:$0xff]   ;;  %v966_v14 = vld [vmem:[%s1290_s1 + $0x98] sm:$0xff]   ;;  %v969_v17 = vld [vmem:[%s1290_s1 + $0x90] sm:$0xff]  }
   0x6   :  { %v964_v12 = vld [vmem:[%s1290_s1 + $0x20] sm:$0xff]   ;;  %v967_v15 = vld [vmem:[%s1290_s1 + $0x18] sm:$0xff]   ;;  %v970_v18 = vld [vmem:[%s1290_s1 + $0x10] sm:$0xff]  }
   0x7   :  { %547 = vmatpush1.bf16.msra.mxu1 %v957_v5  ;;  %v971_v19 = vld [vmem:[%s1290_s1 + $0x48] sm:$0xff]   ;;  %v974_v22 = vld [vmem:[%s1290_s1 + $0x40] sm:$0xff]   ;;  %v980_v28 = vld [vmem:[%s1290_s1 + $0xd0] sm:$0xff]  }
   0x8   :  { %891 = vmatpush3.bf16.msra.mxu0 %v958_v6  ;;  %548 = vmatprep.subr.bf16.mxu1 %v1028_v0  ;;  %v972_v20 = vld [vmem:[%s1290_s1 + $0x88] sm:$0xff]   ;;  %v979_v23 = vld [vmem:[%s1291_s0 + $0x4] ss:$16 sps:$4 sm:$0xff]   ;;  %v977_v26 = vld [vmem:[%s1291_s0] ss:$16 sps:$4 sm:$0xff]  }
   0x9   :  { %892 = vmatprep.subr.bf16.mxu0 %v959_v7  ;;  %v973_v21 = vld [vmem:[%s1290_s1 + $0x8] sm:$0xff]   ;;  %v975_v24 = vld [vmem:[%s1290_s1 + $0x80] sm:$0xff]   ;;  %479 = vmatprep.mubr.bf16.mxu0 %v979_v23 }
   0xa   :  { %v976_v25 = vld [vmem:[%s1290_s1] sm:$0xff]   ;;  %v988_v27 = vld [vmem:[%s1291_s0 + $0xc] ss:$16 sps:$4 sm:$0xff]   ;;  %v986_v34 = vld [vmem:[%s1291_s0 + $0x8] ss:$16 sps:$4 sm:$0xff]  }
   0xb   :  { %549 = vmatpush1.bf16.msra.mxu1 %v960_v8  ;;  %v982_v29 = vld [vmem:[%s1291_s0 + $0x24] ss:$16 sps:$4 sm:$0xff]   ;;  %801 = vmatprep.mubr.msk.bf16.mxu1 %vm422_vm0, %v988_v27  ;;  %v981_v30 = vld [vmem:[%s1290_s1 + $0xc8] sm:$0xff]   ;;  %v984_v31 = vld [vmem:[%s1291_s0 + $0x20] ss:$16 sps:$4 sm:$0xff]  }
   0xc   :  { %893 = vmatpush3.bf16.msra.mxu0 %v961_v9  ;;  %550 = vmatprep.subr.bf16.mxu1 %v1028_v0  ;;  %v985_v32 = vld [vmem:[%s1290_s1 + $0xc0] sm:$0xff]   ;;  %v992_v35 = vld [vmem:[%s1291_s0 + $0x2c] ss:$16 sps:$4 sm:$0xff]   ;;  %v994_v38 = vld [vmem:[%s1291_s0 + $0x28] ss:$16 sps:$4 sm:$0xff]  }
   0xd   :  { %894 = vmatprep.subr.bf16.mxu0 %v962_v10  ;;  %v989_v33 = vld [vmem:[%s1291_s0 + $0x44] ss:$16 sps:$4 sm:$0xff]   ;;  %v991_v36 = vld [vmem:[%s1291_s0 + $0x40] ss:$16 sps:$4 sm:$0xff]   ;;  %v998_v39 = vld [vmem:[%s1291_s0 + $0x4c] ss:$16 sps:$4 sm:$0xff]  }
   0xe   :  { %v995_v37 = vld [vmem:[%s1291_s0 + $0x64] ss:$16 sps:$4 sm:$0xff]   ;;  %v997_v40 = vld [vmem:[%s1291_s0 + $0x60] ss:$16 sps:$4 sm:$0xff]   ;;  %v1000_v42 = vld [vmem:[%s1291_s0 + $0x48] ss:$16 sps:$4 sm:$0xff]  }
   0xf   :  { %551 = vmatpush1.bf16.msra.mxu1 %v963_v11  ;;  %v1001_v41 = vld [vmem:[%s1291_s0 + $0x84] ss:$16 sps:$4 sm:$0xff]   ;;  %v1004_v43 = vld [vmem:[%s1291_s0 + $0x6c] ss:$16 sps:$4 sm:$0xff]   ;;  %v1003_v44 = vld [vmem:[%s1291_s0 + $0x80] ss:$16 sps:$4 sm:$0xff]  }
  0x10   :  { %895 = vmatpush3.bf16.msra.mxu0 %v964_v12  ;;  %552 = vmatprep.subr.bf16.mxu1 %v1028_v0  ;;  %v1007_v45 = vld [vmem:[%s1291_s0 + $0xa4] ss:$16 sps:$4 sm:$0xff]   ;;  %v1006_v46 = vld [vmem:[%s1291_s0 + $0x68] ss:$16 sps:$4 sm:$0xff]   ;;  %v1010_v47 = vld [vmem:[%s1291_s0 + $0x8c] ss:$16 sps:$4 sm:$0xff]  }
  0x11   :  { %896 = vmatprep.subr.bf16.mxu0 %v965_v13  ;;  %v1009_v48 = vld [vmem:[%s1291_s0 + $0xa0] ss:$16 sps:$4 sm:$0xff]   ;;  %v1013_v49 = vld [vmem:[%s1291_s0 + $0xc4] ss:$16 sps:$4 sm:$0xff]   ;;  %v1012_v50 = vld [vmem:[%s1291_s0 + $0x88] ss:$16 sps:$4 sm:$0xff]  }
  0x12   :  { %v1016_v51 = vld [vmem:[%s1291_s0 + $0xac] ss:$16 sps:$4 sm:$0xff]   ;;  %v1015_v52 = vld [vmem:[%s1291_s0 + $0xc0] ss:$16 sps:$4 sm:$0xff]   ;;  %v1019_v53 = vld [vmem:[%s1291_s0 + $0xe4] ss:$16 sps:$4 sm:$0xff]  }
  0x13   :  { %553 = vmatpush1.bf16.msra.mxu1 %v966_v14  ;;  %v1018_v54 = vld [vmem:[%s1291_s0 + $0xa8] ss:$16 sps:$4 sm:$0xff]   ;;  %v1022_v55 = vld [vmem:[%s1291_s0 + $0xcc] ss:$16 sps:$4 sm:$0xff]   ;;  %v1021_v56 = vld [vmem:[%s1291_s0 + $0xe0] ss:$16 sps:$4 sm:$0xff]  }
  0x14   :  { %897 = vmatpush3.bf16.msra.mxu0 %v967_v15  ;;  %554 = vmatprep.subr.bf16.mxu1 %v1028_v0  ;;  %v1024_v57 = vld [vmem:[%s1291_s0 + $0xc8] ss:$16 sps:$4 sm:$0xff]   ;;  %v1025_v58 = vld [vmem:[%s1291_s0 + $0xec] ss:$16 sps:$4 sm:$0xff]   ;;  %v1248_v2 = vld [vmem:[%s1292_s2] ss:$0 sm:$0xff] }
  0x15   :  { %898 = vmatprep.subr.bf16.mxu0 %v968_v16  ;;  %v1027_v59 = vld [vmem:[%s1291_s0 + $0xe8] ss:$16 sps:$4 sm:$0xff]  }
  0x17   :  { %555 = vmatpush1.bf16.msra.mxu1 %v969_v17 }
  0x18   :  { %899 = vmatpush3.bf16.msra.mxu0 %v970_v18  ;;  %556 = vmatprep.subr.bf16.mxu1 %v1028_v0 }
  0x19   :  { %900 = vmatprep.subr.bf16.mxu0 %v971_v19 }
  0x1b   :  { %557 = vmatpush1.bf16.msra.mxu1 %v972_v20 }
  0x1c   :  { %901 = vmatpush3.bf16.msra.mxu0 %v973_v21  ;;  %558 = vmatprep.subr.bf16.mxu1 %v1028_v0 }
  0x1d   :  { %902 = vmatprep.subr.bf16.mxu0 %v974_v22 }
  0x1f   :  { %559 = vmatpush1.bf16.msra.mxu1 %v975_v24 }
  0x20   :  { %903 = vmatpush3.bf16.msra.mxu0 %v976_v25  ;;  %570 = vmatprep.subr.bf16.mxu1 %v1028_v0 }
  0x23   :  { %480 = vmatmul.mubr.bf16.vlgmr.msra.gmra.mxu0 %v977_v26  ;;  %571 = vmatpush2.bf16.msra.mxu1 %v980_v28 }
  0x24   :  { %572 = vmatprep.subr.bf16.mxu1 %v1028_v0  ;;  %487 = vmatprep.mubr.bf16.mxu0 %v982_v29 }
  0x27   :  { %573 = vmatpush2.bf16.msra.mxu1 %v981_v30 }
  0x28   :  { %574 = vmatprep.subr.bf16.mxu1 %v1028_v0 }
  0x2b   :  { %488 = vmatmul.mubr.bf16.gmra.mxu0 %v984_v31  ;;  %575 = vmatpush2.bf16.msra.mxu1 %v985_v32 }
  0x2c   :  { %495 = vmatprep.mubr.bf16.mxu0 %v989_v33 }
  0x2e   :  { %577 = vmatmul.mubr.bf16.vlgmr.msra.gmra.mxu1 %v986_v34 }
  0x2f   :  { %802 = vmatprep.mubr.msk.bf16.mxu1 %vm422_vm0, %v992_v35 }
  0x33   :  { %496 = vmatmul.mubr.bf16.gmra.mxu0 %v991_v36 }
  0x34   :  { %503 = vmatprep.mubr.bf16.mxu0 %v995_v37 }
  0x36   :  { %585 = vmatmul.mubr.bf16.gmra.mxu1 %v994_v38 }
  0x37   :  { %803 = vmatprep.mubr.msk.bf16.mxu1 %vm422_vm0, %v998_v39 }
  0x3b   :  { %504 = vmatmul.mubr.bf16.gmra.mxu0 %v997_v40 }
  0x3c   :  { %511 = vmatprep.mubr.bf16.mxu0 %v1001_v41 }
  0x3e   :  { %593 = vmatmul.mubr.bf16.gmra.mxu1 %v1000_v42 }
  0x3f   :  { %804 = vmatprep.mubr.msk.bf16.mxu1 %vm422_vm0, %v1004_v43 }
  0x43   :  { %512 = vmatmul.mubr.bf16.gmra.mxu0 %v1003_v44 }
  0x44   :  { %519 = vmatprep.mubr.bf16.mxu0 %v1007_v45 }
  0x46   :  { %601 = vmatmul.mubr.bf16.gmra.mxu1 %v1006_v46 }
  0x47   :  { %805 = vmatprep.mubr.msk.bf16.mxu1 %vm422_vm0, %v1010_v47 }
  0x4b   :  { %520 = vmatmul.mubr.bf16.gmra.mxu0 %v1009_v48 }
  0x4c   :  { %527 = vmatprep.mubr.bf16.mxu0 %v1013_v49 }
  0x4e   :  { %609 = vmatmul.mubr.bf16.gmra.mxu1 %v1012_v50 }
  0x4f   :  { %806 = vmatprep.mubr.msk.bf16.mxu1 %vm422_vm0, %v1016_v51 }
  0x53   :  { %528 = vmatmul.mubr.bf16.gmra.mxu0 %v1015_v52 }
  0x54   :  { %535 = vmatprep.mubr.bf16.mxu0 %v1019_v53 }
  0x56   :  { %617 = vmatmul.mubr.bf16.gmra.mxu1 %v1018_v54 }
  0x57   :  { %807 = vmatprep.mubr.msk.bf16.mxu1 %vm422_vm0, %v1022_v55 }
  0x5b   :  { %536 = vmatmul.mubr.bf16.gmra.mxu0 %v1021_v56 }
  0x5e   :  { %625 = vmatmul.mubr.bf16.gmra.mxu1 %v1024_v57 }
  0x5f   :  { %808 = vmatprep.mubr.msk.bf16.mxu1 %vm422_vm0, %v1025_v58 }
  0x66   :  { %633 = vmatmul.mubr.bf16.gmra.mxu1 %v1027_v59 }
  0xe3   :  { %v904_v60 = vpop.f32.mrf.mxu0 }
  0xe5   :  { %v905_v61 = vpop.f32.mrf.mxu0 }
  0xe6   :  { %v906_v0 = vadd.f32 %v905_v61, %v904_v60 }
  0xe7   :  { %v907_v62 = vpop.f32.mrf.mxu0 }
  0xe8   :  { %v482_v6 = vadd.f32 %v906_v0, %v1248_v2 }
  0xe9   :  { %v908_v63 = vpop.f32.mrf.mxu0 }
  0xea   :  { %v909_v3 = vadd.f32 %v908_v63, %v907_v62 }
  0xeb   :  { %v910_v1 = vpop.f32.mrf.mxu0 }
  0xec   :  { %v485_v11 = vadd.f32 %v909_v3, %v1248_v2 }
  0xed   :  { %v911_v4 = vpop.f32.mrf.mxu0 }
  0xee   :  { %v578_v5 = vpop.f32.mrf.mxu1  ;;  %v912_v13 = vadd.f32 %v911_v4, %v910_v1 }
  0xef   :  { %v913_v7 = vpop.f32.mrf.mxu0  ;;  %v579_v9 = vadd.f32 %v578_v5, %v482_v6 }
  0xf0   :  { %v580_v8 = vpop.f32.mrf.mxu1  ;;  %v490_v23 = vadd.f32 %v912_v13, %v1248_v2 }
  0xf1   :  { %v914_v10 = vpop.f32.mrf.mxu0  ;;  %v641_v17 = vmax.f32 %v579_v9, 0.0 }
  0xf2   :  { %v581_v12 = vpop.f32.mrf.mxu1  ;;  %v915_v18 = vadd.f32 %v914_v10, %v913_v7 }
  0xf3   :  { %v582_v14 = vadd.f32 %v581_v12, %v485_v11  ;;  %v916_v15 = vpop.f32.mrf.mxu0 }
  0xf4   :  { %v583_v16 = vpop.f32.mrf.mxu1  ;;  %v493_v28 = vadd.f32 %v915_v18, %v1248_v2 }
  0xf5   :  { %v642_v19 = vmax.f32 %v582_v14, 0.0  ;;  %v917_v20 = vpop.f32.mrf.mxu0 }
  0xf6   :  { %v586_v21 = vpop.f32.mrf.mxu1  ;;  %v918_v30 = vadd.f32 %v917_v20, %v916_v15 }
  0xf7   :  { %v844_v22 = vpack.c.bf16 %v642_v19, %v641_v17  ;;  %v919_v24 = vpop.f32.mrf.mxu0  ;;  %v587_v26 = vadd.f32 %v586_v21, %v490_v23 }
  0xf8   :  { %v588_v25 = vpop.f32.mrf.mxu1  ;;  %v498_v40 = vadd.f32 %v918_v30, %v1248_v2 }
  0xf9   :  { %845 = vst [vmem:[%s1293_s3] sm:$0xff] %v844_v22   ;;  %v920_v27 = vpop.f32.mrf.mxu0  ;;  %v643_v34 = vmax.f32 %v587_v26, 0.0 }
  0xfa   :  { %v589_v29 = vpop.f32.mrf.mxu1  ;;  %v921_v35 = vadd.f32 %v920_v27, %v919_v24 }
  0xfb   :  { %v590_v31 = vadd.f32 %v589_v29, %v493_v28  ;;  %v922_v32 = vpop.f32.mrf.mxu0 }
  0xfc   :  { %v591_v33 = vpop.f32.mrf.mxu1  ;;  %v501_v45 = vadd.f32 %v921_v35, %v1248_v2 }
  0xfd   :  { %v644_v36 = vmax.f32 %v590_v31, 0.0  ;;  %v923_v37 = vpop.f32.mrf.mxu0 }
  0xfe   :  { %v594_v38 = vpop.f32.mrf.mxu1  ;;  %v924_v47 = vadd.f32 %v923_v37, %v922_v32 }
  0xff   :  { %v849_v39 = vpack.c.bf16 %v644_v36, %v643_v34  ;;  %v925_v41 = vpop.f32.mrf.mxu0  ;;  %v595_v43 = vadd.f32 %v594_v38, %v498_v40 }
 0x100   :  { %v596_v42 = vpop.f32.mrf.mxu1  ;;  %v506_v57 = vadd.f32 %v924_v47, %v1248_v2 }
 0x101   :  { %881 = vst [vmem:[%s1293_s3 + $0x8] sm:$0xff] %v849_v39   ;;  %v926_v44 = vpop.f32.mrf.mxu0  ;;  %v645_v51 = vmax.f32 %v595_v43, 0.0 }
 0x102   :  { %v597_v46 = vpop.f32.mrf.mxu1  ;;  %v927_v52 = vadd.f32 %v926_v44, %v925_v41 }
 0x103   :  { %v598_v48 = vadd.f32 %v597_v46, %v501_v45  ;;  %v928_v49 = vpop.f32.mrf.mxu0 }
 0x104   :  { %v599_v50 = vpop.f32.mrf.mxu1  ;;  %v509_v62 = vadd.f32 %v927_v52, %v1248_v2 }
 0x105   :  { %v646_v53 = vmax.f32 %v598_v48, 0.0  ;;  %v929_v54 = vpop.f32.mrf.mxu0 }
 0x106   :  { %v602_v55 = vpop.f32.mrf.mxu1  ;;  %v930_v0 = vadd.f32 %v929_v54, %v928_v49 }
 0x107   :  { %v854_v56 = vpack.c.bf16 %v646_v53, %v645_v51  ;;  %v931_v58 = vpop.f32.mrf.mxu0  ;;  %v603_v60 = vadd.f32 %v602_v55, %v506_v57 }
 0x108   :  { %v604_v59 = vpop.f32.mrf.mxu1  ;;  %v514_v11 = vadd.f32 %v930_v0, %v1248_v2 }
 0x109   :  { %882 = vst [vmem:[%s1293_s3 + $0x10] sm:$0xff] %v854_v56   ;;  %v932_v61 = vpop.f32.mrf.mxu0  ;;  %v647_v5 = vmax.f32 %v603_v60, 0.0 }
 0x10a   :  { %v605_v63 = vpop.f32.mrf.mxu1  ;;  %v933_v6 = vadd.f32 %v932_v61, %v931_v58 }
 0x10b   :  { %v606_v1 = vadd.f32 %v605_v63, %v509_v62  ;;  %v934_v3 = vpop.f32.mrf.mxu0 }
 0x10c   :  { %v607_v4 = vpop.f32.mrf.mxu1  ;;  %v517_v16 = vadd.f32 %v933_v6, %v1248_v2 }
 0x10d   :  { %v648_v7 = vmax.f32 %v606_v1, 0.0  ;;  %v935_v8 = vpop.f32.mrf.mxu0 }
 0x10e   :  { %v610_v9 = vpop.f32.mrf.mxu1  ;;  %v936_v18 = vadd.f32 %v935_v8, %v934_v3 }
 0x10f   :  { %v859_v10 = vpack.c.bf16 %v648_v7, %v647_v5  ;;  %v937_v12 = vpop.f32.mrf.mxu0  ;;  %v611_v14 = vadd.f32 %v610_v9, %v514_v11 }
 0x110   :  { %v612_v13 = vpop.f32.mrf.mxu1  ;;  %v522_v28 = vadd.f32 %v936_v18, %v1248_v2 }
 0x111   :  { %883 = vst [vmem:[%s1293_s3 + $0x18] sm:$0xff] %v859_v10   ;;  %v938_v15 = vpop.f32.mrf.mxu0  ;;  %v649_v22 = vmax.f32 %v611_v14, 0.0 }
 0x112   :  { %v613_v17 = vpop.f32.mrf.mxu1  ;;  %v939_v23 = vadd.f32 %v938_v15, %v937_v12 }
 0x113   :  { %v614_v19 = vadd.f32 %v613_v17, %v517_v16  ;;  %v940_v20 = vpop.f32.mrf.mxu0 }
 0x114   :  { %v615_v21 = vpop.f32.mrf.mxu1  ;;  %v525_v33 = vadd.f32 %v939_v23, %v1248_v2 }
 0x115   :  { %v650_v24 = vmax.f32 %v614_v19, 0.0  ;;  %v941_v25 = vpop.f32.mrf.mxu0 }
 0x116   :  { %v618_v26 = vpop.f32.mrf.mxu1  ;;  %v942_v35 = vadd.f32 %v941_v25, %v940_v20 }
 0x117   :  { %v864_v27 = vpack.c.bf16 %v650_v24, %v649_v22  ;;  %v943_v29 = vpop.f32.mrf.mxu0  ;;  %v619_v31 = vadd.f32 %v618_v26, %v522_v28 }
 0x118   :  { %v620_v30 = vpop.f32.mrf.mxu1  ;;  %v530_v45 = vadd.f32 %v942_v35, %v1248_v2 }
 0x119   :  { %884 = vst [vmem:[%s1293_s3 + $0x20] sm:$0xff] %v864_v27   ;;  %v944_v32 = vpop.f32.mrf.mxu0  ;;  %v651_v39 = vmax.f32 %v619_v31, 0.0 }
 0x11a   :  { %v621_v34 = vpop.f32.mrf.mxu1  ;;  %v945_v40 = vadd.f32 %v944_v32, %v943_v29 }
 0x11b   :  { %v622_v36 = vadd.f32 %v621_v34, %v525_v33  ;;  %v946_v37 = vpop.f32.mrf.mxu0 }
 0x11c   :  { %v623_v38 = vpop.f32.mrf.mxu1  ;;  %v533_v49 = vadd.f32 %v945_v40, %v1248_v2 }
 0x11d   :  { %v652_v41 = vmax.f32 %v622_v36, 0.0  ;;  %v947_v42 = vpop.f32.mrf.mxu0 }
 0x11e   :  { %v626_v43 = vpop.f32.mrf.mxu1  ;;  %v948_v52 = vadd.f32 %v947_v42, %v946_v37 }
 0x11f   :  { %v869_v44 = vpack.c.bf16 %v652_v41, %v651_v39  ;;  %v949_v46 = vpop.f32.mrf.mxu0  ;;  %v627_v48 = vadd.f32 %v626_v43, %v530_v45 }
 0x120   :  { %v628_v47 = vpop.f32.mrf.mxu1  ;;  %v538_v60 = vadd.f32 %v948_v52, %v1248_v2 }
 0x121   :  { %885 = vst [vmem:[%s1293_s3 + $0x28] sm:$0xff] %v869_v44   ;;  %v950_v50 = vpop.f32.mrf.mxu0  ;;  %v653_v55 = vmax.f32 %v627_v48, 0.0 }
 0x122   :  { %v629_v51 = vpop.f32.mrf.mxu1  ;;  %v951_v56 = vadd.f32 %v950_v50, %v949_v46 }
 0x123   :  { %v630_v53 = vadd.f32 %v629_v51, %v533_v49 }
 0x124   :  { %v631_v54 = vpop.f32.mrf.mxu1  ;;  %v541_v63 = vadd.f32 %v951_v56, %v1248_v2 }
 0x125   :  { %v654_v57 = vmax.f32 %v630_v53, 0.0 }
 0x126   :  { %v634_v58 = vpop.f32.mrf.mxu1 }
 0x127   :  { %v874_v59 = vpack.c.bf16 %v654_v57, %v653_v55  ;;  %v635_v62 = vadd.f32 %v634_v58, %v538_v60 }
 0x128   :  { %v636_v61 = vpop.f32.mrf.mxu1 }
 0x129   :  { %886 = vst [vmem:[%s1293_s3 + $0x30] sm:$0xff] %v874_v59   ;;  %v655_v4 = vmax.f32 %v635_v62, 0.0 }
 0x12a   :  { %v637_v0 = vpop.f32.mrf.mxu1 }
 0x12b   :  { %v638_v1 = vadd.f32 %v637_v0, %v541_v63 }
 0x12c   :  { %v639_v3 = vpop.f32.mrf.mxu1 }
 0x12d   :  { %v656_v5 = vmax.f32 %v638_v1, 0.0 }
 0x12f   :  { %v879_v6 = vpack.c.bf16 %v656_v5, %v655_v4 }
 0x131   :  { %887 = vst [vmem:[%s1293_s3 + $0x38] sm:$0xff] %v879_v6  }

// kernel: fwd.25
= control target key start
LH: loop header
LB: loop body
LE: loop exit
PB: predicated region body
PF: predicated region fallthrough
CT: control target
= control target key end

     0   :  { %v542_v0 = vmov 0   ;;  %vm284_vm0 = vcmask 392192   ;;  %s690_s1 = inlined_call_operand.vmem [shape: bf16[432,128], index: 1, kind: input, shape index: {}]   ;;  %s691_s0 = inlined_call_operand.vmem [shape: bf16[32,432], index: 0, kind: input, shape index: {}]   ;;  %s692_s2 = inlined_call_operand.vmem [shape: f32[1,128], index: 2, kind: input, shape index: {}]   ;;  %s693_s3 = inlined_call_operand.vmem [shape: bf16[32,128], index: 3, kind: output, shape index: {}]  }
   0x1   :  { %340 = vmatprep.subr.bf16.mxu1 %v542_v0  ;;  %v503_v1 = vld [vmem:[%s690_s1 + $0x78] sm:$0xff]   ;;  %v506_v4 = vld [vmem:[%s690_s1 + $0x70] sm:$0xff]   ;;  %v509_v7 = vld [vmem:[%s690_s1 + $0x68] sm:$0xff]  }
   0x2   :  { %v504_v2 = vld [vmem:[%s690_s1 + $0xb8] sm:$0xff]   ;;  %474 = vmatprep.subr.bf16.mxu0 %v503_v1  ;;  %v507_v5 = vld [vmem:[%s690_s1 + $0xb0] sm:$0xff]   ;;  %v510_v8 = vld [vmem:[%s690_s1 + $0xa8] sm:$0xff]  }
   0x3   :  { %v505_v3 = vld [vmem:[%s690_s1 + $0x38] sm:$0xff]   ;;  %341 = vmatpush1.bf16.msra.mxu1 %v504_v2  ;;  %v508_v6 = vld [vmem:[%s690_s1 + $0x30] sm:$0xff]   ;;  %v511_v9 = vld [vmem:[%s690_s1 + $0x28] sm:$0xff]  }
   0x4   :  { %475 = vmatpush3.bf16.msra.mxu0 %v505_v3  ;;  %342 = vmatprep.subr.bf16.mxu1 %v542_v0  ;;  %v512_v10 = vld [vmem:[%s690_s1 + $0x60] sm:$0xff]   ;;  %v515_v13 = vld [vmem:[%s690_s1 + $0x58] sm:$0xff]   ;;  %v518_v16 = vld [vmem:[%s690_s1 + $0x50] sm:$0xff]  }
   0x5   :  { %476 = vmatprep.subr.bf16.mxu0 %v506_v4  ;;  %v513_v11 = vld [vmem:[%s690_s1 + $0xa0] sm:$0xff]   ;;  %v516_v14 = vld [vmem:[%s690_s1 + $0x98] sm:$0xff]   ;;  %v519_v17 = vld [vmem:[%s690_s1 + $0x90] sm:$0xff]  }
   0x6   :  { %v514_v12 = vld [vmem:[%s690_s1 + $0x20] sm:$0xff]   ;;  %v517_v15 = vld [vmem:[%s690_s1 + $0x18] sm:$0xff]   ;;  %v520_v18 = vld [vmem:[%s690_s1 + $0x10] sm:$0xff]  }
   0x7   :  { %343 = vmatpush1.bf16.msra.mxu1 %v507_v5  ;;  %v521_v19 = vld [vmem:[%s690_s1 + $0x48] sm:$0xff]   ;;  %v524_v22 = vld [vmem:[%s690_s1 + $0x40] sm:$0xff]   ;;  %v530_v28 = vld [vmem:[%s690_s1 + $0xd0] sm:$0xff]  }
   0x8   :  { %477 = vmatpush3.bf16.msra.mxu0 %v508_v6  ;;  %344 = vmatprep.subr.bf16.mxu1 %v542_v0  ;;  %v522_v20 = vld [vmem:[%s690_s1 + $0x88] sm:$0xff]   ;;  %v529_v23 = vld [vmem:[%s691_s0 + $0x4] ss:$16 sps:$4 sm:$0xff]   ;;  %v527_v26 = vld [vmem:[%s691_s0] ss:$16 sps:$4 sm:$0xff]  }
   0x9   :  { %478 = vmatprep.subr.bf16.mxu0 %v509_v7  ;;  %v523_v21 = vld [vmem:[%s690_s1 + $0x8] sm:$0xff]   ;;  %v525_v24 = vld [vmem:[%s690_s1 + $0x80] sm:$0xff]   ;;  %323 = vmatprep.mubr.bf16.mxu0 %v529_v23 }
   0xa   :  { %v526_v25 = vld [vmem:[%s690_s1] sm:$0xff]   ;;  %v538_v27 = vld [vmem:[%s691_s0 + $0xc] ss:$16 sps:$4 sm:$0xff]   ;;  %v536_v33 = vld [vmem:[%s691_s0 + $0x8] ss:$16 sps:$4 sm:$0xff]  }
   0xb   :  { %345 = vmatpush1.bf16.msra.mxu1 %v510_v8  ;;  %v532_v29 = vld [vmem:[%s691_s0 + $0x24] ss:$16 sps:$4 sm:$0xff]   ;;  %453 = vmatprep.mubr.msk.bf16.mxu1 %vm284_vm0, %v538_v27  ;;  %v531_v30 = vld [vmem:[%s690_s1 + $0xc8] sm:$0xff]   ;;  %v534_v31 = vld [vmem:[%s691_s0 + $0x20] ss:$16 sps:$4 sm:$0xff]  }
   0xc   :  { %479 = vmatpush3.bf16.msra.mxu0 %v511_v9  ;;  %346 = vmatprep.subr.bf16.mxu1 %v542_v0  ;;  %v535_v32 = vld [vmem:[%s690_s1 + $0xc0] sm:$0xff]   ;;  %v539_v34 = vld [vmem:[%s691_s0 + $0x2c] ss:$16 sps:$4 sm:$0xff]   ;;  %v541_v35 = vld [vmem:[%s691_s0 + $0x28] ss:$16 sps:$4 sm:$0xff]  }
   0xd   :  { %480 = vmatprep.subr.bf16.mxu0 %v512_v10  ;;  %v417_v42 = vld [vmem:[%s692_s2] ss:$0 sm:$0xff] }
   0xf   :  { %347 = vmatpush1.bf16.msra.mxu1 %v513_v11 }
  0x10   :  { %481 = vmatpush3.bf16.msra.mxu0 %v514_v12  ;;  %348 = vmatprep.subr.bf16.mxu1 %v542_v0 }
  0x11   :  { %482 = vmatprep.subr.bf16.mxu0 %v515_v13 }
  0x13   :  { %349 = vmatpush1.bf16.msra.mxu1 %v516_v14 }
  0x14   :  { %483 = vmatpush3.bf16.msra.mxu0 %v517_v15  ;;  %350 = vmatprep.subr.bf16.mxu1 %v542_v0 }
  0x15   :  { %484 = vmatprep.subr.bf16.mxu0 %v518_v16 }
  0x17   :  { %351 = vmatpush1.bf16.msra.mxu1 %v519_v17 }
  0x18   :  { %485 = vmatpush3.bf16.msra.mxu0 %v520_v18  ;;  %352 = vmatprep.subr.bf16.mxu1 %v542_v0 }
  0x19   :  { %486 = vmatprep.subr.bf16.mxu0 %v521_v19 }
  0x1b   :  { %353 = vmatpush1.bf16.msra.mxu1 %v522_v20 }
  0x1c   :  { %487 = vmatpush3.bf16.msra.mxu0 %v523_v21  ;;  %354 = vmatprep.subr.bf16.mxu1 %v542_v0 }
  0x1d   :  { %488 = vmatprep.subr.bf16.mxu0 %v524_v22 }
  0x1f   :  { %355 = vmatpush1.bf16.msra.mxu1 %v525_v24 }
  0x20   :  { %489 = vmatpush3.bf16.msra.mxu0 %v526_v25  ;;  %366 = vmatprep.subr.bf16.mxu1 %v542_v0 }
  0x23   :  { %324 = vmatmul.mubr.bf16.vlgmr.msra.gmra.mxu0 %v527_v26  ;;  %367 = vmatpush2.bf16.msra.mxu1 %v530_v28 }
  0x24   :  { %368 = vmatprep.subr.bf16.mxu1 %v542_v0  ;;  %331 = vmatprep.mubr.bf16.mxu0 %v532_v29 }
  0x27   :  { %369 = vmatpush2.bf16.msra.mxu1 %v531_v30 }
  0x28   :  { %370 = vmatprep.subr.bf16.mxu1 %v542_v0 }
  0x2b   :  { %332 = vmatmul.mubr.bf16.gmra.mxu0 %v534_v31  ;;  %371 = vmatpush2.bf16.msra.mxu1 %v535_v32 }
  0x2e   :  { %373 = vmatmul.mubr.bf16.vlgmr.msra.gmra.mxu1 %v536_v33 }
  0x2f   :  { %454 = vmatprep.mubr.msk.bf16.mxu1 %vm284_vm0, %v539_v34 }
  0x36   :  { %381 = vmatmul.mubr.bf16.gmra.mxu1 %v541_v35 }
  0xe3   :  { %v490_v36 = vpop.f32.mrf.mxu0 }
  0xe5   :  { %v491_v37 = vpop.f32.mrf.mxu0 }
  0xe6   :  { %v492_v40 = vadd.f32 %v491_v37, %v490_v36 }
  0xe7   :  { %v493_v38 = vpop.f32.mrf.mxu0 }
  0xe8   :  { %v326_v46 = vadd.f32 %v492_v40, %v417_v42 }
  0xe9   :  { %v494_v39 = vpop.f32.mrf.mxu0 }
  0xea   :  { %v495_v43 = vadd.f32 %v494_v39, %v493_v38 }
  0xeb   :  { %v496_v41 = vpop.f32.mrf.mxu0 }
  0xec   :  { %v329_v50 = vadd.f32 %v495_v43, %v417_v42 }
  0xed   :  { %v497_v44 = vpop.f32.mrf.mxu0 }
  0xee   :  { %v374_v45 = vpop.f32.mrf.mxu1  ;;  %v498_v53 = vadd.f32 %v497_v44, %v496_v41 }
  0xef   :  { %v499_v47 = vpop.f32.mrf.mxu0  ;;  %v375_v49 = vadd.f32 %v374_v45, %v326_v46 }
  0xf0   :  { %v376_v48 = vpop.f32.mrf.mxu1  ;;  %v334_v61 = vadd.f32 %v498_v53, %v417_v42 }
  0xf1   :  { %v500_v51 = vpop.f32.mrf.mxu0  ;;  %v389_v56 = vmax.f32 %v375_v49, 0.0 }
  0xf2   :  { %v377_v52 = vpop.f32.mrf.mxu1  ;;  %v501_v57 = vadd.f32 %v500_v51, %v499_v47 }
  0xf3   :  { %v378_v54 = vadd.f32 %v377_v52, %v329_v50 }
  0xf4   :  { %v379_v55 = vpop.f32.mrf.mxu1  ;;  %v337_v0 = vadd.f32 %v501_v57, %v417_v42 }
  0xf5   :  { %v390_v58 = vmax.f32 %v378_v54, 0.0 }
  0xf6   :  { %v382_v59 = vpop.f32.mrf.mxu1 }
  0xf7   :  { %v466_v60 = vpack.c.bf16 %v390_v58, %v389_v56  ;;  %v383_v63 = vadd.f32 %v382_v59, %v334_v61 }
  0xf8   :  { %v384_v62 = vpop.f32.mrf.mxu1 }
  0xf9   :  { %467 = vst [vmem:[%s693_s3] sm:$0xff] %v466_v60   ;;  %v391_v4 = vmax.f32 %v383_v63, 0.0 }
  0xfa   :  { %v385_v1 = vpop.f32.mrf.mxu1 }
  0xfb   :  { %v386_v2 = vadd.f32 %v385_v1, %v337_v0 }
  0xfc   :  { %v387_v3 = vpop.f32.mrf.mxu1 }
  0xfd   :  { %v392_v5 = vmax.f32 %v386_v2, 0.0 }
  0xff   :  { %v471_v6 = vpack.c.bf16 %v392_v5, %v391_v4 }
 0x101   :  { %473 = vst [vmem:[%s693_s3 + $0x8] sm:$0xff] %v471_v6  }

// kernel: fwd.26
= control target key start
LH: loop header
LB: loop body
LE: loop exit
PB: predicated region body
PF: predicated region fallthrough
CT: control target
= control target key end

     0   :  { %vm540_vm0 = vcmask 785408   ;;  %s1276_s1 = inlined_call_operand.vmem [shape: bf16[864,128], index: 1, kind: input, shape index: {}]   ;;  %s1277_s0 = inlined_call_operand.vmem [shape: bf16[32,864], index: 0, kind: input, shape index: {}]   ;;  %s1278_s2 = inlined_call_operand.vmem [shape: f32[1,128], index: 2, kind: input, shape index: {}]   ;;  %s1279_s3 = inlined_call_operand.vmem [shape: bf16[32,128], index: 3, kind: output, shape index: {}]  }
   0x1   :  { %v969_v0 = vld [vmem:[%s1276_s1 + $0x78] sm:$0xff]   ;;  %v973_v4 = vld [vmem:[%s1276_s1 + $0x70] sm:$0xff]   ;;  %v977_v8 = vld [vmem:[%s1276_s1 + $0x68] sm:$0xff]  }
   0x2   :  { %v970_v1 = vld [vmem:[%s1276_s1 + $0x38] sm:$0xff]   ;;  %861 = vmatprep.subr.bf16.mxu0 %v969_v0  ;;  %v974_v5 = vld [vmem:[%s1276_s1 + $0x30] sm:$0xff]   ;;  %v978_v9 = vld [vmem:[%s1276_s1 + $0x28] sm:$0xff]  }
   0x3   :  { %v971_v2 = vld [vmem:[%s1276_s1 + $0xf8] sm:$0xff]   ;;  %862 = vmatpush3.bf16.msra.mxu0 %v970_v1  ;;  %v975_v6 = vld [vmem:[%s1276_s1 + $0xf0] sm:$0xff]   ;;  %v979_v10 = vld [vmem:[%s1276_s1 + $0xe8] sm:$0xff]  }
   0x4   :  { %v972_v3 = vld [vmem:[%s1276_s1 + $0xb8] sm:$0xff]   ;;  %889 = vmatprep.subr.bf16.mxu1 %v971_v2  ;;  %863 = vmatprep.subr.bf16.mxu0 %v973_v4  ;;  %v976_v7 = vld [vmem:[%s1276_s1 + $0xb0] sm:$0xff]   ;;  %v980_v11 = vld [vmem:[%s1276_s1 + $0xa8] sm:$0xff]  }
   0x5   :  { %890 = vmatpush3.bf16.msra.mxu1 %v972_v3  ;;  %v981_v12 = vld [vmem:[%s1276_s1 + $0x60] sm:$0xff]   ;;  %v985_v16 = vld [vmem:[%s1276_s1 + $0x58] sm:$0xff]   ;;  %v989_v20 = vld [vmem:[%s1276_s1 + $0x50] sm:$0xff]  }
   0x6   :  { %891 = vmatprep.subr.bf16.mxu1 %v975_v6  ;;  %v982_v13 = vld [vmem:[%s1276_s1 + $0x20] sm:$0xff]   ;;  %v986_v17 = vld [vmem:[%s1276_s1 + $0x18] sm:$0xff]   ;;  %v990_v21 = vld [vmem:[%s1276_s1 + $0x10] sm:$0xff]  }
   0x7   :  { %864 = vmatpush3.bf16.msra.mxu0 %v974_v5  ;;  %v983_v14 = vld [vmem:[%s1276_s1 + $0xe0] sm:$0xff]   ;;  %v987_v18 = vld [vmem:[%s1276_s1 + $0xd8] sm:$0xff]   ;;  %v991_v22 = vld [vmem:[%s1276_s1 + $0xd0] sm:$0xff]  }
   0x8   :  { %865 = vmatprep.subr.bf16.mxu0 %v977_v8  ;;  %v984_v15 = vld [vmem:[%s1276_s1 + $0xa0] sm:$0xff]   ;;  %v988_v19 = vld [vmem:[%s1276_s1 + $0x98] sm:$0xff]   ;;  %v992_v23 = vld [vmem:[%s1276_s1 + $0x90] sm:$0xff]  }
   0x9   :  { %892 = vmatpush3.bf16.msra.mxu1 %v976_v7  ;;  %v993_v24 = vld [vmem:[%s1276_s1 + $0x48] sm:$0xff]   ;;  %v997_v28 = vld [vmem:[%s1276_s1 + $0x40] sm:$0xff]   ;;  %v1004_v34 = vld [vmem:[%s1276_s1 + $0x178] sm:$0xff]  }
   0xa   :  { %893 = vmatprep.subr.bf16.mxu1 %v979_v10  ;;  %v994_v25 = vld [vmem:[%s1276_s1 + $0x8] sm:$0xff]   ;;  %v998_v29 = vld [vmem:[%s1276_s1] sm:$0xff]   ;;  %v1008_v37 = vld [vmem:[%s1276_s1 + $0x138] sm:$0xff]  }
   0xb   :  { %866 = vmatpush3.bf16.msra.mxu0 %v978_v9  ;;  %v995_v26 = vld [vmem:[%s1276_s1 + $0xc8] sm:$0xff]   ;;  %v999_v30 = vld [vmem:[%s1276_s1 + $0xc0] sm:$0xff]   ;;  %v1009_v38 = vld [vmem:[%s1276_s1 + $0x170] sm:$0xff]  }
   0xc   :  { %867 = vmatprep.subr.bf16.mxu0 %v981_v12  ;;  %v996_v27 = vld [vmem:[%s1276_s1 + $0x88] sm:$0xff]   ;;  %v1000_v31 = vld [vmem:[%s1277_s0] ss:$28 sps:$4 sm:$0xff]   ;;  %v1010_v39 = vld [vmem:[%s1276_s1 + $0x130] sm:$0xff]  }
   0xd   :  { %894 = vmatpush3.bf16.msra.mxu1 %v980_v11  ;;  %v1002_v32 = vld [vmem:[%s1277_s0 + $0x4] ss:$28 sps:$4 sm:$0xff]   ;;  %v1007_v36 = vld [vmem:[%s1277_s0 + $0xc] ss:$28 sps:$4 sm:$0xff]   ;;  %v1018_v46 = vld [vmem:[%s1277_s0 + $0x3c] ss:$28 sps:$4 sm:$0xff]  }
   0xe   :  { %895 = vmatprep.subr.bf16.mxu1 %v983_v14  ;;  %v1003_v33 = vld [vmem:[%s1276_s1 + $0x80] sm:$0xff]   ;;  %579 = vmatprep.mubr.bf16.mxu0 %v1002_v32  ;;  %v1011_v40 = vld [vmem:[%s1276_s1 + $0x168] sm:$0xff]   ;;  %v1016_v47 = vld [vmem:[%s1276_s1 + $0x158] sm:$0xff]  }
   0xf   :  { %868 = vmatpush3.bf16.msra.mxu0 %v982_v13  ;;  %v1005_v35 = vld [vmem:[%s1277_s0 + $0x8] ss:$28 sps:$4 sm:$0xff]   ;;  %628 = vmatprep.mubr.bf16.mxu1 %v1007_v36  ;;  %v1021_v48 = vld [vmem:[%s1277_s0 + $0x38] ss:$28 sps:$4 sm:$0xff]   ;;  %v1024_v51 = vld [vmem:[%s1277_s0 + $0x40] ss:$28 sps:$4 sm:$0xff]  }
  0x10   :  { %869 = vmatprep.subr.bf16.mxu0 %v985_v16  ;;  %v1012_v41 = vld [vmem:[%s1276_s1 + $0x128] sm:$0xff]   ;;  %v1013_v43 = vld [vmem:[%s1276_s1 + $0x160] sm:$0xff]   ;;  %v1020_v49 = vld [vmem:[%s1276_s1 + $0x118] sm:$0xff]  }
  0x11   :  { %896 = vmatpush3.bf16.msra.mxu1 %v984_v15  ;;  %v1014_v42 = vld [vmem:[%s1276_s1 + $0x1a8] sm:$0xff]   ;;  %v1015_v44 = vld [vmem:[%s1276_s1 + $0x120] sm:$0xff]   ;;  %v1025_v52 = vld [vmem:[%s1276_s1 + $0x150] sm:$0xff]  }
  0x12   :  { %897 = vmatprep.subr.bf16.mxu1 %v987_v18  ;;  %v1017_v45 = vld [vmem:[%s1276_s1 + $0x1a0] sm:$0xff]   ;;  %v1026_v53 = vld [vmem:[%s1276_s1 + $0x198] sm:$0xff]   ;;  %v1027_v54 = vld [vmem:[%s1276_s1 + $0x110] sm:$0xff]  }
  0x13   :  { %870 = vmatpush3.bf16.msra.mxu0 %v986_v17  ;;  %v1022_v50 = vld [vmem:[%s1277_s0 + $0x44] ss:$28 sps:$4 sm:$0xff]   ;;  %v1029_v55 = vld [vmem:[%s1276_s1 + $0x190] sm:$0xff]   ;;  %v1028_v56 = vld [vmem:[%s1276_s1 + $0x148] sm:$0xff]  }
  0x14   :  { %871 = vmatprep.subr.bf16.mxu0 %v989_v20  ;;  %v1032_v57 = vld [vmem:[%s1276_s1 + $0x188] sm:$0xff]   ;;  %v1031_v59 = vld [vmem:[%s1276_s1 + $0x140] sm:$0xff]   ;;  %v1036_v60 = vld [vmem:[%s1277_s0 + $0x14] ss:$28 sps:$4 sm:$0xff]  }
  0x15   :  { %898 = vmatpush3.bf16.msra.mxu1 %v988_v19  ;;  %v1030_v58 = vld [vmem:[%s1276_s1 + $0x108] sm:$0xff]   ;;  %v1037_v61 = vld [vmem:[%s1276_s1 + $0x180] sm:$0xff]   ;;  %v1038_v62 = vld [vmem:[%s1277_s0 + $0x18] ss:$28 sps:$4 sm:$0xff]  }
  0x16   :  { %899 = vmatprep.subr.bf16.mxu1 %v991_v22  ;;  %v1033_v63 = vld [vmem:[%s1276_s1 + $0x100] sm:$0xff]   ;;  %v1034_v0 = vld [vmem:[%s1277_s0 + $0x10] ss:$28 sps:$4 sm:$0xff]  }
  0x17   :  { %872 = vmatpush3.bf16.msra.mxu0 %v990_v21  ;;  %v1039_v1 = vld [vmem:[%s1277_s0 + $0x50] ss:$28 sps:$4 sm:$0xff]   ;;  %v1042_v3 = vld [vmem:[%s1277_s0 + $0x48] ss:$28 sps:$4 sm:$0xff]   ;;  %v771_v19 = vld [vmem:[%s1278_s2] ss:$0 sm:$0xff] }
  0x18   :  { %873 = vmatprep.subr.bf16.mxu0 %v993_v24  ;;  %v1040_v2 = vld [vmem:[%s1277_s0 + $0x4c] ss:$28 sps:$4 sm:$0xff]  }
  0x19   :  { %900 = vmatpush3.bf16.msra.mxu1 %v992_v23 }
  0x1a   :  { %901 = vmatprep.subr.bf16.mxu1 %v995_v26 }
  0x1b   :  { %874 = vmatpush3.bf16.msra.mxu0 %v994_v25 }
  0x1c   :  { %875 = vmatprep.subr.bf16.mxu0 %v997_v28 }
  0x1d   :  { %902 = vmatpush3.bf16.msra.mxu1 %v996_v27 }
  0x1e   :  { %903 = vmatprep.subr.bf16.mxu1 %v999_v30 }
  0x1f   :  { %876 = vmatpush3.bf16.msra.mxu0 %v998_v29 }
  0x20   :  { %917 = vmatprep.subr.bf16.mxu0 %v1004_v34 }
  0x21   :  { %904 = vmatpush3.bf16.msra.mxu1 %v1003_v33 }
  0x22   :  { %580 = vmatmul.mubr.bf16.vlgmr.msra.gmra.mxu0 %v1000_v31  ;;  %953 = vmatprep.subr.bf16.mxu1 %v1014_v42 }
  0x23   :  { %918 = vmatpush3.bf16.msra.mxu0 %v1008_v37  ;;  %587 = vmatprep.mubr.bf16.mxu0 %v1018_v46 }
  0x24   :  { %629 = vmatmul.mubr.bf16.vlgmr.msra.gmra.mxu1 %v1005_v35  ;;  %919 = vmatprep.subr.bf16.mxu0 %v1009_v38 }
  0x25   :  { %954 = vmatpush3.bf16.msra.mxu1 %v1014_v42  ;;  %636 = vmatprep.mubr.bf16.mxu1 %v1022_v50 }
  0x26   :  { %955 = vmatprep.subr.bf16.mxu1 %v1017_v45 }
  0x27   :  { %920 = vmatpush3.bf16.msra.mxu0 %v1010_v39 }
  0x28   :  { %921 = vmatprep.subr.bf16.mxu0 %v1011_v40 }
  0x29   :  { %956 = vmatpush3.bf16.msra.mxu1 %v1017_v45 }
  0x2a   :  { %588 = vmatmul.mubr.bf16.gmra.mxu0 %v1021_v48  ;;  %957 = vmatprep.subr.bf16.mxu1 %v1026_v53 }
  0x2b   :  { %922 = vmatpush3.bf16.msra.mxu0 %v1012_v41  ;;  %677 = vmatprep.mubr.bf16.mxu0 %v1036_v60 }
  0x2c   :  { %923 = vmatprep.subr.bf16.mxu0 %v1013_v43  ;;  %637 = vmatmul.mubr.bf16.gmra.mxu1 %v1024_v51 }
  0x2d   :  { %958 = vmatpush3.bf16.msra.mxu1 %v1026_v53  ;;  %965 = vmatprep.mubr.msk.bf16.mxu1 %vm540_vm0, %v1038_v62 }
  0x2e   :  { %959 = vmatprep.subr.bf16.mxu1 %v1029_v55 }
  0x2f   :  { %924 = vmatpush3.bf16.msra.mxu0 %v1015_v44 }
  0x30   :  { %925 = vmatprep.subr.bf16.mxu0 %v1016_v47 }
  0x31   :  { %960 = vmatpush3.bf16.msra.mxu1 %v1029_v55 }
  0x32   :  { %961 = vmatprep.subr.bf16.mxu1 %v1032_v57 }
  0x33   :  { %926 = vmatpush3.bf16.msra.mxu0 %v1020_v49 }
  0x34   :  { %927 = vmatprep.subr.bf16.mxu0 %v1025_v52 }
  0x35   :  { %962 = vmatpush3.bf16.msra.mxu1 %v1032_v57 }
  0x36   :  { %963 = vmatprep.subr.bf16.mxu1 %v1037_v61 }
  0x37   :  { %928 = vmatpush3.bf16.msra.mxu0 %v1027_v54 }
  0x38   :  { %929 = vmatprep.subr.bf16.mxu0 %v1028_v56 }
  0x39   :  { %964 = vmatpush3.bf16.msra.mxu1 %v1037_v61 }
  0x3b   :  { %930 = vmatpush3.bf16.msra.mxu0 %v1030_v58 }
  0x3c   :  { %931 = vmatprep.subr.bf16.mxu0 %v1031_v59  ;;  %966 = vmatmul.mubr.msk.bf16.vlgmr.msra.gmra.mxu1 %vm540_vm0, %v1039_v1 }
  0x3f   :  { %932 = vmatpush3.bf16.msra.mxu0 %v1033_v63 }
  0x42   :  { %678 = vmatmul.mubr.bf16.vlgmr.msra.gmra.mxu0 %v1034_v0 }
  0x43   :  { %685 = vmatprep.mubr.bf16.mxu0 %v1040_v2 }
  0x4a   :  { %686 = vmatmul.mubr.bf16.gmra.mxu0 %v1042_v3 }
  0xe2   :  { %v877_v4 = vpop.f32.mrf.mxu0 }
  0xe4   :  { %v905_v5 = vpop.f32.mrf.mxu1  ;;  %v878_v6 = vpop.f32.mrf.mxu0 }
  0xe5   :  { %v879_v18 = vadd.f32 %v878_v6, %v877_v4 }
  0xe6   :  { %v906_v7 = vpop.f32.mrf.mxu1  ;;  %v880_v8 = vpop.f32.mrf.mxu0 }
  0xe7   :  { %v582_v22 = vadd.f32 %v879_v18, %v771_v19  ;;  %v907_v23 = vadd.f32 %v906_v7, %v905_v5 }
  0xe8   :  { %v908_v9 = vpop.f32.mrf.mxu1  ;;  %v881_v10 = vpop.f32.mrf.mxu0 }
  0xe9   :  { %v882_v24 = vadd.f32 %v881_v10, %v880_v8  ;;  %v631_v30 = vadd.f32 %v907_v23, %v582_v22 }
  0xea   :  { %v909_v11 = vpop.f32.mrf.mxu1  ;;  %v883_v12 = vpop.f32.mrf.mxu0 }
  0xeb   :  { %v585_v31 = vadd.f32 %v882_v24, %v771_v19  ;;  %v910_v32 = vadd.f32 %v909_v11, %v908_v9 }
  0xec   :  { %v911_v13 = vpop.f32.mrf.mxu1  ;;  %v884_v14 = vpop.f32.mrf.mxu0 }
  0xed   :  { %v885_v27 = vadd.f32 %v884_v14, %v883_v12  ;;  %v634_v40 = vadd.f32 %v910_v32, %v585_v31 }
  0xee   :  { %v912_v15 = vpop.f32.mrf.mxu1  ;;  %v886_v16 = vpop.f32.mrf.mxu0 }
  0xef   :  { %v590_v37 = vadd.f32 %v885_v27, %v771_v19  ;;  %v913_v38 = vadd.f32 %v912_v15, %v911_v13 }
  0xf0   :  { %v914_v17 = vpop.f32.mrf.mxu1  ;;  %v887_v20 = vpop.f32.mrf.mxu0 }
  0xf1   :  { %v888_v41 = vadd.f32 %v887_v20, %v886_v16  ;;  %v639_v47 = vadd.f32 %v913_v38, %v590_v37 }
  0xf2   :  { %v915_v21 = vpop.f32.mrf.mxu1 }
  0xf3   :  { %v593_v49 = vadd.f32 %v888_v41, %v771_v19  ;;  %v916_v50 = vadd.f32 %v915_v21, %v914_v17 }
  0xf5   :  { %v642_v58 = vadd.f32 %v916_v50, %v593_v49 }
  0xfc   :  { %v967_v26 = vpop.f32.mrf.mxu1 }
  0xfe   :  { %v728_v29 = vpop.f32.mrf.mxu1 }
 0x100   :  { %v968_v35 = vpop.f32.mrf.mxu1 }
 0x102   :  { %v933_v25 = vpop.f32.mrf.mxu0  ;;  %v731_v44 = vpop.f32.mrf.mxu1 }
 0x104   :  { %v934_v28 = vpop.f32.mrf.mxu0 }
 0x105   :  { %v935_v33 = vadd.f32 %v934_v28, %v933_v25 }
 0x106   :  { %v936_v34 = vpop.f32.mrf.mxu0 }
 0x107   :  { %v680_v36 = vadd.f32 %v935_v33, %v631_v30 }
 0x108   :  { %v937_v39 = vpop.f32.mrf.mxu0 }
 0x109   :  { %v938_v42 = vadd.f32 %v937_v39, %v936_v34  ;;  %v729_v45 = vadd.f32 %v728_v29, %v680_v36 }
 0x10a   :  { %v939_v43 = vpop.f32.mrf.mxu0 }
 0x10b   :  { %v683_v46 = vadd.f32 %v938_v42, %v634_v40  ;;  %v743_v54 = vmax.f32 %v729_v45, 0.0 }
 0x10c   :  { %v940_v48 = vpop.f32.mrf.mxu0 }
 0x10d   :  { %v941_v51 = vadd.f32 %v940_v48, %v939_v43  ;;  %v732_v52 = vadd.f32 %v731_v44, %v683_v46 }
 0x10e   :  { %v942_v53 = vpop.f32.mrf.mxu0 }
 0x10f   :  { %v688_v55 = vadd.f32 %v941_v51, %v639_v47  ;;  %v744_v56 = vmax.f32 %v732_v52, 0.0 }
 0x110   :  { %v943_v57 = vpop.f32.mrf.mxu0 }
 0x111   :  { %v853_v59 = vpack.c.bf16 %v744_v56, %v743_v54  ;;  %v944_v60 = vadd.f32 %v943_v57, %v942_v53  ;;  %v737_v61 = vadd.f32 %v967_v26, %v688_v55 }
 0x113   :  { %854 = vst [vmem:[%s1279_s3] sm:$0xff] %v853_v59   ;;  %v691_v62 = vadd.f32 %v944_v60, %v642_v58  ;;  %v745_v0 = vmax.f32 %v737_v61, 0.0 }
 0x115   :  { %v740_v63 = vadd.f32 %v968_v35, %v691_v62 }
 0x117   :  { %v746_v1 = vmax.f32 %v740_v63, 0.0 }
 0x119   :  { %v858_v2 = vpack.c.bf16 %v746_v1, %v745_v0 }
 0x11b   :  { %860 = vst [vmem:[%s1279_s3 + $0x8] sm:$0xff] %v858_v2  }

// kernel: fwd.29
= control target key start
LH: loop header
LB: loop body
LE: loop exit
PB: predicated region body
PF: predicated region fallthrough
CT: control target
= control target key end

     0   :  { %vm703_vm0 = vcmask 785408   ;;  %s1543_s1 = inlined_call_operand.vmem [shape: bf16[864,256], index: 1, kind: input, shape index: {}]   ;;  %s1544_s0 = inlined_call_operand.vmem [shape: bf16[8,864], index: 0, kind: input, shape index: {}]   ;;  %s1545_s2 = inlined_call_operand.vmem [shape: f32[1,256], index: 2, kind: input, shape index: {}]   ;;  %s1546_s3 = inlined_call_operand.vmem [shape: bf16[8,256], index: 3, kind: output, shape index: {}]  }
   0x1   :  { %v1005_v0 = vld [vmem:[%s1543_s1 + $0x74] ss:$8 sps:$4 sm:$0xff]   ;;  %v1007_v1 = vld [vmem:[%s1543_s1 + $0x70] ss:$8 sps:$4 sm:$0xff]   ;;  %v1011_v4 = vld [vmem:[%s1543_s1 + $0x64] ss:$8 sps:$4 sm:$0xff]  }
   0x2   :  { %707 = vmatprep.subr.bf16.mxu0 %v1005_v0  ;;  %v1008_v2 = vld [vmem:[%s1543_s1 + $0x174] ss:$8 sps:$4 sm:$0xff]   ;;  %v1010_v3 = vld [vmem:[%s1543_s1 + $0x170] ss:$8 sps:$4 sm:$0xff]   ;;  %v1013_v5 = vld [vmem:[%s1543_s1 + $0x60] ss:$8 sps:$4 sm:$0xff]  }
   0x3   :  { %708 = vmatpush1.bf16.msra.mxu0 %v1007_v1  ;;  %748 = vmatprep.subr.bf16.mxu1 %v1008_v2  ;;  %v1014_v6 = vld [vmem:[%s1543_s1 + $0x164] ss:$8 sps:$4 sm:$0xff]   ;;  %v1016_v7 = vld [vmem:[%s1543_s1 + $0x160] ss:$8 sps:$4 sm:$0xff]   ;;  %v1017_v8 = vld [vmem:[%s1543_s1 + $0x54] ss:$8 sps:$4 sm:$0xff]  }
   0x4   :  { %749 = vmatpush1.bf16.msra.mxu1 %v1010_v3  ;;  %709 = vmatprep.subr.bf16.mxu0 %v1011_v4  ;;  %v1019_v9 = vld [vmem:[%s1543_s1 + $0x50] ss:$8 sps:$4 sm:$0xff]   ;;  %v1020_v10 = vld [vmem:[%s1543_s1 + $0x154] ss:$8 sps:$4 sm:$0xff]   ;;  %v1023_v11 = vld [vmem:[%s1543_s1 + $0x44] ss:$8 sps:$4 sm:$0xff]  }
   0x5   :  { %750 = vmatprep.subr.bf16.mxu1 %v1014_v6  ;;  %v1022_v12 = vld [vmem:[%s1543_s1 + $0x150] ss:$8 sps:$4 sm:$0xff]   ;;  %v1026_v13 = vld [vmem:[%s1543_s1 + $0x144] ss:$8 sps:$4 sm:$0xff]   ;;  %v1025_v14 = vld [vmem:[%s1543_s1 + $0x40] ss:$8 sps:$4 sm:$0xff]  }
   0x6   :  { %v1029_v15 = vld [vmem:[%s1543_s1 + $0x34] ss:$8 sps:$4 sm:$0xff]   ;;  %v1028_v16 = vld [vmem:[%s1543_s1 + $0x140] ss:$8 sps:$4 sm:$0xff]   ;;  %v1031_v18 = vld [vmem:[%s1543_s1 + $0x30] ss:$8 sps:$4 sm:$0xff]  }
   0x7   :  { %710 = vmatpush1.bf16.msra.mxu0 %v1013_v5  ;;  %v1032_v17 = vld [vmem:[%s1543_s1 + $0x134] ss:$8 sps:$4 sm:$0xff]   ;;  %v1035_v19 = vld [vmem:[%s1543_s1 + $0x24] ss:$8 sps:$4 sm:$0xff]   ;;  %v1034_v20 = vld [vmem:[%s1543_s1 + $0x130] ss:$8 sps:$4 sm:$0xff]  }
   0x8   :  { %711 = vmatprep.subr.bf16.mxu0 %v1017_v8  ;;  %751 = vmatpush1.bf16.msra.mxu1 %v1016_v7  ;;  %v1038_v21 = vld [vmem:[%s1543_s1 + $0x124] ss:$8 sps:$4 sm:$0xff]   ;;  %v1037_v22 = vld [vmem:[%s1543_s1 + $0x20] ss:$8 sps:$4 sm:$0xff]   ;;  %v1041_v23 = vld [vmem:[%s1543_s1 + $0x14] ss:$8 sps:$4 sm:$0xff]  }
   0x9   :  { %752 = vmatprep.subr.bf16.mxu1 %v1020_v10  ;;  %v1040_v24 = vld [vmem:[%s1543_s1 + $0x120] ss:$8 sps:$4 sm:$0xff]   ;;  %v1044_v25 = vld [vmem:[%s1543_s1 + $0x114] ss:$8 sps:$4 sm:$0xff]   ;;  %v1043_v26 = vld [vmem:[%s1543_s1 + $0x10] ss:$8 sps:$4 sm:$0xff]  }
   0xa   :  { %v1047_v27 = vld [vmem:[%s1543_s1 + $0x4] ss:$8 sps:$4 sm:$0xff]   ;;  %v1046_v28 = vld [vmem:[%s1543_s1 + $0x110] ss:$8 sps:$4 sm:$0xff]   ;;  %v1049_v30 = vld [vmem:[%s1543_s1] ss:$8 sps:$4 sm:$0xff]  }
   0xb   :  { %712 = vmatpush1.bf16.msra.mxu0 %v1019_v9  ;;  %v1050_v29 = vld [vmem:[%s1543_s1 + $0x104] ss:$8 sps:$4 sm:$0xff]   ;;  %v1053_v31 = vld [vmem:[%s1543_s1 + $0xf4] ss:$8 sps:$4 sm:$0xff]   ;;  %v1052_v32 = vld [vmem:[%s1543_s1 + $0x100] ss:$8 sps:$4 sm:$0xff]  }
   0xc   :  { %713 = vmatprep.subr.bf16.mxu0 %v1023_v11  ;;  %753 = vmatpush1.bf16.msra.mxu1 %v1022_v12  ;;  %v1056_v33 = vld [vmem:[%s1543_s1 + $0x1f4] ss:$8 sps:$4 sm:$0xff]   ;;  %v1055_v34 = vld [vmem:[%s1543_s1 + $0xf0] ss:$8 sps:$4 sm:$0xff]   ;;  %v1059_v35 = vld [vmem:[%s1543_s1 + $0xe4] ss:$8 sps:$4 sm:$0xff]  }
   0xd   :  { %754 = vmatprep.subr.bf16.mxu1 %v1026_v13  ;;  %v1058_v36 = vld [vmem:[%s1543_s1 + $0x1f0] ss:$8 sps:$4 sm:$0xff]   ;;  %v1062_v37 = vld [vmem:[%s1543_s1 + $0x1e4] ss:$8 sps:$4 sm:$0xff]   ;;  %v1061_v38 = vld [vmem:[%s1543_s1 + $0xe0] ss:$8 sps:$4 sm:$0xff]  }
   0xe   :  { %v1065_v39 = vld [vmem:[%s1543_s1 + $0xd4] ss:$8 sps:$4 sm:$0xff]   ;;  %v1064_v40 = vld [vmem:[%s1543_s1 + $0x1e0] ss:$8 sps:$4 sm:$0xff]   ;;  %v1067_v42 = vld [vmem:[%s1543_s1 + $0xd0] ss:$8 sps:$4 sm:$0xff]  }
   0xf   :  { %714 = vmatpush1.bf16.msra.mxu0 %v1025_v14  ;;  %v1068_v41 = vld [vmem:[%s1543_s1 + $0x1d4] ss:$8 sps:$4 sm:$0xff]   ;;  %v1071_v43 = vld [vmem:[%s1543_s1 + $0xc4] ss:$8 sps:$4 sm:$0xff]   ;;  %v1070_v44 = vld [vmem:[%s1543_s1 + $0x1d0] ss:$8 sps:$4 sm:$0xff]  }
  0x10   :  { %715 = vmatprep.subr.bf16.mxu0 %v1029_v15  ;;  %755 = vmatpush1.bf16.msra.mxu1 %v1028_v16  ;;  %v1074_v45 = vld [vmem:[%s1543_s1 + $0x1c4] ss:$8 sps:$4 sm:$0xff]   ;;  %v1073_v47 = vld [vmem:[%s1543_s1 + $0xc0] ss:$8 sps:$4 sm:$0xff]   ;;  %v1077_v50 = vld [vmem:[%s1543_s1 + $0xb4] ss:$8 sps:$4 sm:$0xff]  }
  0x11   :  { %756 = vmatprep.subr.bf16.mxu1 %v1032_v17  ;;  %v15_v46 = vld [vmem:[%s1544_s0] sm:$0xff]  ;;  %v16_v51 = vld [vmem:[%s1544_s0 + $0x8] sm:$0xff]  ;;  %v1080_v52 = vld [vmem:[%s1543_s1 + $0x1b4] ss:$8 sps:$4 sm:$0xff]   ;;  %v1174_v15 = vmov 0  }
  0x12   :  { %v887_v48 = vcombine.high %v15_v46, %v15_v46  ;;  %v1076_v49 = vld [vmem:[%s1543_s1 + $0x1c0] ss:$8 sps:$4 sm:$0xff]   ;;  %v889_v53 = vcombine.high %v16_v51, %v16_v51  ;;  %v1079_v54 = vld [vmem:[%s1543_s1 + $0xb0] ss:$8 sps:$4 sm:$0xff]   ;;  %v1083_v55 = vld [vmem:[%s1543_s1 + $0xa4] ss:$8 sps:$4 sm:$0xff]   ;;  %v886_v5 = vcombine.low %v15_v46, %v15_v46  ;;  %v888_v8 = vcombine.low %v16_v51, %v16_v51 }
  0x13   :  { %716 = vmatpush1.bf16.msra.mxu0 %v1031_v18  ;;  %v1082_v56 = vld [vmem:[%s1543_s1 + $0x1b0] ss:$8 sps:$4 sm:$0xff]   ;;  %v1086_v57 = vld [vmem:[%s1543_s1 + $0x1a4] ss:$8 sps:$4 sm:$0xff]   ;;  %v1085_v58 = vld [vmem:[%s1543_s1 + $0xa0] ss:$8 sps:$4 sm:$0xff]  }
  0x14   :  { %717 = vmatprep.subr.bf16.mxu0 %v1035_v19  ;;  %757 = vmatpush1.bf16.msra.mxu1 %v1034_v20  ;;  %v1089_v59 = vld [vmem:[%s1543_s1 + $0x94] ss:$8 sps:$4 sm:$0xff]   ;;  %v1088_v60 = vld [vmem:[%s1543_s1 + $0x1a0] ss:$8 sps:$4 sm:$0xff]   ;;  %v1091_v62 = vld [vmem:[%s1543_s1 + $0x90] ss:$8 sps:$4 sm:$0xff]  }
  0x15   :  { %758 = vmatprep.subr.bf16.mxu1 %v1038_v21  ;;  %739 = vmatprep.mubr.bf16.mxu0 %v887_v48  ;;  %v1092_v61 = vld [vmem:[%s1543_s1 + $0x194] ss:$8 sps:$4 sm:$0xff]   ;;  %v1095_v63 = vld [vmem:[%s1543_s1 + $0x84] ss:$8 sps:$4 sm:$0xff]   ;;  %v1094_v0 = vld [vmem:[%s1543_s1 + $0x190] ss:$8 sps:$4 sm:$0xff]  }
  0x16   :  { %780 = vmatprep.mubr.bf16.mxu1 %v889_v53  ;;  %v1098_v1 = vld [vmem:[%s1543_s1 + $0x184] ss:$8 sps:$4 sm:$0xff]   ;;  %v1097_v2 = vld [vmem:[%s1543_s1 + $0x80] ss:$8 sps:$4 sm:$0xff]   ;;  %v1106_v3 = vld [vmem:[%s1543_s1 + $0x274] ss:$8 sps:$4 sm:$0xff]  }
  0x17   :  { %718 = vmatpush1.bf16.msra.mxu0 %v1037_v22  ;;  %v1103_v4 = vld [vmem:[%s1543_s1 + $0x180] ss:$8 sps:$4 sm:$0xff]   ;;  %v1138_v6 = vld [vmem:[%s1543_s1 + $0x354] ss:$8 sps:$4 sm:$0xff]   ;;  %v1104_v7 = vld [vmem:[%s1543_s1 + $0x270] ss:$8 sps:$4 sm:$0xff]  }
  0x18   :  { %719 = vmatprep.subr.bf16.mxu0 %v1041_v23  ;;  %759 = vmatpush1.bf16.msra.mxu1 %v1040_v24  ;;  %v1111_v9 = vld [vmem:[%s1543_s1 + $0x264] ss:$8 sps:$4 sm:$0xff]   ;;  %v1136_v10 = vld [vmem:[%s1543_s1 + $0x350] ss:$8 sps:$4 sm:$0xff]   ;;  %v1109_v12 = vld [vmem:[%s1543_s1 + $0x260] ss:$8 sps:$4 sm:$0xff]  }
  0x19   :  { %760 = vmatprep.subr.bf16.mxu1 %v1044_v25  ;;  %v1144_v11 = vld [vmem:[%s1543_s1 + $0x344] ss:$8 sps:$4 sm:$0xff]   ;;  %v1114_v13 = vld [vmem:[%s1543_s1 + $0x254] ss:$8 sps:$4 sm:$0xff]   ;;  %v1142_v14 = vld [vmem:[%s1543_s1 + $0x340] ss:$8 sps:$4 sm:$0xff]  }
  0x1a   :  { %v1150_v16 = vld [vmem:[%s1543_s1 + $0x334] ss:$8 sps:$4 sm:$0xff]   ;;  %v1112_v17 = vld [vmem:[%s1543_s1 + $0x250] ss:$8 sps:$4 sm:$0xff]   ;;  %v1117_v18 = vld [vmem:[%s1543_s1 + $0x244] ss:$8 sps:$4 sm:$0xff]  }
  0x1b   :  { %720 = vmatpush1.bf16.msra.mxu0 %v1043_v26  ;;  %v1148_v19 = vld [vmem:[%s1543_s1 + $0x330] ss:$8 sps:$4 sm:$0xff]   ;;  %v1156_v21 = vld [vmem:[%s1543_s1 + $0x324] ss:$8 sps:$4 sm:$0xff]   ;;  %v1115_v23 = vld [vmem:[%s1543_s1 + $0x240] ss:$8 sps:$4 sm:$0xff]  }
  0x1c   :  { %721 = vmatprep.subr.bf16.mxu0 %v1047_v27  ;;  %761 = vmatpush1.bf16.msra.mxu1 %v1046_v28  ;;  %v1435_v20 = vld [vmem:[%s1544_s0 + $0x10] sm:$0xff]  ;;  %v1154_v25 = vld [vmem:[%s1543_s1 + $0x320] ss:$8 sps:$4 sm:$0xff]   ;;  %v1123_v28 = vld [vmem:[%s1543_s1 + $0x224] ss:$8 sps:$4 sm:$0xff]  }
  0x1d   :  { %762 = vmatprep.subr.bf16.mxu1 %v1050_v29  ;;  %v891_v22 = vcombine.high %v1435_v20, %v1435_v20  ;;  %v1120_v24 = vld [vmem:[%s1543_s1 + $0x234] ss:$8 sps:$4 sm:$0xff]   ;;  %v1118_v27 = vld [vmem:[%s1543_s1 + $0x230] ss:$8 sps:$4 sm:$0xff]   ;;  %v1159_v48 = vld [vmem:[%s1543_s1 + $0x2a4] ss:$8 sps:$4 sm:$0xff]  }
  0x1e   :  { %v1162_v26 = vld [vmem:[%s1543_s1 + $0x314] ss:$8 sps:$4 sm:$0xff]   ;;  %v1160_v29 = vld [vmem:[%s1543_s1 + $0x310] ss:$8 sps:$4 sm:$0xff]   ;;  %v1169_v53 = vld [vmem:[%s1543_s1 + $0x280] ss:$8 sps:$4 sm:$0xff]  }
  0x1f   :  { %722 = vmatpush1.bf16.msra.mxu0 %v1049_v30  ;;  %v1168_v30 = vld [vmem:[%s1543_s1 + $0x304] ss:$8 sps:$4 sm:$0xff]   ;;  %v1153_v46 = vld [vmem:[%s1543_s1 + $0x2b4] ss:$8 sps:$4 sm:$0xff]   ;;  %v1163_v51 = vld [vmem:[%s1543_s1 + $0x290] ss:$8 sps:$4 sm:$0xff]  }
  0x20   :  { %723 = vmatprep.subr.bf16.mxu0 %v1053_v31  ;;  %763 = vmatpush1.bf16.msra.mxu1 %v1052_v32  ;;  %v1121_v31 = vld [vmem:[%s1543_s1 + $0x220] ss:$8 sps:$4 sm:$0xff]   ;;  %v1126_v32 = vld [vmem:[%s1543_s1 + $0x214] ss:$8 sps:$4 sm:$0xff]  }
  0x21   :  { %764 = vmatprep.subr.bf16.mxu1 %v1056_v33  ;;  %v1166_v33 = vld [vmem:[%s1543_s1 + $0x300] ss:$8 sps:$4 sm:$0xff]  }
  0x23   :  { %724 = vmatpush2.bf16.msra.mxu0 %v1055_v34  ;;  %v1124_v34 = vld [vmem:[%s1543_s1 + $0x210] ss:$8 sps:$4 sm:$0xff]  }
  0x24   :  { %725 = vmatprep.subr.bf16.mxu0 %v1059_v35  ;;  %765 = vmatpush2.bf16.msra.mxu1 %v1058_v36  ;;  %v1102_v35 = vld [vmem:[%s1544_s0 + $0x18] ss:$0 sps:$4 sm:$0xff]   ;;  %v1129_v36 = vld [vmem:[%s1543_s1 + $0x204] ss:$8 sps:$4 sm:$0xff]  }
  0x25   :  { %766 = vmatprep.subr.bf16.mxu1 %v1062_v37  ;;  %v1127_v37 = vld [vmem:[%s1543_s1 + $0x200] ss:$8 sps:$4 sm:$0xff]  }
  0x27   :  { %726 = vmatpush2.bf16.msra.mxu0 %v1061_v38  ;;  %v1132_v38 = vld [vmem:[%s1543_s1 + $0x2f4] ss:$8 sps:$4 sm:$0xff]  }
  0x28   :  { %727 = vmatprep.subr.bf16.mxu0 %v1065_v39  ;;  %767 = vmatpush2.bf16.msra.mxu1 %v1064_v40  ;;  %v1130_v39 = vld [vmem:[%s1543_s1 + $0x2f0] ss:$8 sps:$4 sm:$0xff]   ;;  %v1135_v40 = vld [vmem:[%s1543_s1 + $0x2e4] ss:$8 sps:$4 sm:$0xff]  }
  0x29   :  { %768 = vmatprep.subr.bf16.mxu1 %v1068_v41  ;;  %v1133_v41 = vld [vmem:[%s1543_s1 + $0x2e0] ss:$8 sps:$4 sm:$0xff]  }
  0x2b   :  { %728 = vmatpush2.bf16.msra.mxu0 %v1067_v42  ;;  %v1141_v42 = vld [vmem:[%s1543_s1 + $0x2d4] ss:$8 sps:$4 sm:$0xff]  }
  0x2c   :  { %729 = vmatprep.subr.bf16.mxu0 %v1071_v43  ;;  %769 = vmatpush2.bf16.msra.mxu1 %v1070_v44  ;;  %v1139_v43 = vld [vmem:[%s1543_s1 + $0x2d0] ss:$8 sps:$4 sm:$0xff]   ;;  %v1147_v44 = vld [vmem:[%s1543_s1 + $0x2c4] ss:$8 sps:$4 sm:$0xff]  }
  0x2d   :  { %770 = vmatprep.subr.bf16.mxu1 %v1074_v45  ;;  %v1145_v45 = vld [vmem:[%s1543_s1 + $0x2c0] ss:$8 sps:$4 sm:$0xff]  }
  0x2f   :  { %730 = vmatpush2.bf16.msra.mxu0 %v1073_v47  ;;  %v1151_v47 = vld [vmem:[%s1543_s1 + $0x2b0] ss:$8 sps:$4 sm:$0xff]  }
  0x30   :  { %731 = vmatprep.subr.bf16.mxu0 %v1077_v50  ;;  %771 = vmatpush2.bf16.msra.mxu1 %v1076_v49  ;;  %v1157_v49 = vld [vmem:[%s1543_s1 + $0x2a0] ss:$8 sps:$4 sm:$0xff]   ;;  %v1165_v50 = vld [vmem:[%s1543_s1 + $0x294] ss:$8 sps:$4 sm:$0xff]  }
  0x31   :  { %772 = vmatprep.subr.bf16.mxu1 %v1080_v52  ;;  %v1171_v52 = vld [vmem:[%s1543_s1 + $0x284] ss:$8 sps:$4 sm:$0xff]  }
  0x33   :  { %732 = vmatpush2.bf16.msra.mxu0 %v1079_v54  ;;  %v890_v54 = vcombine.low %v1435_v20, %v1435_v20 }
  0x34   :  { %733 = vmatprep.subr.bf16.mxu0 %v1083_v55  ;;  %773 = vmatpush2.bf16.msra.mxu1 %v1082_v56 }
  0x35   :  { %774 = vmatprep.subr.bf16.mxu1 %v1086_v57 }
  0x37   :  { %734 = vmatpush2.bf16.msra.mxu0 %v1085_v58 }
  0x38   :  { %735 = vmatprep.subr.bf16.mxu0 %v1089_v59  ;;  %775 = vmatpush2.bf16.msra.mxu1 %v1088_v60 }
  0x39   :  { %776 = vmatprep.subr.bf16.mxu1 %v1092_v61 }
  0x3b   :  { %736 = vmatpush2.bf16.msra.mxu0 %v1091_v62 }
  0x3c   :  { %737 = vmatprep.subr.bf16.mxu0 %v1095_v63  ;;  %777 = vmatpush2.bf16.msra.mxu1 %v1094_v0 }
  0x3d   :  { %778 = vmatprep.subr.bf16.mxu1 %v1098_v1 }
  0x3f   :  { %738 = vmatpush2.bf16.msra.mxu0 %v1097_v2 }
  0x40   :  { %789 = vmatprep.subr.bf16.mxu0 %v1106_v3  ;;  %779 = vmatpush2.bf16.msra.mxu1 %v1103_v4  ;;  %v129_v3 = vlaneseq }
  0x41   :  { %834 = vmatprep.subr.bf16.mxu1 %v1138_v6  ;;  %v127_v6 = vld [vmem:[%s1545_s2] sm:$0x3] }
  0x42   :  { %740 = vmatmul.mubr.bf16.vlgmr.msra.gmra.mxu0 %v886_v5  ;;  %v130_v4 = vshrl.u32 %v129_v3, 7 }
  0x43   :  { %790 = vmatpush1.bf16.msra.mxu0 %v1104_v7  ;;  %781 = vmatmul.mubr.bf16.vlgmr.msra.gmra.mxu1 %v888_v8 }
  0x44   :  { %791 = vmatprep.subr.bf16.mxu0 %v1111_v9  ;;  %835 = vmatpush1.bf16.msra.mxu1 %v1136_v10  ;;  %v131_v5 = vsub.s32 0, %v130_v4  ;;  %v135_v7 = vsub.s32 1, %v130_v4 }
  0x45   :  { %862 = vmatprep.mubr.bf16.mxu1 %v1174_v15  ;;  %836 = vmatprep.subr.bf16.mxu1 %v1144_v11 }
  0x46   :  { %821 = vmatprep.mubr.bf16.mxu0 %v891_v22  ;;  %v132_v8 = vrot.slane %v127_v6, %v131_v5  ;;  %v136_v9 = vrot.slane %v127_v6, %v135_v7 }
  0x47   :  { %792 = vmatpush1.bf16.msra.mxu0 %v1109_v12 }
  0x48   :  { %793 = vmatprep.subr.bf16.mxu0 %v1114_v13  ;;  %837 = vmatpush1.bf16.msra.mxu1 %v1142_v14 }
  0x49   :  { %838 = vmatprep.subr.bf16.mxu1 %v1150_v16 }
  0x4b   :  { %794 = vmatpush1.bf16.msra.mxu0 %v1112_v17 }
  0x4c   :  { %795 = vmatprep.subr.bf16.mxu0 %v1117_v18  ;;  %839 = vmatpush1.bf16.msra.mxu1 %v1148_v19 }
  0x4d   :  { %840 = vmatprep.subr.bf16.mxu1 %v1156_v21 }
  0x4f   :  { %796 = vmatpush1.bf16.msra.mxu0 %v1115_v23 }
  0x50   :  { %797 = vmatprep.subr.bf16.mxu0 %v1120_v24  ;;  %841 = vmatpush1.bf16.msra.mxu1 %v1154_v25 }
  0x51   :  { %842 = vmatprep.subr.bf16.mxu1 %v1162_v26 }
  0x53   :  { %798 = vmatpush1.bf16.msra.mxu0 %v1118_v27 }
  0x54   :  { %799 = vmatprep.subr.bf16.mxu0 %v1123_v28  ;;  %843 = vmatpush1.bf16.msra.mxu1 %v1160_v29 }
  0x55   :  { %844 = vmatprep.subr.bf16.mxu1 %v1168_v30 }
  0x57   :  { %800 = vmatpush1.bf16.msra.mxu0 %v1121_v31 }
  0x58   :  { %801 = vmatprep.subr.bf16.mxu0 %v1126_v32  ;;  %845 = vmatpush1.bf16.msra.mxu1 %v1166_v33 }
  0x5b   :  { %802 = vmatpush1.bf16.msra.mxu0 %v1124_v34  ;;  %1001 = vmatmul.mubr.msk.bf16.vlgmr.msra.gmra.mxu1 %vm703_vm0, %v1102_v35 }
  0x5c   :  { %803 = vmatprep.subr.bf16.mxu0 %v1129_v36 }
  0x5f   :  { %804 = vmatpush1.bf16.msra.mxu0 %v1127_v37 }
  0x60   :  { %805 = vmatprep.subr.bf16.mxu0 %v1132_v38 }
  0x63   :  { %806 = vmatpush2.bf16.msra.mxu0 %v1130_v39 }
  0x64   :  { %807 = vmatprep.subr.bf16.mxu0 %v1135_v40 }
  0x67   :  { %808 = vmatpush2.bf16.msra.mxu0 %v1133_v41 }
  0x68   :  { %809 = vmatprep.subr.bf16.mxu0 %v1141_v42 }
  0x6b   :  { %810 = vmatpush2.bf16.msra.mxu0 %v1139_v43 }
  0x6c   :  { %811 = vmatprep.subr.bf16.mxu0 %v1147_v44 }
  0x6f   :  { %812 = vmatpush2.bf16.msra.mxu0 %v1145_v45 }
  0x70   :  { %813 = vmatprep.subr.bf16.mxu0 %v1153_v46 }
  0x73   :  { %814 = vmatpush2.bf16.msra.mxu0 %v1151_v47 }
  0x74   :  { %815 = vmatprep.subr.bf16.mxu0 %v1159_v48 }
  0x77   :  { %816 = vmatpush2.bf16.msra.mxu0 %v1157_v49 }
  0x78   :  { %817 = vmatprep.subr.bf16.mxu0 %v1165_v50 }
  0x7b   :  { %818 = vmatpush2.bf16.msra.mxu0 %v1163_v51 }
  0x7c   :  { %819 = vmatprep.subr.bf16.mxu0 %v1171_v52 }
  0x7f   :  { %820 = vmatpush2.bf16.msra.mxu0 %v1169_v53 }
  0x82   :  { %822 = vmatmul.mubr.bf16.vlgmr.msra.gmra.mxu0 %v890_v54 }
 0x102   :  { %v741_v55 = vpop.f32.mrf.mxu0 }
 0x103   :  { %v782_v57 = vpop.f32.mrf.mxu1  ;;  %v742_v10 = vadd.f32 %v741_v55, %v132_v8 }
 0x104   :  { %v743_v56 = vpop.f32.mrf.mxu0 }
 0x105   :  { %v784_v59 = vpop.f32.mrf.mxu1  ;;  %v744_v11 = vadd.f32 %v743_v56, %v136_v9  ;;  %v783_v12 = vadd.f32 %v782_v57, %v742_v10 }
 0x106   :  { %v745_v58 = vpop.f32.mrf.mxu0 }
 0x107   :  { %v786_v61 = vpop.f32.mrf.mxu1  ;;  %v785_v14 = vadd.f32 %v784_v59, %v744_v11 }
 0x108   :  { %v746_v60 = vpop.f32.mrf.mxu0 }
 0x109   :  { %v787_v62 = vpop.f32.mrf.mxu1 }
 0x11b   :  { %v864_v63 = vpop.f32.mrf.mxu1 }
 0x11d   :  { %v866_v0 = vpop.f32.mrf.mxu1 }
 0x11f   :  { %v868_v1 = vpop.f32.mrf.mxu1 }
 0x121   :  { %v869_v2 = vpop.f32.mrf.mxu1 }
 0x142   :  { %v823_v13 = vpop.f32.mrf.mxu0 }
 0x143   :  { %v824_v15 = vadd.f32 %v823_v13, %v783_v12 }
 0x144   :  { %v825_v16 = vpop.f32.mrf.mxu0 }
 0x145   :  { %v865_v17 = vadd.f32 %v864_v63, %v824_v15  ;;  %v826_v18 = vadd.f32 %v825_v16, %v785_v14 }
 0x146   :  { %v827_v19 = vpop.f32.mrf.mxu0 }
 0x147   :  { %v867_v20 = vadd.f32 %v866_v0, %v826_v18  ;;  %v871_v22 = vmax.f32 %v865_v17, 0.0 }
 0x148   :  { %v828_v21 = vpop.f32.mrf.mxu0 }
 0x149   :  { %v872_v23 = vmax.f32 %v867_v20, 0.0 }
 0x14b   :  { %v1003_v24 = vpack.c.bf16 %v872_v23, %v871_v22 }
 0x14d   :  { %881 = vst [vmem:[%s1546_s3] sm:$0xff] %v1003_v24 }

// kernel: fwd.30
= control target key start
LH: loop header
LB: loop body
LE: loop exit
PB: predicated region body
PF: predicated region fallthrough
CT: control target
= control target key end

     0   :  { %vm1378_vm0 = vcmask 523264   ;;  %s2974_s1 = inlined_call_operand.vmem [shape: bf16[1728,256], index: 1, kind: input, shape index: {}]   ;;  %s2975_s0 = inlined_call_operand.vmem [shape: bf16[8,1728], index: 0, kind: input, shape index: {}]   ;;  %s2976_s2 = inlined_call_operand.vmem [shape: f32[1,256], index: 2, kind: input, shape index: {}]   ;;  %s2977_s3 = inlined_call_operand.vmem [shape: bf16[8,256], index: 3, kind: output, shape index: {}]  }
   0x1   :  { %v1917_v0 = vld [vmem:[%s2974_s1 + $0x74] ss:$8 sps:$4 sm:$0xff]   ;;  %v1919_v1 = vld [vmem:[%s2974_s1 + $0x70] ss:$8 sps:$4 sm:$0xff]   ;;  %v1923_v4 = vld [vmem:[%s2974_s1 + $0x64] ss:$8 sps:$4 sm:$0xff]  }
   0x2   :  { %1382 = vmatprep.subr.bf16.mxu0 %v1917_v0  ;;  %v1920_v2 = vld [vmem:[%s2974_s1 + $0x174] ss:$8 sps:$4 sm:$0xff]   ;;  %v1922_v3 = vld [vmem:[%s2974_s1 + $0x170] ss:$8 sps:$4 sm:$0xff]   ;;  %v1925_v5 = vld [vmem:[%s2974_s1 + $0x60] ss:$8 sps:$4 sm:$0xff]  }
   0x3   :  { %1383 = vmatpush1.bf16.msra.mxu0 %v1919_v1  ;;  %1423 = vmatprep.subr.bf16.mxu1 %v1920_v2  ;;  %v1926_v6 = vld [vmem:[%s2974_s1 + $0x164] ss:$8 sps:$4 sm:$0xff]   ;;  %v1928_v7 = vld [vmem:[%s2974_s1 + $0x160] ss:$8 sps:$4 sm:$0xff]   ;;  %v1929_v8 = vld [vmem:[%s2974_s1 + $0x54] ss:$8 sps:$4 sm:$0xff]  }
   0x4   :  { %1424 = vmatpush1.bf16.msra.mxu1 %v1922_v3  ;;  %1384 = vmatprep.subr.bf16.mxu0 %v1923_v4  ;;  %v1931_v9 = vld [vmem:[%s2974_s1 + $0x50] ss:$8 sps:$4 sm:$0xff]   ;;  %v1932_v10 = vld [vmem:[%s2974_s1 + $0x154] ss:$8 sps:$4 sm:$0xff]   ;;  %v1935_v11 = vld [vmem:[%s2974_s1 + $0x44] ss:$8 sps:$4 sm:$0xff]  }
   0x5   :  { %1425 = vmatprep.subr.bf16.mxu1 %v1926_v6  ;;  %v1934_v12 = vld [vmem:[%s2974_s1 + $0x150] ss:$8 sps:$4 sm:$0xff]   ;;  %v1938_v13 = vld [vmem:[%s2974_s1 + $0x144] ss:$8 sps:$4 sm:$0xff]   ;;  %v1937_v14 = vld [vmem:[%s2974_s1 + $0x40] ss:$8 sps:$4 sm:$0xff]  }
   0x6   :  { %v1941_v15 = vld [vmem:[%s2974_s1 + $0x34] ss:$8 sps:$4 sm:$0xff]   ;;  %v1940_v16 = vld [vmem:[%s2974_s1 + $0x140] ss:$8 sps:$4 sm:$0xff]   ;;  %v1943_v18 = vld [vmem:[%s2974_s1 + $0x30] ss:$8 sps:$4 sm:$0xff]  }
   0x7   :  { %1385 = vmatpush1.bf16.msra.mxu0 %v1925_v5  ;;  %v1944_v17 = vld [vmem:[%s2974_s1 + $0x134] ss:$8 sps:$4 sm:$0xff]   ;;  %v1947_v19 = vld [vmem:[%s2974_s1 + $0x24] ss:$8 sps:$4 sm:$0xff]   ;;  %v1946_v20 = vld [vmem:[%s2974_s1 + $0x130] ss:$8 sps:$4 sm:$0xff]  }
   0x8   :  { %1386 = vmatprep.subr.bf16.mxu0 %v1929_v8  ;;  %1426 = vmatpush1.bf16.msra.mxu1 %v1928_v7  ;;  %v1950_v21 = vld [vmem:[%s2974_s1 + $0x124] ss:$8 sps:$4 sm:$0xff]   ;;  %v1949_v22 = vld [vmem:[%s2974_s1 + $0x20] ss:$8 sps:$4 sm:$0xff]   ;;  %v1953_v23 = vld [vmem:[%s2974_s1 + $0x14] ss:$8 sps:$4 sm:$0xff]  }
   0x9   :  { %1427 = vmatprep.subr.bf16.mxu1 %v1932_v10  ;;  %v1952_v24 = vld [vmem:[%s2974_s1 + $0x120] ss:$8 sps:$4 sm:$0xff]   ;;  %v1956_v25 = vld [vmem:[%s2974_s1 + $0x114] ss:$8 sps:$4 sm:$0xff]   ;;  %v1955_v26 = vld [vmem:[%s2974_s1 + $0x10] ss:$8 sps:$4 sm:$0xff]  }
   0xa   :  { %v1959_v27 = vld [vmem:[%s2974_s1 + $0x4] ss:$8 sps:$4 sm:$0xff]   ;;  %v1958_v28 = vld [vmem:[%s2974_s1 + $0x110] ss:$8 sps:$4 sm:$0xff]   ;;  %v1961_v30 = vld [vmem:[%s2974_s1] ss:$8 sps:$4 sm:$0xff]  }
   0xb   :  { %1387 = vmatpush1.bf16.msra.mxu0 %v1931_v9  ;;  %v1962_v29 = vld [vmem:[%s2974_s1 + $0x104] ss:$8 sps:$4 sm:$0xff]   ;;  %v1965_v31 = vld [vmem:[%s2974_s1 + $0xf4] ss:$8 sps:$4 sm:$0xff]   ;;  %v1964_v32 = vld [vmem:[%s2974_s1 + $0x100] ss:$8 sps:$4 sm:$0xff]  }
   0xc   :  { %1388 = vmatprep.subr.bf16.mxu0 %v1935_v11  ;;  %1428 = vmatpush1.bf16.msra.mxu1 %v1934_v12  ;;  %v1968_v33 = vld [vmem:[%s2974_s1 + $0x1f4] ss:$8 sps:$4 sm:$0xff]   ;;  %v1967_v34 = vld [vmem:[%s2974_s1 + $0xf0] ss:$8 sps:$4 sm:$0xff]   ;;  %v1971_v35 = vld [vmem:[%s2974_s1 + $0xe4] ss:$8 sps:$4 sm:$0xff]  }
   0xd   :  { %1429 = vmatprep.subr.bf16.mxu1 %v1938_v13  ;;  %v1970_v36 = vld [vmem:[%s2974_s1 + $0x1f0] ss:$8 sps:$4 sm:$0xff]   ;;  %v1974_v37 = vld [vmem:[%s2974_s1 + $0x1e4] ss:$8 sps:$4 sm:$0xff]   ;;  %v1973_v38 = vld [vmem:[%s2974_s1 + $0xe0] ss:$8 sps:$4 sm:$0xff]  }
   0xe   :  { %v1977_v39 = vld [vmem:[%s2974_s1 + $0xd4] ss:$8 sps:$4 sm:$0xff]   ;;  %v1976_v40 = vld [vmem:[%s2974_s1 + $0x1e0] ss:$8 sps:$4 sm:$0xff]   ;;  %v1979_v42 = vld [vmem:[%s2974_s1 + $0xd0] ss:$8 sps:$4 sm:$0xff]  }
   0xf   :  { %1389 = vmatpush1.bf16.msra.mxu0 %v1937_v14  ;;  %v1980_v41 = vld [vmem:[%s2974_s1 + $0x1d4] ss:$8 sps:$4 sm:$0xff]   ;;  %v1983_v43 = vld [vmem:[%s2974_s1 + $0xc4] ss:$8 sps:$4 sm:$0xff]   ;;  %v1982_v44 = vld [vmem:[%s2974_s1 + $0x1d0] ss:$8 sps:$4 sm:$0xff]  }
  0x10   :  { %1390 = vmatprep.subr.bf16.mxu0 %v1941_v15  ;;  %1430 = vmatpush1.bf16.msra.mxu1 %v1940_v16  ;;  %v1986_v45 = vld [vmem:[%s2974_s1 + $0x1c4] ss:$8 sps:$4 sm:$0xff]   ;;  %v1985_v47 = vld [vmem:[%s2974_s1 + $0xc0] ss:$8 sps:$4 sm:$0xff]   ;;  %v1989_v49 = vld [vmem:[%s2974_s1 + $0xb4] ss:$8 sps:$4 sm:$0xff]  }
  0x11   :  { %1431 = vmatprep.subr.bf16.mxu1 %v1944_v17  ;;  %v15_v46 = vld [vmem:[%s2975_s0] sm:$0xff]  ;;  %v16_v50 = vld [vmem:[%s2975_s0 + $0x8] sm:$0xff]  ;;  %v1992_v53 = vld [vmem:[%s2974_s1 + $0x1b4] ss:$8 sps:$4 sm:$0xff]  }
  0x12   :  { %v1685_v48 = vcombine.high %v15_v46, %v15_v46  ;;  %v1988_v51 = vld [vmem:[%s2974_s1 + $0x1c0] ss:$8 sps:$4 sm:$0xff]   ;;  %v1687_v52 = vcombine.high %v16_v50, %v16_v50  ;;  %v1991_v54 = vld [vmem:[%s2974_s1 + $0xb0] ss:$8 sps:$4 sm:$0xff]   ;;  %v1995_v55 = vld [vmem:[%s2974_s1 + $0xa4] ss:$8 sps:$4 sm:$0xff]   ;;  %v1684_v5 = vcombine.low %v15_v46, %v15_v46  ;;  %v1686_v8 = vcombine.low %v16_v50, %v16_v50 }
  0x13   :  { %1391 = vmatpush1.bf16.msra.mxu0 %v1943_v18  ;;  %v1994_v56 = vld [vmem:[%s2974_s1 + $0x1b0] ss:$8 sps:$4 sm:$0xff]   ;;  %v1998_v57 = vld [vmem:[%s2974_s1 + $0x1a4] ss:$8 sps:$4 sm:$0xff]   ;;  %v1997_v58 = vld [vmem:[%s2974_s1 + $0xa0] ss:$8 sps:$4 sm:$0xff]  }
  0x14   :  { %1392 = vmatprep.subr.bf16.mxu0 %v1947_v19  ;;  %1432 = vmatpush1.bf16.msra.mxu1 %v1946_v20  ;;  %v2001_v59 = vld [vmem:[%s2974_s1 + $0x94] ss:$8 sps:$4 sm:$0xff]   ;;  %v2000_v60 = vld [vmem:[%s2974_s1 + $0x1a0] ss:$8 sps:$4 sm:$0xff]   ;;  %v2003_v62 = vld [vmem:[%s2974_s1 + $0x90] ss:$8 sps:$4 sm:$0xff]  }
  0x15   :  { %1433 = vmatprep.subr.bf16.mxu1 %v1950_v21  ;;  %1414 = vmatprep.mubr.bf16.mxu0 %v1685_v48  ;;  %v2004_v61 = vld [vmem:[%s2974_s1 + $0x194] ss:$8 sps:$4 sm:$0xff]   ;;  %v2007_v63 = vld [vmem:[%s2974_s1 + $0x84] ss:$8 sps:$4 sm:$0xff]   ;;  %v2006_v0 = vld [vmem:[%s2974_s1 + $0x190] ss:$8 sps:$4 sm:$0xff]  }
  0x16   :  { %1455 = vmatprep.mubr.bf16.mxu1 %v1687_v52  ;;  %v2010_v1 = vld [vmem:[%s2974_s1 + $0x184] ss:$8 sps:$4 sm:$0xff]   ;;  %v2009_v2 = vld [vmem:[%s2974_s1 + $0x80] ss:$8 sps:$4 sm:$0xff]   ;;  %v2017_v3 = vld [vmem:[%s2974_s1 + $0x274] ss:$8 sps:$4 sm:$0xff]  }
  0x17   :  { %1393 = vmatpush1.bf16.msra.mxu0 %v1949_v22  ;;  %v2014_v4 = vld [vmem:[%s2974_s1 + $0x180] ss:$8 sps:$4 sm:$0xff]   ;;  %v2022_v6 = vld [vmem:[%s2974_s1 + $0x374] ss:$8 sps:$4 sm:$0xff]   ;;  %v2015_v7 = vld [vmem:[%s2974_s1 + $0x270] ss:$8 sps:$4 sm:$0xff]  }
  0x18   :  { %1394 = vmatprep.subr.bf16.mxu0 %v1953_v23  ;;  %1434 = vmatpush1.bf16.msra.mxu1 %v1952_v24  ;;  %v2025_v9 = vld [vmem:[%s2974_s1 + $0x264] ss:$8 sps:$4 sm:$0xff]   ;;  %v2020_v10 = vld [vmem:[%s2974_s1 + $0x370] ss:$8 sps:$4 sm:$0xff]   ;;  %v2023_v12 = vld [vmem:[%s2974_s1 + $0x260] ss:$8 sps:$4 sm:$0xff]  }
  0x19   :  { %1435 = vmatprep.subr.bf16.mxu1 %v1956_v25  ;;  %v2028_v11 = vld [vmem:[%s2974_s1 + $0x364] ss:$8 sps:$4 sm:$0xff]   ;;  %v2031_v13 = vld [vmem:[%s2974_s1 + $0x254] ss:$8 sps:$4 sm:$0xff]   ;;  %v2026_v14 = vld [vmem:[%s2974_s1 + $0x360] ss:$8 sps:$4 sm:$0xff]  }
  0x1a   :  { %v2034_v15 = vld [vmem:[%s2974_s1 + $0x354] ss:$8 sps:$4 sm:$0xff]   ;;  %v2029_v16 = vld [vmem:[%s2974_s1 + $0x250] ss:$8 sps:$4 sm:$0xff]   ;;  %v2037_v17 = vld [vmem:[%s2974_s1 + $0x244] ss:$8 sps:$4 sm:$0xff]  }
  0x1b   :  { %1395 = vmatpush1.bf16.msra.mxu0 %v1955_v26  ;;  %v2032_v18 = vld [vmem:[%s2974_s1 + $0x350] ss:$8 sps:$4 sm:$0xff]   ;;  %v2040_v19 = vld [vmem:[%s2974_s1 + $0x344] ss:$8 sps:$4 sm:$0xff]   ;;  %v2035_v20 = vld [vmem:[%s2974_s1 + $0x240] ss:$8 sps:$4 sm:$0xff]  }
  0x1c   :  { %1396 = vmatprep.subr.bf16.mxu0 %v1959_v27  ;;  %1436 = vmatpush1.bf16.msra.mxu1 %v1958_v28  ;;  %v2043_v21 = vld [vmem:[%s2974_s1 + $0x234] ss:$8 sps:$4 sm:$0xff]   ;;  %v2038_v22 = vld [vmem:[%s2974_s1 + $0x340] ss:$8 sps:$4 sm:$0xff]   ;;  %v2041_v24 = vld [vmem:[%s2974_s1 + $0x230] ss:$8 sps:$4 sm:$0xff]  }
  0x1d   :  { %1437 = vmatprep.subr.bf16.mxu1 %v1962_v29  ;;  %v2046_v23 = vld [vmem:[%s2974_s1 + $0x334] ss:$8 sps:$4 sm:$0xff]   ;;  %v2049_v25 = vld [vmem:[%s2974_s1 + $0x224] ss:$8 sps:$4 sm:$0xff]   ;;  %v2044_v26 = vld [vmem:[%s2974_s1 + $0x330] ss:$8 sps:$4 sm:$0xff]  }
  0x1e   :  { %v2052_v27 = vld [vmem:[%s2974_s1 + $0x324] ss:$8 sps:$4 sm:$0xff]   ;;  %v2047_v28 = vld [vmem:[%s2974_s1 + $0x220] ss:$8 sps:$4 sm:$0xff]   ;;  %v2055_v29 = vld [vmem:[%s2974_s1 + $0x214] ss:$8 sps:$4 sm:$0xff]  }
  0x1f   :  { %1397 = vmatpush1.bf16.msra.mxu0 %v1961_v30  ;;  %v2050_v30 = vld [vmem:[%s2974_s1 + $0x320] ss:$8 sps:$4 sm:$0xff]   ;;  %v2068_v46 = vld [vmem:[%s2974_s1 + $0x3f0] ss:$8 sps:$4 sm:$0xff]  }
  0x20   :  { %1398 = vmatprep.subr.bf16.mxu0 %v1965_v31  ;;  %1438 = vmatpush1.bf16.msra.mxu1 %v1964_v32  ;;  %v2058_v31 = vld [vmem:[%s2974_s1 + $0x314] ss:$8 sps:$4 sm:$0xff]   ;;  %v2071_v48 = vld [vmem:[%s2974_s1 + $0x2e0] ss:$8 sps:$4 sm:$0xff]   ;;  %v2077_v52 = vld [vmem:[%s2974_s1 + $0x2d0] ss:$8 sps:$4 sm:$0xff]  }
  0x21   :  { %1439 = vmatprep.subr.bf16.mxu1 %v1968_v33  ;;  %v2554_v32 = vld [vmem:[%s2975_s0 + $0x10] sm:$0xff]  ;;  %v2074_v50 = vld [vmem:[%s2974_s1 + $0x3e0] ss:$8 sps:$4 sm:$0xff]  }
  0x22   :  { %v2053_v33 = vld [vmem:[%s2974_s1 + $0x210] ss:$8 sps:$4 sm:$0xff]  }
  0x23   :  { %1399 = vmatpush2.bf16.msra.mxu0 %v1967_v34  ;;  %v1689_v34 = vcombine.high %v2554_v32, %v2554_v32 }
  0x24   :  { %1400 = vmatprep.subr.bf16.mxu0 %v1971_v35  ;;  %1440 = vmatpush2.bf16.msra.mxu1 %v1970_v36  ;;  %v2564_v35 = vld [vmem:[%s2975_s0 + $0x18] sm:$0xff]  ;;  %v2061_v36 = vld [vmem:[%s2974_s1 + $0x204] ss:$8 sps:$4 sm:$0xff]  }
  0x25   :  { %1441 = vmatprep.subr.bf16.mxu1 %v1974_v37  ;;  %v1691_v37 = vcombine.high %v2564_v35, %v2564_v35 }
  0x27   :  { %1401 = vmatpush2.bf16.msra.mxu0 %v1973_v38  ;;  %v2056_v38 = vld [vmem:[%s2974_s1 + $0x310] ss:$8 sps:$4 sm:$0xff]  }
  0x28   :  { %1402 = vmatprep.subr.bf16.mxu0 %v1977_v39  ;;  %1442 = vmatpush2.bf16.msra.mxu1 %v1976_v40  ;;  %v2064_v39 = vld [vmem:[%s2974_s1 + $0x304] ss:$8 sps:$4 sm:$0xff]   ;;  %v2059_v40 = vld [vmem:[%s2974_s1 + $0x200] ss:$8 sps:$4 sm:$0xff]  }
  0x29   :  { %1443 = vmatprep.subr.bf16.mxu1 %v1980_v41  ;;  %v2067_v41 = vld [vmem:[%s2974_s1 + $0x2f4] ss:$8 sps:$4 sm:$0xff]  }
  0x2b   :  { %1403 = vmatpush2.bf16.msra.mxu0 %v1979_v42  ;;  %v2062_v42 = vld [vmem:[%s2974_s1 + $0x300] ss:$8 sps:$4 sm:$0xff]  }
  0x2c   :  { %1404 = vmatprep.subr.bf16.mxu0 %v1983_v43  ;;  %1444 = vmatpush2.bf16.msra.mxu1 %v1982_v44  ;;  %v2070_v43 = vld [vmem:[%s2974_s1 + $0x3f4] ss:$8 sps:$4 sm:$0xff]   ;;  %v2065_v44 = vld [vmem:[%s2974_s1 + $0x2f0] ss:$8 sps:$4 sm:$0xff]  }
  0x2d   :  { %1445 = vmatprep.subr.bf16.mxu1 %v1986_v45  ;;  %v2073_v45 = vld [vmem:[%s2974_s1 + $0x2e4] ss:$8 sps:$4 sm:$0xff]  }
  0x2f   :  { %1405 = vmatpush2.bf16.msra.mxu0 %v1985_v47  ;;  %v2076_v47 = vld [vmem:[%s2974_s1 + $0x3e4] ss:$8 sps:$4 sm:$0xff]  }
  0x30   :  { %1406 = vmatprep.subr.bf16.mxu0 %v1989_v49  ;;  %1446 = vmatpush2.bf16.msra.mxu1 %v1988_v51  ;;  %v2079_v49 = vld [vmem:[%s2974_s1 + $0x2d4] ss:$8 sps:$4 sm:$0xff]  }
  0x31   :  { %1447 = vmatprep.subr.bf16.mxu1 %v1992_v53  ;;  %v2082_v51 = vld [vmem:[%s2974_s1 + $0x3d4] ss:$8 sps:$4 sm:$0xff]   ;;  %v2085_v53 = vld [vmem:[%s2974_s1 + $0x2c4] ss:$8 sps:$4 sm:$0xff]  }
  0x33   :  { %1407 = vmatpush2.bf16.msra.mxu0 %v1991_v54  ;;  %v2080_v54 = vld [vmem:[%s2974_s1 + $0x3d0] ss:$8 sps:$4 sm:$0xff]  }
  0x34   :  { %1408 = vmatprep.subr.bf16.mxu0 %v1995_v55  ;;  %1448 = vmatpush2.bf16.msra.mxu1 %v1994_v56  ;;  %v2088_v55 = vld [vmem:[%s2974_s1 + $0x3c4] ss:$8 sps:$4 sm:$0xff]   ;;  %v2083_v56 = vld [vmem:[%s2974_s1 + $0x2c0] ss:$8 sps:$4 sm:$0xff]  }
  0x35   :  { %1449 = vmatprep.subr.bf16.mxu1 %v1998_v57  ;;  %v2091_v57 = vld [vmem:[%s2974_s1 + $0x2b4] ss:$8 sps:$4 sm:$0xff]  }
  0x37   :  { %1409 = vmatpush2.bf16.msra.mxu0 %v1997_v58  ;;  %v2086_v58 = vld [vmem:[%s2974_s1 + $0x3c0] ss:$8 sps:$4 sm:$0xff]  }
  0x38   :  { %1410 = vmatprep.subr.bf16.mxu0 %v2001_v59  ;;  %1450 = vmatpush2.bf16.msra.mxu1 %v2000_v60  ;;  %v2094_v59 = vld [vmem:[%s2974_s1 + $0x3b4] ss:$8 sps:$4 sm:$0xff]   ;;  %v2089_v60 = vld [vmem:[%s2974_s1 + $0x2b0] ss:$8 sps:$4 sm:$0xff]  }
  0x39   :  { %1451 = vmatprep.subr.bf16.mxu1 %v2004_v61  ;;  %v2097_v61 = vld [vmem:[%s2974_s1 + $0x2a4] ss:$8 sps:$4 sm:$0xff]  }
  0x3b   :  { %1411 = vmatpush2.bf16.msra.mxu0 %v2003_v62  ;;  %v2092_v62 = vld [vmem:[%s2974_s1 + $0x3b0] ss:$8 sps:$4 sm:$0xff]  }
  0x3c   :  { %1412 = vmatprep.subr.bf16.mxu0 %v2007_v63  ;;  %1452 = vmatpush2.bf16.msra.mxu1 %v2006_v0  ;;  %v2100_v63 = vld [vmem:[%s2974_s1 + $0x3a4] ss:$8 sps:$4 sm:$0xff]   ;;  %v2095_v0 = vld [vmem:[%s2974_s1 + $0x2a0] ss:$8 sps:$4 sm:$0xff]  }
  0x3d   :  { %1453 = vmatprep.subr.bf16.mxu1 %v2010_v1  ;;  %v2103_v1 = vld [vmem:[%s2974_s1 + $0x294] ss:$8 sps:$4 sm:$0xff]  }
  0x3f   :  { %1413 = vmatpush2.bf16.msra.mxu0 %v2009_v2  ;;  %v2098_v2 = vld [vmem:[%s2974_s1 + $0x3a0] ss:$8 sps:$4 sm:$0xff]  }
  0x40   :  { %1464 = vmatprep.subr.bf16.mxu0 %v2017_v3  ;;  %1454 = vmatpush2.bf16.msra.mxu1 %v2014_v4  ;;  %v2106_v3 = vld [vmem:[%s2974_s1 + $0x394] ss:$8 sps:$4 sm:$0xff]   ;;  %v2101_v4 = vld [vmem:[%s2974_s1 + $0x290] ss:$8 sps:$4 sm:$0xff]  }
  0x41   :  { %1505 = vmatprep.subr.bf16.mxu1 %v2022_v6  ;;  %v2104_v6 = vld [vmem:[%s2974_s1 + $0x390] ss:$8 sps:$4 sm:$0xff]  }
  0x42   :  { %1415 = vmatmul.mubr.bf16.vlgmr.msra.gmra.mxu0 %v1684_v5  ;;  %v2109_v5 = vld [vmem:[%s2974_s1 + $0x284] ss:$8 sps:$4 sm:$0xff]  }
  0x43   :  { %1465 = vmatpush1.bf16.msra.mxu0 %v2015_v7  ;;  %1456 = vmatmul.mubr.bf16.vlgmr.msra.gmra.mxu1 %v1686_v8  ;;  %v2112_v7 = vld [vmem:[%s2974_s1 + $0x384] ss:$8 sps:$4 sm:$0xff]   ;;  %v2107_v8 = vld [vmem:[%s2974_s1 + $0x280] ss:$8 sps:$4 sm:$0xff]  }
  0x44   :  { %1466 = vmatprep.subr.bf16.mxu0 %v2025_v9  ;;  %1506 = vmatpush1.bf16.msra.mxu1 %v2020_v10  ;;  %v2117_v9 = vld [vmem:[%s2974_s1 + $0x474] ss:$8 sps:$4 sm:$0xff]   ;;  %v2110_v10 = vld [vmem:[%s2974_s1 + $0x380] ss:$8 sps:$4 sm:$0xff]  }
  0x45   :  { %1507 = vmatprep.subr.bf16.mxu1 %v2028_v11  ;;  %1496 = vmatprep.mubr.bf16.mxu0 %v1689_v34  ;;  %v1688_v11 = vcombine.low %v2554_v32, %v2554_v32  ;;  %v2138_v32 = vld [vmem:[%s2974_s1 + $0x540] ss:$8 sps:$4 sm:$0xff]   ;;  %v2141_v34 = vld [vmem:[%s2974_s1 + $0x430] ss:$8 sps:$4 sm:$0xff]  }
  0x46   :  { %1537 = vmatprep.mubr.bf16.mxu1 %v1691_v37  ;;  %v2152_v37 = vld [vmem:[%s2974_s1 + $0x524] ss:$8 sps:$4 sm:$0xff]  }
  0x47   :  { %1467 = vmatpush1.bf16.msra.mxu0 %v2023_v12  ;;  %v2122_v12 = vld [vmem:[%s2974_s1 + $0x574] ss:$8 sps:$4 sm:$0xff]  }
  0x48   :  { %1468 = vmatprep.subr.bf16.mxu0 %v2031_v13  ;;  %1508 = vmatpush1.bf16.msra.mxu1 %v2026_v14  ;;  %v2115_v13 = vld [vmem:[%s2974_s1 + $0x470] ss:$8 sps:$4 sm:$0xff]   ;;  %v1690_v14 = vcombine.low %v2564_v35, %v2564_v35  ;;  %v2149_v35 = vld [vmem:[%s2974_s1 + $0x424] ss:$8 sps:$4 sm:$0xff]  }
  0x49   :  { %1509 = vmatprep.subr.bf16.mxu1 %v2034_v15  ;;  %v2125_v15 = vld [vmem:[%s2974_s1 + $0x464] ss:$8 sps:$4 sm:$0xff]  }
  0x4b   :  { %1469 = vmatpush1.bf16.msra.mxu0 %v2029_v16  ;;  %v2120_v16 = vld [vmem:[%s2974_s1 + $0x570] ss:$8 sps:$4 sm:$0xff]  }
  0x4c   :  { %1470 = vmatprep.subr.bf16.mxu0 %v2037_v17  ;;  %1510 = vmatpush1.bf16.msra.mxu1 %v2032_v18  ;;  %v2701_v17 = vld [vmem:[%s2975_s0 + $0x20] sm:$0xff] }
  0x4d   :  { %1511 = vmatprep.subr.bf16.mxu1 %v2040_v19  ;;  %v2123_v18 = vld [vmem:[%s2974_s1 + $0x460] ss:$8 sps:$4 sm:$0xff]   ;;  %v2128_v19 = vld [vmem:[%s2974_s1 + $0x564] ss:$8 sps:$4 sm:$0xff]  }
  0x4f   :  { %1471 = vmatpush1.bf16.msra.mxu0 %v2035_v20  ;;  %v1693_v20 = vcombine.high %v2701_v17, %v2701_v17 }
  0x50   :  { %1472 = vmatprep.subr.bf16.mxu0 %v2043_v21  ;;  %1512 = vmatpush1.bf16.msra.mxu1 %v2038_v22  ;;  %v2714_v21 = vld [vmem:[%s2975_s0 + $0x28] sm:$0xff]  ;;  %v2131_v22 = vld [vmem:[%s2974_s1 + $0x454] ss:$8 sps:$4 sm:$0xff]  }
  0x51   :  { %1513 = vmatprep.subr.bf16.mxu1 %v2046_v23  ;;  %v1695_v23 = vcombine.high %v2714_v21, %v2714_v21 }
  0x53   :  { %1473 = vmatpush1.bf16.msra.mxu0 %v2041_v24  ;;  %v2126_v24 = vld [vmem:[%s2974_s1 + $0x560] ss:$8 sps:$4 sm:$0xff]  }
  0x54   :  { %1474 = vmatprep.subr.bf16.mxu0 %v2049_v25  ;;  %1514 = vmatpush1.bf16.msra.mxu1 %v2044_v26  ;;  %v2134_v25 = vld [vmem:[%s2974_s1 + $0x554] ss:$8 sps:$4 sm:$0xff]   ;;  %v2129_v26 = vld [vmem:[%s2974_s1 + $0x450] ss:$8 sps:$4 sm:$0xff]  }
  0x55   :  { %1515 = vmatprep.subr.bf16.mxu1 %v2052_v27  ;;  %v2137_v27 = vld [vmem:[%s2974_s1 + $0x444] ss:$8 sps:$4 sm:$0xff]  }
  0x57   :  { %1475 = vmatpush1.bf16.msra.mxu0 %v2047_v28  ;;  %v2132_v28 = vld [vmem:[%s2974_s1 + $0x550] ss:$8 sps:$4 sm:$0xff]  }
  0x58   :  { %1476 = vmatprep.subr.bf16.mxu0 %v2055_v29  ;;  %1516 = vmatpush1.bf16.msra.mxu1 %v2050_v30  ;;  %v2140_v29 = vld [vmem:[%s2974_s1 + $0x544] ss:$8 sps:$4 sm:$0xff]   ;;  %v2135_v30 = vld [vmem:[%s2974_s1 + $0x440] ss:$8 sps:$4 sm:$0xff]  }
  0x59   :  { %1517 = vmatprep.subr.bf16.mxu1 %v2058_v31  ;;  %v2143_v31 = vld [vmem:[%s2974_s1 + $0x434] ss:$8 sps:$4 sm:$0xff]  }
  0x5b   :  { %1477 = vmatpush1.bf16.msra.mxu0 %v2053_v33  ;;  %v2146_v33 = vld [vmem:[%s2974_s1 + $0x534] ss:$8 sps:$4 sm:$0xff]  }
  0x5c   :  { %1478 = vmatprep.subr.bf16.mxu0 %v2061_v36  ;;  %1518 = vmatpush1.bf16.msra.mxu1 %v2056_v38  ;;  %v2144_v36 = vld [vmem:[%s2974_s1 + $0x530] ss:$8 sps:$4 sm:$0xff]   ;;  %v2147_v38 = vld [vmem:[%s2974_s1 + $0x420] ss:$8 sps:$4 sm:$0xff]  }
  0x5d   :  { %1519 = vmatprep.subr.bf16.mxu1 %v2064_v39  ;;  %v2155_v39 = vld [vmem:[%s2974_s1 + $0x414] ss:$8 sps:$4 sm:$0xff]  }
  0x5f   :  { %1479 = vmatpush1.bf16.msra.mxu0 %v2059_v40  ;;  %v2150_v40 = vld [vmem:[%s2974_s1 + $0x520] ss:$8 sps:$4 sm:$0xff]  }
  0x60   :  { %1480 = vmatprep.subr.bf16.mxu0 %v2067_v41  ;;  %1520 = vmatpush1.bf16.msra.mxu1 %v2062_v42  ;;  %v2158_v41 = vld [vmem:[%s2974_s1 + $0x514] ss:$8 sps:$4 sm:$0xff]   ;;  %v2153_v42 = vld [vmem:[%s2974_s1 + $0x410] ss:$8 sps:$4 sm:$0xff]  }
  0x61   :  { %1521 = vmatprep.subr.bf16.mxu1 %v2070_v43  ;;  %v2161_v43 = vld [vmem:[%s2974_s1 + $0x404] ss:$8 sps:$4 sm:$0xff]  }
  0x63   :  { %1481 = vmatpush2.bf16.msra.mxu0 %v2065_v44  ;;  %v2156_v44 = vld [vmem:[%s2974_s1 + $0x510] ss:$8 sps:$4 sm:$0xff]  }
  0x64   :  { %1482 = vmatprep.subr.bf16.mxu0 %v2073_v45  ;;  %1522 = vmatpush2.bf16.msra.mxu1 %v2068_v46  ;;  %v2164_v45 = vld [vmem:[%s2974_s1 + $0x504] ss:$8 sps:$4 sm:$0xff]   ;;  %v2159_v46 = vld [vmem:[%s2974_s1 + $0x400] ss:$8 sps:$4 sm:$0xff]  }
  0x65   :  { %1523 = vmatprep.subr.bf16.mxu1 %v2076_v47  ;;  %v2167_v47 = vld [vmem:[%s2974_s1 + $0x4f4] ss:$8 sps:$4 sm:$0xff]  }
  0x67   :  { %1483 = vmatpush2.bf16.msra.mxu0 %v2071_v48  ;;  %v2162_v48 = vld [vmem:[%s2974_s1 + $0x500] ss:$8 sps:$4 sm:$0xff]  }
  0x68   :  { %1484 = vmatprep.subr.bf16.mxu0 %v2079_v49  ;;  %1524 = vmatpush2.bf16.msra.mxu1 %v2074_v50  ;;  %v2170_v49 = vld [vmem:[%s2974_s1 + $0x5f4] ss:$8 sps:$4 sm:$0xff]   ;;  %v2165_v50 = vld [vmem:[%s2974_s1 + $0x4f0] ss:$8 sps:$4 sm:$0xff]  }
  0x69   :  { %1525 = vmatprep.subr.bf16.mxu1 %v2082_v51  ;;  %v2173_v51 = vld [vmem:[%s2974_s1 + $0x4e4] ss:$8 sps:$4 sm:$0xff]  }
  0x6b   :  { %1485 = vmatpush2.bf16.msra.mxu0 %v2077_v52  ;;  %v2168_v52 = vld [vmem:[%s2974_s1 + $0x5f0] ss:$8 sps:$4 sm:$0xff]  }
  0x6c   :  { %1486 = vmatprep.subr.bf16.mxu0 %v2085_v53  ;;  %1526 = vmatpush2.bf16.msra.mxu1 %v2080_v54  ;;  %v2176_v53 = vld [vmem:[%s2974_s1 + $0x5e4] ss:$8 sps:$4 sm:$0xff]   ;;  %v2171_v54 = vld [vmem:[%s2974_s1 + $0x4e0] ss:$8 sps:$4 sm:$0xff]  }
  0x6d   :  { %1527 = vmatprep.subr.bf16.mxu1 %v2088_v55  ;;  %v2179_v55 = vld [vmem:[%s2974_s1 + $0x4d4] ss:$8 sps:$4 sm:$0xff]  }
  0x6f   :  { %1487 = vmatpush2.bf16.msra.mxu0 %v2083_v56  ;;  %v2174_v56 = vld [vmem:[%s2974_s1 + $0x5e0] ss:$8 sps:$4 sm:$0xff]  }
  0x70   :  { %1488 = vmatprep.subr.bf16.mxu0 %v2091_v57  ;;  %1528 = vmatpush2.bf16.msra.mxu1 %v2086_v58  ;;  %v2182_v57 = vld [vmem:[%s2974_s1 + $0x5d4] ss:$8 sps:$4 sm:$0xff]   ;;  %v2177_v58 = vld [vmem:[%s2974_s1 + $0x4d0] ss:$8 sps:$4 sm:$0xff]  }
  0x71   :  { %1529 = vmatprep.subr.bf16.mxu1 %v2094_v59  ;;  %v2185_v59 = vld [vmem:[%s2974_s1 + $0x4c4] ss:$8 sps:$4 sm:$0xff]  }
  0x73   :  { %1489 = vmatpush2.bf16.msra.mxu0 %v2089_v60  ;;  %v2180_v60 = vld [vmem:[%s2974_s1 + $0x5d0] ss:$8 sps:$4 sm:$0xff]  }
  0x74   :  { %1490 = vmatprep.subr.bf16.mxu0 %v2097_v61  ;;  %1530 = vmatpush2.bf16.msra.mxu1 %v2092_v62  ;;  %v2188_v61 = vld [vmem:[%s2974_s1 + $0x5c4] ss:$8 sps:$4 sm:$0xff]   ;;  %v2183_v62 = vld [vmem:[%s2974_s1 + $0x4c0] ss:$8 sps:$4 sm:$0xff]  }
  0x75   :  { %1531 = vmatprep.subr.bf16.mxu1 %v2100_v63  ;;  %v2191_v63 = vld [vmem:[%s2974_s1 + $0x4b4] ss:$8 sps:$4 sm:$0xff]  }
  0x77   :  { %1491 = vmatpush2.bf16.msra.mxu0 %v2095_v0  ;;  %v2186_v0 = vld [vmem:[%s2974_s1 + $0x5c0] ss:$8 sps:$4 sm:$0xff]  }
  0x78   :  { %1492 = vmatprep.subr.bf16.mxu0 %v2103_v1  ;;  %1532 = vmatpush2.bf16.msra.mxu1 %v2098_v2  ;;  %v2194_v1 = vld [vmem:[%s2974_s1 + $0x5b4] ss:$8 sps:$4 sm:$0xff]   ;;  %v2189_v2 = vld [vmem:[%s2974_s1 + $0x4b0] ss:$8 sps:$4 sm:$0xff]  }
  0x79   :  { %1533 = vmatprep.subr.bf16.mxu1 %v2106_v3  ;;  %v2197_v3 = vld [vmem:[%s2974_s1 + $0x4a4] ss:$8 sps:$4 sm:$0xff]  }
  0x7b   :  { %1493 = vmatpush2.bf16.msra.mxu0 %v2101_v4  ;;  %v2192_v4 = vld [vmem:[%s2974_s1 + $0x5b0] ss:$8 sps:$4 sm:$0xff]  }
  0x7c   :  { %1494 = vmatprep.subr.bf16.mxu0 %v2109_v5  ;;  %1534 = vmatpush2.bf16.msra.mxu1 %v2104_v6  ;;  %v2200_v5 = vld [vmem:[%s2974_s1 + $0x5a4] ss:$8 sps:$4 sm:$0xff]   ;;  %v2195_v6 = vld [vmem:[%s2974_s1 + $0x4a0] ss:$8 sps:$4 sm:$0xff]  }
  0x7d   :  { %1535 = vmatprep.subr.bf16.mxu1 %v2112_v7  ;;  %v2203_v7 = vld [vmem:[%s2974_s1 + $0x494] ss:$8 sps:$4 sm:$0xff]  }
  0x7f   :  { %1495 = vmatpush2.bf16.msra.mxu0 %v2107_v8  ;;  %v2198_v8 = vld [vmem:[%s2974_s1 + $0x5a0] ss:$8 sps:$4 sm:$0xff]  }
  0x80   :  { %1546 = vmatprep.subr.bf16.mxu0 %v2117_v9  ;;  %1536 = vmatpush2.bf16.msra.mxu1 %v2110_v10  ;;  %v2206_v9 = vld [vmem:[%s2974_s1 + $0x594] ss:$8 sps:$4 sm:$0xff]   ;;  %v2201_v10 = vld [vmem:[%s2974_s1 + $0x490] ss:$8 sps:$4 sm:$0xff]  }
  0x81   :  { %1587 = vmatprep.subr.bf16.mxu1 %v2122_v12  ;;  %v2204_v12 = vld [vmem:[%s2974_s1 + $0x590] ss:$8 sps:$4 sm:$0xff]  }
  0x82   :  { %1497 = vmatmul.mubr.bf16.vlgmr.msra.gmra.mxu0 %v1688_v11  ;;  %v2209_v11 = vld [vmem:[%s2974_s1 + $0x484] ss:$8 sps:$4 sm:$0xff]  }
  0x83   :  { %1547 = vmatpush1.bf16.msra.mxu0 %v2115_v13  ;;  %1538 = vmatmul.mubr.bf16.vlgmr.msra.gmra.mxu1 %v1690_v14  ;;  %v2212_v13 = vld [vmem:[%s2974_s1 + $0x584] ss:$8 sps:$4 sm:$0xff]   ;;  %v2207_v14 = vld [vmem:[%s2974_s1 + $0x480] ss:$8 sps:$4 sm:$0xff]  }
  0x84   :  { %1548 = vmatprep.subr.bf16.mxu0 %v2125_v15  ;;  %1588 = vmatpush1.bf16.msra.mxu1 %v2120_v16  ;;  %v2217_v15 = vld [vmem:[%s2974_s1 + $0x674] ss:$8 sps:$4 sm:$0xff]  }
  0x85   :  { %1578 = vmatprep.mubr.bf16.mxu0 %v1693_v20  ;;  %1589 = vmatprep.subr.bf16.mxu1 %v2128_v19  ;;  %v21_v16 = vld [vmem:[%s2975_s0 + $0x30] sm:$0xff]  ;;  %v1692_v19 = vcombine.low %v2701_v17, %v2701_v17  ;;  %v2220_v17 = vld [vmem:[%s2974_s1 + $0x660] ss:$8 sps:$4 sm:$0xff]  }
  0x86   :  { %1619 = vmatprep.mubr.bf16.mxu1 %v1695_v23  ;;  %v2215_v20 = vld [vmem:[%s2974_s1 + $0x670] ss:$8 sps:$4 sm:$0xff]   ;;  %v1694_v23 = vcombine.low %v2714_v21, %v2714_v21 }
  0x87   :  { %1549 = vmatpush1.bf16.msra.mxu0 %v2123_v18  ;;  %v2210_v18 = vld [vmem:[%s2974_s1 + $0x580] ss:$8 sps:$4 sm:$0xff]   ;;  %v2223_v21 = vld [vmem:[%s2974_s1 + $0x650] ss:$8 sps:$4 sm:$0xff]  }
  0x88   :  { %1550 = vmatprep.subr.bf16.mxu0 %v2131_v22  ;;  %1590 = vmatpush1.bf16.msra.mxu1 %v2126_v24  ;;  %v1697_v22 = vcombine.high %v21_v16, %v21_v16  ;;  %v2222_v24 = vld [vmem:[%s2974_s1 + $0x664] ss:$8 sps:$4 sm:$0xff]  }
  0x89   :  { %1591 = vmatprep.subr.bf16.mxu1 %v2134_v25  ;;  %v2225_v25 = vld [vmem:[%s2974_s1 + $0x654] ss:$8 sps:$4 sm:$0xff]  }
  0x8b   :  { %1551 = vmatpush1.bf16.msra.mxu0 %v2129_v26  ;;  %v2228_v26 = vld [vmem:[%s2974_s1 + $0x644] ss:$8 sps:$4 sm:$0xff]  }
  0x8c   :  { %1552 = vmatprep.subr.bf16.mxu0 %v2137_v27  ;;  %1592 = vmatpush1.bf16.msra.mxu1 %v2132_v28  ;;  %v2226_v27 = vld [vmem:[%s2974_s1 + $0x640] ss:$8 sps:$4 sm:$0xff]   ;;  %v2231_v28 = vld [vmem:[%s2974_s1 + $0x634] ss:$8 sps:$4 sm:$0xff]  }
  0x8d   :  { %1593 = vmatprep.subr.bf16.mxu1 %v2140_v29  ;;  %v2229_v29 = vld [vmem:[%s2974_s1 + $0x630] ss:$8 sps:$4 sm:$0xff]  }
  0x8f   :  { %1553 = vmatpush1.bf16.msra.mxu0 %v2135_v30  ;;  %v2234_v30 = vld [vmem:[%s2974_s1 + $0x624] ss:$8 sps:$4 sm:$0xff]  }
  0x90   :  { %1554 = vmatprep.subr.bf16.mxu0 %v2143_v31  ;;  %1594 = vmatpush1.bf16.msra.mxu1 %v2138_v32  ;;  %v2232_v31 = vld [vmem:[%s2974_s1 + $0x620] ss:$8 sps:$4 sm:$0xff]   ;;  %v2237_v32 = vld [vmem:[%s2974_s1 + $0x614] ss:$8 sps:$4 sm:$0xff]  }
  0x91   :  { %1595 = vmatprep.subr.bf16.mxu1 %v2146_v33  ;;  %v2235_v33 = vld [vmem:[%s2974_s1 + $0x610] ss:$8 sps:$4 sm:$0xff]  }
  0x93   :  { %1555 = vmatpush1.bf16.msra.mxu0 %v2141_v34  ;;  %v2240_v34 = vld [vmem:[%s2974_s1 + $0x604] ss:$8 sps:$4 sm:$0xff]  }
  0x94   :  { %1556 = vmatprep.subr.bf16.mxu0 %v2149_v35  ;;  %1596 = vmatpush1.bf16.msra.mxu1 %v2144_v36  ;;  %v2238_v35 = vld [vmem:[%s2974_s1 + $0x600] ss:$8 sps:$4 sm:$0xff]   ;;  %v2243_v36 = vld [vmem:[%s2974_s1 + $0x6b4] ss:$8 sps:$4 sm:$0xff]  }
  0x95   :  { %1597 = vmatprep.subr.bf16.mxu1 %v2152_v37  ;;  %v2241_v37 = vld [vmem:[%s2974_s1 + $0x6b0] ss:$8 sps:$4 sm:$0xff]  }
  0x97   :  { %1557 = vmatpush1.bf16.msra.mxu0 %v2147_v38  ;;  %v2246_v38 = vld [vmem:[%s2974_s1 + $0x6a4] ss:$8 sps:$4 sm:$0xff]  }
  0x98   :  { %1558 = vmatprep.subr.bf16.mxu0 %v2155_v39  ;;  %1598 = vmatpush1.bf16.msra.mxu1 %v2150_v40  ;;  %v2244_v39 = vld [vmem:[%s2974_s1 + $0x6a0] ss:$8 sps:$4 sm:$0xff]   ;;  %v2249_v40 = vld [vmem:[%s2974_s1 + $0x694] ss:$8 sps:$4 sm:$0xff]  }
  0x99   :  { %1599 = vmatprep.subr.bf16.mxu1 %v2158_v41  ;;  %v2247_v41 = vld [vmem:[%s2974_s1 + $0x690] ss:$8 sps:$4 sm:$0xff]  }
  0x9b   :  { %1559 = vmatpush1.bf16.msra.mxu0 %v2153_v42  ;;  %v2252_v42 = vld [vmem:[%s2974_s1 + $0x684] ss:$8 sps:$4 sm:$0xff]  }
  0x9c   :  { %1560 = vmatprep.subr.bf16.mxu0 %v2161_v43  ;;  %1600 = vmatpush1.bf16.msra.mxu1 %v2156_v44  ;;  %v2250_v43 = vld [vmem:[%s2974_s1 + $0x680] ss:$8 sps:$4 sm:$0xff]   ;;  %v1696_v44 = vcombine.low %v21_v16, %v21_v16 }
  0x9d   :  { %1601 = vmatprep.subr.bf16.mxu1 %v2164_v45  ;;  %v240_v45 = vlaneseq }
  0x9f   :  { %1561 = vmatpush1.bf16.msra.mxu0 %v2159_v46  ;;  %v241_v46 = vshrl.u32 %v240_v45, 7 }
  0xa0   :  { %1562 = vmatprep.subr.bf16.mxu0 %v2167_v47  ;;  %1602 = vmatpush1.bf16.msra.mxu1 %v2162_v48  ;;  %v238_v48 = vld [vmem:[%s2976_s2] sm:$0x3] }
  0xa1   :  { %1603 = vmatprep.subr.bf16.mxu1 %v2170_v49  ;;  %v242_v47 = vsub.s32 0, %v241_v46  ;;  %v246_v49 = vsub.s32 1, %v241_v46 }
  0xa3   :  { %1563 = vmatpush2.bf16.msra.mxu0 %v2165_v50  ;;  %v243_v50 = vrot.slane %v238_v48, %v242_v47 }
  0xa4   :  { %1564 = vmatprep.subr.bf16.mxu0 %v2173_v51  ;;  %1604 = vmatpush2.bf16.msra.mxu1 %v2168_v52  ;;  %v247_v51 = vrot.slane %v238_v48, %v246_v49 }
  0xa5   :  { %1605 = vmatprep.subr.bf16.mxu1 %v2176_v53 }
  0xa7   :  { %1565 = vmatpush2.bf16.msra.mxu0 %v2171_v54 }
  0xa8   :  { %1566 = vmatprep.subr.bf16.mxu0 %v2179_v55  ;;  %1606 = vmatpush2.bf16.msra.mxu1 %v2174_v56 }
  0xa9   :  { %1607 = vmatprep.subr.bf16.mxu1 %v2182_v57 }
  0xab   :  { %1567 = vmatpush2.bf16.msra.mxu0 %v2177_v58 }
  0xac   :  { %1568 = vmatprep.subr.bf16.mxu0 %v2185_v59  ;;  %1608 = vmatpush2.bf16.msra.mxu1 %v2180_v60 }
  0xad   :  { %1609 = vmatprep.subr.bf16.mxu1 %v2188_v61 }
  0xaf   :  { %1569 = vmatpush2.bf16.msra.mxu0 %v2183_v62 }
  0xb0   :  { %1570 = vmatprep.subr.bf16.mxu0 %v2191_v63  ;;  %1610 = vmatpush2.bf16.msra.mxu1 %v2186_v0 }
  0xb1   :  { %1611 = vmatprep.subr.bf16.mxu1 %v2194_v1 }
  0xb3   :  { %1571 = vmatpush2.bf16.msra.mxu0 %v2189_v2 }
  0xb4   :  { %1572 = vmatprep.subr.bf16.mxu0 %v2197_v3  ;;  %1612 = vmatpush2.bf16.msra.mxu1 %v2192_v4 }
  0xb5   :  { %1613 = vmatprep.subr.bf16.mxu1 %v2200_v5 }
  0xb7   :  { %1573 = vmatpush2.bf16.msra.mxu0 %v2195_v6 }
  0xb8   :  { %1574 = vmatprep.subr.bf16.mxu0 %v2203_v7  ;;  %1614 = vmatpush2.bf16.msra.mxu1 %v2198_v8 }
  0xb9   :  { %1615 = vmatprep.subr.bf16.mxu1 %v2206_v9 }
  0xbb   :  { %1575 = vmatpush2.bf16.msra.mxu0 %v2201_v10 }
  0xbc   :  { %1576 = vmatprep.subr.bf16.mxu0 %v2209_v11  ;;  %1616 = vmatpush2.bf16.msra.mxu1 %v2204_v12 }
  0xbd   :  { %1617 = vmatprep.subr.bf16.mxu1 %v2212_v13 }
  0xbf   :  { %1577 = vmatpush2.bf16.msra.mxu0 %v2207_v14 }
  0xc0   :  { %1628 = vmatprep.subr.bf16.mxu0 %v2217_v15  ;;  %1618 = vmatpush2.bf16.msra.mxu1 %v2210_v18 }
  0xc2   :  { %1579 = vmatmul.mubr.bf16.vlgmr.msra.gmra.mxu0 %v1692_v19 }
  0xc3   :  { %1629 = vmatpush1.bf16.msra.mxu0 %v2215_v20  ;;  %1914 = vmatprep.mubr.msk.bf16.mxu0 %vm1378_vm0, %v1697_v22 }
  0xc4   :  { %1620 = vmatmul.mubr.bf16.vlgmr.msra.gmra.mxu1 %v1694_v23  ;;  %1630 = vmatprep.subr.bf16.mxu0 %v2222_v24 }
  0xc7   :  { %1631 = vmatpush1.bf16.msra.mxu0 %v2220_v17 }
  0xc8   :  { %1632 = vmatprep.subr.bf16.mxu0 %v2225_v25 }
  0xcb   :  { %1633 = vmatpush1.bf16.msra.mxu0 %v2223_v21 }
  0xcc   :  { %1634 = vmatprep.subr.bf16.mxu0 %v2228_v26 }
  0xcf   :  { %1635 = vmatpush1.bf16.msra.mxu0 %v2226_v27 }
  0xd0   :  { %1636 = vmatprep.subr.bf16.mxu0 %v2231_v28 }
  0xd3   :  { %1637 = vmatpush1.bf16.msra.mxu0 %v2229_v29 }
  0xd4   :  { %1638 = vmatprep.subr.bf16.mxu0 %v2234_v30 }
  0xd7   :  { %1639 = vmatpush1.bf16.msra.mxu0 %v2232_v31 }
  0xd8   :  { %1640 = vmatprep.subr.bf16.mxu0 %v2237_v32 }
  0xdb   :  { %1641 = vmatpush1.bf16.msra.mxu0 %v2235_v33 }
  0xdc   :  { %1642 = vmatprep.subr.bf16.mxu0 %v2240_v34 }
  0xdf   :  { %1643 = vmatpush1.bf16.msra.mxu0 %v2238_v35 }
  0xe0   :  { %1652 = vmatprep.subr.bf16.mxu0 %v2243_v36 }
  0xe3   :  { %1653 = vmatpush2.bf16.msra.mxu0 %v2241_v37 }
  0xe4   :  { %1654 = vmatprep.subr.bf16.mxu0 %v2246_v38 }
  0xe7   :  { %1655 = vmatpush2.bf16.msra.mxu0 %v2244_v39 }
  0xe8   :  { %1656 = vmatprep.subr.bf16.mxu0 %v2249_v40 }
  0xeb   :  { %1657 = vmatpush2.bf16.msra.mxu0 %v2247_v41 }
  0xec   :  { %1658 = vmatprep.subr.bf16.mxu0 %v2252_v42 }
  0xef   :  { %1659 = vmatpush2.bf16.msra.mxu0 %v2250_v43 }
  0xf2   :  { %1661 = vmatmul.mubr.bf16.vlgmr.msra.gmra.mxu0 %v1696_v44 }
 0x102   :  { %v1416_v52 = vpop.f32.mrf.mxu0 }
 0x103   :  { %v1417_v53 = vadd.f32 %v1416_v52, %v243_v50  ;;  %v1457_v55 = vpop.f32.mrf.mxu1 }
 0x104   :  { %v1418_v54 = vpop.f32.mrf.mxu0 }
 0x105   :  { %v1419_v56 = vadd.f32 %v1418_v54, %v247_v51  ;;  %v1458_v57 = vadd.f32 %v1457_v55, %v1417_v53  ;;  %v1459_v59 = vpop.f32.mrf.mxu1 }
 0x106   :  { %v1420_v58 = vpop.f32.mrf.mxu0 }
 0x107   :  { %v1460_v60 = vadd.f32 %v1459_v59, %v1419_v56  ;;  %v1461_v62 = vpop.f32.mrf.mxu1 }
 0x108   :  { %v1421_v61 = vpop.f32.mrf.mxu0 }
 0x109   :  { %v1462_v63 = vpop.f32.mrf.mxu1 }
 0x142   :  { %v1498_v0 = vpop.f32.mrf.mxu0 }
 0x143   :  { %v1499_v1 = vadd.f32 %v1498_v0, %v1458_v57  ;;  %v1539_v3 = vpop.f32.mrf.mxu1 }
 0x144   :  { %v1500_v2 = vpop.f32.mrf.mxu0 }
 0x145   :  { %v1501_v4 = vadd.f32 %v1500_v2, %v1460_v60  ;;  %v1540_v5 = vadd.f32 %v1539_v3, %v1499_v1  ;;  %v1541_v7 = vpop.f32.mrf.mxu1 }
 0x146   :  { %v1502_v6 = vpop.f32.mrf.mxu0 }
 0x147   :  { %v1542_v8 = vadd.f32 %v1541_v7, %v1501_v4  ;;  %v1543_v10 = vpop.f32.mrf.mxu1 }
 0x148   :  { %v1503_v9 = vpop.f32.mrf.mxu0 }
 0x149   :  { %v1544_v11 = vpop.f32.mrf.mxu1 }
 0x182   :  { %v1580_v12 = vpop.f32.mrf.mxu0 }
 0x183   :  { %v1581_v22 = vadd.f32 %v1580_v12, %v1540_v5 }
 0x184   :  { %v1582_v13 = vpop.f32.mrf.mxu0  ;;  %v1621_v14 = vpop.f32.mrf.mxu1 }
 0x185   :  { %v1583_v23 = vadd.f32 %v1582_v13, %v1542_v8  ;;  %v1622_v24 = vadd.f32 %v1621_v14, %v1581_v22 }
 0x186   :  { %v1584_v15 = vpop.f32.mrf.mxu0  ;;  %v1623_v16 = vpop.f32.mrf.mxu1 }
 0x187   :  { %v1624_v25 = vadd.f32 %v1623_v16, %v1583_v23 }
 0x188   :  { %v1585_v18 = vpop.f32.mrf.mxu0  ;;  %v1625_v19 = vpop.f32.mrf.mxu1 }
 0x18a   :  { %v1626_v20 = vpop.f32.mrf.mxu1 }
 0x1b2   :  { %v1662_v17 = vpop.f32.mrf.mxu0 }
 0x1b3   :  { %v1663_v21 = vadd.f32 %v1662_v17, %v1622_v24 }
 0x1b4   :  { %v1664_v26 = vpop.f32.mrf.mxu0 }
 0x1b5   :  { %v1665_v27 = vadd.f32 %v1664_v26, %v1624_v25  ;;  %v1669_v29 = vmax.f32 %v1663_v21, 0.0 }
 0x1b6   :  { %v1666_v28 = vpop.f32.mrf.mxu0 }
 0x1b7   :  { %v1670_v30 = vmax.f32 %v1665_v27, 0.0 }
 0x1b8   :  { %v1667_v31 = vpop.f32.mrf.mxu0 }
 0x1b9   :  { %v1916_v32 = vpack.c.bf16 %v1670_v30, %v1669_v29 }
 0x1bb   :  { %1679 = vst [vmem:[%s2977_s3] sm:$0xff] %v1916_v32 }

// kernel: fwd.43
= control target key start
LH: loop header
LB: loop body
LE: loop exit
PB: predicated region body
PF: predicated region fallthrough
CT: control target
= control target key end

     0   :  { %vm6604_vm0 = vcmask 523264   ;;  %s14406_s1 = inlined_call_operand.vmem [shape: bf16[1728,1280], index: 1, kind: input, shape index: {}]   ;;  %s14407_s0 = inlined_call_operand.vmem [shape: bf16[8,1728], index: 0, kind: input, shape index: {}]   ;;  %s14408_s2 = inlined_call_operand.vmem [shape: f32[1,1280], index: 2, kind: input, shape index: {}]   ;;  %s14409_s3 = inlined_call_operand.vmem [shape: bf16[8,1280], index: 3, kind: output, shape index: {}]  }
   0x1   :  { %v9211_v0 = vld [vmem:[%s14406_s1 + $0x234] ss:$40 sps:$4 sm:$0xff]   ;;  %v9215_v2 = vld [vmem:[%s14406_s1 + $0x230] ss:$40 sps:$4 sm:$0xff]   ;;  %v9217_v4 = vld [vmem:[%s14406_s1 + $0x1e4] ss:$40 sps:$4 sm:$0xff]  }
   0x2   :  { %v9213_v1 = vld [vmem:[%s14406_s1 + $0x734] ss:$40 sps:$4 sm:$0xff]   ;;  %6608 = vmatprep.subr.bf16.mxu0 %v9211_v0  ;;  %v9216_v3 = vld [vmem:[%s14406_s1 + $0x730] ss:$40 sps:$4 sm:$0xff]   ;;  %v9219_v5 = vld [vmem:[%s14406_s1 + $0x6e4] ss:$40 sps:$4 sm:$0xff]  }
   0x3   :  { %6649 = vmatprep.subr.bf16.mxu1 %v9213_v1  ;;  %6609 = vmatpush1.bf16.msra.mxu0 %v9215_v2  ;;  %v9221_v6 = vld [vmem:[%s14406_s1 + $0x1e0] ss:$40 sps:$4 sm:$0xff]   ;;  %v9223_v8 = vld [vmem:[%s14406_s1 + $0x194] ss:$40 sps:$4 sm:$0xff]   ;;  %v9227_v10 = vld [vmem:[%s14406_s1 + $0x190] ss:$40 sps:$4 sm:$0xff]  }
   0x4   :  { %6650 = vmatpush1.bf16.msra.mxu1 %v9216_v3  ;;  %6610 = vmatprep.subr.bf16.mxu0 %v9217_v4  ;;  %v9222_v7 = vld [vmem:[%s14406_s1 + $0x6e0] ss:$40 sps:$4 sm:$0xff]   ;;  %v9225_v9 = vld [vmem:[%s14406_s1 + $0x694] ss:$40 sps:$4 sm:$0xff]   ;;  %v9228_v11 = vld [vmem:[%s14406_s1 + $0x690] ss:$40 sps:$4 sm:$0xff]  }
   0x5   :  { %6651 = vmatprep.subr.bf16.mxu1 %v9219_v5  ;;  %v9229_v12 = vld [vmem:[%s14406_s1 + $0x144] ss:$40 sps:$4 sm:$0xff]   ;;  %v9233_v14 = vld [vmem:[%s14406_s1 + $0x140] ss:$40 sps:$4 sm:$0xff]   ;;  %v9235_v16 = vld [vmem:[%s14406_s1 + $0xf4] ss:$40 sps:$4 sm:$0xff]  }
   0x6   :  { %v9231_v13 = vld [vmem:[%s14406_s1 + $0x644] ss:$40 sps:$4 sm:$0xff]   ;;  %v9234_v15 = vld [vmem:[%s14406_s1 + $0x640] ss:$40 sps:$4 sm:$0xff]   ;;  %v9237_v17 = vld [vmem:[%s14406_s1 + $0x5f4] ss:$40 sps:$4 sm:$0xff]  }
   0x7   :  { %6611 = vmatpush1.bf16.msra.mxu0 %v9221_v6  ;;  %v9239_v18 = vld [vmem:[%s14406_s1 + $0xf0] ss:$40 sps:$4 sm:$0xff]   ;;  %v9241_v20 = vld [vmem:[%s14406_s1 + $0xa4] ss:$40 sps:$4 sm:$0xff]   ;;  %v9245_v22 = vld [vmem:[%s14406_s1 + $0xa0] ss:$40 sps:$4 sm:$0xff]  }
   0x8   :  { %6652 = vmatpush1.bf16.msra.mxu1 %v9222_v7  ;;  %6612 = vmatprep.subr.bf16.mxu0 %v9223_v8  ;;  %v9240_v19 = vld [vmem:[%s14406_s1 + $0x5f0] ss:$40 sps:$4 sm:$0xff]   ;;  %v9243_v21 = vld [vmem:[%s14406_s1 + $0x5a4] ss:$40 sps:$4 sm:$0xff]   ;;  %v9246_v23 = vld [vmem:[%s14406_s1 + $0x5a0] ss:$40 sps:$4 sm:$0xff]  }
   0x9   :  { %6653 = vmatprep.subr.bf16.mxu1 %v9225_v9  ;;  %v9247_v24 = vld [vmem:[%s14406_s1 + $0x54] ss:$40 sps:$4 sm:$0xff]   ;;  %v9251_v26 = vld [vmem:[%s14406_s1 + $0x50] ss:$40 sps:$4 sm:$0xff]   ;;  %v9253_v28 = vld [vmem:[%s14406_s1 + $0x4] ss:$40 sps:$4 sm:$0xff]  }
   0xa   :  { %v9249_v25 = vld [vmem:[%s14406_s1 + $0x554] ss:$40 sps:$4 sm:$0xff]   ;;  %v9252_v27 = vld [vmem:[%s14406_s1 + $0x550] ss:$40 sps:$4 sm:$0xff]   ;;  %v9255_v29 = vld [vmem:[%s14406_s1 + $0x504] ss:$40 sps:$4 sm:$0xff]  }
   0xb   :  { %6613 = vmatpush1.bf16.msra.mxu0 %v9227_v10  ;;  %v9257_v30 = vld [vmem:[%s14406_s1] ss:$40 sps:$4 sm:$0xff]   ;;  %v9259_v32 = vld [vmem:[%s14406_s1 + $0x4b4] ss:$40 sps:$4 sm:$0xff]   ;;  %v9263_v34 = vld [vmem:[%s14406_s1 + $0x4b0] ss:$40 sps:$4 sm:$0xff]  }
   0xc   :  { %6654 = vmatpush1.bf16.msra.mxu1 %v9228_v11  ;;  %6614 = vmatprep.subr.bf16.mxu0 %v9229_v12  ;;  %v9258_v31 = vld [vmem:[%s14406_s1 + $0x500] ss:$40 sps:$4 sm:$0xff]   ;;  %v9261_v33 = vld [vmem:[%s14406_s1 + $0x9b4] ss:$40 sps:$4 sm:$0xff]   ;;  %v9264_v35 = vld [vmem:[%s14406_s1 + $0x9b0] ss:$40 sps:$4 sm:$0xff]  }
   0xd   :  { %6655 = vmatprep.subr.bf16.mxu1 %v9231_v13  ;;  %v9265_v36 = vld [vmem:[%s14406_s1 + $0x464] ss:$40 sps:$4 sm:$0xff]   ;;  %v9269_v38 = vld [vmem:[%s14406_s1 + $0x460] ss:$40 sps:$4 sm:$0xff]   ;;  %v9271_v40 = vld [vmem:[%s14406_s1 + $0x414] ss:$40 sps:$4 sm:$0xff]  }
   0xe   :  { %v9267_v37 = vld [vmem:[%s14406_s1 + $0x964] ss:$40 sps:$4 sm:$0xff]   ;;  %v9270_v39 = vld [vmem:[%s14406_s1 + $0x960] ss:$40 sps:$4 sm:$0xff]   ;;  %v9273_v41 = vld [vmem:[%s14406_s1 + $0x914] ss:$40 sps:$4 sm:$0xff]  }
   0xf   :  { %6615 = vmatpush1.bf16.msra.mxu0 %v9233_v14  ;;  %v9275_v42 = vld [vmem:[%s14406_s1 + $0x410] ss:$40 sps:$4 sm:$0xff]   ;;  %v9277_v44 = vld [vmem:[%s14406_s1 + $0x3c4] ss:$40 sps:$4 sm:$0xff]   ;;  %v9281_v49 = vld [vmem:[%s14406_s1 + $0x3c0] ss:$40 sps:$4 sm:$0xff]  }
  0x10   :  { %6656 = vmatpush1.bf16.msra.mxu1 %v9234_v15  ;;  %6616 = vmatprep.subr.bf16.mxu0 %v9235_v16  ;;  %v9276_v43 = vld [vmem:[%s14406_s1 + $0x910] ss:$40 sps:$4 sm:$0xff]   ;;  %v9279_v45 = vld [vmem:[%s14406_s1 + $0x8c4] ss:$40 sps:$4 sm:$0xff]   ;;  %v9282_v50 = vld [vmem:[%s14406_s1 + $0x8c0] ss:$40 sps:$4 sm:$0xff]  }
  0x11   :  { %6657 = vmatprep.subr.bf16.mxu1 %v9237_v17  ;;  %v15_v46 = vld [vmem:[%s14407_s0] sm:$0xff]  ;;  %v16_v48 = vld [vmem:[%s14407_s0 + $0x8] sm:$0xff]  ;;  %v9283_v52 = vld [vmem:[%s14406_s1 + $0x374] ss:$40 sps:$4 sm:$0xff]  }
  0x12   :  { %v11009_v47 = vcombine.high %v15_v46, %v15_v46  ;;  %v11020_v51 = vcombine.high %v16_v48, %v16_v48  ;;  %v9285_v53 = vld [vmem:[%s14406_s1 + $0x874] ss:$40 sps:$4 sm:$0xff]   ;;  %v9287_v54 = vld [vmem:[%s14406_s1 + $0x370] ss:$40 sps:$4 sm:$0xff]   ;;  %v9289_v56 = vld [vmem:[%s14406_s1 + $0x324] ss:$40 sps:$4 sm:$0xff]   ;;  %v11078_v6 = vcombine.low %v15_v46, %v15_v46  ;;  %v11080_v7 = vcombine.low %v16_v48, %v16_v48 }
  0x13   :  { %6617 = vmatpush1.bf16.msra.mxu0 %v9239_v18  ;;  %v9288_v55 = vld [vmem:[%s14406_s1 + $0x870] ss:$40 sps:$4 sm:$0xff]   ;;  %v9291_v57 = vld [vmem:[%s14406_s1 + $0x824] ss:$40 sps:$4 sm:$0xff]   ;;  %v9293_v58 = vld [vmem:[%s14406_s1 + $0x320] ss:$40 sps:$4 sm:$0xff]  }
  0x14   :  { %6658 = vmatpush1.bf16.msra.mxu1 %v9240_v19  ;;  %6618 = vmatprep.subr.bf16.mxu0 %v9241_v20  ;;  %v9294_v59 = vld [vmem:[%s14406_s1 + $0x820] ss:$40 sps:$4 sm:$0xff]   ;;  %v9295_v60 = vld [vmem:[%s14406_s1 + $0x2d4] ss:$40 sps:$4 sm:$0xff]   ;;  %v9299_v62 = vld [vmem:[%s14406_s1 + $0x2d0] ss:$40 sps:$4 sm:$0xff]  }
  0x15   :  { %6659 = vmatprep.subr.bf16.mxu1 %v9243_v21  ;;  %6640 = vmatprep.mubr.bf16.mxu0 %v11009_v47  ;;  %v9297_v61 = vld [vmem:[%s14406_s1 + $0x7d4] ss:$40 sps:$4 sm:$0xff]   ;;  %v9300_v63 = vld [vmem:[%s14406_s1 + $0x7d0] ss:$40 sps:$4 sm:$0xff]   ;;  %v9301_v0 = vld [vmem:[%s14406_s1 + $0x284] ss:$40 sps:$4 sm:$0xff]  }
  0x16   :  { %6681 = vmatprep.mubr.bf16.mxu1 %v11020_v51  ;;  %v9303_v1 = vld [vmem:[%s14406_s1 + $0x784] ss:$40 sps:$4 sm:$0xff]   ;;  %v9305_v2 = vld [vmem:[%s14406_s1 + $0x280] ss:$40 sps:$4 sm:$0xff]   ;;  %v9312_v4 = vld [vmem:[%s14406_s1 + $0xc34] ss:$40 sps:$4 sm:$0xff]  }
  0x17   :  { %6619 = vmatpush1.bf16.msra.mxu0 %v9245_v22  ;;  %v9306_v3 = vld [vmem:[%s14406_s1 + $0x780] ss:$40 sps:$4 sm:$0xff]   ;;  %v9315_v5 = vld [vmem:[%s14406_s1 + $0x1134] ss:$40 sps:$4 sm:$0xff]   ;;  %v9310_v8 = vld [vmem:[%s14406_s1 + $0xc30] ss:$40 sps:$4 sm:$0xff]  }
  0x18   :  { %6660 = vmatpush1.bf16.msra.mxu1 %v9246_v23  ;;  %6620 = vmatprep.subr.bf16.mxu0 %v9247_v24  ;;  %v9313_v9 = vld [vmem:[%s14406_s1 + $0x1130] ss:$40 sps:$4 sm:$0xff]   ;;  %v9319_v10 = vld [vmem:[%s14406_s1 + $0xbe4] ss:$40 sps:$4 sm:$0xff]   ;;  %v9317_v12 = vld [vmem:[%s14406_s1 + $0xbe0] ss:$40 sps:$4 sm:$0xff]  }
  0x19   :  { %6661 = vmatprep.subr.bf16.mxu1 %v9249_v25  ;;  %v9322_v11 = vld [vmem:[%s14406_s1 + $0x10e4] ss:$40 sps:$4 sm:$0xff]   ;;  %v9320_v13 = vld [vmem:[%s14406_s1 + $0x10e0] ss:$40 sps:$4 sm:$0xff]   ;;  %v9325_v14 = vld [vmem:[%s14406_s1 + $0xb94] ss:$40 sps:$4 sm:$0xff]  }
  0x1a   :  { %v9328_v15 = vld [vmem:[%s14406_s1 + $0x1094] ss:$40 sps:$4 sm:$0xff]   ;;  %v9323_v16 = vld [vmem:[%s14406_s1 + $0xb90] ss:$40 sps:$4 sm:$0xff]   ;;  %v9331_v18 = vld [vmem:[%s14406_s1 + $0xb44] ss:$40 sps:$4 sm:$0xff]  }
  0x1b   :  { %6621 = vmatpush1.bf16.msra.mxu0 %v9251_v26  ;;  %v9326_v17 = vld [vmem:[%s14406_s1 + $0x1090] ss:$40 sps:$4 sm:$0xff]   ;;  %v9334_v19 = vld [vmem:[%s14406_s1 + $0x1044] ss:$40 sps:$4 sm:$0xff]   ;;  %v9329_v20 = vld [vmem:[%s14406_s1 + $0xb40] ss:$40 sps:$4 sm:$0xff]  }
  0x1c   :  { %6662 = vmatpush1.bf16.msra.mxu1 %v9252_v27  ;;  %6622 = vmatprep.subr.bf16.mxu0 %v9253_v28  ;;  %v9332_v21 = vld [vmem:[%s14406_s1 + $0x1040] ss:$40 sps:$4 sm:$0xff]   ;;  %v9337_v22 = vld [vmem:[%s14406_s1 + $0xaf4] ss:$40 sps:$4 sm:$0xff]   ;;  %v9335_v24 = vld [vmem:[%s14406_s1 + $0xaf0] ss:$40 sps:$4 sm:$0xff]  }
  0x1d   :  { %6663 = vmatprep.subr.bf16.mxu1 %v9255_v29  ;;  %v9340_v23 = vld [vmem:[%s14406_s1 + $0xff4] ss:$40 sps:$4 sm:$0xff]   ;;  %v9338_v25 = vld [vmem:[%s14406_s1 + $0xff0] ss:$40 sps:$4 sm:$0xff]   ;;  %v9343_v26 = vld [vmem:[%s14406_s1 + $0xaa4] ss:$40 sps:$4 sm:$0xff]  }
  0x1e   :  { %v9346_v27 = vld [vmem:[%s14406_s1 + $0xfa4] ss:$40 sps:$4 sm:$0xff]   ;;  %v9341_v28 = vld [vmem:[%s14406_s1 + $0xaa0] ss:$40 sps:$4 sm:$0xff]  }
  0x1f   :  { %6623 = vmatpush1.bf16.msra.mxu0 %v9257_v30  ;;  %v9344_v29 = vld [vmem:[%s14406_s1 + $0xfa0] ss:$40 sps:$4 sm:$0xff]   ;;  %v9349_v30 = vld [vmem:[%s14406_s1 + $0xa54] ss:$40 sps:$4 sm:$0xff]   ;;  %v9367_v46 = vld [vmem:[%s14406_s1 + $0xe64] ss:$40 sps:$4 sm:$0xff]  }
  0x20   :  { %6664 = vmatpush1.bf16.msra.mxu1 %v9258_v31  ;;  %6624 = vmatprep.subr.bf16.mxu0 %v9259_v32  ;;  %v9352_v31 = vld [vmem:[%s14406_s1 + $0xf54] ss:$40 sps:$4 sm:$0xff]   ;;  %v9370_v48 = vld [vmem:[%s14406_s1 + $0x1364] ss:$40 sps:$4 sm:$0xff]  }
  0x21   :  { %6665 = vmatprep.subr.bf16.mxu1 %v9261_v33  ;;  %v11159_v32 = vld [vmem:[%s14407_s0 + $0x10] sm:$0xff]  ;;  %v11164_v33 = vld [vmem:[%s14407_s0 + $0x18] sm:$0xff] }
  0x23   :  { %6625 = vmatpush2.bf16.msra.mxu0 %v9263_v34  ;;  %v9347_v34 = vld [vmem:[%s14406_s1 + $0xa50] ss:$40 sps:$4 sm:$0xff]  }
  0x24   :  { %6666 = vmatpush2.bf16.msra.mxu1 %v9264_v35  ;;  %6626 = vmatprep.subr.bf16.mxu0 %v9265_v36  ;;  %v9350_v35 = vld [vmem:[%s14406_s1 + $0xf50] ss:$40 sps:$4 sm:$0xff]   ;;  %v11174_v36 = vcombine.high %v11159_v32, %v11159_v32 }
  0x25   :  { %6667 = vmatprep.subr.bf16.mxu1 %v9267_v37  ;;  %v11178_v37 = vcombine.high %v11164_v33, %v11164_v33 }
  0x27   :  { %6627 = vmatpush2.bf16.msra.mxu0 %v9269_v38  ;;  %v9355_v38 = vld [vmem:[%s14406_s1 + $0xa04] ss:$40 sps:$4 sm:$0xff]  }
  0x28   :  { %6668 = vmatpush2.bf16.msra.mxu1 %v9270_v39  ;;  %6628 = vmatprep.subr.bf16.mxu0 %v9271_v40  ;;  %v9358_v39 = vld [vmem:[%s14406_s1 + $0xf04] ss:$40 sps:$4 sm:$0xff]   ;;  %v9353_v40 = vld [vmem:[%s14406_s1 + $0xa00] ss:$40 sps:$4 sm:$0xff]  }
  0x29   :  { %6669 = vmatprep.subr.bf16.mxu1 %v9273_v41  ;;  %v9356_v41 = vld [vmem:[%s14406_s1 + $0xf00] ss:$40 sps:$4 sm:$0xff]  }
  0x2b   :  { %6629 = vmatpush2.bf16.msra.mxu0 %v9275_v42  ;;  %v9361_v42 = vld [vmem:[%s14406_s1 + $0xeb4] ss:$40 sps:$4 sm:$0xff]  }
  0x2c   :  { %6670 = vmatpush2.bf16.msra.mxu1 %v9276_v43  ;;  %6630 = vmatprep.subr.bf16.mxu0 %v9277_v44  ;;  %v9364_v43 = vld [vmem:[%s14406_s1 + $0x13b4] ss:$40 sps:$4 sm:$0xff]   ;;  %v9359_v44 = vld [vmem:[%s14406_s1 + $0xeb0] ss:$40 sps:$4 sm:$0xff]  }
  0x2d   :  { %6671 = vmatprep.subr.bf16.mxu1 %v9279_v45  ;;  %v9362_v45 = vld [vmem:[%s14406_s1 + $0x13b0] ss:$40 sps:$4 sm:$0xff]  }
  0x2f   :  { %6631 = vmatpush2.bf16.msra.mxu0 %v9281_v49  ;;  %v9365_v49 = vld [vmem:[%s14406_s1 + $0xe60] ss:$40 sps:$4 sm:$0xff]  }
  0x30   :  { %6672 = vmatpush2.bf16.msra.mxu1 %v9282_v50  ;;  %6632 = vmatprep.subr.bf16.mxu0 %v9283_v52  ;;  %v9368_v50 = vld [vmem:[%s14406_s1 + $0x1360] ss:$40 sps:$4 sm:$0xff]   ;;  %v9373_v52 = vld [vmem:[%s14406_s1 + $0xe14] ss:$40 sps:$4 sm:$0xff]  }
  0x31   :  { %6673 = vmatprep.subr.bf16.mxu1 %v9285_v53  ;;  %v9376_v53 = vld [vmem:[%s14406_s1 + $0x1314] ss:$40 sps:$4 sm:$0xff]  }
  0x33   :  { %6633 = vmatpush2.bf16.msra.mxu0 %v9287_v54  ;;  %v9371_v54 = vld [vmem:[%s14406_s1 + $0xe10] ss:$40 sps:$4 sm:$0xff]  }
  0x34   :  { %6674 = vmatpush2.bf16.msra.mxu1 %v9288_v55  ;;  %6634 = vmatprep.subr.bf16.mxu0 %v9289_v56  ;;  %v9374_v55 = vld [vmem:[%s14406_s1 + $0x1310] ss:$40 sps:$4 sm:$0xff]   ;;  %v9379_v56 = vld [vmem:[%s14406_s1 + $0xdc4] ss:$40 sps:$4 sm:$0xff]  }
  0x35   :  { %6675 = vmatprep.subr.bf16.mxu1 %v9291_v57  ;;  %v9382_v57 = vld [vmem:[%s14406_s1 + $0x12c4] ss:$40 sps:$4 sm:$0xff]  }
  0x37   :  { %6635 = vmatpush2.bf16.msra.mxu0 %v9293_v58  ;;  %v9377_v58 = vld [vmem:[%s14406_s1 + $0xdc0] ss:$40 sps:$4 sm:$0xff]  }
  0x38   :  { %6676 = vmatpush2.bf16.msra.mxu1 %v9294_v59  ;;  %6636 = vmatprep.subr.bf16.mxu0 %v9295_v60  ;;  %v9380_v59 = vld [vmem:[%s14406_s1 + $0x12c0] ss:$40 sps:$4 sm:$0xff]   ;;  %v9385_v60 = vld [vmem:[%s14406_s1 + $0xd74] ss:$40 sps:$4 sm:$0xff]  }
  0x39   :  { %6677 = vmatprep.subr.bf16.mxu1 %v9297_v61  ;;  %v9388_v61 = vld [vmem:[%s14406_s1 + $0x1274] ss:$40 sps:$4 sm:$0xff]  }
  0x3b   :  { %6637 = vmatpush2.bf16.msra.mxu0 %v9299_v62  ;;  %v9383_v62 = vld [vmem:[%s14406_s1 + $0xd70] ss:$40 sps:$4 sm:$0xff]  }
  0x3c   :  { %6678 = vmatpush2.bf16.msra.mxu1 %v9300_v63  ;;  %6638 = vmatprep.subr.bf16.mxu0 %v9301_v0  ;;  %v9386_v63 = vld [vmem:[%s14406_s1 + $0x1270] ss:$40 sps:$4 sm:$0xff]   ;;  %v9391_v0 = vld [vmem:[%s14406_s1 + $0xd24] ss:$40 sps:$4 sm:$0xff]  }
  0x3d   :  { %6679 = vmatprep.subr.bf16.mxu1 %v9303_v1  ;;  %v9394_v1 = vld [vmem:[%s14406_s1 + $0x1224] ss:$40 sps:$4 sm:$0xff]  }
  0x3f   :  { %6639 = vmatpush2.bf16.msra.mxu0 %v9305_v2  ;;  %v9389_v2 = vld [vmem:[%s14406_s1 + $0xd20] ss:$40 sps:$4 sm:$0xff]  }
  0x40   :  { %6680 = vmatpush2.bf16.msra.mxu1 %v9306_v3  ;;  %6690 = vmatprep.subr.bf16.mxu0 %v9312_v4  ;;  %v9392_v3 = vld [vmem:[%s14406_s1 + $0x1220] ss:$40 sps:$4 sm:$0xff]   ;;  %v9397_v4 = vld [vmem:[%s14406_s1 + $0xcd4] ss:$40 sps:$4 sm:$0xff]  }
  0x41   :  { %6731 = vmatprep.subr.bf16.mxu1 %v9315_v5  ;;  %v9400_v5 = vld [vmem:[%s14406_s1 + $0x11d4] ss:$40 sps:$4 sm:$0xff]  }
  0x42   :  { %6641 = vmatmul.mubr.bf16.vlgmr.msra.gmra.mxu0 %v11078_v6 }
  0x43   :  { %6682 = vmatmul.mubr.bf16.vlgmr.msra.gmra.mxu1 %v11080_v7  ;;  %6691 = vmatpush1.bf16.msra.mxu0 %v9310_v8  ;;  %v9395_v8 = vld [vmem:[%s14406_s1 + $0xcd0] ss:$40 sps:$4 sm:$0xff]  }
  0x44   :  { %6732 = vmatpush1.bf16.msra.mxu1 %v9313_v9  ;;  %6692 = vmatprep.subr.bf16.mxu0 %v9319_v10  ;;  %v9398_v9 = vld [vmem:[%s14406_s1 + $0x11d0] ss:$40 sps:$4 sm:$0xff]   ;;  %v9403_v10 = vld [vmem:[%s14406_s1 + $0xc84] ss:$40 sps:$4 sm:$0xff]  }
  0x45   :  { %6733 = vmatprep.subr.bf16.mxu1 %v9322_v11  ;;  %6722 = vmatprep.mubr.bf16.mxu0 %v11174_v36  ;;  %v9406_v11 = vld [vmem:[%s14406_s1 + $0x1184] ss:$40 sps:$4 sm:$0xff]  }
  0x46   :  { %6763 = vmatprep.mubr.bf16.mxu1 %v11178_v37 }
  0x47   :  { %6693 = vmatpush1.bf16.msra.mxu0 %v9317_v12  ;;  %v9401_v12 = vld [vmem:[%s14406_s1 + $0xc80] ss:$40 sps:$4 sm:$0xff]  }
  0x48   :  { %6734 = vmatpush1.bf16.msra.mxu1 %v9320_v13  ;;  %6694 = vmatprep.subr.bf16.mxu0 %v9325_v14  ;;  %v9404_v13 = vld [vmem:[%s14406_s1 + $0x1180] ss:$40 sps:$4 sm:$0xff]   ;;  %v9412_v14 = vld [vmem:[%s14406_s1 + $0x1634] ss:$40 sps:$4 sm:$0xff]  }
  0x49   :  { %6735 = vmatprep.subr.bf16.mxu1 %v9328_v15  ;;  %v9415_v15 = vld [vmem:[%s14406_s1 + $0x1b34] ss:$40 sps:$4 sm:$0xff]  }
  0x4b   :  { %6695 = vmatpush1.bf16.msra.mxu0 %v9323_v16  ;;  %v11298_v16 = vcombine.low %v11159_v32, %v11159_v32  ;;  %v9431_v32 = vld [vmem:[%s14406_s1 + $0x1544] ss:$40 sps:$4 sm:$0xff]  }
  0x4c   :  { %6736 = vmatpush1.bf16.msra.mxu1 %v9326_v17  ;;  %6696 = vmatprep.subr.bf16.mxu0 %v9331_v18  ;;  %v9410_v17 = vld [vmem:[%s14406_s1 + $0x1630] ss:$40 sps:$4 sm:$0xff]  }
  0x4d   :  { %6737 = vmatprep.subr.bf16.mxu1 %v9334_v19  ;;  %v9413_v18 = vld [vmem:[%s14406_s1 + $0x1b30] ss:$40 sps:$4 sm:$0xff]   ;;  %v11308_v19 = vcombine.low %v11164_v33, %v11164_v33  ;;  %v9434_v33 = vld [vmem:[%s14406_s1 + $0x1a44] ss:$40 sps:$4 sm:$0xff]  }
  0x4f   :  { %6697 = vmatpush1.bf16.msra.mxu0 %v9329_v20  ;;  %v9419_v20 = vld [vmem:[%s14406_s1 + $0x15e4] ss:$40 sps:$4 sm:$0xff]  }
  0x50   :  { %6738 = vmatpush1.bf16.msra.mxu1 %v9332_v21  ;;  %6698 = vmatprep.subr.bf16.mxu0 %v9337_v22  ;;  %v9422_v21 = vld [vmem:[%s14406_s1 + $0x1ae4] ss:$40 sps:$4 sm:$0xff]  }
  0x51   :  { %6739 = vmatprep.subr.bf16.mxu1 %v9340_v23  ;;  %v11319_v22 = vld [vmem:[%s14407_s0 + $0x20] sm:$0xff]  ;;  %v11324_v23 = vld [vmem:[%s14407_s0 + $0x28] sm:$0xff] }
  0x53   :  { %6699 = vmatpush1.bf16.msra.mxu0 %v9335_v24  ;;  %v11328_v24 = vcombine.high %v11319_v22, %v11319_v22 }
  0x54   :  { %6740 = vmatpush1.bf16.msra.mxu1 %v9338_v25  ;;  %6700 = vmatprep.subr.bf16.mxu0 %v9343_v26  ;;  %v11332_v25 = vcombine.high %v11324_v23, %v11324_v23  ;;  %v9417_v26 = vld [vmem:[%s14406_s1 + $0x15e0] ss:$40 sps:$4 sm:$0xff]  }
  0x55   :  { %6741 = vmatprep.subr.bf16.mxu1 %v9346_v27  ;;  %v9420_v27 = vld [vmem:[%s14406_s1 + $0x1ae0] ss:$40 sps:$4 sm:$0xff]  }
  0x57   :  { %6701 = vmatpush1.bf16.msra.mxu0 %v9341_v28  ;;  %v9425_v28 = vld [vmem:[%s14406_s1 + $0x1594] ss:$40 sps:$4 sm:$0xff]  }
  0x58   :  { %6742 = vmatpush1.bf16.msra.mxu1 %v9344_v29  ;;  %6702 = vmatprep.subr.bf16.mxu0 %v9349_v30  ;;  %v9428_v29 = vld [vmem:[%s14406_s1 + $0x1a94] ss:$40 sps:$4 sm:$0xff]   ;;  %v9423_v30 = vld [vmem:[%s14406_s1 + $0x1590] ss:$40 sps:$4 sm:$0xff]  }
  0x59   :  { %6743 = vmatprep.subr.bf16.mxu1 %v9352_v31  ;;  %v9426_v31 = vld [vmem:[%s14406_s1 + $0x1a90] ss:$40 sps:$4 sm:$0xff]  }
  0x5b   :  { %6703 = vmatpush1.bf16.msra.mxu0 %v9347_v34  ;;  %v9429_v34 = vld [vmem:[%s14406_s1 + $0x1540] ss:$40 sps:$4 sm:$0xff]  }
  0x5c   :  { %6744 = vmatpush1.bf16.msra.mxu1 %v9350_v35  ;;  %6704 = vmatprep.subr.bf16.mxu0 %v9355_v38  ;;  %v9432_v35 = vld [vmem:[%s14406_s1 + $0x1a40] ss:$40 sps:$4 sm:$0xff]   ;;  %v9437_v38 = vld [vmem:[%s14406_s1 + $0x14f4] ss:$40 sps:$4 sm:$0xff]  }
  0x5d   :  { %6745 = vmatprep.subr.bf16.mxu1 %v9358_v39  ;;  %v9440_v39 = vld [vmem:[%s14406_s1 + $0x19f4] ss:$40 sps:$4 sm:$0xff]  }
  0x5f   :  { %6705 = vmatpush1.bf16.msra.mxu0 %v9353_v40  ;;  %v9435_v40 = vld [vmem:[%s14406_s1 + $0x14f0] ss:$40 sps:$4 sm:$0xff]  }
  0x60   :  { %6746 = vmatpush1.bf16.msra.mxu1 %v9356_v41  ;;  %6706 = vmatprep.subr.bf16.mxu0 %v9361_v42  ;;  %v9438_v41 = vld [vmem:[%s14406_s1 + $0x19f0] ss:$40 sps:$4 sm:$0xff]   ;;  %v9443_v42 = vld [vmem:[%s14406_s1 + $0x14a4] ss:$40 sps:$4 sm:$0xff]  }
  0x61   :  { %6747 = vmatprep.subr.bf16.mxu1 %v9364_v43  ;;  %v9446_v43 = vld [vmem:[%s14406_s1 + $0x19a4] ss:$40 sps:$4 sm:$0xff]  }
  0x63   :  { %6707 = vmatpush2.bf16.msra.mxu0 %v9359_v44  ;;  %v9441_v44 = vld [vmem:[%s14406_s1 + $0x14a0] ss:$40 sps:$4 sm:$0xff]  }
  0x64   :  { %6748 = vmatpush2.bf16.msra.mxu1 %v9362_v45  ;;  %6708 = vmatprep.subr.bf16.mxu0 %v9367_v46  ;;  %v9444_v45 = vld [vmem:[%s14406_s1 + $0x19a0] ss:$40 sps:$4 sm:$0xff]   ;;  %v9449_v46 = vld [vmem:[%s14406_s1 + $0x1454] ss:$40 sps:$4 sm:$0xff]  }
  0x65   :  { %6749 = vmatprep.subr.bf16.mxu1 %v9370_v48  ;;  %v9452_v48 = vld [vmem:[%s14406_s1 + $0x1954] ss:$40 sps:$4 sm:$0xff]  }
  0x67   :  { %6709 = vmatpush2.bf16.msra.mxu0 %v9365_v49  ;;  %v9447_v49 = vld [vmem:[%s14406_s1 + $0x1450] ss:$40 sps:$4 sm:$0xff]  }
  0x68   :  { %6750 = vmatpush2.bf16.msra.mxu1 %v9368_v50  ;;  %6710 = vmatprep.subr.bf16.mxu0 %v9373_v52  ;;  %v9450_v50 = vld [vmem:[%s14406_s1 + $0x1950] ss:$40 sps:$4 sm:$0xff]   ;;  %v9455_v52 = vld [vmem:[%s14406_s1 + $0x1404] ss:$40 sps:$4 sm:$0xff]  }
  0x69   :  { %6751 = vmatprep.subr.bf16.mxu1 %v9376_v53  ;;  %v9458_v53 = vld [vmem:[%s14406_s1 + $0x1904] ss:$40 sps:$4 sm:$0xff]  }
  0x6b   :  { %6711 = vmatpush2.bf16.msra.mxu0 %v9371_v54  ;;  %v9453_v54 = vld [vmem:[%s14406_s1 + $0x1400] ss:$40 sps:$4 sm:$0xff]  }
  0x6c   :  { %6752 = vmatpush2.bf16.msra.mxu1 %v9374_v55  ;;  %6712 = vmatprep.subr.bf16.mxu0 %v9379_v56  ;;  %v9456_v55 = vld [vmem:[%s14406_s1 + $0x1900] ss:$40 sps:$4 sm:$0xff]   ;;  %v9461_v56 = vld [vmem:[%s14406_s1 + $0x18b4] ss:$40 sps:$4 sm:$0xff]  }
  0x6d   :  { %6753 = vmatprep.subr.bf16.mxu1 %v9382_v57  ;;  %v9464_v57 = vld [vmem:[%s14406_s1 + $0x1db4] ss:$40 sps:$4 sm:$0xff]  }
  0x6f   :  { %6713 = vmatpush2.bf16.msra.mxu0 %v9377_v58  ;;  %v9459_v58 = vld [vmem:[%s14406_s1 + $0x18b0] ss:$40 sps:$4 sm:$0xff]  }
  0x70   :  { %6754 = vmatpush2.bf16.msra.mxu1 %v9380_v59  ;;  %6714 = vmatprep.subr.bf16.mxu0 %v9385_v60  ;;  %v9462_v59 = vld [vmem:[%s14406_s1 + $0x1db0] ss:$40 sps:$4 sm:$0xff]   ;;  %v9467_v60 = vld [vmem:[%s14406_s1 + $0x1864] ss:$40 sps:$4 sm:$0xff]  }
  0x71   :  { %6755 = vmatprep.subr.bf16.mxu1 %v9388_v61  ;;  %v9470_v61 = vld [vmem:[%s14406_s1 + $0x1d64] ss:$40 sps:$4 sm:$0xff]  }
  0x73   :  { %6715 = vmatpush2.bf16.msra.mxu0 %v9383_v62  ;;  %v9465_v62 = vld [vmem:[%s14406_s1 + $0x1860] ss:$40 sps:$4 sm:$0xff]  }
  0x74   :  { %6756 = vmatpush2.bf16.msra.mxu1 %v9386_v63  ;;  %6716 = vmatprep.subr.bf16.mxu0 %v9391_v0  ;;  %v9468_v63 = vld [vmem:[%s14406_s1 + $0x1d60] ss:$40 sps:$4 sm:$0xff]   ;;  %v9473_v0 = vld [vmem:[%s14406_s1 + $0x1814] ss:$40 sps:$4 sm:$0xff]  }
  0x75   :  { %6757 = vmatprep.subr.bf16.mxu1 %v9394_v1  ;;  %v9476_v1 = vld [vmem:[%s14406_s1 + $0x1d14] ss:$40 sps:$4 sm:$0xff]  }
  0x77   :  { %6717 = vmatpush2.bf16.msra.mxu0 %v9389_v2  ;;  %v9471_v2 = vld [vmem:[%s14406_s1 + $0x1810] ss:$40 sps:$4 sm:$0xff]  }
  0x78   :  { %6758 = vmatpush2.bf16.msra.mxu1 %v9392_v3  ;;  %6718 = vmatprep.subr.bf16.mxu0 %v9397_v4  ;;  %v9474_v3 = vld [vmem:[%s14406_s1 + $0x1d10] ss:$40 sps:$4 sm:$0xff]   ;;  %v9479_v4 = vld [vmem:[%s14406_s1 + $0x17c4] ss:$40 sps:$4 sm:$0xff]  }
  0x79   :  { %6759 = vmatprep.subr.bf16.mxu1 %v9400_v5  ;;  %v9482_v5 = vld [vmem:[%s14406_s1 + $0x1cc4] ss:$40 sps:$4 sm:$0xff]  }
  0x7b   :  { %6719 = vmatpush2.bf16.msra.mxu0 %v9395_v8  ;;  %v9477_v8 = vld [vmem:[%s14406_s1 + $0x17c0] ss:$40 sps:$4 sm:$0xff]  }
  0x7c   :  { %6760 = vmatpush2.bf16.msra.mxu1 %v9398_v9  ;;  %6720 = vmatprep.subr.bf16.mxu0 %v9403_v10  ;;  %v9480_v9 = vld [vmem:[%s14406_s1 + $0x1cc0] ss:$40 sps:$4 sm:$0xff]   ;;  %v9485_v10 = vld [vmem:[%s14406_s1 + $0x1774] ss:$40 sps:$4 sm:$0xff]  }
  0x7d   :  { %6761 = vmatprep.subr.bf16.mxu1 %v9406_v11  ;;  %v9488_v11 = vld [vmem:[%s14406_s1 + $0x1c74] ss:$40 sps:$4 sm:$0xff]  }
  0x7f   :  { %6721 = vmatpush2.bf16.msra.mxu0 %v9401_v12  ;;  %v9483_v12 = vld [vmem:[%s14406_s1 + $0x1770] ss:$40 sps:$4 sm:$0xff]  }
  0x80   :  { %6762 = vmatpush2.bf16.msra.mxu1 %v9404_v13  ;;  %6772 = vmatprep.subr.bf16.mxu0 %v9412_v14  ;;  %v9486_v13 = vld [vmem:[%s14406_s1 + $0x1c70] ss:$40 sps:$4 sm:$0xff]   ;;  %v9491_v14 = vld [vmem:[%s14406_s1 + $0x1724] ss:$40 sps:$4 sm:$0xff]  }
  0x81   :  { %6813 = vmatprep.subr.bf16.mxu1 %v9415_v15  ;;  %v9494_v15 = vld [vmem:[%s14406_s1 + $0x1c24] ss:$40 sps:$4 sm:$0xff]  }
  0x82   :  { %6723 = vmatmul.mubr.bf16.vlgmr.msra.gmra.mxu0 %v11298_v16 }
  0x83   :  { %6764 = vmatmul.mubr.bf16.vlgmr.msra.gmra.mxu1 %v11308_v19  ;;  %6773 = vmatpush1.bf16.msra.mxu0 %v9410_v17  ;;  %v9489_v17 = vld [vmem:[%s14406_s1 + $0x1720] ss:$40 sps:$4 sm:$0xff]  }
  0x84   :  { %6814 = vmatpush1.bf16.msra.mxu1 %v9413_v18  ;;  %6774 = vmatprep.subr.bf16.mxu0 %v9419_v20  ;;  %v9492_v18 = vld [vmem:[%s14406_s1 + $0x1c20] ss:$40 sps:$4 sm:$0xff]   ;;  %v9497_v20 = vld [vmem:[%s14406_s1 + $0x16d4] ss:$40 sps:$4 sm:$0xff]  }
  0x85   :  { %6815 = vmatprep.subr.bf16.mxu1 %v9422_v21  ;;  %6804 = vmatprep.mubr.bf16.mxu0 %v11328_v24  ;;  %v9500_v21 = vld [vmem:[%s14406_s1 + $0x1bd4] ss:$40 sps:$4 sm:$0xff]  }
  0x86   :  { %6845 = vmatprep.mubr.bf16.mxu1 %v11332_v25 }
  0x87   :  { %6775 = vmatpush1.bf16.msra.mxu0 %v9417_v26  ;;  %v9495_v26 = vld [vmem:[%s14406_s1 + $0x16d0] ss:$40 sps:$4 sm:$0xff]  }
  0x88   :  { %6816 = vmatpush1.bf16.msra.mxu1 %v9420_v27  ;;  %6776 = vmatprep.subr.bf16.mxu0 %v9425_v28  ;;  %v9498_v27 = vld [vmem:[%s14406_s1 + $0x1bd0] ss:$40 sps:$4 sm:$0xff]   ;;  %v9503_v28 = vld [vmem:[%s14406_s1 + $0x1684] ss:$40 sps:$4 sm:$0xff]  }
  0x89   :  { %6817 = vmatprep.subr.bf16.mxu1 %v9428_v29  ;;  %v9506_v29 = vld [vmem:[%s14406_s1 + $0x1b84] ss:$40 sps:$4 sm:$0xff]  }
  0x8b   :  { %6777 = vmatpush1.bf16.msra.mxu0 %v9423_v30  ;;  %v9501_v30 = vld [vmem:[%s14406_s1 + $0x1680] ss:$40 sps:$4 sm:$0xff]  }
  0x8c   :  { %6818 = vmatpush1.bf16.msra.mxu1 %v9426_v31  ;;  %6778 = vmatprep.subr.bf16.mxu0 %v9431_v32  ;;  %v9504_v31 = vld [vmem:[%s14406_s1 + $0x1b80] ss:$40 sps:$4 sm:$0xff]   ;;  %v9512_v32 = vld [vmem:[%s14406_s1 + $0x2034] ss:$40 sps:$4 sm:$0xff]  }
  0x8d   :  { %6819 = vmatprep.subr.bf16.mxu1 %v9434_v33  ;;  %v9515_v33 = vld [vmem:[%s14406_s1 + $0x23c] ss:$40 sps:$4 sm:$0xff]  }
  0x8f   :  { %6779 = vmatpush1.bf16.msra.mxu0 %v9429_v34  ;;  %v9510_v34 = vld [vmem:[%s14406_s1 + $0x2030] ss:$40 sps:$4 sm:$0xff]  }
  0x90   :  { %6820 = vmatpush1.bf16.msra.mxu1 %v9432_v35  ;;  %6780 = vmatprep.subr.bf16.mxu0 %v9437_v38  ;;  %v11523_v35 = vcombine.low %v11319_v22, %v11319_v22  ;;  %v9513_v38 = vld [vmem:[%s14406_s1 + $0x238] ss:$40 sps:$4 sm:$0xff]   ;;  %v9519_v22 = vld [vmem:[%s14406_s1 + $0x1fe4] ss:$40 sps:$4 sm:$0xff]  }
  0x91   :  { %6821 = vmatprep.subr.bf16.mxu1 %v9440_v39  ;;  %v11530_v39 = vcombine.low %v11324_v23, %v11324_v23 }
  0x93   :  { %6781 = vmatpush1.bf16.msra.mxu0 %v9435_v40  ;;  %v11535_v40 = vld [vmem:[%s14407_s0 + $0x30] sm:$0xff] }
  0x94   :  { %6822 = vmatpush1.bf16.msra.mxu1 %v9438_v41  ;;  %6782 = vmatprep.subr.bf16.mxu0 %v9443_v42  ;;  %v9522_v41 = vld [vmem:[%s14406_s1 + $0x1ec] ss:$40 sps:$4 sm:$0xff]   ;;  %v11545_v23 = vcombine.high %v11535_v40, %v11535_v40  ;;  %v9517_v42 = vld [vmem:[%s14406_s1 + $0x1fe0] ss:$40 sps:$4 sm:$0xff]  }
  0x95   :  { %6823 = vmatprep.subr.bf16.mxu1 %v9446_v43  ;;  %v9520_v43 = vld [vmem:[%s14406_s1 + $0x1e8] ss:$40 sps:$4 sm:$0xff]  }
  0x97   :  { %6783 = vmatpush1.bf16.msra.mxu0 %v9441_v44  ;;  %v9525_v44 = vld [vmem:[%s14406_s1 + $0x1f94] ss:$40 sps:$4 sm:$0xff]  }
  0x98   :  { %6824 = vmatpush1.bf16.msra.mxu1 %v9444_v45  ;;  %6784 = vmatprep.subr.bf16.mxu0 %v9449_v46  ;;  %v9528_v45 = vld [vmem:[%s14406_s1 + $0x19c] ss:$40 sps:$4 sm:$0xff]   ;;  %v9523_v46 = vld [vmem:[%s14406_s1 + $0x1f90] ss:$40 sps:$4 sm:$0xff]  }
  0x99   :  { %6825 = vmatprep.subr.bf16.mxu1 %v9452_v48  ;;  %v9526_v48 = vld [vmem:[%s14406_s1 + $0x198] ss:$40 sps:$4 sm:$0xff]  }
  0x9b   :  { %6785 = vmatpush1.bf16.msra.mxu0 %v9447_v49  ;;  %v9531_v49 = vld [vmem:[%s14406_s1 + $0x1f44] ss:$40 sps:$4 sm:$0xff]  }
  0x9c   :  { %6826 = vmatpush1.bf16.msra.mxu1 %v9450_v50  ;;  %6786 = vmatprep.subr.bf16.mxu0 %v9455_v52  ;;  %v9534_v50 = vld [vmem:[%s14406_s1 + $0x14c] ss:$40 sps:$4 sm:$0xff]   ;;  %v9529_v52 = vld [vmem:[%s14406_s1 + $0x1f40] ss:$40 sps:$4 sm:$0xff]  }
  0x9d   :  { %6827 = vmatprep.subr.bf16.mxu1 %v9458_v53  ;;  %v9532_v53 = vld [vmem:[%s14406_s1 + $0x148] ss:$40 sps:$4 sm:$0xff]  }
  0x9f   :  { %6787 = vmatpush1.bf16.msra.mxu0 %v9453_v54  ;;  %v9537_v54 = vld [vmem:[%s14406_s1 + $0x1ef4] ss:$40 sps:$4 sm:$0xff]  }
  0xa0   :  { %6828 = vmatpush1.bf16.msra.mxu1 %v9456_v55  ;;  %6788 = vmatprep.subr.bf16.mxu0 %v9461_v56  ;;  %v9540_v55 = vld [vmem:[%s14406_s1 + $0xfc] ss:$40 sps:$4 sm:$0xff]   ;;  %v9535_v56 = vld [vmem:[%s14406_s1 + $0x1ef0] ss:$40 sps:$4 sm:$0xff]  }
  0xa1   :  { %6829 = vmatprep.subr.bf16.mxu1 %v9464_v57  ;;  %v9538_v57 = vld [vmem:[%s14406_s1 + $0xf8] ss:$40 sps:$4 sm:$0xff]  }
  0xa3   :  { %6789 = vmatpush2.bf16.msra.mxu0 %v9459_v58  ;;  %v9543_v58 = vld [vmem:[%s14406_s1 + $0x1ea4] ss:$40 sps:$4 sm:$0xff]  }
  0xa4   :  { %6830 = vmatpush2.bf16.msra.mxu1 %v9462_v59  ;;  %6790 = vmatprep.subr.bf16.mxu0 %v9467_v60  ;;  %v9546_v59 = vld [vmem:[%s14406_s1 + $0xac] ss:$40 sps:$4 sm:$0xff]   ;;  %v9541_v60 = vld [vmem:[%s14406_s1 + $0x1ea0] ss:$40 sps:$4 sm:$0xff]  }
  0xa5   :  { %6831 = vmatprep.subr.bf16.mxu1 %v9470_v61  ;;  %v9544_v61 = vld [vmem:[%s14406_s1 + $0xa8] ss:$40 sps:$4 sm:$0xff]  }
  0xa7   :  { %6791 = vmatpush2.bf16.msra.mxu0 %v9465_v62  ;;  %v9549_v62 = vld [vmem:[%s14406_s1 + $0x1e54] ss:$40 sps:$4 sm:$0xff]  }
  0xa8   :  { %6832 = vmatpush2.bf16.msra.mxu1 %v9468_v63  ;;  %6792 = vmatprep.subr.bf16.mxu0 %v9473_v0  ;;  %v9552_v63 = vld [vmem:[%s14406_s1 + $0x5c] ss:$40 sps:$4 sm:$0xff]   ;;  %v9547_v0 = vld [vmem:[%s14406_s1 + $0x1e50] ss:$40 sps:$4 sm:$0xff]  }
  0xa9   :  { %6833 = vmatprep.subr.bf16.mxu1 %v9476_v1  ;;  %v9550_v1 = vld [vmem:[%s14406_s1 + $0x58] ss:$40 sps:$4 sm:$0xff]  }
  0xab   :  { %6793 = vmatpush2.bf16.msra.mxu0 %v9471_v2  ;;  %v9555_v2 = vld [vmem:[%s14406_s1 + $0x1e04] ss:$40 sps:$4 sm:$0xff]  }
  0xac   :  { %6834 = vmatpush2.bf16.msra.mxu1 %v9474_v3  ;;  %6794 = vmatprep.subr.bf16.mxu0 %v9479_v4  ;;  %v9558_v3 = vld [vmem:[%s14406_s1 + $0xc] ss:$40 sps:$4 sm:$0xff]   ;;  %v9553_v4 = vld [vmem:[%s14406_s1 + $0x1e00] ss:$40 sps:$4 sm:$0xff]  }
  0xad   :  { %6835 = vmatprep.subr.bf16.mxu1 %v9482_v5  ;;  %v9556_v5 = vld [vmem:[%s14406_s1 + $0x8] ss:$40 sps:$4 sm:$0xff]  }
  0xaf   :  { %6795 = vmatpush2.bf16.msra.mxu0 %v9477_v8  ;;  %v9561_v8 = vld [vmem:[%s14406_s1 + $0x2174] ss:$40 sps:$4 sm:$0xff]  }
  0xb0   :  { %6836 = vmatpush2.bf16.msra.mxu1 %v9480_v9  ;;  %6796 = vmatprep.subr.bf16.mxu0 %v9485_v10  ;;  %v9564_v9 = vld [vmem:[%s14406_s1 + $0x4bc] ss:$40 sps:$4 sm:$0xff]   ;;  %v9559_v10 = vld [vmem:[%s14406_s1 + $0x2170] ss:$40 sps:$4 sm:$0xff]  }
  0xb1   :  { %6837 = vmatprep.subr.bf16.mxu1 %v9488_v11  ;;  %v9562_v11 = vld [vmem:[%s14406_s1 + $0x4b8] ss:$40 sps:$4 sm:$0xff]  }
  0xb3   :  { %6797 = vmatpush2.bf16.msra.mxu0 %v9483_v12  ;;  %v9567_v12 = vld [vmem:[%s14406_s1 + $0x2124] ss:$40 sps:$4 sm:$0xff]  }
  0xb4   :  { %6838 = vmatpush2.bf16.msra.mxu1 %v9486_v13  ;;  %6798 = vmatprep.subr.bf16.mxu0 %v9491_v14  ;;  %v9570_v13 = vld [vmem:[%s14406_s1 + $0x46c] ss:$40 sps:$4 sm:$0xff]   ;;  %v9565_v14 = vld [vmem:[%s14406_s1 + $0x2120] ss:$40 sps:$4 sm:$0xff]  }
  0xb5   :  { %6839 = vmatprep.subr.bf16.mxu1 %v9494_v15  ;;  %v9568_v15 = vld [vmem:[%s14406_s1 + $0x468] ss:$40 sps:$4 sm:$0xff]  }
  0xb7   :  { %6799 = vmatpush2.bf16.msra.mxu0 %v9489_v17  ;;  %v9573_v17 = vld [vmem:[%s14406_s1 + $0x20d4] ss:$40 sps:$4 sm:$0xff]  }
  0xb8   :  { %6840 = vmatpush2.bf16.msra.mxu1 %v9492_v18  ;;  %6800 = vmatprep.subr.bf16.mxu0 %v9497_v20  ;;  %v9576_v18 = vld [vmem:[%s14406_s1 + $0x41c] ss:$40 sps:$4 sm:$0xff]   ;;  %v9571_v20 = vld [vmem:[%s14406_s1 + $0x20d0] ss:$40 sps:$4 sm:$0xff]  }
  0xb9   :  { %6841 = vmatprep.subr.bf16.mxu1 %v9500_v21  ;;  %v9574_v21 = vld [vmem:[%s14406_s1 + $0x418] ss:$40 sps:$4 sm:$0xff]  }
  0xbb   :  { %6801 = vmatpush2.bf16.msra.mxu0 %v9495_v26  ;;  %v9579_v26 = vld [vmem:[%s14406_s1 + $0x2084] ss:$40 sps:$4 sm:$0xff]  }
  0xbc   :  { %6842 = vmatpush2.bf16.msra.mxu1 %v9498_v27  ;;  %6802 = vmatprep.subr.bf16.mxu0 %v9503_v28  ;;  %v9582_v27 = vld [vmem:[%s14406_s1 + $0x3cc] ss:$40 sps:$4 sm:$0xff]   ;;  %v9577_v28 = vld [vmem:[%s14406_s1 + $0x2080] ss:$40 sps:$4 sm:$0xff]  }
  0xbd   :  { %6843 = vmatprep.subr.bf16.mxu1 %v9506_v29  ;;  %v9580_v29 = vld [vmem:[%s14406_s1 + $0x3c8] ss:$40 sps:$4 sm:$0xff]  }
  0xbf   :  { %6803 = vmatpush2.bf16.msra.mxu0 %v9501_v30  ;;  %v9587_v30 = vld [vmem:[%s14406_s1 + $0x37c] ss:$40 sps:$4 sm:$0xff]  }
  0xc0   :  { %6844 = vmatpush2.bf16.msra.mxu1 %v9504_v31  ;;  %6854 = vmatprep.subr.bf16.mxu0 %v9512_v32  ;;  %v9590_v31 = vld [vmem:[%s14406_s1 + $0x73c] ss:$40 sps:$4 sm:$0xff]   ;;  %v11686_v32 = vcombine.low %v11535_v40, %v11535_v40  ;;  %v9596_v40 = vld [vmem:[%s14406_s1 + $0x6ec] ss:$40 sps:$4 sm:$0xff]  }
  0xc1   :  { %6895 = vmatprep.subr.bf16.mxu1 %v9515_v33  ;;  %v9585_v33 = vld [vmem:[%s14406_s1 + $0x378] ss:$40 sps:$4 sm:$0xff]  }
  0xc2   :  { %6805 = vmatmul.mubr.bf16.vlgmr.msra.gmra.mxu0 %v11523_v35 }
  0xc3   :  { %6846 = vmatmul.mubr.bf16.vlgmr.msra.gmra.mxu1 %v11530_v39  ;;  %6855 = vmatpush1.bf16.msra.mxu0 %v9510_v34  ;;  %v9588_v34 = vld [vmem:[%s14406_s1 + $0x738] ss:$40 sps:$4 sm:$0xff]  }
  0xc4   :  { %6896 = vmatpush1.bf16.msra.mxu1 %v9513_v38  ;;  %6856 = vmatprep.subr.bf16.mxu0 %v9519_v22  ;;  %v9593_v38 = vld [vmem:[%s14406_s1 + $0x32c] ss:$40 sps:$4 sm:$0xff]   ;;  %v9591_v22 = vld [vmem:[%s14406_s1 + $0x328] ss:$40 sps:$4 sm:$0xff]  }
  0xc5   :  { %6897 = vmatprep.subr.bf16.mxu1 %v9522_v41  ;;  %9196 = vmatprep.mubr.msk.bf16.mxu0 %vm6604_vm0, %v11545_v23  ;;  %v9594_v41 = vld [vmem:[%s14406_s1 + $0x6e8] ss:$40 sps:$4 sm:$0xff]  }
  0xc6   :  { %6927 = vmatprep.mubr.bf16.mxu1 %v11009_v47 }
  0xc7   :  { %6857 = vmatpush1.bf16.msra.mxu0 %v9517_v42  ;;  %v9599_v42 = vld [vmem:[%s14406_s1 + $0x2dc] ss:$40 sps:$4 sm:$0xff]  }
  0xc8   :  { %6898 = vmatpush1.bf16.msra.mxu1 %v9520_v43  ;;  %6858 = vmatprep.subr.bf16.mxu0 %v9525_v44  ;;  %v1106_v43 = vlaneseq  ;;  %v9602_v44 = vld [vmem:[%s14406_s1 + $0x69c] ss:$40 sps:$4 sm:$0xff]  }
  0xc9   :  { %6899 = vmatprep.subr.bf16.mxu1 %v9528_v45  ;;  %v9597_v45 = vld [vmem:[%s14406_s1 + $0x2d8] ss:$40 sps:$4 sm:$0xff]  }
  0xcb   :  { %6859 = vmatpush1.bf16.msra.mxu0 %v9523_v46  ;;  %v9600_v46 = vld [vmem:[%s14406_s1 + $0x698] ss:$40 sps:$4 sm:$0xff]  }
  0xcc   :  { %6900 = vmatpush1.bf16.msra.mxu1 %v9526_v48  ;;  %6860 = vmatprep.subr.bf16.mxu0 %v9531_v49  ;;  %v9605_v48 = vld [vmem:[%s14406_s1 + $0x28c] ss:$40 sps:$4 sm:$0xff]   ;;  %v11723_v49 = vshrl.u32 %v1106_v43, 7  ;;  %v9647_v43 = vld [vmem:[%s14406_s1 + $0x91c] ss:$40 sps:$4 sm:$0xff]  }
  0xcd   :  { %6901 = vmatprep.subr.bf16.mxu1 %v9534_v50  ;;  %v9608_v50 = vld [vmem:[%s14406_s1 + $0x64c] ss:$40 sps:$4 sm:$0xff]  }
  0xcf   :  { %6861 = vmatpush1.bf16.msra.mxu0 %v9529_v52  ;;  %v9603_v52 = vld [vmem:[%s14406_s1 + $0x288] ss:$40 sps:$4 sm:$0xff]  }
  0xd0   :  { %6902 = vmatpush1.bf16.msra.mxu1 %v9532_v53  ;;  %6862 = vmatprep.subr.bf16.mxu0 %v9537_v54  ;;  %v9606_v53 = vld [vmem:[%s14406_s1 + $0x648] ss:$40 sps:$4 sm:$0xff]   ;;  %v1102_v54 = vld [vmem:[%s14408_s2] sm:$0xff] }
  0xd1   :  { %6903 = vmatprep.subr.bf16.mxu1 %v9540_v55  ;;  %v1108_v55 = vsub.s32 0, %v11723_v49 }
  0xd3   :  { %6863 = vmatpush1.bf16.msra.mxu0 %v9535_v56  ;;  %v9611_v56 = vld [vmem:[%s14406_s1 + $0x5fc] ss:$40 sps:$4 sm:$0xff]  }
  0xd4   :  { %6904 = vmatpush1.bf16.msra.mxu1 %v9538_v57  ;;  %6864 = vmatprep.subr.bf16.mxu0 %v9543_v58  ;;  %v9614_v57 = vld [vmem:[%s14406_s1 + $0xc3c] ss:$40 sps:$4 sm:$0xff]   ;;  %v1112_v58 = vsub.s32 1, %v11723_v49 }
  0xd5   :  { %6905 = vmatprep.subr.bf16.mxu1 %v9546_v59  ;;  %v9609_v59 = vld [vmem:[%s14406_s1 + $0x5f8] ss:$40 sps:$4 sm:$0xff]  }
  0xd7   :  { %6865 = vmatpush1.bf16.msra.mxu0 %v9541_v60  ;;  %v9612_v60 = vld [vmem:[%s14406_s1 + $0xc38] ss:$40 sps:$4 sm:$0xff]  }
  0xd8   :  { %6906 = vmatpush1.bf16.msra.mxu1 %v9544_v61  ;;  %6866 = vmatprep.subr.bf16.mxu0 %v9549_v62  ;;  %v1109_v61 = vrot.slane %v1102_v54, %v1108_v55  ;;  %v9617_v62 = vld [vmem:[%s14406_s1 + $0x5ac] ss:$40 sps:$4 sm:$0xff]  }
  0xd9   :  { %6907 = vmatprep.subr.bf16.mxu1 %v9552_v63  ;;  %v9620_v63 = vld [vmem:[%s14406_s1 + $0xbec] ss:$40 sps:$4 sm:$0xff]  }
  0xdb   :  { %6867 = vmatpush1.bf16.msra.mxu0 %v9547_v0  ;;  %v1113_v0 = vrot.slane %v1102_v54, %v1112_v58  ;;  %v9659_v54 = vld [vmem:[%s14406_s1 + $0x87c] ss:$40 sps:$4 sm:$0xff]  }
  0xdc   :  { %6908 = vmatpush1.bf16.msra.mxu1 %v9550_v1  ;;  %6868 = vmatprep.subr.bf16.mxu0 %v9555_v2 }
  0xdd   :  { %6909 = vmatprep.subr.bf16.mxu1 %v9558_v3  ;;  %v9615_v3 = vld [vmem:[%s14406_s1 + $0x5a8] ss:$40 sps:$4 sm:$0xff]  }
  0xdf   :  { %6869 = vmatpush1.bf16.msra.mxu0 %v9553_v4  ;;  %v9618_v4 = vld [vmem:[%s14406_s1 + $0xbe8] ss:$40 sps:$4 sm:$0xff]  }
  0xe0   :  { %6910 = vmatpush1.bf16.msra.mxu1 %v9556_v5  ;;  %6878 = vmatprep.subr.bf16.mxu0 %v9561_v8  ;;  %v9623_v8 = vld [vmem:[%s14406_s1 + $0x55c] ss:$40 sps:$4 sm:$0xff]  }
  0xe1   :  { %6911 = vmatprep.subr.bf16.mxu1 %v9564_v9 }
  0xe3   :  { %6879 = vmatpush2.bf16.msra.mxu0 %v9559_v10 }
  0xe4   :  { %6912 = vmatpush2.bf16.msra.mxu1 %v9562_v11  ;;  %6880 = vmatprep.subr.bf16.mxu0 %v9567_v12  ;;  %v9626_v11 = vld [vmem:[%s14406_s1 + $0xb9c] ss:$40 sps:$4 sm:$0xff]  }
  0xe5   :  { %6913 = vmatprep.subr.bf16.mxu1 %v9570_v13 }
  0xe7   :  { %6881 = vmatpush2.bf16.msra.mxu0 %v9565_v14 }
  0xe8   :  { %6914 = vmatpush2.bf16.msra.mxu1 %v9568_v15  ;;  %6882 = vmatprep.subr.bf16.mxu0 %v9573_v17  ;;  %v9621_v15 = vld [vmem:[%s14406_s1 + $0x558] ss:$40 sps:$4 sm:$0xff]  }
  0xe9   :  { %6915 = vmatprep.subr.bf16.mxu1 %v9576_v18  ;;  %v9624_v17 = vld [vmem:[%s14406_s1 + $0xb98] ss:$40 sps:$4 sm:$0xff]  }
  0xeb   :  { %6883 = vmatpush2.bf16.msra.mxu0 %v9571_v20 }
  0xec   :  { %6916 = vmatpush2.bf16.msra.mxu1 %v9574_v21  ;;  %6884 = vmatprep.subr.bf16.mxu0 %v9579_v26  ;;  %v9629_v26 = vld [vmem:[%s14406_s1 + $0x50c] ss:$40 sps:$4 sm:$0xff]  }
  0xed   :  { %6917 = vmatprep.subr.bf16.mxu1 %v9582_v27  ;;  %v9632_v27 = vld [vmem:[%s14406_s1 + $0xb4c] ss:$40 sps:$4 sm:$0xff]  }
  0xef   :  { %6885 = vmatpush2.bf16.msra.mxu0 %v9577_v28 }
  0xf0   :  { %6918 = vmatpush2.bf16.msra.mxu1 %v9580_v29  ;;  %6936 = vmatprep.subr.bf16.mxu0 %v9590_v31  ;;  %v9627_v29 = vld [vmem:[%s14406_s1 + $0x508] ss:$40 sps:$4 sm:$0xff]   ;;  %v9635_v31 = vld [vmem:[%s14406_s1 + $0x9bc] ss:$40 sps:$4 sm:$0xff]  }
  0xf1   :  { %6919 = vmatprep.subr.bf16.mxu1 %v9587_v30  ;;  %v9630_v30 = vld [vmem:[%s14406_s1 + $0xb48] ss:$40 sps:$4 sm:$0xff]  }
  0xf2   :  { %6887 = vmatmul.mubr.bf16.vlgmr.msra.gmra.mxu0 %v11686_v32 }
  0xf3   :  { %6937 = vmatpush1.bf16.msra.mxu0 %v9588_v34  ;;  %6968 = vmatprep.mubr.bf16.mxu0 %v11020_v51  ;;  %v9633_v34 = vld [vmem:[%s14406_s1 + $0x9b8] ss:$40 sps:$4 sm:$0xff]  }
  0xf4   :  { %6920 = vmatpush2.bf16.msra.mxu1 %v9585_v33  ;;  %6938 = vmatprep.subr.bf16.mxu0 %v9596_v40  ;;  %v9638_v33 = vld [vmem:[%s14406_s1 + $0xafc] ss:$40 sps:$4 sm:$0xff]   ;;  %v9641_v40 = vld [vmem:[%s14406_s1 + $0x96c] ss:$40 sps:$4 sm:$0xff]  }
  0xf5   :  { %6921 = vmatprep.subr.bf16.mxu1 %v9593_v38  ;;  %v9636_v38 = vld [vmem:[%s14406_s1 + $0xaf8] ss:$40 sps:$4 sm:$0xff]  }
  0xf7   :  { %6939 = vmatpush1.bf16.msra.mxu0 %v9594_v41  ;;  %v9639_v41 = vld [vmem:[%s14406_s1 + $0x968] ss:$40 sps:$4 sm:$0xff]  }
  0xf8   :  { %6922 = vmatpush2.bf16.msra.mxu1 %v9591_v22  ;;  %6940 = vmatprep.subr.bf16.mxu0 %v9602_v44  ;;  %v9644_v22 = vld [vmem:[%s14406_s1 + $0xaac] ss:$40 sps:$4 sm:$0xff]   ;;  %v9650_v44 = vld [vmem:[%s14406_s1 + $0xa5c] ss:$40 sps:$4 sm:$0xff]  }
  0xf9   :  { %6923 = vmatprep.subr.bf16.mxu1 %v9599_v42  ;;  %v9642_v42 = vld [vmem:[%s14406_s1 + $0xaa8] ss:$40 sps:$4 sm:$0xff]  }
  0xfb   :  { %6941 = vmatpush1.bf16.msra.mxu0 %v9600_v46  ;;  %v9648_v46 = vld [vmem:[%s14406_s1 + $0xa58] ss:$40 sps:$4 sm:$0xff]  }
  0xfc   :  { %6924 = vmatpush2.bf16.msra.mxu1 %v9597_v45  ;;  %6942 = vmatprep.subr.bf16.mxu0 %v9608_v50  ;;  %v9645_v45 = vld [vmem:[%s14406_s1 + $0x918] ss:$40 sps:$4 sm:$0xff]   ;;  %v9656_v50 = vld [vmem:[%s14406_s1 + $0xa0c] ss:$40 sps:$4 sm:$0xff]  }
  0xfd   :  { %6925 = vmatprep.subr.bf16.mxu1 %v9605_v48  ;;  %v9653_v48 = vld [vmem:[%s14406_s1 + $0x8cc] ss:$40 sps:$4 sm:$0xff]  }
  0xff   :  { %6943 = vmatpush1.bf16.msra.mxu0 %v9606_v53  ;;  %v9654_v53 = vld [vmem:[%s14406_s1 + $0xa08] ss:$40 sps:$4 sm:$0xff]  }
 0x100   :  { %6926 = vmatpush2.bf16.msra.mxu1 %v9603_v52  ;;  %6944 = vmatprep.subr.bf16.mxu0 %v9611_v56  ;;  %v9651_v52 = vld [vmem:[%s14406_s1 + $0x8c8] ss:$40 sps:$4 sm:$0xff]   ;;  %v9662_v56 = vld [vmem:[%s14406_s1 + $0xebc] ss:$40 sps:$4 sm:$0xff]  }
 0x101   :  { %6977 = vmatprep.subr.bf16.mxu1 %v9614_v57  ;;  %v9657_v57 = vld [vmem:[%s14406_s1 + $0x878] ss:$40 sps:$4 sm:$0xff]  }
 0x102   :  { %v6642_v1 = vpop.f32.mrf.mxu0 }
 0x103   :  { %6928 = vmatmul.mubr.bf16.vlgmr.msra.gmra.mxu1 %v11078_v6  ;;  %v6683_v2 = vpop.f32.mrf.mxu1  ;;  %v6643_v5 = vadd.f32 %v6642_v1, %v1109_v61  ;;  %6945 = vmatpush1.bf16.msra.mxu0 %v9609_v59  ;;  %v9660_v59 = vld [vmem:[%s14406_s1 + $0xeb8] ss:$40 sps:$4 sm:$0xff]   ;;  %v9668_v61 = vld [vmem:[%s14406_s1 + $0xe6c] ss:$40 sps:$4 sm:$0xff]   ;;  %v9674_v1 = vld [vmem:[%s14406_s1 + $0xe1c] ss:$40 sps:$4 sm:$0xff]  }
 0x104   :  { %6978 = vmatpush1.bf16.msra.mxu1 %v9612_v60  ;;  %v6644_v9 = vpop.f32.mrf.mxu0  ;;  %6946 = vmatprep.subr.bf16.mxu0 %v9617_v62  ;;  %v9665_v60 = vld [vmem:[%s14406_s1 + $0x82c] ss:$40 sps:$4 sm:$0xff]   ;;  %v9663_v62 = vld [vmem:[%s14406_s1 + $0x828] ss:$40 sps:$4 sm:$0xff]  }
 0x105   :  { %v6685_v10 = vpop.f32.mrf.mxu1  ;;  %6979 = vmatprep.subr.bf16.mxu1 %v9620_v63  ;;  %v6645_v12 = vadd.f32 %v6644_v9, %v1113_v0  ;;  %v11774_v13 = vadd.f32 %v6683_v2, %v6643_v5  ;;  %7009 = vmatprep.mubr.bf16.mxu1 %v11174_v36  ;;  %v9666_v63 = vld [vmem:[%s14406_s1 + $0xe68] ss:$40 sps:$4 sm:$0xff]   ;;  %v9671_v0 = vld [vmem:[%s14406_s1 + $0x7dc] ss:$40 sps:$4 sm:$0xff]   ;;  %v9669_v2 = vld [vmem:[%s14406_s1 + $0x7d8] ss:$40 sps:$4 sm:$0xff]  }
 0x106   :  { %v6646_v14 = vpop.f32.mrf.mxu0  ;;  %v9680_v5 = vld [vmem:[%s14406_s1 + $0xdcc] ss:$40 sps:$4 sm:$0xff]   ;;  %v9678_v9 = vld [vmem:[%s14406_s1 + $0xdc8] ss:$40 sps:$4 sm:$0xff]  }
 0x107   :  { %v6687_v18 = vpop.f32.mrf.mxu1  ;;  %v11783_v20 = vadd.f32 %v6685_v10, %v6645_v12  ;;  %6947 = vmatpush1.bf16.msra.mxu0 %v9615_v3  ;;  %v9672_v3 = vld [vmem:[%s14406_s1 + $0xe18] ss:$40 sps:$4 sm:$0xff]   ;;  %v9683_v10 = vld [vmem:[%s14406_s1 + $0xd7c] ss:$40 sps:$4 sm:$0xff]  }
 0x108   :  { %6980 = vmatpush1.bf16.msra.mxu1 %v9618_v4  ;;  %v6647_v21 = vpop.f32.mrf.mxu0  ;;  %6948 = vmatprep.subr.bf16.mxu0 %v9623_v8  ;;  %v9677_v4 = vld [vmem:[%s14406_s1 + $0x78c] ss:$40 sps:$4 sm:$0xff]   ;;  %v9675_v8 = vld [vmem:[%s14406_s1 + $0x788] ss:$40 sps:$4 sm:$0xff]   ;;  %v9681_v12 = vld [vmem:[%s14406_s1 + $0xd78] ss:$40 sps:$4 sm:$0xff]  }
 0x109   :  { %6981 = vmatprep.subr.bf16.mxu1 %v9626_v11  ;;  %v6688_v28 = vpop.f32.mrf.mxu1  ;;  %v9686_v11 = vld [vmem:[%s14406_s1 + $0x113c] ss:$40 sps:$4 sm:$0xff]   ;;  %v9684_v14 = vld [vmem:[%s14406_s1 + $0x1138] ss:$40 sps:$4 sm:$0xff]   ;;  %v9687_v18 = vld [vmem:[%s14406_s1 + $0xd28] ss:$40 sps:$4 sm:$0xff]  }
 0x10a   :  { %v9690_v21 = vld [vmem:[%s14406_s1 + $0x10e8] ss:$40 sps:$4 sm:$0xff]   ;;  %v9693_v28 = vld [vmem:[%s14406_s1 + $0xcd8] ss:$40 sps:$4 sm:$0xff]  }
 0x10b   :  { %6949 = vmatpush1.bf16.msra.mxu0 %v9621_v15  ;;  %v9689_v15 = vld [vmem:[%s14406_s1 + $0xd2c] ss:$40 sps:$4 sm:$0xff]  }
 0x10c   :  { %6982 = vmatpush1.bf16.msra.mxu1 %v9624_v17  ;;  %6950 = vmatprep.subr.bf16.mxu0 %v9629_v26  ;;  %v9692_v17 = vld [vmem:[%s14406_s1 + $0x10ec] ss:$40 sps:$4 sm:$0xff]   ;;  %v9695_v26 = vld [vmem:[%s14406_s1 + $0xcdc] ss:$40 sps:$4 sm:$0xff]  }
 0x10d   :  { %6983 = vmatprep.subr.bf16.mxu1 %v9632_v27  ;;  %v9698_v27 = vld [vmem:[%s14406_s1 + $0x109c] ss:$40 sps:$4 sm:$0xff]  }
 0x10f   :  { %6951 = vmatpush1.bf16.msra.mxu0 %v9627_v29  ;;  %v9696_v29 = vld [vmem:[%s14406_s1 + $0x1098] ss:$40 sps:$4 sm:$0xff]  }
 0x110   :  { %6984 = vmatpush1.bf16.msra.mxu1 %v9630_v30  ;;  %6952 = vmatprep.subr.bf16.mxu0 %v9635_v31  ;;  %v9701_v30 = vld [vmem:[%s14406_s1 + $0xc8c] ss:$40 sps:$4 sm:$0xff]  }
 0x111   :  { %6985 = vmatprep.subr.bf16.mxu1 %v9638_v33  ;;  %v9704_v31 = vld [vmem:[%s14406_s1 + $0x104c] ss:$40 sps:$4 sm:$0xff]   ;;  %v9699_v33 = vld [vmem:[%s14406_s1 + $0xc88] ss:$40 sps:$4 sm:$0xff]  }
 0x113   :  { %6953 = vmatpush2.bf16.msra.mxu0 %v9633_v34  ;;  %v9702_v34 = vld [vmem:[%s14406_s1 + $0x1048] ss:$40 sps:$4 sm:$0xff]  }
 0x114   :  { %6986 = vmatpush1.bf16.msra.mxu1 %v9636_v38  ;;  %6954 = vmatprep.subr.bf16.mxu0 %v9641_v40  ;;  %v9707_v38 = vld [vmem:[%s14406_s1 + $0xffc] ss:$40 sps:$4 sm:$0xff]  }
 0x115   :  { %6987 = vmatprep.subr.bf16.mxu1 %v9644_v22  ;;  %v9710_v40 = vld [vmem:[%s14406_s1 + $0x163c] ss:$40 sps:$4 sm:$0xff]   ;;  %v9705_v22 = vld [vmem:[%s14406_s1 + $0xff8] ss:$40 sps:$4 sm:$0xff]  }
 0x117   :  { %6955 = vmatpush2.bf16.msra.mxu0 %v9639_v41  ;;  %v9708_v41 = vld [vmem:[%s14406_s1 + $0x1638] ss:$40 sps:$4 sm:$0xff]  }
 0x118   :  { %6988 = vmatpush1.bf16.msra.mxu1 %v9642_v42  ;;  %6956 = vmatprep.subr.bf16.mxu0 %v9647_v43  ;;  %v9713_v42 = vld [vmem:[%s14406_s1 + $0xfac] ss:$40 sps:$4 sm:$0xff]  }
 0x119   :  { %6989 = vmatprep.subr.bf16.mxu1 %v9650_v44  ;;  %v9716_v43 = vld [vmem:[%s14406_s1 + $0x15ec] ss:$40 sps:$4 sm:$0xff]  }
 0x11b   :  { %6957 = vmatpush2.bf16.msra.mxu0 %v9645_v45 }
 0x11c   :  { %6990 = vmatpush1.bf16.msra.mxu1 %v9648_v46  ;;  %6958 = vmatprep.subr.bf16.mxu0 %v9653_v48  ;;  %v9711_v48 = vld [vmem:[%s14406_s1 + $0xfa8] ss:$40 sps:$4 sm:$0xff]  }
 0x11d   :  { %6991 = vmatprep.subr.bf16.mxu1 %v9656_v50  ;;  %v9714_v50 = vld [vmem:[%s14406_s1 + $0x15e8] ss:$40 sps:$4 sm:$0xff]  }
 0x11f   :  { %6959 = vmatpush2.bf16.msra.mxu0 %v9651_v52 }
 0x120   :  { %6992 = vmatpush1.bf16.msra.mxu1 %v9654_v53  ;;  %6960 = vmatprep.subr.bf16.mxu0 %v9659_v54  ;;  %v9719_v54 = vld [vmem:[%s14406_s1 + $0xf5c] ss:$40 sps:$4 sm:$0xff]  }
 0x121   :  { %6993 = vmatprep.subr.bf16.mxu1 %v9662_v56 }
 0x123   :  { %6961 = vmatpush2.bf16.msra.mxu0 %v9657_v57 }
 0x124   :  { %6994 = vmatpush2.bf16.msra.mxu1 %v9660_v59  ;;  %6962 = vmatprep.subr.bf16.mxu0 %v9665_v60 }
 0x125   :  { %6995 = vmatprep.subr.bf16.mxu1 %v9668_v61 }
 0x127   :  { %6963 = vmatpush2.bf16.msra.mxu0 %v9663_v62  ;;  %v9717_v62 = vld [vmem:[%s14406_s1 + $0xf58] ss:$40 sps:$4 sm:$0xff]  }
 0x128   :  { %6996 = vmatpush2.bf16.msra.mxu1 %v9666_v63  ;;  %6964 = vmatprep.subr.bf16.mxu0 %v9671_v0  ;;  %v9720_v63 = vld [vmem:[%s14406_s1 + $0x1598] ss:$40 sps:$4 sm:$0xff]  }
 0x129   :  { %6997 = vmatprep.subr.bf16.mxu1 %v9674_v1  ;;  %v9728_v1 = vld [vmem:[%s14406_s1 + $0x154c] ss:$40 sps:$4 sm:$0xff]  }
 0x12b   :  { %6965 = vmatpush2.bf16.msra.mxu0 %v9669_v2 }
 0x12c   :  { %6998 = vmatpush2.bf16.msra.mxu1 %v9672_v3  ;;  %6966 = vmatprep.subr.bf16.mxu0 %v9677_v4  ;;  %v9723_v3 = vld [vmem:[%s14406_s1 + $0xf08] ss:$40 sps:$4 sm:$0xff]  }
 0x12d   :  { %6999 = vmatprep.subr.bf16.mxu1 %v9680_v5  ;;  %v9726_v4 = vld [vmem:[%s14406_s1 + $0x1548] ss:$40 sps:$4 sm:$0xff]   ;;  %v9731_v5 = vld [vmem:[%s14406_s1 + $0x13bc] ss:$40 sps:$4 sm:$0xff]  }
 0x12f   :  { %6967 = vmatpush2.bf16.msra.mxu0 %v9675_v8  ;;  %v9734_v8 = vld [vmem:[%s14406_s1 + $0x14fc] ss:$40 sps:$4 sm:$0xff]  }
 0x130   :  { %7000 = vmatpush2.bf16.msra.mxu1 %v9678_v9  ;;  %7018 = vmatprep.subr.bf16.mxu0 %v9686_v11  ;;  %v9729_v9 = vld [vmem:[%s14406_s1 + $0x13b8] ss:$40 sps:$4 sm:$0xff]   ;;  %v9737_v11 = vld [vmem:[%s14406_s1 + $0x136c] ss:$40 sps:$4 sm:$0xff]  }
 0x131   :  { %7001 = vmatprep.subr.bf16.mxu1 %v9683_v10  ;;  %v9732_v10 = vld [vmem:[%s14406_s1 + $0x14f8] ss:$40 sps:$4 sm:$0xff]  }
 0x132   :  { %6969 = vmatmul.mubr.bf16.vlgmr.msra.gmra.mxu0 %v11080_v7 }
 0x133   :  { %7019 = vmatpush1.bf16.msra.mxu0 %v9684_v14  ;;  %7050 = vmatprep.mubr.bf16.mxu0 %v11178_v37  ;;  %v9735_v14 = vld [vmem:[%s14406_s1 + $0x1368] ss:$40 sps:$4 sm:$0xff]  }
 0x134   :  { %7002 = vmatpush2.bf16.msra.mxu1 %v9681_v12  ;;  %7020 = vmatprep.subr.bf16.mxu0 %v9692_v17  ;;  %v9740_v12 = vld [vmem:[%s14406_s1 + $0x14ac] ss:$40 sps:$4 sm:$0xff]   ;;  %v9743_v17 = vld [vmem:[%s14406_s1 + $0x131c] ss:$40 sps:$4 sm:$0xff]  }
 0x135   :  { %7003 = vmatprep.subr.bf16.mxu1 %v9689_v15  ;;  %v9738_v15 = vld [vmem:[%s14406_s1 + $0x14a8] ss:$40 sps:$4 sm:$0xff]  }
 0x137   :  { %7021 = vmatpush1.bf16.msra.mxu0 %v9690_v21  ;;  %v9741_v21 = vld [vmem:[%s14406_s1 + $0x1318] ss:$40 sps:$4 sm:$0xff]  }
 0x138   :  { %7004 = vmatpush2.bf16.msra.mxu1 %v9687_v18  ;;  %7022 = vmatprep.subr.bf16.mxu0 %v9698_v27  ;;  %v9746_v18 = vld [vmem:[%s14406_s1 + $0x145c] ss:$40 sps:$4 sm:$0xff]   ;;  %v9749_v27 = vld [vmem:[%s14406_s1 + $0x12cc] ss:$40 sps:$4 sm:$0xff]  }
 0x139   :  { %7005 = vmatprep.subr.bf16.mxu1 %v9695_v26  ;;  %v9744_v26 = vld [vmem:[%s14406_s1 + $0x1458] ss:$40 sps:$4 sm:$0xff]  }
 0x13b   :  { %7023 = vmatpush1.bf16.msra.mxu0 %v9696_v29  ;;  %v9747_v29 = vld [vmem:[%s14406_s1 + $0x12c8] ss:$40 sps:$4 sm:$0xff]  }
 0x13c   :  { %7006 = vmatpush2.bf16.msra.mxu1 %v9693_v28  ;;  %7024 = vmatprep.subr.bf16.mxu0 %v9704_v31  ;;  %v9752_v28 = vld [vmem:[%s14406_s1 + $0x140c] ss:$40 sps:$4 sm:$0xff]   ;;  %v9755_v31 = vld [vmem:[%s14406_s1 + $0x127c] ss:$40 sps:$4 sm:$0xff]  }
 0x13d   :  { %7007 = vmatprep.subr.bf16.mxu1 %v9701_v30  ;;  %v9750_v30 = vld [vmem:[%s14406_s1 + $0x1408] ss:$40 sps:$4 sm:$0xff]  }
 0x13f   :  { %7025 = vmatpush1.bf16.msra.mxu0 %v9702_v34  ;;  %v9753_v34 = vld [vmem:[%s14406_s1 + $0x1278] ss:$40 sps:$4 sm:$0xff]  }
 0x140   :  { %7008 = vmatpush2.bf16.msra.mxu1 %v9699_v33  ;;  %7026 = vmatprep.subr.bf16.mxu0 %v9707_v38  ;;  %v9758_v33 = vld [vmem:[%s14406_s1 + $0x18bc] ss:$40 sps:$4 sm:$0xff]   ;;  %v9756_v38 = vld [vmem:[%s14406_s1 + $0x18b8] ss:$40 sps:$4 sm:$0xff]  }
 0x141   :  { %7059 = vmatprep.subr.bf16.mxu1 %v9710_v40  ;;  %v9761_v40 = vld [vmem:[%s14406_s1 + $0x122c] ss:$40 sps:$4 sm:$0xff]  }
 0x142   :  { %v6724_v44 = vpop.f32.mrf.mxu0 }
 0x143   :  { %7010 = vmatmul.mubr.bf16.vlgmr.msra.gmra.mxu1 %v11298_v16  ;;  %v6765_v45 = vpop.f32.mrf.mxu1  ;;  %v6725_v46 = vadd.f32 %v6724_v44, %v11774_v13  ;;  %7027 = vmatpush1.bf16.msra.mxu0 %v9705_v22  ;;  %v9722_v13 = vld [vmem:[%s14406_s1 + $0x159c] ss:$40 sps:$4 sm:$0xff]   ;;  %v9764_v22 = vld [vmem:[%s14406_s1 + $0x186c] ss:$40 sps:$4 sm:$0xff]  }
 0x144   :  { %7060 = vmatpush1.bf16.msra.mxu1 %v9708_v41  ;;  %v6726_v52 = vpop.f32.mrf.mxu0  ;;  %7028 = vmatprep.subr.bf16.mxu0 %v9713_v42  ;;  %v9759_v41 = vld [vmem:[%s14406_s1 + $0x1228] ss:$40 sps:$4 sm:$0xff]   ;;  %v9770_v44 = vld [vmem:[%s14406_s1 + $0x181c] ss:$40 sps:$4 sm:$0xff]  }
 0x145   :  { %v6767_v53 = vpop.f32.mrf.mxu1  ;;  %7061 = vmatprep.subr.bf16.mxu1 %v9716_v43  ;;  %v6727_v56 = vadd.f32 %v6726_v52, %v11783_v20  ;;  %v11976_v57 = vadd.f32 %v6765_v45, %v6725_v46  ;;  %7091 = vmatprep.mubr.bf16.mxu1 %v11328_v24  ;;  %v9725_v20 = vld [vmem:[%s14406_s1 + $0xf0c] ss:$40 sps:$4 sm:$0xff]   ;;  %v9762_v42 = vld [vmem:[%s14406_s1 + $0x1868] ss:$40 sps:$4 sm:$0xff]   ;;  %v9767_v43 = vld [vmem:[%s14406_s1 + $0x11dc] ss:$40 sps:$4 sm:$0xff]  }
 0x146   :  { %v6728_v59 = vpop.f32.mrf.mxu0  ;;  %v9765_v45 = vld [vmem:[%s14406_s1 + $0x11d8] ss:$40 sps:$4 sm:$0xff]   ;;  %v9771_v52 = vld [vmem:[%s14406_s1 + $0x1188] ss:$40 sps:$4 sm:$0xff]  }
 0x147   :  { %v6769_v60 = vpop.f32.mrf.mxu1  ;;  %v11979_v61 = vadd.f32 %v6767_v53, %v6727_v56  ;;  %7029 = vmatpush1.bf16.msra.mxu0 %v9711_v48  ;;  %v9768_v46 = vld [vmem:[%s14406_s1 + $0x1818] ss:$40 sps:$4 sm:$0xff]   ;;  %v9773_v48 = vld [vmem:[%s14406_s1 + $0x118c] ss:$40 sps:$4 sm:$0xff]   ;;  %v9774_v53 = vld [vmem:[%s14406_s1 + $0x17c8] ss:$40 sps:$4 sm:$0xff]  }
 0x148   :  { %7062 = vmatpush1.bf16.msra.mxu1 %v9714_v50  ;;  %v6729_v0 = vpop.f32.mrf.mxu0  ;;  %7030 = vmatprep.subr.bf16.mxu0 %v9719_v54  ;;  %v9776_v50 = vld [vmem:[%s14406_s1 + $0x17cc] ss:$40 sps:$4 sm:$0xff]   ;;  %v9779_v54 = vld [vmem:[%s14406_s1 + $0x177c] ss:$40 sps:$4 sm:$0xff]   ;;  %v9777_v56 = vld [vmem:[%s14406_s1 + $0x1778] ss:$40 sps:$4 sm:$0xff]  }
 0x149   :  { %7063 = vmatprep.subr.bf16.mxu1 %v9722_v13  ;;  %v6770_v2 = vpop.f32.mrf.mxu1  ;;  %v9782_v13 = vld [vmem:[%s14406_s1 + $0x1b3c] ss:$40 sps:$4 sm:$0xff]   ;;  %v9780_v59 = vld [vmem:[%s14406_s1 + $0x1b38] ss:$40 sps:$4 sm:$0xff]   ;;  %v9785_v60 = vld [vmem:[%s14406_s1 + $0x172c] ss:$40 sps:$4 sm:$0xff]  }
 0x14a   :  { %v9786_v0 = vld [vmem:[%s14406_s1 + $0x1ae8] ss:$40 sps:$4 sm:$0xff]   ;;  %v9789_v2 = vld [vmem:[%s14406_s1 + $0x16d8] ss:$40 sps:$4 sm:$0xff]  }
 0x14b   :  { %7031 = vmatpush1.bf16.msra.mxu0 %v9717_v62  ;;  %v9788_v62 = vld [vmem:[%s14406_s1 + $0x1aec] ss:$40 sps:$4 sm:$0xff]  }
 0x14c   :  { %7064 = vmatpush1.bf16.msra.mxu1 %v9720_v63  ;;  %7032 = vmatprep.subr.bf16.mxu0 %v9725_v20  ;;  %v9783_v63 = vld [vmem:[%s14406_s1 + $0x1728] ss:$40 sps:$4 sm:$0xff]   ;;  %v9791_v20 = vld [vmem:[%s14406_s1 + $0x16dc] ss:$40 sps:$4 sm:$0xff]  }
 0x14d   :  { %7065 = vmatprep.subr.bf16.mxu1 %v9728_v1  ;;  %v9794_v1 = vld [vmem:[%s14406_s1 + $0x1a9c] ss:$40 sps:$4 sm:$0xff]  }
 0x14f   :  { %7033 = vmatpush1.bf16.msra.mxu0 %v9723_v3  ;;  %v9792_v3 = vld [vmem:[%s14406_s1 + $0x1a98] ss:$40 sps:$4 sm:$0xff]  }
 0x150   :  { %7066 = vmatpush1.bf16.msra.mxu1 %v9726_v4  ;;  %7034 = vmatprep.subr.bf16.mxu0 %v9731_v5  ;;  %v9797_v4 = vld [vmem:[%s14406_s1 + $0x168c] ss:$40 sps:$4 sm:$0xff]  }
 0x151   :  { %7067 = vmatprep.subr.bf16.mxu1 %v9734_v8  ;;  %v9800_v5 = vld [vmem:[%s14406_s1 + $0x1a4c] ss:$40 sps:$4 sm:$0xff]   ;;  %v9795_v8 = vld [vmem:[%s14406_s1 + $0x1688] ss:$40 sps:$4 sm:$0xff]  }
 0x153   :  { %7035 = vmatpush2.bf16.msra.mxu0 %v9729_v9  ;;  %v9798_v9 = vld [vmem:[%s14406_s1 + $0x1a48] ss:$40 sps:$4 sm:$0xff]  }
 0x154   :  { %7068 = vmatpush1.bf16.msra.mxu1 %v9732_v10  ;;  %7036 = vmatprep.subr.bf16.mxu0 %v9737_v11  ;;  %v9803_v10 = vld [vmem:[%s14406_s1 + $0x19fc] ss:$40 sps:$4 sm:$0xff]  }
 0x155   :  { %7069 = vmatprep.subr.bf16.mxu1 %v9740_v12  ;;  %v9806_v11 = vld [vmem:[%s14406_s1 + $0x203c] ss:$40 sps:$4 sm:$0xff]   ;;  %v9801_v12 = vld [vmem:[%s14406_s1 + $0x19f8] ss:$40 sps:$4 sm:$0xff]  }
 0x157   :  { %7037 = vmatpush2.bf16.msra.mxu0 %v9735_v14  ;;  %v9804_v14 = vld [vmem:[%s14406_s1 + $0x2038] ss:$40 sps:$4 sm:$0xff]  }
 0x158   :  { %7070 = vmatpush1.bf16.msra.mxu1 %v9738_v15  ;;  %7038 = vmatprep.subr.bf16.mxu0 %v9743_v17  ;;  %v9809_v15 = vld [vmem:[%s14406_s1 + $0x19ac] ss:$40 sps:$4 sm:$0xff]  }
 0x159   :  { %7071 = vmatprep.subr.bf16.mxu1 %v9746_v18  ;;  %v9812_v17 = vld [vmem:[%s14406_s1 + $0x1fec] ss:$40 sps:$4 sm:$0xff]   ;;  %v9807_v18 = vld [vmem:[%s14406_s1 + $0x19a8] ss:$40 sps:$4 sm:$0xff]  }
 0x15b   :  { %7039 = vmatpush2.bf16.msra.mxu0 %v9741_v21  ;;  %v9810_v21 = vld [vmem:[%s14406_s1 + $0x1fe8] ss:$40 sps:$4 sm:$0xff]  }
 0x15c   :  { %7072 = vmatpush1.bf16.msra.mxu1 %v9744_v26  ;;  %7040 = vmatprep.subr.bf16.mxu0 %v9749_v27 }
 0x15d   :  { %7073 = vmatprep.subr.bf16.mxu1 %v9752_v28 }
 0x15f   :  { %7041 = vmatpush2.bf16.msra.mxu0 %v9747_v29 }
 0x160   :  { %7074 = vmatpush1.bf16.msra.mxu1 %v9750_v30  ;;  %7042 = vmatprep.subr.bf16.mxu0 %v9755_v31  ;;  %v9815_v30 = vld [vmem:[%s14406_s1 + $0x195c] ss:$40 sps:$4 sm:$0xff]  }
 0x161   :  { %7075 = vmatprep.subr.bf16.mxu1 %v9758_v33  ;;  %v9818_v31 = vld [vmem:[%s14406_s1 + $0x1f9c] ss:$40 sps:$4 sm:$0xff]  }
 0x163   :  { %7043 = vmatpush2.bf16.msra.mxu0 %v9753_v34 }
 0x164   :  { %7076 = vmatpush2.bf16.msra.mxu1 %v9756_v38  ;;  %7044 = vmatprep.subr.bf16.mxu0 %v9761_v40  ;;  %v9813_v38 = vld [vmem:[%s14406_s1 + $0x1958] ss:$40 sps:$4 sm:$0xff]  }
 0x165   :  { %7077 = vmatprep.subr.bf16.mxu1 %v9764_v22  ;;  %v9816_v40 = vld [vmem:[%s14406_s1 + $0x1f98] ss:$40 sps:$4 sm:$0xff]  }
 0x167   :  { %7045 = vmatpush2.bf16.msra.mxu0 %v9759_v41  ;;  %v9821_v41 = vld [vmem:[%s14406_s1 + $0x190c] ss:$40 sps:$4 sm:$0xff]  }
 0x168   :  { %7078 = vmatpush2.bf16.msra.mxu1 %v9762_v42  ;;  %7046 = vmatprep.subr.bf16.mxu0 %v9767_v43  ;;  %v9824_v42 = vld [vmem:[%s14406_s1 + $0x1f4c] ss:$40 sps:$4 sm:$0xff]  }
 0x169   :  { %7079 = vmatprep.subr.bf16.mxu1 %v9770_v44  ;;  %v9819_v44 = vld [vmem:[%s14406_s1 + $0x1908] ss:$40 sps:$4 sm:$0xff]  }
 0x16b   :  { %7047 = vmatpush2.bf16.msra.mxu0 %v9765_v45  ;;  %v9822_v45 = vld [vmem:[%s14406_s1 + $0x1f48] ss:$40 sps:$4 sm:$0xff]  }
 0x16c   :  { %7080 = vmatpush2.bf16.msra.mxu1 %v9768_v46  ;;  %7048 = vmatprep.subr.bf16.mxu0 %v9773_v48  ;;  %v9827_v46 = vld [vmem:[%s14406_s1 + $0x1dbc] ss:$40 sps:$4 sm:$0xff]  }
 0x16d   :  { %7081 = vmatprep.subr.bf16.mxu1 %v9776_v50  ;;  %v9830_v48 = vld [vmem:[%s14406_s1 + $0x1efc] ss:$40 sps:$4 sm:$0xff]   ;;  %v9825_v50 = vld [vmem:[%s14406_s1 + $0x1db8] ss:$40 sps:$4 sm:$0xff]  }
 0x16f   :  { %7049 = vmatpush2.bf16.msra.mxu0 %v9771_v52  ;;  %v9828_v52 = vld [vmem:[%s14406_s1 + $0x1ef8] ss:$40 sps:$4 sm:$0xff]  }
 0x170   :  { %7082 = vmatpush2.bf16.msra.mxu1 %v9774_v53  ;;  %7100 = vmatprep.subr.bf16.mxu0 %v9782_v13  ;;  %v9833_v53 = vld [vmem:[%s14406_s1 + $0x1d6c] ss:$40 sps:$4 sm:$0xff]   ;;  %v9831_v13 = vld [vmem:[%s14406_s1 + $0x1d68] ss:$40 sps:$4 sm:$0xff]  }
 0x171   :  { %7083 = vmatprep.subr.bf16.mxu1 %v9779_v54  ;;  %v9836_v54 = vld [vmem:[%s14406_s1 + $0x1eac] ss:$40 sps:$4 sm:$0xff]  }
 0x172   :  { %7051 = vmatmul.mubr.bf16.vlgmr.msra.gmra.mxu0 %v11308_v19 }
 0x173   :  { %7101 = vmatpush1.bf16.msra.mxu0 %v9780_v59  ;;  %7132 = vmatprep.mubr.bf16.mxu0 %v11332_v25  ;;  %v9839_v59 = vld [vmem:[%s14406_s1 + $0x1d1c] ss:$40 sps:$4 sm:$0xff]  }
 0x174   :  { %7084 = vmatpush2.bf16.msra.mxu1 %v9777_v56  ;;  %7102 = vmatprep.subr.bf16.mxu0 %v9788_v62  ;;  %v9834_v56 = vld [vmem:[%s14406_s1 + $0x1ea8] ss:$40 sps:$4 sm:$0xff]   ;;  %v9837_v62 = vld [vmem:[%s14406_s1 + $0x1d18] ss:$40 sps:$4 sm:$0xff]  }
 0x175   :  { %7085 = vmatprep.subr.bf16.mxu1 %v9785_v60  ;;  %v9842_v60 = vld [vmem:[%s14406_s1 + $0x1e5c] ss:$40 sps:$4 sm:$0xff]  }
 0x177   :  { %7103 = vmatpush1.bf16.msra.mxu0 %v9786_v0  ;;  %v9845_v0 = vld [vmem:[%s14406_s1 + $0x1ccc] ss:$40 sps:$4 sm:$0xff]  }
 0x178   :  { %7086 = vmatpush2.bf16.msra.mxu1 %v9783_v63  ;;  %7104 = vmatprep.subr.bf16.mxu0 %v9794_v1  ;;  %v9840_v63 = vld [vmem:[%s14406_s1 + $0x1e58] ss:$40 sps:$4 sm:$0xff]   ;;  %v9843_v1 = vld [vmem:[%s14406_s1 + $0x1cc8] ss:$40 sps:$4 sm:$0xff]  }
 0x179   :  { %7087 = vmatprep.subr.bf16.mxu1 %v9791_v20  ;;  %v9848_v20 = vld [vmem:[%s14406_s1 + $0x1e0c] ss:$40 sps:$4 sm:$0xff]  }
 0x17b   :  { %7105 = vmatpush1.bf16.msra.mxu0 %v9792_v3  ;;  %v9851_v3 = vld [vmem:[%s14406_s1 + $0x1c7c] ss:$40 sps:$4 sm:$0xff]  }
 0x17c   :  { %7088 = vmatpush2.bf16.msra.mxu1 %v9789_v2  ;;  %7106 = vmatprep.subr.bf16.mxu0 %v9800_v5  ;;  %v9846_v2 = vld [vmem:[%s14406_s1 + $0x1e08] ss:$40 sps:$4 sm:$0xff]   ;;  %v9849_v5 = vld [vmem:[%s14406_s1 + $0x1c78] ss:$40 sps:$4 sm:$0xff]  }
 0x17d   :  { %7089 = vmatprep.subr.bf16.mxu1 %v9797_v4  ;;  %v9854_v4 = vld [vmem:[%s14406_s1 + $0x217c] ss:$40 sps:$4 sm:$0xff]  }
 0x17f   :  { %7107 = vmatpush1.bf16.msra.mxu0 %v9798_v9  ;;  %v9857_v9 = vld [vmem:[%s14406_s1 + $0x1c2c] ss:$40 sps:$4 sm:$0xff]  }
 0x180   :  { %7090 = vmatpush2.bf16.msra.mxu1 %v9795_v8  ;;  %7108 = vmatprep.subr.bf16.mxu0 %v9803_v10  ;;  %v9852_v8 = vld [vmem:[%s14406_s1 + $0x2178] ss:$40 sps:$4 sm:$0xff]   ;;  %v9860_v10 = vld [vmem:[%s14406_s1 + $0x212c] ss:$40 sps:$4 sm:$0xff]  }
 0x181   :  { %7141 = vmatprep.subr.bf16.mxu1 %v9806_v11  ;;  %v9855_v11 = vld [vmem:[%s14406_s1 + $0x1c28] ss:$40 sps:$4 sm:$0xff]  }
 0x182   :  { %v12169_v26 = vpop.f32.mrf.mxu0 }
 0x183   :  { %7092 = vmatmul.mubr.bf16.vlgmr.msra.gmra.mxu1 %v11523_v35  ;;  %v12172_v27 = vpop.f32.mrf.mxu1  ;;  %7109 = vmatpush1.bf16.msra.mxu0 %v9801_v12  ;;  %v9858_v12 = vld [vmem:[%s14406_s1 + $0x2128] ss:$40 sps:$4 sm:$0xff]  }
 0x184   :  { %7142 = vmatpush1.bf16.msra.mxu1 %v9804_v14  ;;  %v12174_v28 = vpop.f32.mrf.mxu0  ;;  %7110 = vmatprep.subr.bf16.mxu0 %v9809_v15  ;;  %v9863_v14 = vld [vmem:[%s14406_s1 + $0x1bdc] ss:$40 sps:$4 sm:$0xff]  }
 0x185   :  { %v12176_v29 = vpop.f32.mrf.mxu1  ;;  %7143 = vmatprep.subr.bf16.mxu1 %v9812_v17  ;;  %9197 = vmatprep.mubr.msk.bf16.mxu1 %vm6604_vm0, %v11545_v23  ;;  %v9866_v15 = vld [vmem:[%s14406_s1 + $0x20dc] ss:$40 sps:$4 sm:$0xff]   ;;  %v9861_v17 = vld [vmem:[%s14406_s1 + $0x1bd8] ss:$40 sps:$4 sm:$0xff]  }
 0x186   :  { %v6810_v33 = vpop.f32.mrf.mxu0 }
 0x187   :  { %v6851_v34 = vpop.f32.mrf.mxu1  ;;  %7111 = vmatpush1.bf16.msra.mxu0 %v9807_v18  ;;  %v9864_v18 = vld [vmem:[%s14406_s1 + $0x20d8] ss:$40 sps:$4 sm:$0xff]   ;;  %v9870_v33 = vld [vmem:[%s14406_s1 + $0x2088] ss:$40 sps:$4 sm:$0xff]  }
 0x188   :  { %7144 = vmatpush1.bf16.msra.mxu1 %v9810_v21  ;;  %v6811_v22 = vpop.f32.mrf.mxu0  ;;  %7112 = vmatprep.subr.bf16.mxu0 %v9815_v30  ;;  %v9869_v21 = vld [vmem:[%s14406_s1 + $0x1b8c] ss:$40 sps:$4 sm:$0xff]  }
 0x189   :  { %7145 = vmatprep.subr.bf16.mxu1 %v9818_v31  ;;  %v6852_v43 = vpop.f32.mrf.mxu1  ;;  %v9872_v30 = vld [vmem:[%s14406_s1 + $0x208c] ss:$40 sps:$4 sm:$0xff]   ;;  %v9867_v31 = vld [vmem:[%s14406_s1 + $0x1b88] ss:$40 sps:$4 sm:$0xff]  }
 0x18a   :  { %v9875_v34 = vld [vmem:[%s14406_s1 + $0x244] ss:$40 sps:$4 sm:$0xff]   ;;  %v9873_v22 = vld [vmem:[%s14406_s1 + $0x240] ss:$40 sps:$4 sm:$0xff]   ;;  %v9881_v43 = vld [vmem:[%s14406_s1 + $0x1f4] ss:$40 sps:$4 sm:$0xff]  }
 0x18b   :  { %7113 = vmatpush1.bf16.msra.mxu0 %v9813_v38  ;;  %v9878_v38 = vld [vmem:[%s14406_s1 + $0x744] ss:$40 sps:$4 sm:$0xff]  }
 0x18c   :  { %7146 = vmatpush1.bf16.msra.mxu1 %v9816_v40  ;;  %7114 = vmatprep.subr.bf16.mxu0 %v9821_v41  ;;  %v6807_v40 = vadd.f32 %v12169_v26, %v11976_v57  ;;  %v9876_v41 = vld [vmem:[%s14406_s1 + $0x740] ss:$40 sps:$4 sm:$0xff]   ;;  %v9884_v57 = vld [vmem:[%s14406_s1 + $0x6f4] ss:$40 sps:$4 sm:$0xff]  }
 0x18d   :  { %7147 = vmatprep.subr.bf16.mxu1 %v9824_v42  ;;  %v6809_v42 = vadd.f32 %v12174_v28, %v11979_v61  ;;  %v9882_v61 = vld [vmem:[%s14406_s1 + $0x6f0] ss:$40 sps:$4 sm:$0xff]  }
 0x18e   :  { %v6848_v26 = vadd.f32 %v12172_v27, %v6807_v40  ;;  %v9887_v27 = vld [vmem:[%s14406_s1 + $0x1a4] ss:$40 sps:$4 sm:$0xff]  }
 0x18f   :  { %7115 = vmatpush1.bf16.msra.mxu0 %v9819_v44  ;;  %v9879_v44 = vld [vmem:[%s14406_s1 + $0x1f0] ss:$40 sps:$4 sm:$0xff]   ;;  %v9923_v40 = vld [vmem:[%s14406_s1 + $0x4c4] ss:$40 sps:$4 sm:$0xff]  }
 0x190   :  { %7148 = vmatpush1.bf16.msra.mxu1 %v9822_v45  ;;  %7116 = vmatprep.subr.bf16.mxu0 %v9827_v46  ;;  %v6850_v45 = vadd.f32 %v12176_v29, %v6809_v42  ;;  %v9888_v29 = vld [vmem:[%s14406_s1 + $0x6a0] ss:$40 sps:$4 sm:$0xff]  }
 0x191   :  { %7149 = vmatprep.subr.bf16.mxu1 %v9830_v48  ;;  %v9924_v42 = vld [vmem:[%s14406_s1 + $0x9c0] ss:$40 sps:$4 sm:$0xff]  }
 0x193   :  { %7117 = vmatpush2.bf16.msra.mxu0 %v9825_v50  ;;  %v9890_v50 = vld [vmem:[%s14406_s1 + $0x6a4] ss:$40 sps:$4 sm:$0xff]  }
 0x194   :  { %7150 = vmatpush1.bf16.msra.mxu1 %v9828_v52  ;;  %7118 = vmatprep.subr.bf16.mxu0 %v9833_v53  ;;  %v9885_v53 = vld [vmem:[%s14406_s1 + $0x1a0] ss:$40 sps:$4 sm:$0xff]  }
 0x195   :  { %7151 = vmatprep.subr.bf16.mxu1 %v9836_v54 }
 0x197   :  { %7119 = vmatpush2.bf16.msra.mxu0 %v9831_v13 }
 0x198   :  { %7152 = vmatpush1.bf16.msra.mxu1 %v9834_v56  ;;  %7120 = vmatprep.subr.bf16.mxu0 %v9839_v59 }
 0x199   :  { %7153 = vmatprep.subr.bf16.mxu1 %v9842_v60  ;;  %v9893_v60 = vld [vmem:[%s14406_s1 + $0x154] ss:$40 sps:$4 sm:$0xff]  }
 0x19b   :  { %7121 = vmatpush2.bf16.msra.mxu0 %v9837_v62  ;;  %v9896_v62 = vld [vmem:[%s14406_s1 + $0x654] ss:$40 sps:$4 sm:$0xff]  }
 0x19c   :  { %7154 = vmatpush1.bf16.msra.mxu1 %v9840_v63  ;;  %7122 = vmatprep.subr.bf16.mxu0 %v9845_v0  ;;  %v9891_v0 = vld [vmem:[%s14406_s1 + $0x150] ss:$40 sps:$4 sm:$0xff]  }
 0x19d   :  { %7155 = vmatprep.subr.bf16.mxu1 %v9848_v20  ;;  %v9894_v20 = vld [vmem:[%s14406_s1 + $0x650] ss:$40 sps:$4 sm:$0xff]  }
 0x19f   :  { %7123 = vmatpush2.bf16.msra.mxu0 %v9843_v1  ;;  %v9899_v1 = vld [vmem:[%s14406_s1 + $0x104] ss:$40 sps:$4 sm:$0xff]  }
 0x1a0   :  { %7156 = vmatpush1.bf16.msra.mxu1 %v9846_v2  ;;  %7124 = vmatprep.subr.bf16.mxu0 %v9851_v3  ;;  %v9902_v2 = vld [vmem:[%s14406_s1 + $0x604] ss:$40 sps:$4 sm:$0xff]   ;;  %v9897_v3 = vld [vmem:[%s14406_s1 + $0x100] ss:$40 sps:$4 sm:$0xff]  }
 0x1a1   :  { %7165 = vmatprep.subr.bf16.mxu1 %v9854_v4  ;;  %v9900_v4 = vld [vmem:[%s14406_s1 + $0x600] ss:$40 sps:$4 sm:$0xff]  }
 0x1a3   :  { %7125 = vmatpush2.bf16.msra.mxu0 %v9849_v5  ;;  %v9905_v5 = vld [vmem:[%s14406_s1 + $0xb4] ss:$40 sps:$4 sm:$0xff]  }
 0x1a4   :  { %7166 = vmatpush2.bf16.msra.mxu1 %v9852_v8  ;;  %7126 = vmatprep.subr.bf16.mxu0 %v9857_v9  ;;  %v9908_v8 = vld [vmem:[%s14406_s1 + $0x5b4] ss:$40 sps:$4 sm:$0xff]   ;;  %v9903_v9 = vld [vmem:[%s14406_s1 + $0xb0] ss:$40 sps:$4 sm:$0xff]  }
 0x1a5   :  { %7167 = vmatprep.subr.bf16.mxu1 %v9860_v10  ;;  %v9906_v10 = vld [vmem:[%s14406_s1 + $0x5b0] ss:$40 sps:$4 sm:$0xff]  }
 0x1a7   :  { %7127 = vmatpush2.bf16.msra.mxu0 %v9855_v11 }
 0x1a8   :  { %7168 = vmatpush2.bf16.msra.mxu1 %v9858_v12  ;;  %7128 = vmatprep.subr.bf16.mxu0 %v9863_v14  ;;  %v9911_v12 = vld [vmem:[%s14406_s1 + $0x64] ss:$40 sps:$4 sm:$0xff]  }
 0x1a9   :  { %7169 = vmatprep.subr.bf16.mxu1 %v9866_v15  ;;  %v9914_v14 = vld [vmem:[%s14406_s1 + $0x564] ss:$40 sps:$4 sm:$0xff]  }
 0x1ab   :  { %7129 = vmatpush2.bf16.msra.mxu0 %v9861_v17 }
 0x1ac   :  { %7170 = vmatpush2.bf16.msra.mxu1 %v9864_v18  ;;  %7130 = vmatprep.subr.bf16.mxu0 %v9869_v21  ;;  %v9909_v18 = vld [vmem:[%s14406_s1 + $0x60] ss:$40 sps:$4 sm:$0xff]  }
 0x1ad   :  { %7171 = vmatprep.subr.bf16.mxu1 %v9872_v30  ;;  %v9912_v21 = vld [vmem:[%s14406_s1 + $0x560] ss:$40 sps:$4 sm:$0xff]   ;;  %v9917_v30 = vld [vmem:[%s14406_s1 + $0x14] ss:$40 sps:$4 sm:$0xff]  }
 0x1af   :  { %7131 = vmatpush2.bf16.msra.mxu0 %v9867_v31  ;;  %v9920_v31 = vld [vmem:[%s14406_s1 + $0x514] ss:$40 sps:$4 sm:$0xff]  }
 0x1b0   :  { %7172 = vmatpush2.bf16.msra.mxu1 %v9870_v33  ;;  %7182 = vmatprep.subr.bf16.mxu0 %v9875_v34  ;;  %v9915_v34 = vld [vmem:[%s14406_s1 + $0x10] ss:$40 sps:$4 sm:$0xff]  }
 0x1b1   :  { %7223 = vmatprep.subr.bf16.mxu1 %v9878_v38  ;;  %v9918_v38 = vld [vmem:[%s14406_s1 + $0x510] ss:$40 sps:$4 sm:$0xff]  }
 0x1b2   :  { %v6888_v28 = vpop.f32.mrf.mxu0  ;;  %7133 = vmatmul.mubr.bf16.vlgmr.msra.gmra.mxu0 %v11530_v39 }
 0x1b3   :  { %7174 = vmatmul.mubr.bf16.vlgmr.msra.gmra.mxu1 %v11686_v32  ;;  %v6889_v46 = vadd.f32 %v6888_v28, %v6848_v26  ;;  %7183 = vmatpush1.bf16.msra.mxu0 %v9873_v22  ;;  %v9926_v22 = vld [vmem:[%s14406_s1 + $0x9c4] ss:$40 sps:$4 sm:$0xff]   ;;  %v9927_v26 = vld [vmem:[%s14406_s1 + $0x470] ss:$40 sps:$4 sm:$0xff]  }
 0x1b4   :  { %7224 = vmatpush1.bf16.msra.mxu1 %v9876_v41  ;;  %v6890_v48 = vpop.f32.mrf.mxu0  ;;  %7184 = vmatprep.subr.bf16.mxu0 %v9881_v43  ;;  %v9921_v41 = vld [vmem:[%s14406_s1 + $0x4c0] ss:$40 sps:$4 sm:$0xff]   ;;  %v9929_v43 = vld [vmem:[%s14406_s1 + $0x474] ss:$40 sps:$4 sm:$0xff]   ;;  %v9938_v28 = vld [vmem:[%s14406_s1 + $0x924] ss:$40 sps:$4 sm:$0xff]  }
 0x1b5   :  { %7225 = vmatprep.subr.bf16.mxu1 %v9884_v57  ;;  %v6891_v52 = vadd.f32 %v6890_v48, %v6850_v45  ;;  %7214 = vmatprep.mubr.bf16.mxu0 %v11009_v47  ;;  %v8043_v13 = vmax.f32 %v6889_v46, 0.0  ;;  %v9932_v57 = vld [vmem:[%s14406_s1 + $0x974] ss:$40 sps:$4 sm:$0xff]   ;;  %v9933_v45 = vld [vmem:[%s14406_s1 + $0x420] ss:$40 sps:$4 sm:$0xff]  }
 0x1b6   :  { %7255 = vmatprep.mubr.bf16.mxu1 %v11020_v51  ;;  %v6892_v54 = vpop.f32.mrf.mxu0  ;;  %v9936_v46 = vld [vmem:[%s14406_s1 + $0x920] ss:$40 sps:$4 sm:$0xff]   ;;  %v9941_v48 = vld [vmem:[%s14406_s1 + $0x3d4] ss:$40 sps:$4 sm:$0xff]  }
 0x1b7   :  { %v8044_v56 = vmax.f32 %v6891_v52, 0.0  ;;  %7185 = vmatpush1.bf16.msra.mxu0 %v9879_v44  ;;  %v9930_v44 = vld [vmem:[%s14406_s1 + $0x970] ss:$40 sps:$4 sm:$0xff]   ;;  %v9945_v54 = vld [vmem:[%s14406_s1 + $0x380] ss:$40 sps:$4 sm:$0xff]  }
 0x1b8   :  { %7226 = vmatpush1.bf16.msra.mxu1 %v9882_v61  ;;  %v6893_v59 = vpop.f32.mrf.mxu0  ;;  %7186 = vmatprep.subr.bf16.mxu0 %v9887_v27  ;;  %v9935_v61 = vld [vmem:[%s14406_s1 + $0x424] ss:$40 sps:$4 sm:$0xff]   ;;  %v9944_v27 = vld [vmem:[%s14406_s1 + $0x8d4] ss:$40 sps:$4 sm:$0xff]   ;;  %v9942_v52 = vld [vmem:[%s14406_s1 + $0x8d0] ss:$40 sps:$4 sm:$0xff]  }
 0x1b9   :  { %7227 = vmatprep.subr.bf16.mxu1 %v9890_v50  ;;  %v9206_v63 = vpack.c.bf16 %v8044_v56, %v8043_v13  ;;  %v9939_v50 = vld [vmem:[%s14406_s1 + $0x3d0] ss:$40 sps:$4 sm:$0xff]   ;;  %v9948_v13 = vld [vmem:[%s14406_s1 + $0x880] ss:$40 sps:$4 sm:$0xff]   ;;  %v9953_v56 = vld [vmem:[%s14406_s1 + $0x334] ss:$40 sps:$4 sm:$0xff]  }
 0x1ba   :  { %v9956_v59 = vld [vmem:[%s14406_s1 + $0x834] ss:$40 sps:$4 sm:$0xff]  }
 0x1bb   :  { %8093 = vst [vmem:[%s14409_s3] sm:$0xff] %v9206_v63  ;;  %7187 = vmatpush1.bf16.msra.mxu0 %v9885_v53  ;;  %v9947_v53 = vld [vmem:[%s14406_s1 + $0x384] ss:$40 sps:$4 sm:$0xff]  }
 0x1bc   :  { %7228 = vmatpush1.bf16.msra.mxu1 %v9888_v29  ;;  %7188 = vmatprep.subr.bf16.mxu0 %v9893_v60  ;;  %v9950_v29 = vld [vmem:[%s14406_s1 + $0x884] ss:$40 sps:$4 sm:$0xff]   ;;  %v9951_v60 = vld [vmem:[%s14406_s1 + $0x330] ss:$40 sps:$4 sm:$0xff]  }
 0x1bd   :  { %7229 = vmatprep.subr.bf16.mxu1 %v9896_v62  ;;  %v9954_v62 = vld [vmem:[%s14406_s1 + $0x830] ss:$40 sps:$4 sm:$0xff]   ;;  %v9959_v63 = vld [vmem:[%s14406_s1 + $0x2e4] ss:$40 sps:$4 sm:$0xff]  }
 0x1bf   :  { %7189 = vmatpush1.bf16.msra.mxu0 %v9891_v0  ;;  %v9962_v0 = vld [vmem:[%s14406_s1 + $0x7e4] ss:$40 sps:$4 sm:$0xff]  }
 0x1c0   :  { %7230 = vmatpush1.bf16.msra.mxu1 %v9894_v20  ;;  %7190 = vmatprep.subr.bf16.mxu0 %v9899_v1  ;;  %v9957_v20 = vld [vmem:[%s14406_s1 + $0x2e0] ss:$40 sps:$4 sm:$0xff]  }
 0x1c1   :  { %7231 = vmatprep.subr.bf16.mxu1 %v9902_v2  ;;  %v9960_v1 = vld [vmem:[%s14406_s1 + $0x7e0] ss:$40 sps:$4 sm:$0xff]   ;;  %v1116_v2 = vsub.s32 2, %v11723_v49 }
 0x1c3   :  { %v12385_v11 = vpop.f32.mrf.mxu1  ;;  %7191 = vmatpush1.bf16.msra.mxu0 %v9897_v3  ;;  %v9965_v3 = vld [vmem:[%s14406_s1 + $0x294] ss:$40 sps:$4 sm:$0xff]  }
 0x1c4   :  { %7232 = vmatpush1.bf16.msra.mxu1 %v9900_v4  ;;  %7192 = vmatprep.subr.bf16.mxu0 %v9905_v5  ;;  %v9968_v4 = vld [vmem:[%s14406_s1 + $0x794] ss:$40 sps:$4 sm:$0xff]   ;;  %v1120_v5 = vsub.s32 3, %v11723_v49 }
 0x1c5   :  { %7233 = vmatprep.subr.bf16.mxu1 %v9908_v8  ;;  %v12393_v15 = vpop.f32.mrf.mxu1  ;;  %v10845_v8 = vld [vmem:[%s14408_s2] sm:$0xff] }
 0x1c7   :  { %v6933_v17 = vpop.f32.mrf.mxu1  ;;  %7193 = vmatpush1.bf16.msra.mxu0 %v9903_v9  ;;  %v1117_v9 = vrot.slane %v10845_v8, %v1116_v2 }
 0x1c8   :  { %7234 = vmatpush1.bf16.msra.mxu1 %v9906_v10  ;;  %7194 = vmatprep.subr.bf16.mxu0 %v9911_v12  ;;  %v9963_v10 = vld [vmem:[%s14406_s1 + $0x290] ss:$40 sps:$4 sm:$0xff]   ;;  %v9974_v17 = vld [vmem:[%s14406_s1 + $0x1144] ss:$40 sps:$4 sm:$0xff]  }
 0x1c9   :  { %7235 = vmatprep.subr.bf16.mxu1 %v9914_v14  ;;  %v6934_v33 = vpop.f32.mrf.mxu1  ;;  %v9966_v12 = vld [vmem:[%s14406_s1 + $0x790] ss:$40 sps:$4 sm:$0xff]   ;;  %v9971_v14 = vld [vmem:[%s14406_s1 + $0xc44] ss:$40 sps:$4 sm:$0xff]  }
 0x1ca   :  { %v9977_v33 = vld [vmem:[%s14406_s1 + $0xbf4] ss:$40 sps:$4 sm:$0xff]  }
 0x1cb   :  { %7195 = vmatpush1.bf16.msra.mxu0 %v9909_v18  ;;  %v1121_v18 = vrot.slane %v10845_v8, %v1120_v5  ;;  %v10013_v5 = vld [vmem:[%s14406_s1 + $0xa14] ss:$40 sps:$4 sm:$0xff]  }
 0x1cc   :  { %7236 = vmatpush1.bf16.msra.mxu1 %v9912_v21  ;;  %7196 = vmatprep.subr.bf16.mxu0 %v9917_v30  ;;  %v9969_v21 = vld [vmem:[%s14406_s1 + $0xc40] ss:$40 sps:$4 sm:$0xff]   ;;  %v10016_v8 = vld [vmem:[%s14406_s1 + $0xf14] ss:$40 sps:$4 sm:$0xff]  }
 0x1cd   :  { %7237 = vmatprep.subr.bf16.mxu1 %v9920_v31  ;;  %v9972_v30 = vld [vmem:[%s14406_s1 + $0x1140] ss:$40 sps:$4 sm:$0xff]   ;;  %v6930_v31 = vadd.f32 %v12385_v11, %v1117_v9  ;;  %v9978_v11 = vld [vmem:[%s14406_s1 + $0x10f0] ss:$40 sps:$4 sm:$0xff]  }
 0x1cf   :  { %7197 = vmatpush1.bf16.msra.mxu0 %v9915_v34  ;;  %v9980_v34 = vld [vmem:[%s14406_s1 + $0x10f4] ss:$40 sps:$4 sm:$0xff]  }
 0x1d0   :  { %7238 = vmatpush1.bf16.msra.mxu1 %v9918_v38  ;;  %7198 = vmatprep.subr.bf16.mxu0 %v9923_v40  ;;  %v6932_v38 = vadd.f32 %v12393_v15, %v1121_v18  ;;  %v9975_v40 = vld [vmem:[%s14406_s1 + $0xbf0] ss:$40 sps:$4 sm:$0xff]   ;;  %v9983_v15 = vld [vmem:[%s14406_s1 + $0xba4] ss:$40 sps:$4 sm:$0xff]   ;;  %v10017_v18 = vld [vmem:[%s14406_s1 + $0xec0] ss:$40 sps:$4 sm:$0xff]  }
 0x1d1   :  { %7239 = vmatprep.subr.bf16.mxu1 %v9926_v22 }
 0x1d3   :  { %7199 = vmatpush2.bf16.msra.mxu0 %v9921_v41 }
 0x1d4   :  { %7240 = vmatpush2.bf16.msra.mxu1 %v9924_v42  ;;  %7200 = vmatprep.subr.bf16.mxu0 %v9929_v43  ;;  %v9986_v43 = vld [vmem:[%s14406_s1 + $0x10a4] ss:$40 sps:$4 sm:$0xff]  }
 0x1d5   :  { %7241 = vmatprep.subr.bf16.mxu1 %v9932_v57 }
 0x1d7   :  { %7201 = vmatpush2.bf16.msra.mxu0 %v9927_v26  ;;  %v9981_v26 = vld [vmem:[%s14406_s1 + $0xba0] ss:$40 sps:$4 sm:$0xff]  }
 0x1d8   :  { %7242 = vmatpush2.bf16.msra.mxu1 %v9930_v44  ;;  %7202 = vmatprep.subr.bf16.mxu0 %v9935_v61  ;;  %v9984_v44 = vld [vmem:[%s14406_s1 + $0x10a0] ss:$40 sps:$4 sm:$0xff]  }
 0x1d9   :  { %7243 = vmatprep.subr.bf16.mxu1 %v9938_v28 }
 0x1db   :  { %7203 = vmatpush2.bf16.msra.mxu0 %v9933_v45  ;;  %v9989_v45 = vld [vmem:[%s14406_s1 + $0xb54] ss:$40 sps:$4 sm:$0xff]  }
 0x1dc   :  { %7244 = vmatpush2.bf16.msra.mxu1 %v9936_v46  ;;  %7204 = vmatprep.subr.bf16.mxu0 %v9941_v48  ;;  %v9992_v46 = vld [vmem:[%s14406_s1 + $0x1054] ss:$40 sps:$4 sm:$0xff]   ;;  %v9987_v48 = vld [vmem:[%s14406_s1 + $0xb50] ss:$40 sps:$4 sm:$0xff]  }
 0x1dd   :  { %7245 = vmatprep.subr.bf16.mxu1 %v9944_v27  ;;  %v9990_v27 = vld [vmem:[%s14406_s1 + $0x1050] ss:$40 sps:$4 sm:$0xff]  }
 0x1df   :  { %7205 = vmatpush2.bf16.msra.mxu0 %v9939_v50  ;;  %v9995_v50 = vld [vmem:[%s14406_s1 + $0xb04] ss:$40 sps:$4 sm:$0xff]  }
 0x1e0   :  { %7246 = vmatpush2.bf16.msra.mxu1 %v9942_v52  ;;  %7206 = vmatprep.subr.bf16.mxu0 %v9947_v53  ;;  %v9998_v52 = vld [vmem:[%s14406_s1 + $0x1004] ss:$40 sps:$4 sm:$0xff]   ;;  %v9993_v53 = vld [vmem:[%s14406_s1 + $0xb00] ss:$40 sps:$4 sm:$0xff]  }
 0x1e1   :  { %7247 = vmatprep.subr.bf16.mxu1 %v9950_v29  ;;  %v9996_v29 = vld [vmem:[%s14406_s1 + $0x1000] ss:$40 sps:$4 sm:$0xff]  }
 0x1e3   :  { %7207 = vmatpush2.bf16.msra.mxu0 %v9945_v54  ;;  %v10001_v54 = vld [vmem:[%s14406_s1 + $0xab4] ss:$40 sps:$4 sm:$0xff]  }
 0x1e4   :  { %7248 = vmatpush2.bf16.msra.mxu1 %v9948_v13  ;;  %7208 = vmatprep.subr.bf16.mxu0 %v9953_v56  ;;  %v10004_v13 = vld [vmem:[%s14406_s1 + $0xfb4] ss:$40 sps:$4 sm:$0xff]  }
 0x1e5   :  { %7249 = vmatprep.subr.bf16.mxu1 %v9956_v59 }
 0x1e7   :  { %7209 = vmatpush2.bf16.msra.mxu0 %v9951_v60  ;;  %v9999_v60 = vld [vmem:[%s14406_s1 + $0xab0] ss:$40 sps:$4 sm:$0xff]  }
 0x1e8   :  { %7250 = vmatpush2.bf16.msra.mxu1 %v9954_v62  ;;  %7210 = vmatprep.subr.bf16.mxu0 %v9959_v63  ;;  %v10002_v62 = vld [vmem:[%s14406_s1 + $0xfb0] ss:$40 sps:$4 sm:$0xff]  }
 0x1e9   :  { %7251 = vmatprep.subr.bf16.mxu1 %v9962_v0  ;;  %v10007_v0 = vld [vmem:[%s14406_s1 + $0xa64] ss:$40 sps:$4 sm:$0xff]  }
 0x1eb   :  { %7211 = vmatpush2.bf16.msra.mxu0 %v9957_v20  ;;  %v10010_v20 = vld [vmem:[%s14406_s1 + $0xf64] ss:$40 sps:$4 sm:$0xff]  }
 0x1ec   :  { %7252 = vmatpush2.bf16.msra.mxu1 %v9960_v1  ;;  %7212 = vmatprep.subr.bf16.mxu0 %v9965_v3  ;;  %v10005_v3 = vld [vmem:[%s14406_s1 + $0xa60] ss:$40 sps:$4 sm:$0xff]  }
 0x1ed   :  { %7253 = vmatprep.subr.bf16.mxu1 %v9968_v4  ;;  %v10008_v4 = vld [vmem:[%s14406_s1 + $0xf60] ss:$40 sps:$4 sm:$0xff]  }
 0x1ef   :  { %7213 = vmatpush2.bf16.msra.mxu0 %v9963_v10  ;;  %v10011_v10 = vld [vmem:[%s14406_s1 + $0xa10] ss:$40 sps:$4 sm:$0xff]  }
 0x1f0   :  { %7254 = vmatpush2.bf16.msra.mxu1 %v9966_v12  ;;  %7264 = vmatprep.subr.bf16.mxu0 %v9971_v14  ;;  %v10014_v12 = vld [vmem:[%s14406_s1 + $0xf10] ss:$40 sps:$4 sm:$0xff]   ;;  %v10019_v14 = vld [vmem:[%s14406_s1 + $0xec4] ss:$40 sps:$4 sm:$0xff]  }
 0x1f1   :  { %7305 = vmatprep.subr.bf16.mxu1 %v9974_v17  ;;  %v10022_v17 = vld [vmem:[%s14406_s1 + $0x13c4] ss:$40 sps:$4 sm:$0xff]  }
 0x1f2   :  { %v6970_v22 = vpop.f32.mrf.mxu0  ;;  %7215 = vmatmul.mubr.bf16.vlgmr.msra.gmra.mxu0 %v11078_v6 }
 0x1f3   :  { %7256 = vmatmul.mubr.bf16.vlgmr.msra.gmra.mxu1 %v11080_v7  ;;  %v6971_v41 = vadd.f32 %v6970_v22, %v6930_v31  ;;  %7265 = vmatpush1.bf16.msra.mxu0 %v9969_v21  ;;  %v10020_v21 = vld [vmem:[%s14406_s1 + $0x13c0] ss:$40 sps:$4 sm:$0xff]   ;;  %v10028_v31 = vld [vmem:[%s14406_s1 + $0x1374] ss:$40 sps:$4 sm:$0xff]  }
 0x1f4   :  { %7306 = vmatpush1.bf16.msra.mxu1 %v9972_v30  ;;  %v6972_v42 = vpop.f32.mrf.mxu0  ;;  %7266 = vmatprep.subr.bf16.mxu0 %v9977_v33  ;;  %v10025_v30 = vld [vmem:[%s14406_s1 + $0xe74] ss:$40 sps:$4 sm:$0xff]   ;;  %v10023_v33 = vld [vmem:[%s14406_s1 + $0xe70] ss:$40 sps:$4 sm:$0xff]   ;;  %v10032_v22 = vld [vmem:[%s14406_s1 + $0x1320] ss:$40 sps:$4 sm:$0xff]  }
 0x1f5   :  { %7307 = vmatprep.subr.bf16.mxu1 %v9980_v34  ;;  %v6973_v57 = vadd.f32 %v6972_v42, %v6932_v38  ;;  %7296 = vmatprep.mubr.bf16.mxu0 %v11174_v36  ;;  %v10026_v34 = vld [vmem:[%s14406_s1 + $0x1370] ss:$40 sps:$4 sm:$0xff]   ;;  %v10031_v38 = vld [vmem:[%s14406_s1 + $0xe24] ss:$40 sps:$4 sm:$0xff]   ;;  %v10040_v42 = vld [vmem:[%s14406_s1 + $0x12d4] ss:$40 sps:$4 sm:$0xff]  }
 0x1f6   :  { %7337 = vmatprep.mubr.bf16.mxu1 %v11178_v37  ;;  %v6974_v61 = vpop.f32.mrf.mxu0 }
 0x1f7   :  { %7267 = vmatpush1.bf16.msra.mxu0 %v9975_v40  ;;  %v10034_v40 = vld [vmem:[%s14406_s1 + $0x1324] ss:$40 sps:$4 sm:$0xff]   ;;  %v10044_v61 = vld [vmem:[%s14406_s1 + $0x1280] ss:$40 sps:$4 sm:$0xff]  }
 0x1f8   :  { %7308 = vmatpush1.bf16.msra.mxu1 %v9978_v11  ;;  %v6975_v28 = vpop.f32.mrf.mxu0  ;;  %7268 = vmatprep.subr.bf16.mxu0 %v9983_v15  ;;  %v10029_v11 = vld [vmem:[%s14406_s1 + $0xe20] ss:$40 sps:$4 sm:$0xff]   ;;  %v10035_v15 = vld [vmem:[%s14406_s1 + $0xdd0] ss:$40 sps:$4 sm:$0xff]  }
 0x1f9   :  { %7309 = vmatprep.subr.bf16.mxu1 %v9986_v43  ;;  %v10038_v43 = vld [vmem:[%s14406_s1 + $0x12d0] ss:$40 sps:$4 sm:$0xff]   ;;  %v10049_v28 = vld [vmem:[%s14406_s1 + $0xd34] ss:$40 sps:$4 sm:$0xff]  }
 0x1fb   :  { %7269 = vmatpush1.bf16.msra.mxu0 %v9981_v26  ;;  %v10046_v26 = vld [vmem:[%s14406_s1 + $0x1284] ss:$40 sps:$4 sm:$0xff]  }
 0x1fc   :  { %7310 = vmatpush1.bf16.msra.mxu1 %v9984_v44  ;;  %7270 = vmatprep.subr.bf16.mxu0 %v9989_v45  ;;  %v10041_v44 = vld [vmem:[%s14406_s1 + $0xd80] ss:$40 sps:$4 sm:$0xff]   ;;  %v10052_v45 = vld [vmem:[%s14406_s1 + $0x1234] ss:$40 sps:$4 sm:$0xff]  }
 0x1fd   :  { %7311 = vmatprep.subr.bf16.mxu1 %v9992_v46  ;;  %v10047_v46 = vld [vmem:[%s14406_s1 + $0xd30] ss:$40 sps:$4 sm:$0xff]  }
 0x1ff   :  { %7271 = vmatpush1.bf16.msra.mxu0 %v9987_v48  ;;  %v10050_v48 = vld [vmem:[%s14406_s1 + $0x1230] ss:$40 sps:$4 sm:$0xff]  }
 0x200   :  { %7312 = vmatpush1.bf16.msra.mxu1 %v9990_v27  ;;  %7272 = vmatprep.subr.bf16.mxu0 %v9995_v50  ;;  %v10055_v27 = vld [vmem:[%s14406_s1 + $0xce4] ss:$40 sps:$4 sm:$0xff]  }
 0x201   :  { %7313 = vmatprep.subr.bf16.mxu1 %v9998_v52  ;;  %v10058_v50 = vld [vmem:[%s14406_s1 + $0x11e4] ss:$40 sps:$4 sm:$0xff]   ;;  %v10053_v52 = vld [vmem:[%s14406_s1 + $0xce0] ss:$40 sps:$4 sm:$0xff]  }
 0x203   :  { %v7011_v56 = vpop.f32.mrf.mxu1  ;;  %7273 = vmatpush1.bf16.msra.mxu0 %v9993_v53  ;;  %v10056_v53 = vld [vmem:[%s14406_s1 + $0x11e0] ss:$40 sps:$4 sm:$0xff]  }
 0x204   :  { %v12586_v59 = vadd.f32 %v7011_v56, %v6971_v41  ;;  %7314 = vmatpush1.bf16.msra.mxu1 %v9996_v29  ;;  %7274 = vmatprep.subr.bf16.mxu0 %v10001_v54  ;;  %v10037_v41 = vld [vmem:[%s14406_s1 + $0xdd4] ss:$40 sps:$4 sm:$0xff]   ;;  %v10062_v56 = vld [vmem:[%s14406_s1 + $0x1190] ss:$40 sps:$4 sm:$0xff]  }
 0x205   :  { %v7013_v63 = vpop.f32.mrf.mxu1  ;;  %7315 = vmatprep.subr.bf16.mxu1 %v10004_v13  ;;  %v10061_v29 = vld [vmem:[%s14406_s1 + $0xc94] ss:$40 sps:$4 sm:$0xff]   ;;  %v10059_v13 = vld [vmem:[%s14406_s1 + $0xc90] ss:$40 sps:$4 sm:$0xff]  }
 0x206   :  { %v12600_v1 = vadd.f32 %v7013_v63, %v6973_v57  ;;  %v10043_v57 = vld [vmem:[%s14406_s1 + $0xd84] ss:$40 sps:$4 sm:$0xff]   ;;  %v10064_v54 = vld [vmem:[%s14406_s1 + $0x1194] ss:$40 sps:$4 sm:$0xff]   ;;  %v10065_v63 = vld [vmem:[%s14406_s1 + $0x1640] ss:$40 sps:$4 sm:$0xff]  }
 0x207   :  { %v7015_v2 = vpop.f32.mrf.mxu1  ;;  %7275 = vmatpush1.bf16.msra.mxu0 %v9999_v60  ;;  %v10067_v60 = vld [vmem:[%s14406_s1 + $0x1644] ss:$40 sps:$4 sm:$0xff]  }
 0x208   :  { %7316 = vmatpush1.bf16.msra.mxu1 %v10002_v62  ;;  %7276 = vmatprep.subr.bf16.mxu0 %v10007_v0  ;;  %v10070_v62 = vld [vmem:[%s14406_s1 + $0x1b44] ss:$40 sps:$4 sm:$0xff]   ;;  %v10068_v0 = vld [vmem:[%s14406_s1 + $0x1b40] ss:$40 sps:$4 sm:$0xff]   ;;  %v10076_v2 = vld [vmem:[%s14406_s1 + $0x1af4] ss:$40 sps:$4 sm:$0xff]  }
 0x209   :  { %7317 = vmatprep.subr.bf16.mxu1 %v10010_v20  ;;  %v7016_v9 = vpop.f32.mrf.mxu1  ;;  %v10073_v20 = vld [vmem:[%s14406_s1 + $0x15f4] ss:$40 sps:$4 sm:$0xff]  }
 0x20a   :  { %v10079_v9 = vld [vmem:[%s14406_s1 + $0x15a4] ss:$40 sps:$4 sm:$0xff]  }
 0x20b   :  { %7277 = vmatpush1.bf16.msra.mxu0 %v10005_v3  ;;  %v10071_v3 = vld [vmem:[%s14406_s1 + $0x15f0] ss:$40 sps:$4 sm:$0xff]  }
 0x20c   :  { %7318 = vmatpush1.bf16.msra.mxu1 %v10008_v4  ;;  %7278 = vmatprep.subr.bf16.mxu0 %v10013_v5  ;;  %v10074_v4 = vld [vmem:[%s14406_s1 + $0x1af0] ss:$40 sps:$4 sm:$0xff]  }
 0x20d   :  { %7319 = vmatprep.subr.bf16.mxu1 %v10016_v8 }
 0x20f   :  { %7279 = vmatpush1.bf16.msra.mxu0 %v10011_v10  ;;  %v10082_v10 = vld [vmem:[%s14406_s1 + $0x1aa4] ss:$40 sps:$4 sm:$0xff]  }
 0x210   :  { %7320 = vmatpush1.bf16.msra.mxu1 %v10014_v12  ;;  %7280 = vmatprep.subr.bf16.mxu0 %v10019_v14  ;;  %v10077_v12 = vld [vmem:[%s14406_s1 + $0x15a0] ss:$40 sps:$4 sm:$0xff]  }
 0x211   :  { %7321 = vmatprep.subr.bf16.mxu1 %v10022_v17  ;;  %v10080_v14 = vld [vmem:[%s14406_s1 + $0x1aa0] ss:$40 sps:$4 sm:$0xff]  }
 0x213   :  { %7281 = vmatpush2.bf16.msra.mxu0 %v10017_v18 }
 0x214   :  { %7322 = vmatpush2.bf16.msra.mxu1 %v10020_v21  ;;  %7282 = vmatprep.subr.bf16.mxu0 %v10025_v30  ;;  %v10085_v21 = vld [vmem:[%s14406_s1 + $0x1554] ss:$40 sps:$4 sm:$0xff]  }
 0x215   :  { %7323 = vmatprep.subr.bf16.mxu1 %v10028_v31  ;;  %v10088_v30 = vld [vmem:[%s14406_s1 + $0x1a54] ss:$40 sps:$4 sm:$0xff]   ;;  %v10083_v31 = vld [vmem:[%s14406_s1 + $0x1550] ss:$40 sps:$4 sm:$0xff]  }
 0x217   :  { %7283 = vmatpush2.bf16.msra.mxu0 %v10023_v33  ;;  %v10086_v33 = vld [vmem:[%s14406_s1 + $0x1a50] ss:$40 sps:$4 sm:$0xff]  }
 0x218   :  { %7324 = vmatpush2.bf16.msra.mxu1 %v10026_v34  ;;  %7284 = vmatprep.subr.bf16.mxu0 %v10031_v38  ;;  %v10091_v34 = vld [vmem:[%s14406_s1 + $0x1504] ss:$40 sps:$4 sm:$0xff]  }
 0x219   :  { %7325 = vmatprep.subr.bf16.mxu1 %v10034_v40  ;;  %v10094_v38 = vld [vmem:[%s14406_s1 + $0x1a04] ss:$40 sps:$4 sm:$0xff]   ;;  %v10089_v40 = vld [vmem:[%s14406_s1 + $0x1500] ss:$40 sps:$4 sm:$0xff]  }
 0x21b   :  { %7285 = vmatpush2.bf16.msra.mxu0 %v10029_v11  ;;  %v10092_v11 = vld [vmem:[%s14406_s1 + $0x1a00] ss:$40 sps:$4 sm:$0xff]  }
 0x21c   :  { %7326 = vmatpush2.bf16.msra.mxu1 %v10032_v22  ;;  %7286 = vmatprep.subr.bf16.mxu0 %v10037_v41  ;;  %v10097_v22 = vld [vmem:[%s14406_s1 + $0x14b4] ss:$40 sps:$4 sm:$0xff]  }
 0x21d   :  { %7327 = vmatprep.subr.bf16.mxu1 %v10040_v42  ;;  %v10100_v41 = vld [vmem:[%s14406_s1 + $0x19b4] ss:$40 sps:$4 sm:$0xff]  }
 0x21f   :  { %7287 = vmatpush2.bf16.msra.mxu0 %v10035_v15  ;;  %v10095_v15 = vld [vmem:[%s14406_s1 + $0x14b0] ss:$40 sps:$4 sm:$0xff]  }
 0x220   :  { %7328 = vmatpush2.bf16.msra.mxu1 %v10038_v43  ;;  %7288 = vmatprep.subr.bf16.mxu0 %v10043_v57  ;;  %v10098_v43 = vld [vmem:[%s14406_s1 + $0x19b0] ss:$40 sps:$4 sm:$0xff]  }
 0x221   :  { %7329 = vmatprep.subr.bf16.mxu1 %v10046_v26  ;;  %v10103_v26 = vld [vmem:[%s14406_s1 + $0x1464] ss:$40 sps:$4 sm:$0xff]  }
 0x223   :  { %7289 = vmatpush2.bf16.msra.mxu0 %v10041_v44  ;;  %v10106_v44 = vld [vmem:[%s14406_s1 + $0x1964] ss:$40 sps:$4 sm:$0xff]  }
 0x224   :  { %7330 = vmatpush2.bf16.msra.mxu1 %v10044_v61  ;;  %7290 = vmatprep.subr.bf16.mxu0 %v10049_v28  ;;  %v10101_v28 = vld [vmem:[%s14406_s1 + $0x1460] ss:$40 sps:$4 sm:$0xff]  }
 0x225   :  { %7331 = vmatprep.subr.bf16.mxu1 %v10052_v45  ;;  %v10104_v45 = vld [vmem:[%s14406_s1 + $0x1960] ss:$40 sps:$4 sm:$0xff]  }
 0x227   :  { %7291 = vmatpush2.bf16.msra.mxu0 %v10047_v46  ;;  %v10109_v46 = vld [vmem:[%s14406_s1 + $0x1414] ss:$40 sps:$4 sm:$0xff]  }
 0x228   :  { %7332 = vmatpush2.bf16.msra.mxu1 %v10050_v48  ;;  %7292 = vmatprep.subr.bf16.mxu0 %v10055_v27  ;;  %v10112_v48 = vld [vmem:[%s14406_s1 + $0x1914] ss:$40 sps:$4 sm:$0xff]  }
 0x229   :  { %7333 = vmatprep.subr.bf16.mxu1 %v10058_v50  ;;  %v10107_v50 = vld [vmem:[%s14406_s1 + $0x1410] ss:$40 sps:$4 sm:$0xff]  }
 0x22b   :  { %7293 = vmatpush2.bf16.msra.mxu0 %v10053_v52  ;;  %v10110_v52 = vld [vmem:[%s14406_s1 + $0x1910] ss:$40 sps:$4 sm:$0xff]  }
 0x22c   :  { %7334 = vmatpush2.bf16.msra.mxu1 %v10056_v53  ;;  %7294 = vmatprep.subr.bf16.mxu0 %v10061_v29  ;;  %v10115_v53 = vld [vmem:[%s14406_s1 + $0x18c4] ss:$40 sps:$4 sm:$0xff]  }
 0x22d   :  { %7335 = vmatprep.subr.bf16.mxu1 %v10064_v54  ;;  %v10118_v29 = vld [vmem:[%s14406_s1 + $0x1dc4] ss:$40 sps:$4 sm:$0xff]   ;;  %v10113_v54 = vld [vmem:[%s14406_s1 + $0x18c0] ss:$40 sps:$4 sm:$0xff]  }
 0x22f   :  { %7295 = vmatpush2.bf16.msra.mxu0 %v10059_v13  ;;  %v10116_v13 = vld [vmem:[%s14406_s1 + $0x1dc0] ss:$40 sps:$4 sm:$0xff]  }
 0x230   :  { %7336 = vmatpush2.bf16.msra.mxu1 %v10062_v56  ;;  %7346 = vmatprep.subr.bf16.mxu0 %v10067_v60  ;;  %v10121_v56 = vld [vmem:[%s14406_s1 + $0x1874] ss:$40 sps:$4 sm:$0xff]  }
 0x231   :  { %7387 = vmatprep.subr.bf16.mxu1 %v10070_v62  ;;  %v10124_v60 = vld [vmem:[%s14406_s1 + $0x1d74] ss:$40 sps:$4 sm:$0xff]   ;;  %v10119_v62 = vld [vmem:[%s14406_s1 + $0x1870] ss:$40 sps:$4 sm:$0xff]  }
 0x232   :  { %v12740_v5 = vpop.f32.mrf.mxu0  ;;  %7297 = vmatmul.mubr.bf16.vlgmr.msra.gmra.mxu0 %v11298_v16 }
 0x233   :  { %7338 = vmatmul.mubr.bf16.vlgmr.msra.gmra.mxu1 %v11308_v19  ;;  %7347 = vmatpush1.bf16.msra.mxu0 %v10065_v63  ;;  %v10122_v63 = vld [vmem:[%s14406_s1 + $0x1d70] ss:$40 sps:$4 sm:$0xff]  }
 0x234   :  { %7388 = vmatpush1.bf16.msra.mxu1 %v10068_v0  ;;  %v12744_v8 = vpop.f32.mrf.mxu0  ;;  %7348 = vmatprep.subr.bf16.mxu0 %v10073_v20  ;;  %v10127_v0 = vld [vmem:[%s14406_s1 + $0x1824] ss:$40 sps:$4 sm:$0xff]  }
 0x235   :  { %7389 = vmatprep.subr.bf16.mxu1 %v10076_v2  ;;  %7378 = vmatprep.mubr.bf16.mxu0 %v11328_v24  ;;  %v10130_v20 = vld [vmem:[%s14406_s1 + $0x1d24] ss:$40 sps:$4 sm:$0xff]   ;;  %v10125_v2 = vld [vmem:[%s14406_s1 + $0x1820] ss:$40 sps:$4 sm:$0xff]  }
 0x236   :  { %7419 = vmatprep.mubr.bf16.mxu1 %v11332_v25  ;;  %v7056_v17 = vpop.f32.mrf.mxu0 }
 0x237   :  { %7349 = vmatpush1.bf16.msra.mxu0 %v10071_v3  ;;  %v10128_v3 = vld [vmem:[%s14406_s1 + $0x1d20] ss:$40 sps:$4 sm:$0xff]   ;;  %v10142_v17 = vld [vmem:[%s14406_s1 + $0x1c84] ss:$40 sps:$4 sm:$0xff]  }
 0x238   :  { %7390 = vmatpush1.bf16.msra.mxu1 %v10074_v4  ;;  %v7057_v18 = vpop.f32.mrf.mxu0  ;;  %7350 = vmatprep.subr.bf16.mxu0 %v10079_v9  ;;  %v10133_v4 = vld [vmem:[%s14406_s1 + $0x17d4] ss:$40 sps:$4 sm:$0xff]  }
 0x239   :  { %7391 = vmatprep.subr.bf16.mxu1 %v10082_v10  ;;  %v10136_v9 = vld [vmem:[%s14406_s1 + $0x1cd4] ss:$40 sps:$4 sm:$0xff]   ;;  %v10131_v10 = vld [vmem:[%s14406_s1 + $0x17d0] ss:$40 sps:$4 sm:$0xff]   ;;  %v10137_v18 = vld [vmem:[%s14406_s1 + $0x1780] ss:$40 sps:$4 sm:$0xff]  }
 0x23b   :  { %7351 = vmatpush1.bf16.msra.mxu0 %v10077_v12  ;;  %v10134_v12 = vld [vmem:[%s14406_s1 + $0x1cd0] ss:$40 sps:$4 sm:$0xff]  }
 0x23c   :  { %7392 = vmatpush1.bf16.msra.mxu1 %v10080_v14  ;;  %7352 = vmatprep.subr.bf16.mxu0 %v10085_v21  ;;  %v10139_v14 = vld [vmem:[%s14406_s1 + $0x1784] ss:$40 sps:$4 sm:$0xff]   ;;  %v10140_v21 = vld [vmem:[%s14406_s1 + $0x1c80] ss:$40 sps:$4 sm:$0xff]  }
 0x23d   :  { %7393 = vmatprep.subr.bf16.mxu1 %v10088_v30  ;;  %v10145_v30 = vld [vmem:[%s14406_s1 + $0x1734] ss:$40 sps:$4 sm:$0xff]  }
 0x23f   :  { %7353 = vmatpush1.bf16.msra.mxu0 %v10083_v31  ;;  %v10148_v31 = vld [vmem:[%s14406_s1 + $0x1c34] ss:$40 sps:$4 sm:$0xff]  }
 0x240   :  { %7394 = vmatpush1.bf16.msra.mxu1 %v10086_v33  ;;  %7354 = vmatprep.subr.bf16.mxu0 %v10091_v34  ;;  %v10143_v33 = vld [vmem:[%s14406_s1 + $0x1730] ss:$40 sps:$4 sm:$0xff]  }
 0x241   :  { %7395 = vmatprep.subr.bf16.mxu1 %v10094_v38  ;;  %v10146_v34 = vld [vmem:[%s14406_s1 + $0x1c30] ss:$40 sps:$4 sm:$0xff]   ;;  %v10151_v38 = vld [vmem:[%s14406_s1 + $0x16e4] ss:$40 sps:$4 sm:$0xff]  }
 0x243   :  { %v12790_v42 = vpop.f32.mrf.mxu1  ;;  %7355 = vmatpush1.bf16.msra.mxu0 %v10089_v40  ;;  %v10154_v40 = vld [vmem:[%s14406_s1 + $0x1be4] ss:$40 sps:$4 sm:$0xff]  }
 0x244   :  { %7396 = vmatpush1.bf16.msra.mxu1 %v10092_v11  ;;  %7356 = vmatprep.subr.bf16.mxu0 %v10097_v22  ;;  %v10149_v11 = vld [vmem:[%s14406_s1 + $0x16e0] ss:$40 sps:$4 sm:$0xff]  }
 0x245   :  { %v12798_v57 = vpop.f32.mrf.mxu1  ;;  %7397 = vmatprep.subr.bf16.mxu1 %v10100_v41  ;;  %v10152_v22 = vld [vmem:[%s14406_s1 + $0x1be0] ss:$40 sps:$4 sm:$0xff]   ;;  %v10157_v41 = vld [vmem:[%s14406_s1 + $0x1694] ss:$40 sps:$4 sm:$0xff]  }
 0x247   :  { %v7097_v61 = vpop.f32.mrf.mxu1  ;;  %7357 = vmatpush1.bf16.msra.mxu0 %v10095_v15  ;;  %v10160_v15 = vld [vmem:[%s14406_s1 + $0x1b94] ss:$40 sps:$4 sm:$0xff]  }
 0x248   :  { %7398 = vmatpush1.bf16.msra.mxu1 %v10098_v43  ;;  %7358 = vmatprep.subr.bf16.mxu0 %v10103_v26  ;;  %v10155_v43 = vld [vmem:[%s14406_s1 + $0x1690] ss:$40 sps:$4 sm:$0xff]   ;;  %v10166_v61 = vld [vmem:[%s14406_s1 + $0x24c] ss:$40 sps:$4 sm:$0xff]  }
 0x249   :  { %7399 = vmatprep.subr.bf16.mxu1 %v10106_v44  ;;  %v7098_v27 = vpop.f32.mrf.mxu1  ;;  %v10158_v26 = vld [vmem:[%s14406_s1 + $0x1b90] ss:$40 sps:$4 sm:$0xff]   ;;  %v10163_v44 = vld [vmem:[%s14406_s1 + $0x2044] ss:$40 sps:$4 sm:$0xff]  }
 0x24b   :  { %7359 = vmatpush1.bf16.msra.mxu0 %v10101_v28  ;;  %v7053_v28 = vadd.f32 %v12740_v5, %v12586_v59  ;;  %v10172_v59 = vld [vmem:[%s14406_s1 + $0x1fc] ss:$40 sps:$4 sm:$0xff]   ;;  %v7055_v5 = vadd.f32 %v12744_v8, %v12600_v1  ;;  %v10170_v1 = vld [vmem:[%s14406_s1 + $0x1f8] ss:$40 sps:$4 sm:$0xff]  }
 0x24c   :  { %7400 = vmatpush1.bf16.msra.mxu1 %v10104_v45  ;;  %7360 = vmatprep.subr.bf16.mxu0 %v10109_v46  ;;  %v10161_v45 = vld [vmem:[%s14406_s1 + $0x2040] ss:$40 sps:$4 sm:$0xff]  }
 0x24d   :  { %7401 = vmatprep.subr.bf16.mxu1 %v10112_v48  ;;  %v10164_v46 = vld [vmem:[%s14406_s1 + $0x248] ss:$40 sps:$4 sm:$0xff]   ;;  %v10169_v48 = vld [vmem:[%s14406_s1 + $0x1ff4] ss:$40 sps:$4 sm:$0xff]   ;;  %v7094_v27 = vadd.f32 %v12790_v42, %v7053_v28 }
 0x24e   :  { %v10203_v28 = vld [vmem:[%s14406_s1 + $0x1e10] ss:$40 sps:$4 sm:$0xff]  }
 0x24f   :  { %7361 = vmatpush1.bf16.msra.mxu0 %v10107_v50 }
 0x250   :  { %7402 = vmatpush1.bf16.msra.mxu1 %v10110_v52  ;;  %7362 = vmatprep.subr.bf16.mxu0 %v10115_v53  ;;  %v7096_v53 = vadd.f32 %v12798_v57, %v7055_v5  ;;  %v10178_v57 = vld [vmem:[%s14406_s1 + $0x1ac] ss:$40 sps:$4 sm:$0xff]   ;;  %v10212_v5 = vld [vmem:[%s14406_s1 + $0x4c8] ss:$40 sps:$4 sm:$0xff]  }
 0x251   :  { %7403 = vmatprep.subr.bf16.mxu1 %v10118_v29 }
 0x253   :  { %7363 = vmatpush2.bf16.msra.mxu0 %v10113_v54  ;;  %v10167_v54 = vld [vmem:[%s14406_s1 + $0x1ff0] ss:$40 sps:$4 sm:$0xff]  }
 0x254   :  { %7404 = vmatpush2.bf16.msra.mxu1 %v10116_v13  ;;  %7364 = vmatprep.subr.bf16.mxu0 %v10121_v56  ;;  %v10175_v13 = vld [vmem:[%s14406_s1 + $0x1fa4] ss:$40 sps:$4 sm:$0xff]  }
 0x255   :  { %7405 = vmatprep.subr.bf16.mxu1 %v10124_v60 }
 0x257   :  { %7365 = vmatpush2.bf16.msra.mxu0 %v10119_v62 }
 0x258   :  { %7406 = vmatpush2.bf16.msra.mxu1 %v10122_v63  ;;  %7366 = vmatprep.subr.bf16.mxu0 %v10127_v0 }
 0x259   :  { %7407 = vmatprep.subr.bf16.mxu1 %v10130_v20  ;;  %v10173_v20 = vld [vmem:[%s14406_s1 + $0x1fa0] ss:$40 sps:$4 sm:$0xff]  }
 0x25b   :  { %7367 = vmatpush2.bf16.msra.mxu0 %v10125_v2  ;;  %v10176_v2 = vld [vmem:[%s14406_s1 + $0x1a8] ss:$40 sps:$4 sm:$0xff]  }
 0x25c   :  { %7408 = vmatpush2.bf16.msra.mxu1 %v10128_v3  ;;  %7368 = vmatprep.subr.bf16.mxu0 %v10133_v4  ;;  %v10181_v4 = vld [vmem:[%s14406_s1 + $0x1f54] ss:$40 sps:$4 sm:$0xff]  }
 0x25d   :  { %7409 = vmatprep.subr.bf16.mxu1 %v10136_v9  ;;  %v10184_v9 = vld [vmem:[%s14406_s1 + $0x15c] ss:$40 sps:$4 sm:$0xff]  }
 0x25f   :  { %7369 = vmatpush2.bf16.msra.mxu0 %v10131_v10 }
 0x260   :  { %7410 = vmatpush2.bf16.msra.mxu1 %v10134_v12  ;;  %7370 = vmatprep.subr.bf16.mxu0 %v10139_v14 }
 0x261   :  { %7411 = vmatprep.subr.bf16.mxu1 %v10142_v17 }
 0x263   :  { %7371 = vmatpush2.bf16.msra.mxu0 %v10137_v18  ;;  %v10179_v18 = vld [vmem:[%s14406_s1 + $0x1f50] ss:$40 sps:$4 sm:$0xff]  }
 0x264   :  { %7412 = vmatpush2.bf16.msra.mxu1 %v10140_v21  ;;  %7372 = vmatprep.subr.bf16.mxu0 %v10145_v30  ;;  %v10182_v21 = vld [vmem:[%s14406_s1 + $0x158] ss:$40 sps:$4 sm:$0xff]   ;;  %v10187_v30 = vld [vmem:[%s14406_s1 + $0x1f04] ss:$40 sps:$4 sm:$0xff]  }
 0x265   :  { %7413 = vmatprep.subr.bf16.mxu1 %v10148_v31  ;;  %v10190_v31 = vld [vmem:[%s14406_s1 + $0x10c] ss:$40 sps:$4 sm:$0xff]  }
 0x267   :  { %7373 = vmatpush2.bf16.msra.mxu0 %v10143_v33  ;;  %v10185_v33 = vld [vmem:[%s14406_s1 + $0x1f00] ss:$40 sps:$4 sm:$0xff]  }
 0x268   :  { %7414 = vmatpush2.bf16.msra.mxu1 %v10146_v34  ;;  %7374 = vmatprep.subr.bf16.mxu0 %v10151_v38  ;;  %v10188_v34 = vld [vmem:[%s14406_s1 + $0x108] ss:$40 sps:$4 sm:$0xff]   ;;  %v10193_v38 = vld [vmem:[%s14406_s1 + $0x1eb4] ss:$40 sps:$4 sm:$0xff]  }
 0x269   :  { %7415 = vmatprep.subr.bf16.mxu1 %v10154_v40  ;;  %v10196_v40 = vld [vmem:[%s14406_s1 + $0xbc] ss:$40 sps:$4 sm:$0xff]  }
 0x26b   :  { %7375 = vmatpush2.bf16.msra.mxu0 %v10149_v11  ;;  %v10191_v11 = vld [vmem:[%s14406_s1 + $0x1eb0] ss:$40 sps:$4 sm:$0xff]  }
 0x26c   :  { %7416 = vmatpush2.bf16.msra.mxu1 %v10152_v22  ;;  %7376 = vmatprep.subr.bf16.mxu0 %v10157_v41  ;;  %v10194_v22 = vld [vmem:[%s14406_s1 + $0xb8] ss:$40 sps:$4 sm:$0xff]   ;;  %v10199_v41 = vld [vmem:[%s14406_s1 + $0x1e64] ss:$40 sps:$4 sm:$0xff]  }
 0x26d   :  { %7417 = vmatprep.subr.bf16.mxu1 %v10160_v15  ;;  %v10202_v15 = vld [vmem:[%s14406_s1 + $0x6c] ss:$40 sps:$4 sm:$0xff]  }
 0x26f   :  { %7377 = vmatpush2.bf16.msra.mxu0 %v10155_v43  ;;  %v10197_v43 = vld [vmem:[%s14406_s1 + $0x1e60] ss:$40 sps:$4 sm:$0xff]  }
 0x270   :  { %7418 = vmatpush2.bf16.msra.mxu1 %v10158_v26  ;;  %7428 = vmatprep.subr.bf16.mxu0 %v10163_v44  ;;  %v10200_v26 = vld [vmem:[%s14406_s1 + $0x68] ss:$40 sps:$4 sm:$0xff]   ;;  %v10205_v44 = vld [vmem:[%s14406_s1 + $0x1e14] ss:$40 sps:$4 sm:$0xff]  }
 0x271   :  { %7469 = vmatprep.subr.bf16.mxu1 %v10166_v61  ;;  %v10208_v61 = vld [vmem:[%s14406_s1 + $0x1c] ss:$40 sps:$4 sm:$0xff]  }
 0x272   :  { %v7134_v50 = vpop.f32.mrf.mxu0  ;;  %7379 = vmatmul.mubr.bf16.vlgmr.msra.gmra.mxu0 %v11523_v35 }
 0x273   :  { %7420 = vmatmul.mubr.bf16.vlgmr.msra.gmra.mxu1 %v11530_v39  ;;  %v7175_v52 = vpop.f32.mrf.mxu1  ;;  %v7135_v29 = vadd.f32 %v7134_v50, %v7094_v27  ;;  %7429 = vmatpush1.bf16.msra.mxu0 %v10161_v45  ;;  %v10206_v45 = vld [vmem:[%s14406_s1 + $0x18] ss:$40 sps:$4 sm:$0xff]   ;;  %v10217_v27 = vld [vmem:[%s14406_s1 + $0x2134] ss:$40 sps:$4 sm:$0xff]  }
 0x274   :  { %7470 = vmatpush1.bf16.msra.mxu1 %v10164_v46  ;;  %v7136_v8 = vpop.f32.mrf.mxu0  ;;  %7430 = vmatprep.subr.bf16.mxu0 %v10169_v48  ;;  %v10211_v46 = vld [vmem:[%s14406_s1 + $0x2184] ss:$40 sps:$4 sm:$0xff]  }
 0x275   :  { %v7177_v42 = vpop.f32.mrf.mxu1  ;;  %7471 = vmatprep.subr.bf16.mxu1 %v10172_v59  ;;  %v7137_v56 = vadd.f32 %v7136_v8, %v7096_v53  ;;  %v7176_v60 = vadd.f32 %v7175_v52, %v7135_v29  ;;  %9198 = vmatprep.mubr.msk.bf16.mxu0 %vm6604_vm0, %v11545_v23  ;;  %v10214_v48 = vld [vmem:[%s14406_s1 + $0x4cc] ss:$40 sps:$4 sm:$0xff]   ;;  %v10209_v59 = vld [vmem:[%s14406_s1 + $0x2180] ss:$40 sps:$4 sm:$0xff]   ;;  %v10220_v50 = vld [vmem:[%s14406_s1 + $0x47c] ss:$40 sps:$4 sm:$0xff]  }
 0x276   :  { %7501 = vmatprep.mubr.bf16.mxu1 %v11009_v47  ;;  %v7138_v62 = vpop.f32.mrf.mxu0  ;;  %v10215_v52 = vld [vmem:[%s14406_s1 + $0x2130] ss:$40 sps:$4 sm:$0xff]   ;;  %v10223_v29 = vld [vmem:[%s14406_s1 + $0x20e4] ss:$40 sps:$4 sm:$0xff]  }
 0x277   :  { %v7179_v63 = vpop.f32.mrf.mxu1  ;;  %v7178_v0 = vadd.f32 %v7177_v42, %v7137_v56  ;;  %7431 = vmatpush1.bf16.msra.mxu0 %v10167_v54  ;;  %v8045_v12 = vmax.f32 %v7176_v60, 0.0  ;;  %v10218_v53 = vld [vmem:[%s14406_s1 + $0x478] ss:$40 sps:$4 sm:$0xff]   ;;  %v10226_v54 = vld [vmem:[%s14406_s1 + $0x42c] ss:$40 sps:$4 sm:$0xff]  }
 0x278   :  { %7472 = vmatpush1.bf16.msra.mxu1 %v10170_v1  ;;  %v7139_v3 = vpop.f32.mrf.mxu0  ;;  %7432 = vmatprep.subr.bf16.mxu0 %v10175_v13  ;;  %v10221_v1 = vld [vmem:[%s14406_s1 + $0x20e0] ss:$40 sps:$4 sm:$0xff]   ;;  %v10229_v42 = vld [vmem:[%s14406_s1 + $0x2094] ss:$40 sps:$4 sm:$0xff]  }
 0x279   :  { %7473 = vmatprep.subr.bf16.mxu1 %v10178_v57  ;;  %v7180_v10 = vpop.f32.mrf.mxu1  ;;  %v8046_v14 = vmax.f32 %v7178_v0, 0.0  ;;  %v10224_v8 = vld [vmem:[%s14406_s1 + $0x428] ss:$40 sps:$4 sm:$0xff]   ;;  %v10232_v13 = vld [vmem:[%s14406_s1 + $0x3dc] ss:$40 sps:$4 sm:$0xff]  }
 0x27a   :  { %v10227_v57 = vld [vmem:[%s14406_s1 + $0x2090] ss:$40 sps:$4 sm:$0xff]   ;;  %v10235_v60 = vld [vmem:[%s14406_s1 + $0x38c] ss:$40 sps:$4 sm:$0xff]  }
 0x27b   :  { %v9207_v17 = vpack.c.bf16 %v8046_v14, %v8045_v12  ;;  %7433 = vmatpush1.bf16.msra.mxu0 %v10173_v20  ;;  %v10230_v56 = vld [vmem:[%s14406_s1 + $0x3d8] ss:$40 sps:$4 sm:$0xff]   ;;  %v10238_v62 = vld [vmem:[%s14406_s1 + $0x74c] ss:$40 sps:$4 sm:$0xff]   ;;  %v10233_v63 = vld [vmem:[%s14406_s1 + $0x388] ss:$40 sps:$4 sm:$0xff]  }
 0x27c   :  { %7474 = vmatpush1.bf16.msra.mxu1 %v10176_v2  ;;  %7434 = vmatprep.subr.bf16.mxu0 %v10181_v4  ;;  %v10236_v0 = vld [vmem:[%s14406_s1 + $0x748] ss:$40 sps:$4 sm:$0xff]   ;;  %v10241_v20 = vld [vmem:[%s14406_s1 + $0x33c] ss:$40 sps:$4 sm:$0xff]   ;;  %v10239_v3 = vld [vmem:[%s14406_s1 + $0x338] ss:$40 sps:$4 sm:$0xff]  }
 0x27d   :  { %7475 = vmatprep.subr.bf16.mxu1 %v10184_v9  ;;  %8094 = vst [vmem:[%s14409_s3 + $0x8] sm:$0xff] %v9207_v17  ;;  %v10244_v2 = vld [vmem:[%s14406_s1 + $0x6fc] ss:$40 sps:$4 sm:$0xff]   ;;  %v10242_v4 = vld [vmem:[%s14406_s1 + $0x6f8] ss:$40 sps:$4 sm:$0xff]  }
 0x27e   :  { %v10247_v9 = vld [vmem:[%s14406_s1 + $0x2ec] ss:$40 sps:$4 sm:$0xff]   ;;  %v10245_v12 = vld [vmem:[%s14406_s1 + $0x2e8] ss:$40 sps:$4 sm:$0xff]   ;;  %v10253_v17 = vld [vmem:[%s14406_s1 + $0x29c] ss:$40 sps:$4 sm:$0xff]  }
 0x27f   :  { %7435 = vmatpush1.bf16.msra.mxu0 %v10179_v18  ;;  %v10250_v10 = vld [vmem:[%s14406_s1 + $0x6ac] ss:$40 sps:$4 sm:$0xff]   ;;  %v10248_v14 = vld [vmem:[%s14406_s1 + $0x6a8] ss:$40 sps:$4 sm:$0xff]   ;;  %v10256_v18 = vld [vmem:[%s14406_s1 + $0x65c] ss:$40 sps:$4 sm:$0xff]  }
 0x280   :  { %7476 = vmatpush1.bf16.msra.mxu1 %v10182_v21  ;;  %7436 = vmatprep.subr.bf16.mxu0 %v10187_v30  ;;  %v10251_v21 = vld [vmem:[%s14406_s1 + $0x298] ss:$40 sps:$4 sm:$0xff]  }
 0x281   :  { %7477 = vmatprep.subr.bf16.mxu1 %v10190_v31  ;;  %v10254_v30 = vld [vmem:[%s14406_s1 + $0x658] ss:$40 sps:$4 sm:$0xff]   ;;  %v1124_v31 = vsub.s32 4, %v11723_v49 }
 0x283   :  { %7437 = vmatpush1.bf16.msra.mxu0 %v10185_v33  ;;  %v10259_v33 = vld [vmem:[%s14406_s1 + $0x60c] ss:$40 sps:$4 sm:$0xff]  }
 0x284   :  { %7478 = vmatpush1.bf16.msra.mxu1 %v10188_v34  ;;  %7438 = vmatprep.subr.bf16.mxu0 %v10193_v38  ;;  %v10262_v34 = vld [vmem:[%s14406_s1 + $0xc4c] ss:$40 sps:$4 sm:$0xff]   ;;  %v1128_v38 = vsub.s32 5, %v11723_v49 }
 0x285   :  { %7479 = vmatprep.subr.bf16.mxu1 %v10196_v40  ;;  %v10846_v40 = vld [vmem:[%s14408_s2] sm:$0xff] }
 0x287   :  { %7439 = vmatpush1.bf16.msra.mxu0 %v10191_v11  ;;  %v1125_v11 = vrot.slane %v10846_v40, %v1124_v31  ;;  %v10299_v31 = vld [vmem:[%s14406_s1 + $0x8d8] ss:$40 sps:$4 sm:$0xff]  }
 0x288   :  { %7480 = vmatpush1.bf16.msra.mxu1 %v10194_v22  ;;  %7440 = vmatprep.subr.bf16.mxu0 %v10199_v41  ;;  %v10257_v22 = vld [vmem:[%s14406_s1 + $0x608] ss:$40 sps:$4 sm:$0xff]  }
 0x289   :  { %7481 = vmatprep.subr.bf16.mxu1 %v10202_v15  ;;  %v10260_v41 = vld [vmem:[%s14406_s1 + $0xc48] ss:$40 sps:$4 sm:$0xff]   ;;  %v10265_v15 = vld [vmem:[%s14406_s1 + $0x5bc] ss:$40 sps:$4 sm:$0xff]  }
 0x28b   :  { %7441 = vmatpush1.bf16.msra.mxu0 %v10197_v43  ;;  %v10268_v43 = vld [vmem:[%s14406_s1 + $0xbfc] ss:$40 sps:$4 sm:$0xff]  }
 0x28c   :  { %7482 = vmatpush1.bf16.msra.mxu1 %v10200_v26  ;;  %7442 = vmatprep.subr.bf16.mxu0 %v10205_v44  ;;  %v1129_v26 = vrot.slane %v10846_v40, %v1128_v38  ;;  %v10310_v38 = vld [vmem:[%s14406_s1 + $0xecc] ss:$40 sps:$4 sm:$0xff]   ;;  %v10305_v40 = vld [vmem:[%s14406_s1 + $0x888] ss:$40 sps:$4 sm:$0xff]  }
 0x28d   :  { %7483 = vmatprep.subr.bf16.mxu1 %v10208_v61 }
 0x28f   :  { %7443 = vmatpush1.bf16.msra.mxu0 %v10203_v28 }
 0x290   :  { %7484 = vmatpush1.bf16.msra.mxu1 %v10206_v45  ;;  %7452 = vmatprep.subr.bf16.mxu0 %v10211_v46  ;;  %v10263_v45 = vld [vmem:[%s14406_s1 + $0x5b8] ss:$40 sps:$4 sm:$0xff]  }
 0x291   :  { %7485 = vmatprep.subr.bf16.mxu1 %v10214_v48  ;;  %v10266_v46 = vld [vmem:[%s14406_s1 + $0xbf8] ss:$40 sps:$4 sm:$0xff]  }
 0x293   :  { %7453 = vmatpush2.bf16.msra.mxu0 %v10209_v59 }
 0x294   :  { %7486 = vmatpush2.bf16.msra.mxu1 %v10212_v5  ;;  %7454 = vmatprep.subr.bf16.mxu0 %v10217_v27  ;;  %v10271_v5 = vld [vmem:[%s14406_s1 + $0x56c] ss:$40 sps:$4 sm:$0xff]  }
 0x295   :  { %7487 = vmatprep.subr.bf16.mxu1 %v10220_v50  ;;  %v10274_v27 = vld [vmem:[%s14406_s1 + $0xbac] ss:$40 sps:$4 sm:$0xff]  }
 0x297   :  { %7455 = vmatpush2.bf16.msra.mxu0 %v10215_v52 }
 0x298   :  { %7488 = vmatpush2.bf16.msra.mxu1 %v10218_v53  ;;  %7456 = vmatprep.subr.bf16.mxu0 %v10223_v29 }
 0x299   :  { %7489 = vmatprep.subr.bf16.mxu1 %v10226_v54 }
 0x29b   :  { %7457 = vmatpush2.bf16.msra.mxu0 %v10221_v1  ;;  %v10269_v1 = vld [vmem:[%s14406_s1 + $0x568] ss:$40 sps:$4 sm:$0xff]  }
 0x29c   :  { %7490 = vmatpush2.bf16.msra.mxu1 %v10224_v8  ;;  %7458 = vmatprep.subr.bf16.mxu0 %v10229_v42  ;;  %v10272_v8 = vld [vmem:[%s14406_s1 + $0xba8] ss:$40 sps:$4 sm:$0xff]  }
 0x29d   :  { %7491 = vmatprep.subr.bf16.mxu1 %v10232_v13  ;;  %v10277_v13 = vld [vmem:[%s14406_s1 + $0x51c] ss:$40 sps:$4 sm:$0xff]  }
 0x29f   :  { %7459 = vmatpush2.bf16.msra.mxu0 %v10227_v57  ;;  %v10280_v57 = vld [vmem:[%s14406_s1 + $0xb5c] ss:$40 sps:$4 sm:$0xff]  }
 0x2a0   :  { %7492 = vmatpush2.bf16.msra.mxu1 %v10230_v56  ;;  %7510 = vmatprep.subr.bf16.mxu0 %v10238_v62  ;;  %v10278_v62 = vld [vmem:[%s14406_s1 + $0xb58] ss:$40 sps:$4 sm:$0xff]  }
 0x2a1   :  { %7493 = vmatprep.subr.bf16.mxu1 %v10235_v60  ;;  %v10275_v60 = vld [vmem:[%s14406_s1 + $0x518] ss:$40 sps:$4 sm:$0xff]  }
 0x2a2   :  { %7461 = vmatmul.mubr.bf16.vlgmr.msra.gmra.mxu0 %v11686_v32 }
 0x2a3   :  { %7511 = vmatpush1.bf16.msra.mxu0 %v10236_v0  ;;  %7542 = vmatprep.mubr.bf16.mxu0 %v11020_v51  ;;  %v10286_v0 = vld [vmem:[%s14406_s1 + $0xb0c] ss:$40 sps:$4 sm:$0xff]  }
 0x2a4   :  { %7494 = vmatpush2.bf16.msra.mxu1 %v10233_v63  ;;  %7512 = vmatprep.subr.bf16.mxu0 %v10244_v2  ;;  %v10283_v63 = vld [vmem:[%s14406_s1 + $0x9cc] ss:$40 sps:$4 sm:$0xff]   ;;  %v10284_v2 = vld [vmem:[%s14406_s1 + $0xb08] ss:$40 sps:$4 sm:$0xff]  }
 0x2a5   :  { %7495 = vmatprep.subr.bf16.mxu1 %v10241_v20  ;;  %v10281_v20 = vld [vmem:[%s14406_s1 + $0x9c8] ss:$40 sps:$4 sm:$0xff]  }
 0x2a7   :  { %7513 = vmatpush1.bf16.msra.mxu0 %v10242_v4  ;;  %v10292_v4 = vld [vmem:[%s14406_s1 + $0xabc] ss:$40 sps:$4 sm:$0xff]  }
 0x2a8   :  { %7496 = vmatpush2.bf16.msra.mxu1 %v10239_v3  ;;  %7514 = vmatprep.subr.bf16.mxu0 %v10250_v10  ;;  %v10289_v3 = vld [vmem:[%s14406_s1 + $0x97c] ss:$40 sps:$4 sm:$0xff]   ;;  %v10290_v10 = vld [vmem:[%s14406_s1 + $0xab8] ss:$40 sps:$4 sm:$0xff]  }
 0x2a9   :  { %7497 = vmatprep.subr.bf16.mxu1 %v10247_v9  ;;  %v10287_v9 = vld [vmem:[%s14406_s1 + $0x978] ss:$40 sps:$4 sm:$0xff]  }
 0x2ab   :  { %7515 = vmatpush1.bf16.msra.mxu0 %v10248_v14  ;;  %v10298_v14 = vld [vmem:[%s14406_s1 + $0xa6c] ss:$40 sps:$4 sm:$0xff]  }
 0x2ac   :  { %7498 = vmatpush2.bf16.msra.mxu1 %v10245_v12  ;;  %7516 = vmatprep.subr.bf16.mxu0 %v10256_v18  ;;  %v10295_v12 = vld [vmem:[%s14406_s1 + $0x92c] ss:$40 sps:$4 sm:$0xff]   ;;  %v10296_v18 = vld [vmem:[%s14406_s1 + $0xa68] ss:$40 sps:$4 sm:$0xff]  }
 0x2ad   :  { %7499 = vmatprep.subr.bf16.mxu1 %v10253_v17  ;;  %v10293_v17 = vld [vmem:[%s14406_s1 + $0x928] ss:$40 sps:$4 sm:$0xff]  }
 0x2af   :  { %7517 = vmatpush1.bf16.msra.mxu0 %v10254_v30  ;;  %v10304_v30 = vld [vmem:[%s14406_s1 + $0xa1c] ss:$40 sps:$4 sm:$0xff]  }
 0x2b0   :  { %7500 = vmatpush2.bf16.msra.mxu1 %v10251_v21  ;;  %7518 = vmatprep.subr.bf16.mxu0 %v10259_v33  ;;  %v10301_v21 = vld [vmem:[%s14406_s1 + $0x8dc] ss:$40 sps:$4 sm:$0xff]   ;;  %v10302_v33 = vld [vmem:[%s14406_s1 + $0xa18] ss:$40 sps:$4 sm:$0xff]  }
 0x2b1   :  { %7551 = vmatprep.subr.bf16.mxu1 %v10262_v34  ;;  %v10307_v34 = vld [vmem:[%s14406_s1 + $0x88c] ss:$40 sps:$4 sm:$0xff]  }
 0x2b2   :  { %v7216_v44 = vpop.f32.mrf.mxu0 }
 0x2b3   :  { %7502 = vmatmul.mubr.bf16.vlgmr.msra.gmra.mxu1 %v11078_v6  ;;  %v7257_v61 = vpop.f32.mrf.mxu1  ;;  %v7217_v28 = vadd.f32 %v7216_v44, %v1125_v11  ;;  %7519 = vmatpush1.bf16.msra.mxu0 %v10257_v22  ;;  %v10308_v11 = vld [vmem:[%s14406_s1 + $0xec8] ss:$40 sps:$4 sm:$0xff]   ;;  %v10313_v22 = vld [vmem:[%s14406_s1 + $0x83c] ss:$40 sps:$4 sm:$0xff]   ;;  %v10322_v44 = vld [vmem:[%s14406_s1 + $0xe2c] ss:$40 sps:$4 sm:$0xff]  }
 0x2b4   :  { %7552 = vmatpush1.bf16.msra.mxu1 %v10260_v41  ;;  %v7218_v48 = vpop.f32.mrf.mxu0  ;;  %7520 = vmatprep.subr.bf16.mxu0 %v10265_v15  ;;  %v10316_v41 = vld [vmem:[%s14406_s1 + $0xe7c] ss:$40 sps:$4 sm:$0xff]   ;;  %v10311_v15 = vld [vmem:[%s14406_s1 + $0x838] ss:$40 sps:$4 sm:$0xff]  }
 0x2b5   :  { %v7259_v59 = vpop.f32.mrf.mxu1  ;;  %7553 = vmatprep.subr.bf16.mxu1 %v10268_v43  ;;  %v7219_v50 = vadd.f32 %v7218_v48, %v1129_v26  ;;  %v13164_v52 = vadd.f32 %v7257_v61, %v7217_v28  ;;  %7583 = vmatprep.mubr.bf16.mxu1 %v11174_v36  ;;  %v10314_v43 = vld [vmem:[%s14406_s1 + $0xe78] ss:$40 sps:$4 sm:$0xff]   ;;  %v10319_v26 = vld [vmem:[%s14406_s1 + $0x7ec] ss:$40 sps:$4 sm:$0xff]   ;;  %v10317_v61 = vld [vmem:[%s14406_s1 + $0x7e8] ss:$40 sps:$4 sm:$0xff]  }
 0x2b6   :  { %v7220_v53 = vpop.f32.mrf.mxu0  ;;  %v10320_v28 = vld [vmem:[%s14406_s1 + $0xe28] ss:$40 sps:$4 sm:$0xff]   ;;  %v10323_v48 = vld [vmem:[%s14406_s1 + $0x798] ss:$40 sps:$4 sm:$0xff]  }
 0x2b7   :  { %v7261_v29 = vpop.f32.mrf.mxu1  ;;  %v13167_v54 = vadd.f32 %v7259_v59, %v7219_v50  ;;  %7521 = vmatpush1.bf16.msra.mxu0 %v10263_v45  ;;  %v10325_v45 = vld [vmem:[%s14406_s1 + $0x79c] ss:$40 sps:$4 sm:$0xff]   ;;  %v10326_v59 = vld [vmem:[%s14406_s1 + $0xdd8] ss:$40 sps:$4 sm:$0xff]   ;;  %v10329_v50 = vld [vmem:[%s14406_s1 + $0xd88] ss:$40 sps:$4 sm:$0xff]  }
 0x2b8   :  { %7554 = vmatpush1.bf16.msra.mxu1 %v10266_v46  ;;  %v7221_v42 = vpop.f32.mrf.mxu0  ;;  %7522 = vmatprep.subr.bf16.mxu0 %v10271_v5  ;;  %v10328_v46 = vld [vmem:[%s14406_s1 + $0xddc] ss:$40 sps:$4 sm:$0xff]   ;;  %v10331_v5 = vld [vmem:[%s14406_s1 + $0xd8c] ss:$40 sps:$4 sm:$0xff]   ;;  %v10332_v53 = vld [vmem:[%s14406_s1 + $0x1148] ss:$40 sps:$4 sm:$0xff]  }
 0x2b9   :  { %7555 = vmatprep.subr.bf16.mxu1 %v10274_v27  ;;  %v7262_v56 = vpop.f32.mrf.mxu1  ;;  %v10334_v27 = vld [vmem:[%s14406_s1 + $0x114c] ss:$40 sps:$4 sm:$0xff]   ;;  %v10337_v29 = vld [vmem:[%s14406_s1 + $0xd3c] ss:$40 sps:$4 sm:$0xff]   ;;  %v10338_v42 = vld [vmem:[%s14406_s1 + $0x10f8] ss:$40 sps:$4 sm:$0xff]  }
 0x2ba   :  { %v10341_v56 = vld [vmem:[%s14406_s1 + $0xce8] ss:$40 sps:$4 sm:$0xff]  }
 0x2bb   :  { %7523 = vmatpush1.bf16.msra.mxu0 %v10269_v1  ;;  %v10340_v1 = vld [vmem:[%s14406_s1 + $0x10fc] ss:$40 sps:$4 sm:$0xff]  }
 0x2bc   :  { %7556 = vmatpush1.bf16.msra.mxu1 %v10272_v8  ;;  %7524 = vmatprep.subr.bf16.mxu0 %v10277_v13  ;;  %v10335_v8 = vld [vmem:[%s14406_s1 + $0xd38] ss:$40 sps:$4 sm:$0xff]   ;;  %v10343_v13 = vld [vmem:[%s14406_s1 + $0xcec] ss:$40 sps:$4 sm:$0xff]  }
 0x2bd   :  { %7557 = vmatprep.subr.bf16.mxu1 %v10280_v57  ;;  %v10346_v57 = vld [vmem:[%s14406_s1 + $0x10ac] ss:$40 sps:$4 sm:$0xff]  }
 0x2bf   :  { %7525 = vmatpush1.bf16.msra.mxu0 %v10275_v60  ;;  %v10344_v60 = vld [vmem:[%s14406_s1 + $0x10a8] ss:$40 sps:$4 sm:$0xff]  }
 0x2c0   :  { %7558 = vmatpush1.bf16.msra.mxu1 %v10278_v62  ;;  %7526 = vmatprep.subr.bf16.mxu0 %v10283_v63  ;;  %v10349_v62 = vld [vmem:[%s14406_s1 + $0xc9c] ss:$40 sps:$4 sm:$0xff]  }
 0x2c1   :  { %7559 = vmatprep.subr.bf16.mxu1 %v10286_v0  ;;  %v10352_v63 = vld [vmem:[%s14406_s1 + $0x105c] ss:$40 sps:$4 sm:$0xff]   ;;  %v10347_v0 = vld [vmem:[%s14406_s1 + $0xc98] ss:$40 sps:$4 sm:$0xff]  }
 0x2c3   :  { %7527 = vmatpush2.bf16.msra.mxu0 %v10281_v20  ;;  %v10350_v20 = vld [vmem:[%s14406_s1 + $0x1058] ss:$40 sps:$4 sm:$0xff]  }
 0x2c4   :  { %7560 = vmatpush1.bf16.msra.mxu1 %v10284_v2  ;;  %7528 = vmatprep.subr.bf16.mxu0 %v10289_v3  ;;  %v10355_v2 = vld [vmem:[%s14406_s1 + $0x100c] ss:$40 sps:$4 sm:$0xff]  }
 0x2c5   :  { %7561 = vmatprep.subr.bf16.mxu1 %v10292_v4  ;;  %v10358_v3 = vld [vmem:[%s14406_s1 + $0x164c] ss:$40 sps:$4 sm:$0xff]   ;;  %v10353_v4 = vld [vmem:[%s14406_s1 + $0x1008] ss:$40 sps:$4 sm:$0xff]  }
 0x2c7   :  { %7529 = vmatpush2.bf16.msra.mxu0 %v10287_v9  ;;  %v10356_v9 = vld [vmem:[%s14406_s1 + $0x1648] ss:$40 sps:$4 sm:$0xff]  }
 0x2c8   :  { %7562 = vmatpush1.bf16.msra.mxu1 %v10290_v10  ;;  %7530 = vmatprep.subr.bf16.mxu0 %v10295_v12  ;;  %v10361_v10 = vld [vmem:[%s14406_s1 + $0xfbc] ss:$40 sps:$4 sm:$0xff]  }
 0x2c9   :  { %7563 = vmatprep.subr.bf16.mxu1 %v10298_v14  ;;  %v10364_v12 = vld [vmem:[%s14406_s1 + $0x15fc] ss:$40 sps:$4 sm:$0xff]  }
 0x2cb   :  { %7531 = vmatpush2.bf16.msra.mxu0 %v10293_v17 }
 0x2cc   :  { %7564 = vmatpush1.bf16.msra.mxu1 %v10296_v18  ;;  %7532 = vmatprep.subr.bf16.mxu0 %v10301_v21  ;;  %v10359_v21 = vld [vmem:[%s14406_s1 + $0xfb8] ss:$40 sps:$4 sm:$0xff]  }
 0x2cd   :  { %7565 = vmatprep.subr.bf16.mxu1 %v10304_v30  ;;  %v10362_v30 = vld [vmem:[%s14406_s1 + $0x15f8] ss:$40 sps:$4 sm:$0xff]  }
 0x2cf   :  { %7533 = vmatpush2.bf16.msra.mxu0 %v10299_v31 }
 0x2d0   :  { %7566 = vmatpush1.bf16.msra.mxu1 %v10302_v33  ;;  %7534 = vmatprep.subr.bf16.mxu0 %v10307_v34  ;;  %v10367_v34 = vld [vmem:[%s14406_s1 + $0xf6c] ss:$40 sps:$4 sm:$0xff]  }
 0x2d1   :  { %7567 = vmatprep.subr.bf16.mxu1 %v10310_v38 }
 0x2d3   :  { %7535 = vmatpush2.bf16.msra.mxu0 %v10305_v40 }
 0x2d4   :  { %7568 = vmatpush2.bf16.msra.mxu1 %v10308_v11  ;;  %7536 = vmatprep.subr.bf16.mxu0 %v10313_v22 }
 0x2d5   :  { %7569 = vmatprep.subr.bf16.mxu1 %v10316_v41 }
 0x2d7   :  { %7537 = vmatpush2.bf16.msra.mxu0 %v10311_v15  ;;  %v10365_v15 = vld [vmem:[%s14406_s1 + $0xf68] ss:$40 sps:$4 sm:$0xff]  }
 0x2d8   :  { %7570 = vmatpush2.bf16.msra.mxu1 %v10314_v43  ;;  %7538 = vmatprep.subr.bf16.mxu0 %v10319_v26  ;;  %v10368_v43 = vld [vmem:[%s14406_s1 + $0x15a8] ss:$40 sps:$4 sm:$0xff]  }
 0x2d9   :  { %7571 = vmatprep.subr.bf16.mxu1 %v10322_v44  ;;  %v10376_v44 = vld [vmem:[%s14406_s1 + $0x155c] ss:$40 sps:$4 sm:$0xff]  }
 0x2db   :  { %7539 = vmatpush2.bf16.msra.mxu0 %v10317_v61 }
 0x2dc   :  { %7572 = vmatpush2.bf16.msra.mxu1 %v10320_v28  ;;  %7540 = vmatprep.subr.bf16.mxu0 %v10325_v45  ;;  %v10371_v28 = vld [vmem:[%s14406_s1 + $0xf18] ss:$40 sps:$4 sm:$0xff]  }
 0x2dd   :  { %7573 = vmatprep.subr.bf16.mxu1 %v10328_v46  ;;  %v10374_v45 = vld [vmem:[%s14406_s1 + $0x1558] ss:$40 sps:$4 sm:$0xff]   ;;  %v10379_v46 = vld [vmem:[%s14406_s1 + $0x13cc] ss:$40 sps:$4 sm:$0xff]  }
 0x2df   :  { %7541 = vmatpush2.bf16.msra.mxu0 %v10323_v48  ;;  %v10382_v48 = vld [vmem:[%s14406_s1 + $0x150c] ss:$40 sps:$4 sm:$0xff]  }
 0x2e0   :  { %7574 = vmatpush2.bf16.msra.mxu1 %v10326_v59  ;;  %7592 = vmatprep.subr.bf16.mxu0 %v10334_v27  ;;  %v10377_v59 = vld [vmem:[%s14406_s1 + $0x13c8] ss:$40 sps:$4 sm:$0xff]   ;;  %v10385_v27 = vld [vmem:[%s14406_s1 + $0x137c] ss:$40 sps:$4 sm:$0xff]  }
 0x2e1   :  { %7575 = vmatprep.subr.bf16.mxu1 %v10331_v5  ;;  %v10380_v5 = vld [vmem:[%s14406_s1 + $0x1508] ss:$40 sps:$4 sm:$0xff]  }
 0x2e2   :  { %7543 = vmatmul.mubr.bf16.vlgmr.msra.gmra.mxu0 %v11080_v7 }
 0x2e3   :  { %7593 = vmatpush1.bf16.msra.mxu0 %v10332_v53  ;;  %7624 = vmatprep.mubr.bf16.mxu0 %v11178_v37  ;;  %v10383_v53 = vld [vmem:[%s14406_s1 + $0x1378] ss:$40 sps:$4 sm:$0xff]  }
 0x2e4   :  { %7576 = vmatpush2.bf16.msra.mxu1 %v10329_v50  ;;  %7594 = vmatprep.subr.bf16.mxu0 %v10340_v1  ;;  %v10388_v50 = vld [vmem:[%s14406_s1 + $0x14bc] ss:$40 sps:$4 sm:$0xff]   ;;  %v10391_v1 = vld [vmem:[%s14406_s1 + $0x132c] ss:$40 sps:$4 sm:$0xff]  }
 0x2e5   :  { %7577 = vmatprep.subr.bf16.mxu1 %v10337_v29  ;;  %v10386_v29 = vld [vmem:[%s14406_s1 + $0x14b8] ss:$40 sps:$4 sm:$0xff]  }
 0x2e7   :  { %7595 = vmatpush1.bf16.msra.mxu0 %v10338_v42  ;;  %v10389_v42 = vld [vmem:[%s14406_s1 + $0x1328] ss:$40 sps:$4 sm:$0xff]  }
 0x2e8   :  { %7578 = vmatpush2.bf16.msra.mxu1 %v10335_v8  ;;  %7596 = vmatprep.subr.bf16.mxu0 %v10346_v57  ;;  %v10394_v8 = vld [vmem:[%s14406_s1 + $0x146c] ss:$40 sps:$4 sm:$0xff]   ;;  %v10397_v57 = vld [vmem:[%s14406_s1 + $0x12dc] ss:$40 sps:$4 sm:$0xff]  }
 0x2e9   :  { %7579 = vmatprep.subr.bf16.mxu1 %v10343_v13  ;;  %v10392_v13 = vld [vmem:[%s14406_s1 + $0x1468] ss:$40 sps:$4 sm:$0xff]  }
 0x2eb   :  { %7597 = vmatpush1.bf16.msra.mxu0 %v10344_v60  ;;  %v10395_v60 = vld [vmem:[%s14406_s1 + $0x12d8] ss:$40 sps:$4 sm:$0xff]  }
 0x2ec   :  { %7580 = vmatpush2.bf16.msra.mxu1 %v10341_v56  ;;  %7598 = vmatprep.subr.bf16.mxu0 %v10352_v63  ;;  %v10400_v56 = vld [vmem:[%s14406_s1 + $0x141c] ss:$40 sps:$4 sm:$0xff]   ;;  %v10403_v63 = vld [vmem:[%s14406_s1 + $0x128c] ss:$40 sps:$4 sm:$0xff]  }
 0x2ed   :  { %7581 = vmatprep.subr.bf16.mxu1 %v10349_v62  ;;  %v10398_v62 = vld [vmem:[%s14406_s1 + $0x1418] ss:$40 sps:$4 sm:$0xff]  }
 0x2ef   :  { %7599 = vmatpush1.bf16.msra.mxu0 %v10350_v20  ;;  %v10401_v20 = vld [vmem:[%s14406_s1 + $0x1288] ss:$40 sps:$4 sm:$0xff]  }
 0x2f0   :  { %7582 = vmatpush2.bf16.msra.mxu1 %v10347_v0  ;;  %7600 = vmatprep.subr.bf16.mxu0 %v10355_v2  ;;  %v10406_v0 = vld [vmem:[%s14406_s1 + $0x18cc] ss:$40 sps:$4 sm:$0xff]   ;;  %v10404_v2 = vld [vmem:[%s14406_s1 + $0x18c8] ss:$40 sps:$4 sm:$0xff]  }
 0x2f1   :  { %7633 = vmatprep.subr.bf16.mxu1 %v10358_v3  ;;  %v10409_v3 = vld [vmem:[%s14406_s1 + $0x123c] ss:$40 sps:$4 sm:$0xff]  }
 0x2f2   :  { %v7298_v14 = vpop.f32.mrf.mxu0 }
 0x2f3   :  { %7584 = vmatmul.mubr.bf16.vlgmr.msra.gmra.mxu1 %v11298_v16  ;;  %v7339_v17 = vpop.f32.mrf.mxu1  ;;  %v7299_v18 = vadd.f32 %v7298_v14, %v13164_v52  ;;  %7601 = vmatpush1.bf16.msra.mxu0 %v10353_v4  ;;  %v10370_v52 = vld [vmem:[%s14406_s1 + $0x15ac] ss:$40 sps:$4 sm:$0xff]   ;;  %v10412_v4 = vld [vmem:[%s14406_s1 + $0x187c] ss:$40 sps:$4 sm:$0xff]  }
 0x2f4   :  { %7634 = vmatpush1.bf16.msra.mxu1 %v10356_v9  ;;  %v7300_v31 = vpop.f32.mrf.mxu0  ;;  %7602 = vmatprep.subr.bf16.mxu0 %v10361_v10  ;;  %v10407_v9 = vld [vmem:[%s14406_s1 + $0x1238] ss:$40 sps:$4 sm:$0xff]   ;;  %v10418_v14 = vld [vmem:[%s14406_s1 + $0x182c] ss:$40 sps:$4 sm:$0xff]  }
 0x2f5   :  { %v7341_v33 = vpop.f32.mrf.mxu1  ;;  %7635 = vmatprep.subr.bf16.mxu1 %v10364_v12  ;;  %v7301_v38 = vadd.f32 %v7300_v31, %v13167_v54  ;;  %v13366_v40 = vadd.f32 %v7339_v17, %v7299_v18  ;;  %7665 = vmatprep.mubr.bf16.mxu1 %v11328_v24  ;;  %v10373_v54 = vld [vmem:[%s14406_s1 + $0xf1c] ss:$40 sps:$4 sm:$0xff]   ;;  %v10410_v10 = vld [vmem:[%s14406_s1 + $0x1878] ss:$40 sps:$4 sm:$0xff]   ;;  %v10415_v12 = vld [vmem:[%s14406_s1 + $0x11ec] ss:$40 sps:$4 sm:$0xff]  }
 0x2f6   :  { %v7302_v11 = vpop.f32.mrf.mxu0  ;;  %v10413_v17 = vld [vmem:[%s14406_s1 + $0x11e8] ss:$40 sps:$4 sm:$0xff]   ;;  %v10419_v31 = vld [vmem:[%s14406_s1 + $0x1198] ss:$40 sps:$4 sm:$0xff]  }
 0x2f7   :  { %v7343_v22 = vpop.f32.mrf.mxu1  ;;  %v13369_v41 = vadd.f32 %v7341_v33, %v7301_v38  ;;  %7603 = vmatpush1.bf16.msra.mxu0 %v10359_v21  ;;  %v10416_v18 = vld [vmem:[%s14406_s1 + $0x1828] ss:$40 sps:$4 sm:$0xff]   ;;  %v10421_v21 = vld [vmem:[%s14406_s1 + $0x119c] ss:$40 sps:$4 sm:$0xff]   ;;  %v10422_v33 = vld [vmem:[%s14406_s1 + $0x17d8] ss:$40 sps:$4 sm:$0xff]  }
 0x2f8   :  { %7636 = vmatpush1.bf16.msra.mxu1 %v10362_v30  ;;  %v7303_v26 = vpop.f32.mrf.mxu0  ;;  %7604 = vmatprep.subr.bf16.mxu0 %v10367_v34  ;;  %v10424_v30 = vld [vmem:[%s14406_s1 + $0x17dc] ss:$40 sps:$4 sm:$0xff]   ;;  %v10427_v34 = vld [vmem:[%s14406_s1 + $0x178c] ss:$40 sps:$4 sm:$0xff]   ;;  %v10425_v38 = vld [vmem:[%s14406_s1 + $0x1788] ss:$40 sps:$4 sm:$0xff]  }
 0x2f9   :  { %7637 = vmatprep.subr.bf16.mxu1 %v10370_v52  ;;  %v7344_v61 = vpop.f32.mrf.mxu1  ;;  %v10430_v52 = vld [vmem:[%s14406_s1 + $0x1b4c] ss:$40 sps:$4 sm:$0xff]   ;;  %v10428_v11 = vld [vmem:[%s14406_s1 + $0x1b48] ss:$40 sps:$4 sm:$0xff]   ;;  %v10433_v22 = vld [vmem:[%s14406_s1 + $0x173c] ss:$40 sps:$4 sm:$0xff]  }
 0x2fa   :  { %v10434_v26 = vld [vmem:[%s14406_s1 + $0x1af8] ss:$40 sps:$4 sm:$0xff]   ;;  %v10437_v61 = vld [vmem:[%s14406_s1 + $0x16e8] ss:$40 sps:$4 sm:$0xff]  }
 0x2fb   :  { %7605 = vmatpush1.bf16.msra.mxu0 %v10365_v15  ;;  %v10436_v15 = vld [vmem:[%s14406_s1 + $0x1afc] ss:$40 sps:$4 sm:$0xff]  }
 0x2fc   :  { %7638 = vmatpush1.bf16.msra.mxu1 %v10368_v43  ;;  %7606 = vmatprep.subr.bf16.mxu0 %v10373_v54  ;;  %v10431_v43 = vld [vmem:[%s14406_s1 + $0x1738] ss:$40 sps:$4 sm:$0xff]   ;;  %v10439_v54 = vld [vmem:[%s14406_s1 + $0x16ec] ss:$40 sps:$4 sm:$0xff]  }
 0x2fd   :  { %7639 = vmatprep.subr.bf16.mxu1 %v10376_v44  ;;  %v10442_v44 = vld [vmem:[%s14406_s1 + $0x1aac] ss:$40 sps:$4 sm:$0xff]  }
 0x2ff   :  { %7607 = vmatpush1.bf16.msra.mxu0 %v10371_v28  ;;  %v10440_v28 = vld [vmem:[%s14406_s1 + $0x1aa8] ss:$40 sps:$4 sm:$0xff]  }
 0x300   :  { %7640 = vmatpush1.bf16.msra.mxu1 %v10374_v45  ;;  %7608 = vmatprep.subr.bf16.mxu0 %v10379_v46  ;;  %v10445_v45 = vld [vmem:[%s14406_s1 + $0x169c] ss:$40 sps:$4 sm:$0xff]  }
 0x301   :  { %7641 = vmatprep.subr.bf16.mxu1 %v10382_v48  ;;  %v10448_v46 = vld [vmem:[%s14406_s1 + $0x1a5c] ss:$40 sps:$4 sm:$0xff]   ;;  %v10443_v48 = vld [vmem:[%s14406_s1 + $0x1698] ss:$40 sps:$4 sm:$0xff]  }
 0x303   :  { %7609 = vmatpush2.bf16.msra.mxu0 %v10377_v59  ;;  %v10446_v59 = vld [vmem:[%s14406_s1 + $0x1a58] ss:$40 sps:$4 sm:$0xff]  }
 0x304   :  { %7642 = vmatpush1.bf16.msra.mxu1 %v10380_v5  ;;  %7610 = vmatprep.subr.bf16.mxu0 %v10385_v27  ;;  %v10451_v5 = vld [vmem:[%s14406_s1 + $0x1a0c] ss:$40 sps:$4 sm:$0xff]  }
 0x305   :  { %7643 = vmatprep.subr.bf16.mxu1 %v10388_v50  ;;  %v10454_v27 = vld [vmem:[%s14406_s1 + $0x204c] ss:$40 sps:$4 sm:$0xff]   ;;  %v10449_v50 = vld [vmem:[%s14406_s1 + $0x1a08] ss:$40 sps:$4 sm:$0xff]  }
 0x307   :  { %7611 = vmatpush2.bf16.msra.mxu0 %v10383_v53  ;;  %v10452_v53 = vld [vmem:[%s14406_s1 + $0x2048] ss:$40 sps:$4 sm:$0xff]  }
 0x308   :  { %7644 = vmatpush1.bf16.msra.mxu1 %v10386_v29  ;;  %7612 = vmatprep.subr.bf16.mxu0 %v10391_v1  ;;  %v10457_v29 = vld [vmem:[%s14406_s1 + $0x19bc] ss:$40 sps:$4 sm:$0xff]  }
 0x309   :  { %7645 = vmatprep.subr.bf16.mxu1 %v10394_v8  ;;  %v10460_v1 = vld [vmem:[%s14406_s1 + $0x1ffc] ss:$40 sps:$4 sm:$0xff]  }
 0x30b   :  { %7613 = vmatpush2.bf16.msra.mxu0 %v10389_v42 }
 0x30c   :  { %7646 = vmatpush1.bf16.msra.mxu1 %v10392_v13  ;;  %7614 = vmatprep.subr.bf16.mxu0 %v10397_v57  ;;  %v10455_v13 = vld [vmem:[%s14406_s1 + $0x19b8] ss:$40 sps:$4 sm:$0xff]  }
 0x30d   :  { %7647 = vmatprep.subr.bf16.mxu1 %v10400_v56  ;;  %v10458_v57 = vld [vmem:[%s14406_s1 + $0x1ff8] ss:$40 sps:$4 sm:$0xff]  }
 0x30f   :  { %7615 = vmatpush2.bf16.msra.mxu0 %v10395_v60 }
 0x310   :  { %7648 = vmatpush1.bf16.msra.mxu1 %v10398_v62  ;;  %7616 = vmatprep.subr.bf16.mxu0 %v10403_v63  ;;  %v10463_v62 = vld [vmem:[%s14406_s1 + $0x196c] ss:$40 sps:$4 sm:$0xff]  }
 0x311   :  { %7649 = vmatprep.subr.bf16.mxu1 %v10406_v0  ;;  %v10466_v63 = vld [vmem:[%s14406_s1 + $0x1fac] ss:$40 sps:$4 sm:$0xff]  }
 0x313   :  { %7617 = vmatpush2.bf16.msra.mxu0 %v10401_v20 }
 0x314   :  { %7650 = vmatpush2.bf16.msra.mxu1 %v10404_v2  ;;  %7618 = vmatprep.subr.bf16.mxu0 %v10409_v3  ;;  %v10461_v2 = vld [vmem:[%s14406_s1 + $0x1968] ss:$40 sps:$4 sm:$0xff]  }
 0x315   :  { %7651 = vmatprep.subr.bf16.mxu1 %v10412_v4  ;;  %v10464_v3 = vld [vmem:[%s14406_s1 + $0x1fa8] ss:$40 sps:$4 sm:$0xff]  }
 0x317   :  { %7619 = vmatpush2.bf16.msra.mxu0 %v10407_v9  ;;  %v10469_v9 = vld [vmem:[%s14406_s1 + $0x191c] ss:$40 sps:$4 sm:$0xff]  }
 0x318   :  { %7652 = vmatpush2.bf16.msra.mxu1 %v10410_v10  ;;  %7620 = vmatprep.subr.bf16.mxu0 %v10415_v12  ;;  %v10472_v10 = vld [vmem:[%s14406_s1 + $0x1f5c] ss:$40 sps:$4 sm:$0xff]  }
 0x319   :  { %7653 = vmatprep.subr.bf16.mxu1 %v10418_v14  ;;  %v10467_v14 = vld [vmem:[%s14406_s1 + $0x1918] ss:$40 sps:$4 sm:$0xff]  }
 0x31b   :  { %7621 = vmatpush2.bf16.msra.mxu0 %v10413_v17  ;;  %v10470_v17 = vld [vmem:[%s14406_s1 + $0x1f58] ss:$40 sps:$4 sm:$0xff]  }
 0x31c   :  { %7654 = vmatpush2.bf16.msra.mxu1 %v10416_v18  ;;  %7622 = vmatprep.subr.bf16.mxu0 %v10421_v21  ;;  %v10475_v18 = vld [vmem:[%s14406_s1 + $0x1dcc] ss:$40 sps:$4 sm:$0xff]  }
 0x31d   :  { %7655 = vmatprep.subr.bf16.mxu1 %v10424_v30  ;;  %v10478_v21 = vld [vmem:[%s14406_s1 + $0x1f0c] ss:$40 sps:$4 sm:$0xff]   ;;  %v10473_v30 = vld [vmem:[%s14406_s1 + $0x1dc8] ss:$40 sps:$4 sm:$0xff]  }
 0x31f   :  { %7623 = vmatpush2.bf16.msra.mxu0 %v10419_v31  ;;  %v10476_v31 = vld [vmem:[%s14406_s1 + $0x1f08] ss:$40 sps:$4 sm:$0xff]  }
 0x320   :  { %7656 = vmatpush2.bf16.msra.mxu1 %v10422_v33  ;;  %7674 = vmatprep.subr.bf16.mxu0 %v10430_v52  ;;  %v10481_v33 = vld [vmem:[%s14406_s1 + $0x1d7c] ss:$40 sps:$4 sm:$0xff]   ;;  %v10479_v52 = vld [vmem:[%s14406_s1 + $0x1d78] ss:$40 sps:$4 sm:$0xff]  }
 0x321   :  { %7657 = vmatprep.subr.bf16.mxu1 %v10427_v34  ;;  %v10484_v34 = vld [vmem:[%s14406_s1 + $0x1ebc] ss:$40 sps:$4 sm:$0xff]  }
 0x322   :  { %7625 = vmatmul.mubr.bf16.vlgmr.msra.gmra.mxu0 %v11308_v19 }
 0x323   :  { %7675 = vmatpush1.bf16.msra.mxu0 %v10428_v11  ;;  %7706 = vmatprep.mubr.bf16.mxu0 %v11332_v25  ;;  %v10487_v11 = vld [vmem:[%s14406_s1 + $0x1d2c] ss:$40 sps:$4 sm:$0xff]  }
 0x324   :  { %7658 = vmatpush2.bf16.msra.mxu1 %v10425_v38  ;;  %7676 = vmatprep.subr.bf16.mxu0 %v10436_v15  ;;  %v10482_v38 = vld [vmem:[%s14406_s1 + $0x1eb8] ss:$40 sps:$4 sm:$0xff]   ;;  %v10485_v15 = vld [vmem:[%s14406_s1 + $0x1d28] ss:$40 sps:$4 sm:$0xff]  }
 0x325   :  { %7659 = vmatprep.subr.bf16.mxu1 %v10433_v22  ;;  %v10490_v22 = vld [vmem:[%s14406_s1 + $0x1e6c] ss:$40 sps:$4 sm:$0xff]  }
 0x327   :  { %7677 = vmatpush1.bf16.msra.mxu0 %v10434_v26  ;;  %v10493_v26 = vld [vmem:[%s14406_s1 + $0x1cdc] ss:$40 sps:$4 sm:$0xff]  }
 0x328   :  { %7660 = vmatpush2.bf16.msra.mxu1 %v10431_v43  ;;  %7678 = vmatprep.subr.bf16.mxu0 %v10442_v44  ;;  %v10488_v43 = vld [vmem:[%s14406_s1 + $0x1e68] ss:$40 sps:$4 sm:$0xff]   ;;  %v10491_v44 = vld [vmem:[%s14406_s1 + $0x1cd8] ss:$40 sps:$4 sm:$0xff]  }
 0x329   :  { %7661 = vmatprep.subr.bf16.mxu1 %v10439_v54  ;;  %v10496_v54 = vld [vmem:[%s14406_s1 + $0x1e1c] ss:$40 sps:$4 sm:$0xff]  }
 0x32b   :  { %7679 = vmatpush1.bf16.msra.mxu0 %v10440_v28  ;;  %v10499_v28 = vld [vmem:[%s14406_s1 + $0x1c8c] ss:$40 sps:$4 sm:$0xff]  }
 0x32c   :  { %7662 = vmatpush2.bf16.msra.mxu1 %v10437_v61  ;;  %7680 = vmatprep.subr.bf16.mxu0 %v10448_v46  ;;  %v10494_v61 = vld [vmem:[%s14406_s1 + $0x1e18] ss:$40 sps:$4 sm:$0xff]   ;;  %v10497_v46 = vld [vmem:[%s14406_s1 + $0x1c88] ss:$40 sps:$4 sm:$0xff]  }
 0x32d   :  { %7663 = vmatprep.subr.bf16.mxu1 %v10445_v45  ;;  %v10502_v45 = vld [vmem:[%s14406_s1 + $0x218c] ss:$40 sps:$4 sm:$0xff]  }
 0x32f   :  { %7681 = vmatpush1.bf16.msra.mxu0 %v10446_v59  ;;  %v10505_v59 = vld [vmem:[%s14406_s1 + $0x1c3c] ss:$40 sps:$4 sm:$0xff]  }
 0x330   :  { %7664 = vmatpush2.bf16.msra.mxu1 %v10443_v48  ;;  %7682 = vmatprep.subr.bf16.mxu0 %v10451_v5  ;;  %v10500_v48 = vld [vmem:[%s14406_s1 + $0x2188] ss:$40 sps:$4 sm:$0xff]   ;;  %v10508_v5 = vld [vmem:[%s14406_s1 + $0x213c] ss:$40 sps:$4 sm:$0xff]  }
 0x331   :  { %7715 = vmatprep.subr.bf16.mxu1 %v10454_v27  ;;  %v10503_v27 = vld [vmem:[%s14406_s1 + $0x1c38] ss:$40 sps:$4 sm:$0xff]  }
 0x332   :  { %v13553_v8 = vpop.f32.mrf.mxu0 }
 0x333   :  { %7666 = vmatmul.mubr.bf16.vlgmr.msra.gmra.mxu1 %v11523_v35  ;;  %v13556_v42 = vpop.f32.mrf.mxu1  ;;  %7683 = vmatpush1.bf16.msra.mxu0 %v10449_v50  ;;  %v10506_v50 = vld [vmem:[%s14406_s1 + $0x2138] ss:$40 sps:$4 sm:$0xff]  }
 0x334   :  { %7716 = vmatpush1.bf16.msra.mxu1 %v10452_v53  ;;  %v13564_v56 = vpop.f32.mrf.mxu0  ;;  %7684 = vmatprep.subr.bf16.mxu0 %v10457_v29  ;;  %v10511_v53 = vld [vmem:[%s14406_s1 + $0x1bec] ss:$40 sps:$4 sm:$0xff]  }
 0x335   :  { %v13566_v60 = vpop.f32.mrf.mxu1  ;;  %7717 = vmatprep.subr.bf16.mxu1 %v10460_v1  ;;  %9199 = vmatprep.mubr.msk.bf16.mxu1 %vm6604_vm0, %v11545_v23  ;;  %v10514_v29 = vld [vmem:[%s14406_s1 + $0x20ec] ss:$40 sps:$4 sm:$0xff]   ;;  %v10509_v1 = vld [vmem:[%s14406_s1 + $0x1be8] ss:$40 sps:$4 sm:$0xff]  }
 0x336   :  { %v7384_v0 = vpop.f32.mrf.mxu0 }
 0x337   :  { %v7425_v20 = vpop.f32.mrf.mxu1  ;;  %7685 = vmatpush1.bf16.msra.mxu0 %v10455_v13  ;;  %v10512_v13 = vld [vmem:[%s14406_s1 + $0x20e8] ss:$40 sps:$4 sm:$0xff]   ;;  %v10518_v0 = vld [vmem:[%s14406_s1 + $0x2098] ss:$40 sps:$4 sm:$0xff]  }
 0x338   :  { %7718 = vmatpush1.bf16.msra.mxu1 %v10458_v57  ;;  %v7385_v4 = vpop.f32.mrf.mxu0  ;;  %7686 = vmatprep.subr.bf16.mxu0 %v10463_v62  ;;  %v10517_v57 = vld [vmem:[%s14406_s1 + $0x1b9c] ss:$40 sps:$4 sm:$0xff]  }
 0x339   :  { %7719 = vmatprep.subr.bf16.mxu1 %v10466_v63  ;;  %v7426_v12 = vpop.f32.mrf.mxu1  ;;  %v10520_v62 = vld [vmem:[%s14406_s1 + $0x209c] ss:$40 sps:$4 sm:$0xff]   ;;  %v10515_v63 = vld [vmem:[%s14406_s1 + $0x1b98] ss:$40 sps:$4 sm:$0xff]   ;;  %v7383_v4 = vadd.f32 %v13564_v56, %v13369_v41 }
 0x33a   :  { %v10523_v20 = vld [vmem:[%s14406_s1 + $0x254] ss:$40 sps:$4 sm:$0xff]   ;;  %v10529_v12 = vld [vmem:[%s14406_s1 + $0x204] ss:$40 sps:$4 sm:$0xff]  }
 0x33b   :  { %7687 = vmatpush1.bf16.msra.mxu0 %v10461_v2  ;;  %v10526_v2 = vld [vmem:[%s14406_s1 + $0x754] ss:$40 sps:$4 sm:$0xff]   ;;  %v7424_v56 = vadd.f32 %v13566_v60, %v7383_v4  ;;  %v10572_v4 = vld [vmem:[%s14406_s1 + $0x9d0] ss:$40 sps:$4 sm:$0xff]  }
 0x33c   :  { %7720 = vmatpush1.bf16.msra.mxu1 %v10464_v3  ;;  %7688 = vmatprep.subr.bf16.mxu0 %v10469_v9  ;;  %v7381_v3 = vadd.f32 %v13553_v8, %v13366_v40  ;;  %v10521_v9 = vld [vmem:[%s14406_s1 + $0x250] ss:$40 sps:$4 sm:$0xff]   ;;  %v10532_v40 = vld [vmem:[%s14406_s1 + $0x704] ss:$40 sps:$4 sm:$0xff]   ;;  %v10538_v60 = vld [vmem:[%s14406_s1 + $0x6b4] ss:$40 sps:$4 sm:$0xff]  }
 0x33d   :  { %7721 = vmatprep.subr.bf16.mxu1 %v10472_v10  ;;  %v10524_v10 = vld [vmem:[%s14406_s1 + $0x750] ss:$40 sps:$4 sm:$0xff]  }
 0x33e   :  { %v7422_v41 = vadd.f32 %v13556_v42, %v7381_v3  ;;  %v10535_v42 = vld [vmem:[%s14406_s1 + $0x1b4] ss:$40 sps:$4 sm:$0xff]   ;;  %v10569_v3 = vld [vmem:[%s14406_s1 + $0x4d0] ss:$40 sps:$4 sm:$0xff]  }
 0x33f   :  { %7689 = vmatpush1.bf16.msra.mxu0 %v10467_v14 }
 0x340   :  { %7722 = vmatpush1.bf16.msra.mxu1 %v10470_v17  ;;  %7690 = vmatprep.subr.bf16.mxu0 %v10475_v18  ;;  %v10527_v17 = vld [vmem:[%s14406_s1 + $0x200] ss:$40 sps:$4 sm:$0xff]  }
 0x341   :  { %7723 = vmatprep.subr.bf16.mxu1 %v10478_v21  ;;  %v10530_v18 = vld [vmem:[%s14406_s1 + $0x700] ss:$40 sps:$4 sm:$0xff]  }
 0x343   :  { %7691 = vmatpush2.bf16.msra.mxu0 %v10473_v30 }
 0x344   :  { %7724 = vmatpush1.bf16.msra.mxu1 %v10476_v31  ;;  %7692 = vmatprep.subr.bf16.mxu0 %v10481_v33 }
 0x345   :  { %7725 = vmatprep.subr.bf16.mxu1 %v10484_v34 }
 0x347   :  { %7693 = vmatpush2.bf16.msra.mxu0 %v10479_v52  ;;  %v10533_v52 = vld [vmem:[%s14406_s1 + $0x1b0] ss:$40 sps:$4 sm:$0xff]  }
 0x348   :  { %7726 = vmatpush1.bf16.msra.mxu1 %v10482_v38  ;;  %7694 = vmatprep.subr.bf16.mxu0 %v10487_v11  ;;  %v10536_v38 = vld [vmem:[%s14406_s1 + $0x6b0] ss:$40 sps:$4 sm:$0xff]  }
 0x349   :  { %7727 = vmatprep.subr.bf16.mxu1 %v10490_v22 }
 0x34b   :  { %7695 = vmatpush2.bf16.msra.mxu0 %v10485_v15  ;;  %v10539_v15 = vld [vmem:[%s14406_s1 + $0x160] ss:$40 sps:$4 sm:$0xff]  }
 0x34c   :  { %7728 = vmatpush1.bf16.msra.mxu1 %v10488_v43  ;;  %7696 = vmatprep.subr.bf16.mxu0 %v10493_v26  ;;  %v10542_v43 = vld [vmem:[%s14406_s1 + $0x660] ss:$40 sps:$4 sm:$0xff]   ;;  %v10547_v26 = vld [vmem:[%s14406_s1 + $0x114] ss:$40 sps:$4 sm:$0xff]  }
 0x34d   :  { %7729 = vmatprep.subr.bf16.mxu1 %v10496_v54  ;;  %v10550_v54 = vld [vmem:[%s14406_s1 + $0x614] ss:$40 sps:$4 sm:$0xff]  }
 0x34f   :  { %7697 = vmatpush2.bf16.msra.mxu0 %v10491_v44  ;;  %v10545_v44 = vld [vmem:[%s14406_s1 + $0x110] ss:$40 sps:$4 sm:$0xff]  }
 0x350   :  { %7730 = vmatpush1.bf16.msra.mxu1 %v10494_v61  ;;  %7698 = vmatprep.subr.bf16.mxu0 %v10499_v28  ;;  %v10548_v61 = vld [vmem:[%s14406_s1 + $0x610] ss:$40 sps:$4 sm:$0xff]   ;;  %v10553_v28 = vld [vmem:[%s14406_s1 + $0xc4] ss:$40 sps:$4 sm:$0xff]  }
 0x351   :  { %7739 = vmatprep.subr.bf16.mxu1 %v10502_v45  ;;  %v10556_v45 = vld [vmem:[%s14406_s1 + $0x5c4] ss:$40 sps:$4 sm:$0xff]  }
 0x353   :  { %7699 = vmatpush2.bf16.msra.mxu0 %v10497_v46 }
 0x354   :  { %7740 = vmatpush2.bf16.msra.mxu1 %v10500_v48  ;;  %7700 = vmatprep.subr.bf16.mxu0 %v10505_v59  ;;  %v10551_v48 = vld [vmem:[%s14406_s1 + $0xc0] ss:$40 sps:$4 sm:$0xff]  }
 0x355   :  { %7741 = vmatprep.subr.bf16.mxu1 %v10508_v5  ;;  %v10554_v59 = vld [vmem:[%s14406_s1 + $0x5c0] ss:$40 sps:$4 sm:$0xff]   ;;  %v10559_v5 = vld [vmem:[%s14406_s1 + $0x74] ss:$40 sps:$4 sm:$0xff]  }
 0x357   :  { %7701 = vmatpush2.bf16.msra.mxu0 %v10503_v27  ;;  %v10562_v27 = vld [vmem:[%s14406_s1 + $0x574] ss:$40 sps:$4 sm:$0xff]  }
 0x358   :  { %7742 = vmatpush2.bf16.msra.mxu1 %v10506_v50  ;;  %7702 = vmatprep.subr.bf16.mxu0 %v10511_v53 }
 0x359   :  { %7743 = vmatprep.subr.bf16.mxu1 %v10514_v29  ;;  %v10557_v29 = vld [vmem:[%s14406_s1 + $0x70] ss:$40 sps:$4 sm:$0xff]  }
 0x35b   :  { %7703 = vmatpush2.bf16.msra.mxu0 %v10509_v1  ;;  %v10560_v1 = vld [vmem:[%s14406_s1 + $0x570] ss:$40 sps:$4 sm:$0xff]  }
 0x35c   :  { %7744 = vmatpush2.bf16.msra.mxu1 %v10512_v13  ;;  %7704 = vmatprep.subr.bf16.mxu0 %v10517_v57  ;;  %v10565_v13 = vld [vmem:[%s14406_s1 + $0x24] ss:$40 sps:$4 sm:$0xff]  }
 0x35d   :  { %7745 = vmatprep.subr.bf16.mxu1 %v10520_v62  ;;  %v10568_v57 = vld [vmem:[%s14406_s1 + $0x524] ss:$40 sps:$4 sm:$0xff]  }
 0x35f   :  { %7705 = vmatpush2.bf16.msra.mxu0 %v10515_v63  ;;  %v10563_v63 = vld [vmem:[%s14406_s1 + $0x20] ss:$40 sps:$4 sm:$0xff]  }
 0x360   :  { %7746 = vmatpush2.bf16.msra.mxu1 %v10518_v0  ;;  %7756 = vmatprep.subr.bf16.mxu0 %v10523_v20  ;;  %v10566_v0 = vld [vmem:[%s14406_s1 + $0x520] ss:$40 sps:$4 sm:$0xff]   ;;  %v10571_v20 = vld [vmem:[%s14406_s1 + $0x4d4] ss:$40 sps:$4 sm:$0xff]  }
 0x361   :  { %7797 = vmatprep.subr.bf16.mxu1 %v10526_v2  ;;  %v10574_v2 = vld [vmem:[%s14406_s1 + $0x9d4] ss:$40 sps:$4 sm:$0xff]  }
 0x362   :  { %v7462_v8 = vpop.f32.mrf.mxu0  ;;  %7707 = vmatmul.mubr.bf16.vlgmr.msra.gmra.mxu0 %v11530_v39 }
 0x363   :  { %7748 = vmatmul.mubr.bf16.vlgmr.msra.gmra.mxu1 %v11686_v32  ;;  %v7463_v14 = vadd.f32 %v7462_v8, %v7422_v41  ;;  %7757 = vmatpush1.bf16.msra.mxu0 %v10521_v9  ;;  %v10577_v9 = vld [vmem:[%s14406_s1 + $0x484] ss:$40 sps:$4 sm:$0xff]   ;;  %v10583_v41 = vld [vmem:[%s14406_s1 + $0x434] ss:$40 sps:$4 sm:$0xff]  }
 0x364   :  { %7798 = vmatpush1.bf16.msra.mxu1 %v10524_v10  ;;  %v7464_v21 = vpop.f32.mrf.mxu0  ;;  %7758 = vmatprep.subr.bf16.mxu0 %v10529_v12  ;;  %v10580_v10 = vld [vmem:[%s14406_s1 + $0x984] ss:$40 sps:$4 sm:$0xff]   ;;  %v10575_v12 = vld [vmem:[%s14406_s1 + $0x480] ss:$40 sps:$4 sm:$0xff]   ;;  %v10586_v8 = vld [vmem:[%s14406_s1 + $0x934] ss:$40 sps:$4 sm:$0xff]  }
 0x365   :  { %7799 = vmatprep.subr.bf16.mxu1 %v10532_v40  ;;  %v7465_v30 = vadd.f32 %v7464_v21, %v7424_v56  ;;  %7788 = vmatprep.mubr.bf16.mxu0 %v11009_v47  ;;  %v8047_v33 = vmax.f32 %v7463_v14, 0.0  ;;  %v10541_v47 = vld [vmem:[%s14406_s1 + $0x164] ss:$40 sps:$4 sm:$0xff]   ;;  %v10578_v40 = vld [vmem:[%s14406_s1 + $0x980] ss:$40 sps:$4 sm:$0xff]  }
 0x366   :  { %7829 = vmatprep.mubr.bf16.mxu1 %v11020_v51  ;;  %v7466_v31 = vpop.f32.mrf.mxu0  ;;  %v10544_v51 = vld [vmem:[%s14406_s1 + $0x664] ss:$40 sps:$4 sm:$0xff]   ;;  %v10581_v56 = vld [vmem:[%s14406_s1 + $0x430] ss:$40 sps:$4 sm:$0xff]   ;;  %v10587_v21 = vld [vmem:[%s14406_s1 + $0x3e0] ss:$40 sps:$4 sm:$0xff]  }
 0x367   :  { %v8048_v34 = vmax.f32 %v7465_v30, 0.0  ;;  %7759 = vmatpush1.bf16.msra.mxu0 %v10527_v17  ;;  %v10584_v14 = vld [vmem:[%s14406_s1 + $0x930] ss:$40 sps:$4 sm:$0xff]   ;;  %v10589_v17 = vld [vmem:[%s14406_s1 + $0x3e4] ss:$40 sps:$4 sm:$0xff]  }
 0x368   :  { %7800 = vmatpush1.bf16.msra.mxu1 %v10530_v18  ;;  %v7467_v11 = vpop.f32.mrf.mxu0  ;;  %7760 = vmatprep.subr.bf16.mxu0 %v10535_v42  ;;  %v10592_v18 = vld [vmem:[%s14406_s1 + $0x8e4] ss:$40 sps:$4 sm:$0xff]   ;;  %v10590_v42 = vld [vmem:[%s14406_s1 + $0x8e0] ss:$40 sps:$4 sm:$0xff]   ;;  %v10598_v30 = vld [vmem:[%s14406_s1 + $0x894] ss:$40 sps:$4 sm:$0xff]  }
 0x369   :  { %7801 = vmatprep.subr.bf16.mxu1 %v10538_v60  ;;  %v9208_v22 = vpack.c.bf16 %v8048_v34, %v8047_v33  ;;  %v10595_v60 = vld [vmem:[%s14406_s1 + $0x394] ss:$40 sps:$4 sm:$0xff]   ;;  %v10593_v31 = vld [vmem:[%s14406_s1 + $0x390] ss:$40 sps:$4 sm:$0xff]   ;;  %v10601_v34 = vld [vmem:[%s14406_s1 + $0x344] ss:$40 sps:$4 sm:$0xff]  }
 0x36a   :  { %v10596_v33 = vld [vmem:[%s14406_s1 + $0x890] ss:$40 sps:$4 sm:$0xff]   ;;  %v10602_v11 = vld [vmem:[%s14406_s1 + $0x840] ss:$40 sps:$4 sm:$0xff]  }
 0x36b   :  { %8095 = vst [vmem:[%s14409_s3 + $0x10] sm:$0xff] %v9208_v22  ;;  %7761 = vmatpush1.bf16.msra.mxu0 %v10533_v52  ;;  %v10604_v52 = vld [vmem:[%s14406_s1 + $0x844] ss:$40 sps:$4 sm:$0xff]   ;;  %v10605_v22 = vld [vmem:[%s14406_s1 + $0x2f0] ss:$40 sps:$4 sm:$0xff]  }
 0x36c   :  { %7802 = vmatpush1.bf16.msra.mxu1 %v10536_v38  ;;  %7762 = vmatprep.subr.bf16.mxu0 %v10541_v47  ;;  %v10599_v38 = vld [vmem:[%s14406_s1 + $0x340] ss:$40 sps:$4 sm:$0xff]   ;;  %v10607_v47 = vld [vmem:[%s14406_s1 + $0x2f4] ss:$40 sps:$4 sm:$0xff]  }
 0x36d   :  { %7803 = vmatprep.subr.bf16.mxu1 %v10544_v51  ;;  %v10610_v51 = vld [vmem:[%s14406_s1 + $0x7f4] ss:$40 sps:$4 sm:$0xff]  }
 0x36f   :  { %7763 = vmatpush1.bf16.msra.mxu0 %v10539_v15  ;;  %v1132_v15 = vsub.s32 6, %v11723_v49 }
 0x370   :  { %7804 = vmatpush1.bf16.msra.mxu1 %v10542_v43  ;;  %7764 = vmatprep.subr.bf16.mxu0 %v10547_v26  ;;  %v10608_v43 = vld [vmem:[%s14406_s1 + $0x7f0] ss:$40 sps:$4 sm:$0xff]   ;;  %v10613_v26 = vld [vmem:[%s14406_s1 + $0x2a4] ss:$40 sps:$4 sm:$0xff]  }
 0x371   :  { %7805 = vmatprep.subr.bf16.mxu1 %v10550_v54  ;;  %v10616_v54 = vld [vmem:[%s14406_s1 + $0x7a4] ss:$40 sps:$4 sm:$0xff]  }
 0x373   :  { %v13769_v46 = vpop.f32.mrf.mxu1  ;;  %7765 = vmatpush1.bf16.msra.mxu0 %v10545_v44  ;;  %v1136_v44 = vsub.s32 7, %v11723_v49 }
 0x374   :  { %7806 = vmatpush1.bf16.msra.mxu1 %v10548_v61  ;;  %7766 = vmatprep.subr.bf16.mxu0 %v10553_v28  ;;  %v10847_v61 = vld [vmem:[%s14408_s2] sm:$0xff] }
 0x375   :  { %7807 = vmatprep.subr.bf16.mxu1 %v10556_v45  ;;  %v13783_v50 = vpop.f32.mrf.mxu1  ;;  %v1133_v28 = vrot.slane %v10847_v61, %v1132_v15  ;;  %v10611_v45 = vld [vmem:[%s14406_s1 + $0x2a0] ss:$40 sps:$4 sm:$0xff]  }
 0x377   :  { %v7507_v53 = vpop.f32.mrf.mxu1  ;;  %7767 = vmatpush1.bf16.msra.mxu0 %v10551_v48  ;;  %v10614_v48 = vld [vmem:[%s14406_s1 + $0x7a0] ss:$40 sps:$4 sm:$0xff]  }
 0x378   :  { %7808 = vmatpush1.bf16.msra.mxu1 %v10554_v59  ;;  %7768 = vmatprep.subr.bf16.mxu0 %v10559_v5  ;;  %v10619_v59 = vld [vmem:[%s14406_s1 + $0xc54] ss:$40 sps:$4 sm:$0xff]   ;;  %v7504_v53 = vadd.f32 %v13769_v46, %v1133_v28  ;;  %v10628_v46 = vld [vmem:[%s14406_s1 + $0x1104] ss:$40 sps:$4 sm:$0xff]   ;;  %v10668_v28 = vld [vmem:[%s14406_s1 + $0x13d0] ss:$40 sps:$4 sm:$0xff]  }
 0x379   :  { %7809 = vmatprep.subr.bf16.mxu1 %v10562_v27  ;;  %v7508_v62 = vpop.f32.mrf.mxu1  ;;  %v10622_v5 = vld [vmem:[%s14406_s1 + $0x1154] ss:$40 sps:$4 sm:$0xff]   ;;  %v1137_v27 = vrot.slane %v10847_v61, %v1136_v44  ;;  %v10665_v61 = vld [vmem:[%s14406_s1 + $0xed0] ss:$40 sps:$4 sm:$0xff]  }
 0x37a   :  { %v10670_v44 = vld [vmem:[%s14406_s1 + $0x13d4] ss:$40 sps:$4 sm:$0xff]  }
 0x37b   :  { %7769 = vmatpush1.bf16.msra.mxu0 %v10557_v29  ;;  %v10617_v29 = vld [vmem:[%s14406_s1 + $0xc50] ss:$40 sps:$4 sm:$0xff]  }
 0x37c   :  { %7810 = vmatpush1.bf16.msra.mxu1 %v10560_v1  ;;  %7770 = vmatprep.subr.bf16.mxu0 %v10565_v13  ;;  %v10620_v1 = vld [vmem:[%s14406_s1 + $0x1150] ss:$40 sps:$4 sm:$0xff]   ;;  %v10625_v13 = vld [vmem:[%s14406_s1 + $0xc04] ss:$40 sps:$4 sm:$0xff]  }
 0x37d   :  { %7811 = vmatprep.subr.bf16.mxu1 %v10568_v57  ;;  %v7506_v57 = vadd.f32 %v13783_v50, %v1137_v27  ;;  %v10679_v27 = vld [vmem:[%s14406_s1 + $0xe34] ss:$40 sps:$4 sm:$0xff]  }
 0x37f   :  { %7771 = vmatpush1.bf16.msra.mxu0 %v10563_v63 }
 0x380   :  { %7812 = vmatpush1.bf16.msra.mxu1 %v10566_v0  ;;  %7772 = vmatprep.subr.bf16.mxu0 %v10571_v20  ;;  %v10623_v0 = vld [vmem:[%s14406_s1 + $0xc00] ss:$40 sps:$4 sm:$0xff]  }
 0x381   :  { %7813 = vmatprep.subr.bf16.mxu1 %v10574_v2  ;;  %v10626_v20 = vld [vmem:[%s14406_s1 + $0x1100] ss:$40 sps:$4 sm:$0xff]  }
 0x383   :  { %7773 = vmatpush2.bf16.msra.mxu0 %v10569_v3 }
 0x384   :  { %7814 = vmatpush2.bf16.msra.mxu1 %v10572_v4  ;;  %7774 = vmatprep.subr.bf16.mxu0 %v10577_v9  ;;  %v10629_v4 = vld [vmem:[%s14406_s1 + $0xbb0] ss:$40 sps:$4 sm:$0xff]  }
 0x385   :  { %7815 = vmatprep.subr.bf16.mxu1 %v10580_v10  ;;  %v10632_v9 = vld [vmem:[%s14406_s1 + $0x10b0] ss:$40 sps:$4 sm:$0xff]  }
 0x387   :  { %7775 = vmatpush2.bf16.msra.mxu0 %v10575_v12  ;;  %v10635_v12 = vld [vmem:[%s14406_s1 + $0xb60] ss:$40 sps:$4 sm:$0xff]  }
 0x388   :  { %7816 = vmatpush2.bf16.msra.mxu1 %v10578_v40  ;;  %7776 = vmatprep.subr.bf16.mxu0 %v10583_v41  ;;  %v10638_v40 = vld [vmem:[%s14406_s1 + $0x1060] ss:$40 sps:$4 sm:$0xff]   ;;  %v10643_v41 = vld [vmem:[%s14406_s1 + $0xb14] ss:$40 sps:$4 sm:$0xff]  }
 0x389   :  { %7817 = vmatprep.subr.bf16.mxu1 %v10586_v8  ;;  %v10646_v8 = vld [vmem:[%s14406_s1 + $0x1014] ss:$40 sps:$4 sm:$0xff]  }
 0x38b   :  { %7777 = vmatpush2.bf16.msra.mxu0 %v10581_v56  ;;  %v10641_v56 = vld [vmem:[%s14406_s1 + $0xb10] ss:$40 sps:$4 sm:$0xff]  }
 0x38c   :  { %7818 = vmatpush2.bf16.msra.mxu1 %v10584_v14  ;;  %7778 = vmatprep.subr.bf16.mxu0 %v10589_v17  ;;  %v10644_v14 = vld [vmem:[%s14406_s1 + $0x1010] ss:$40 sps:$4 sm:$0xff]   ;;  %v10649_v17 = vld [vmem:[%s14406_s1 + $0xac4] ss:$40 sps:$4 sm:$0xff]  }
 0x38d   :  { %7819 = vmatprep.subr.bf16.mxu1 %v10592_v18  ;;  %v10652_v18 = vld [vmem:[%s14406_s1 + $0xfc4] ss:$40 sps:$4 sm:$0xff]  }
 0x38f   :  { %7779 = vmatpush2.bf16.msra.mxu0 %v10587_v21 }
 0x390   :  { %7820 = vmatpush2.bf16.msra.mxu1 %v10590_v42  ;;  %7780 = vmatprep.subr.bf16.mxu0 %v10595_v60  ;;  %v10647_v60 = vld [vmem:[%s14406_s1 + $0xac0] ss:$40 sps:$4 sm:$0xff]  }
 0x391   :  { %7821 = vmatprep.subr.bf16.mxu1 %v10598_v30  ;;  %v10650_v30 = vld [vmem:[%s14406_s1 + $0xfc0] ss:$40 sps:$4 sm:$0xff]  }
 0x393   :  { %7781 = vmatpush2.bf16.msra.mxu0 %v10593_v31 }
 0x394   :  { %7822 = vmatpush2.bf16.msra.mxu1 %v10596_v33  ;;  %7782 = vmatprep.subr.bf16.mxu0 %v10601_v34  ;;  %v10655_v33 = vld [vmem:[%s14406_s1 + $0xa74] ss:$40 sps:$4 sm:$0xff]  }
 0x395   :  { %7823 = vmatprep.subr.bf16.mxu1 %v10604_v52  ;;  %v10658_v34 = vld [vmem:[%s14406_s1 + $0xf74] ss:$40 sps:$4 sm:$0xff]  }
 0x397   :  { %7783 = vmatpush2.bf16.msra.mxu0 %v10599_v38 }
 0x398   :  { %7824 = vmatpush2.bf16.msra.mxu1 %v10602_v11  ;;  %7784 = vmatprep.subr.bf16.mxu0 %v10607_v47  ;;  %v10653_v11 = vld [vmem:[%s14406_s1 + $0xa70] ss:$40 sps:$4 sm:$0xff]  }
 0x399   :  { %7825 = vmatprep.subr.bf16.mxu1 %v10610_v51  ;;  %v10656_v47 = vld [vmem:[%s14406_s1 + $0xf70] ss:$40 sps:$4 sm:$0xff]   ;;  %v10661_v51 = vld [vmem:[%s14406_s1 + $0xa24] ss:$40 sps:$4 sm:$0xff]  }
 0x39b   :  { %7785 = vmatpush2.bf16.msra.mxu0 %v10605_v22  ;;  %v10664_v22 = vld [vmem:[%s14406_s1 + $0xf24] ss:$40 sps:$4 sm:$0xff]  }
 0x39c   :  { %7826 = vmatpush2.bf16.msra.mxu1 %v10608_v43  ;;  %7786 = vmatprep.subr.bf16.mxu0 %v10613_v26  ;;  %v10659_v43 = vld [vmem:[%s14406_s1 + $0xa20] ss:$40 sps:$4 sm:$0xff]  }
 0x39d   :  { %7827 = vmatprep.subr.bf16.mxu1 %v10616_v54  ;;  %v10662_v26 = vld [vmem:[%s14406_s1 + $0xf20] ss:$40 sps:$4 sm:$0xff]   ;;  %v10667_v54 = vld [vmem:[%s14406_s1 + $0xed4] ss:$40 sps:$4 sm:$0xff]  }
 0x39f   :  { %7787 = vmatpush2.bf16.msra.mxu0 %v10611_v45  ;;  %v10673_v45 = vld [vmem:[%s14406_s1 + $0xe84] ss:$40 sps:$4 sm:$0xff]  }
 0x3a0   :  { %7828 = vmatpush2.bf16.msra.mxu1 %v10614_v48  ;;  %7838 = vmatprep.subr.bf16.mxu0 %v10619_v59  ;;  %v10676_v48 = vld [vmem:[%s14406_s1 + $0x1384] ss:$40 sps:$4 sm:$0xff]   ;;  %v10671_v59 = vld [vmem:[%s14406_s1 + $0xe80] ss:$40 sps:$4 sm:$0xff]  }
 0x3a1   :  { %7879 = vmatprep.subr.bf16.mxu1 %v10622_v5  ;;  %v10674_v5 = vld [vmem:[%s14406_s1 + $0x1380] ss:$40 sps:$4 sm:$0xff]  }
 0x3a2   :  { %v7544_v62 = vpop.f32.mrf.mxu0  ;;  %7789 = vmatmul.mubr.bf16.vlgmr.msra.gmra.mxu0 %v11078_v6  ;;  %v10631_v6 = vld [vmem:[%s14406_s1 + $0xbb4] ss:$40 sps:$4 sm:$0xff]  }
 0x3a3   :  { %7830 = vmatmul.mubr.bf16.vlgmr.msra.gmra.mxu1 %v11080_v7  ;;  %v7545_v63 = vadd.f32 %v7544_v62, %v7504_v53  ;;  %7839 = vmatpush1.bf16.msra.mxu0 %v10617_v29  ;;  %v10634_v7 = vld [vmem:[%s14406_s1 + $0x10b4] ss:$40 sps:$4 sm:$0xff]   ;;  %v10677_v29 = vld [vmem:[%s14406_s1 + $0xe30] ss:$40 sps:$4 sm:$0xff]   ;;  %v10686_v62 = vld [vmem:[%s14406_s1 + $0x12e0] ss:$40 sps:$4 sm:$0xff]  }
 0x3a4   :  { %7880 = vmatpush1.bf16.msra.mxu1 %v10620_v1  ;;  %v7546_v2 = vpop.f32.mrf.mxu0  ;;  %7840 = vmatprep.subr.bf16.mxu0 %v10625_v13  ;;  %v10682_v53 = vld [vmem:[%s14406_s1 + $0x1334] ss:$40 sps:$4 sm:$0xff]   ;;  %v10680_v1 = vld [vmem:[%s14406_s1 + $0x1330] ss:$40 sps:$4 sm:$0xff]   ;;  %v10685_v13 = vld [vmem:[%s14406_s1 + $0xde4] ss:$40 sps:$4 sm:$0xff]  }
 0x3a5   :  { %7881 = vmatprep.subr.bf16.mxu1 %v10628_v46  ;;  %v7547_v50 = vadd.f32 %v7546_v2, %v7506_v57  ;;  %7870 = vmatprep.mubr.bf16.mxu0 %v11174_v36  ;;  %v10637_v36 = vld [vmem:[%s14406_s1 + $0xb64] ss:$40 sps:$4 sm:$0xff]   ;;  %v10683_v57 = vld [vmem:[%s14406_s1 + $0xde0] ss:$40 sps:$4 sm:$0xff]   ;;  %v10692_v2 = vld [vmem:[%s14406_s1 + $0x1290] ss:$40 sps:$4 sm:$0xff]  }
 0x3a6   :  { %7911 = vmatprep.mubr.bf16.mxu1 %v11178_v37  ;;  %v7548_v3 = vpop.f32.mrf.mxu0  ;;  %v10640_v37 = vld [vmem:[%s14406_s1 + $0x1064] ss:$40 sps:$4 sm:$0xff]  }
 0x3a7   :  { %7841 = vmatpush1.bf16.msra.mxu0 %v10623_v0  ;;  %v10688_v46 = vld [vmem:[%s14406_s1 + $0x12e4] ss:$40 sps:$4 sm:$0xff]   ;;  %v10694_v0 = vld [vmem:[%s14406_s1 + $0x1294] ss:$40 sps:$4 sm:$0xff]   ;;  %v10698_v3 = vld [vmem:[%s14406_s1 + $0x1240] ss:$40 sps:$4 sm:$0xff]  }
 0x3a8   :  { %7882 = vmatpush1.bf16.msra.mxu1 %v10626_v20  ;;  %v7549_v10 = vpop.f32.mrf.mxu0  ;;  %7842 = vmatprep.subr.bf16.mxu0 %v10631_v6  ;;  %v10689_v20 = vld [vmem:[%s14406_s1 + $0xd90] ss:$40 sps:$4 sm:$0xff]   ;;  %v10697_v6 = vld [vmem:[%s14406_s1 + $0xd44] ss:$40 sps:$4 sm:$0xff]  }
 0x3a9   :  { %7883 = vmatprep.subr.bf16.mxu1 %v10634_v7  ;;  %v10700_v7 = vld [vmem:[%s14406_s1 + $0x1244] ss:$40 sps:$4 sm:$0xff]   ;;  %v10701_v10 = vld [vmem:[%s14406_s1 + $0xcf0] ss:$40 sps:$4 sm:$0xff]  }
 0x3ab   :  { %7843 = vmatpush1.bf16.msra.mxu0 %v10629_v4  ;;  %v10703_v4 = vld [vmem:[%s14406_s1 + $0xcf4] ss:$40 sps:$4 sm:$0xff]  }
 0x3ac   :  { %7884 = vmatpush1.bf16.msra.mxu1 %v10632_v9  ;;  %7844 = vmatprep.subr.bf16.mxu0 %v10637_v36  ;;  %v10706_v9 = vld [vmem:[%s14406_s1 + $0x11f4] ss:$40 sps:$4 sm:$0xff]   ;;  %v10704_v36 = vld [vmem:[%s14406_s1 + $0x11f0] ss:$40 sps:$4 sm:$0xff]  }
 0x3ad   :  { %7885 = vmatprep.subr.bf16.mxu1 %v10640_v37  ;;  %v10709_v37 = vld [vmem:[%s14406_s1 + $0xca4] ss:$40 sps:$4 sm:$0xff]  }
 0x3af   :  { %7845 = vmatpush1.bf16.msra.mxu0 %v10635_v12  ;;  %v10712_v12 = vld [vmem:[%s14406_s1 + $0x11a4] ss:$40 sps:$4 sm:$0xff]  }
 0x3b0   :  { %7886 = vmatpush1.bf16.msra.mxu1 %v10638_v40  ;;  %7846 = vmatprep.subr.bf16.mxu0 %v10643_v41  ;;  %v10707_v40 = vld [vmem:[%s14406_s1 + $0xca0] ss:$40 sps:$4 sm:$0xff]  }
 0x3b1   :  { %7887 = vmatprep.subr.bf16.mxu1 %v10646_v8  ;;  %v10710_v41 = vld [vmem:[%s14406_s1 + $0x11a0] ss:$40 sps:$4 sm:$0xff]   ;;  %v10715_v8 = vld [vmem:[%s14406_s1 + $0x1654] ss:$40 sps:$4 sm:$0xff]  }
 0x3b3   :  { %v7585_v21 = vpop.f32.mrf.mxu1  ;;  %7847 = vmatpush1.bf16.msra.mxu0 %v10641_v56  ;;  %v10718_v56 = vld [vmem:[%s14406_s1 + $0x1b54] ss:$40 sps:$4 sm:$0xff]  }
 0x3b4   :  { %v13976_v42 = vadd.f32 %v7585_v21, %v7545_v63  ;;  %7888 = vmatpush1.bf16.msra.mxu1 %v10644_v14  ;;  %7848 = vmatprep.subr.bf16.mxu0 %v10649_v17  ;;  %v10691_v63 = vld [vmem:[%s14406_s1 + $0xd94] ss:$40 sps:$4 sm:$0xff]   ;;  %v10713_v14 = vld [vmem:[%s14406_s1 + $0x1650] ss:$40 sps:$4 sm:$0xff]   ;;  %v10724_v21 = vld [vmem:[%s14406_s1 + $0x1b04] ss:$40 sps:$4 sm:$0xff]  }
 0x3b5   :  { %v7587_v31 = vpop.f32.mrf.mxu1  ;;  %7889 = vmatprep.subr.bf16.mxu1 %v10652_v18  ;;  %v10716_v17 = vld [vmem:[%s14406_s1 + $0x1b50] ss:$40 sps:$4 sm:$0xff]   ;;  %v10721_v18 = vld [vmem:[%s14406_s1 + $0x1604] ss:$40 sps:$4 sm:$0xff]  }
 0x3b6   :  { %v13990_v52 = vadd.f32 %v7587_v31, %v7547_v50  ;;  %v10695_v50 = vld [vmem:[%s14406_s1 + $0xd40] ss:$40 sps:$4 sm:$0xff]  }
 0x3b7   :  { %v7589_v38 = vpop.f32.mrf.mxu1  ;;  %7849 = vmatpush1.bf16.msra.mxu0 %v10647_v60  ;;  %v10722_v31 = vld [vmem:[%s14406_s1 + $0x1b00] ss:$40 sps:$4 sm:$0xff]  }
 0x3b8   :  { %7890 = vmatpush1.bf16.msra.mxu1 %v10650_v30  ;;  %7850 = vmatprep.subr.bf16.mxu0 %v10655_v33  ;;  %v10719_v30 = vld [vmem:[%s14406_s1 + $0x1600] ss:$40 sps:$4 sm:$0xff]   ;;  %v10725_v38 = vld [vmem:[%s14406_s1 + $0x15b0] ss:$40 sps:$4 sm:$0xff]  }
 0x3b9   :  { %7891 = vmatprep.subr.bf16.mxu1 %v10658_v34  ;;  %v7590_v15 = vpop.f32.mrf.mxu1 }
 0x3ba   :  { %v10739_v15 = vld [vmem:[%s14406_s1 + $0x1514] ss:$40 sps:$4 sm:$0xff]  }
 0x3bb   :  { %7851 = vmatpush1.bf16.msra.mxu0 %v10653_v11  ;;  %v10728_v11 = vld [vmem:[%s14406_s1 + $0x1ab0] ss:$40 sps:$4 sm:$0xff]  }
 0x3bc   :  { %7892 = vmatpush1.bf16.msra.mxu1 %v10656_v47  ;;  %7852 = vmatprep.subr.bf16.mxu0 %v10661_v51  ;;  %v10731_v51 = vld [vmem:[%s14406_s1 + $0x1560] ss:$40 sps:$4 sm:$0xff]  }
 0x3bd   :  { %7893 = vmatprep.subr.bf16.mxu1 %v10664_v22  ;;  %v10734_v22 = vld [vmem:[%s14406_s1 + $0x1a60] ss:$40 sps:$4 sm:$0xff]  }
 0x3bf   :  { %7853 = vmatpush1.bf16.msra.mxu0 %v10659_v43  ;;  %v10742_v43 = vld [vmem:[%s14406_s1 + $0x1a14] ss:$40 sps:$4 sm:$0xff]  }
 0x3c0   :  { %7894 = vmatpush1.bf16.msra.mxu1 %v10662_v26  ;;  %7854 = vmatprep.subr.bf16.mxu0 %v10667_v54  ;;  %v10737_v26 = vld [vmem:[%s14406_s1 + $0x1510] ss:$40 sps:$4 sm:$0xff]  }
 0x3c1   :  { %7895 = vmatprep.subr.bf16.mxu1 %v10670_v44  ;;  %v10740_v54 = vld [vmem:[%s14406_s1 + $0x1a10] ss:$40 sps:$4 sm:$0xff]   ;;  %v10745_v44 = vld [vmem:[%s14406_s1 + $0x14c4] ss:$40 sps:$4 sm:$0xff]  }
 0x3c3   :  { %7855 = vmatpush2.bf16.msra.mxu0 %v10665_v61  ;;  %v10748_v61 = vld [vmem:[%s14406_s1 + $0x19c4] ss:$40 sps:$4 sm:$0xff]  }
 0x3c4   :  { %7896 = vmatpush2.bf16.msra.mxu1 %v10668_v28  ;;  %7856 = vmatprep.subr.bf16.mxu0 %v10673_v45  ;;  %v10743_v45 = vld [vmem:[%s14406_s1 + $0x14c0] ss:$40 sps:$4 sm:$0xff]  }
 0x3c5   :  { %7897 = vmatprep.subr.bf16.mxu1 %v10676_v48  ;;  %v10746_v48 = vld [vmem:[%s14406_s1 + $0x19c0] ss:$40 sps:$4 sm:$0xff]  }
 0x3c7   :  { %7857 = vmatpush2.bf16.msra.mxu0 %v10671_v59 }
 0x3c8   :  { %7898 = vmatpush2.bf16.msra.mxu1 %v10674_v5  ;;  %7858 = vmatprep.subr.bf16.mxu0 %v10679_v27  ;;  %v10751_v5 = vld [vmem:[%s14406_s1 + $0x1474] ss:$40 sps:$4 sm:$0xff]  }
 0x3c9   :  { %7899 = vmatprep.subr.bf16.mxu1 %v10682_v53  ;;  %v10754_v27 = vld [vmem:[%s14406_s1 + $0x1974] ss:$40 sps:$4 sm:$0xff]  }
 0x3cb   :  { %7859 = vmatpush2.bf16.msra.mxu0 %v10677_v29  ;;  %v10749_v29 = vld [vmem:[%s14406_s1 + $0x1470] ss:$40 sps:$4 sm:$0xff]  }
 0x3cc   :  { %7900 = vmatpush2.bf16.msra.mxu1 %v10680_v1  ;;  %7860 = vmatprep.subr.bf16.mxu0 %v10685_v13  ;;  %v10752_v1 = vld [vmem:[%s14406_s1 + $0x1970] ss:$40 sps:$4 sm:$0xff]   ;;  %v10757_v13 = vld [vmem:[%s14406_s1 + $0x1424] ss:$40 sps:$4 sm:$0xff]  }
 0x3cd   :  { %7901 = vmatprep.subr.bf16.mxu1 %v10688_v46  ;;  %v10760_v46 = vld [vmem:[%s14406_s1 + $0x1924] ss:$40 sps:$4 sm:$0xff]  }
 0x3cf   :  { %7861 = vmatpush2.bf16.msra.mxu0 %v10683_v57 }
 0x3d0   :  { %7902 = vmatpush2.bf16.msra.mxu1 %v10686_v62  ;;  %7862 = vmatprep.subr.bf16.mxu0 %v10691_v63  ;;  %v10755_v62 = vld [vmem:[%s14406_s1 + $0x1420] ss:$40 sps:$4 sm:$0xff]  }
 0x3d1   :  { %7903 = vmatprep.subr.bf16.mxu1 %v10694_v0  ;;  %v10758_v63 = vld [vmem:[%s14406_s1 + $0x1920] ss:$40 sps:$4 sm:$0xff]   ;;  %v10763_v0 = vld [vmem:[%s14406_s1 + $0x18d4] ss:$40 sps:$4 sm:$0xff]  }
 0x3d3   :  { %7863 = vmatpush2.bf16.msra.mxu0 %v10689_v20  ;;  %v10766_v20 = vld [vmem:[%s14406_s1 + $0x1dd4] ss:$40 sps:$4 sm:$0xff]  }
 0x3d4   :  { %7904 = vmatpush2.bf16.msra.mxu1 %v10692_v2  ;;  %7864 = vmatprep.subr.bf16.mxu0 %v10697_v6  ;;  %v10761_v2 = vld [vmem:[%s14406_s1 + $0x18d0] ss:$40 sps:$4 sm:$0xff]  }
 0x3d5   :  { %7905 = vmatprep.subr.bf16.mxu1 %v10700_v7  ;;  %v10764_v6 = vld [vmem:[%s14406_s1 + $0x1dd0] ss:$40 sps:$4 sm:$0xff]   ;;  %v10769_v7 = vld [vmem:[%s14406_s1 + $0x1884] ss:$40 sps:$4 sm:$0xff]  }
 0x3d7   :  { %7865 = vmatpush2.bf16.msra.mxu0 %v10695_v50  ;;  %v10772_v50 = vld [vmem:[%s14406_s1 + $0x1d84] ss:$40 sps:$4 sm:$0xff]  }
 0x3d8   :  { %7906 = vmatpush2.bf16.msra.mxu1 %v10698_v3  ;;  %7866 = vmatprep.subr.bf16.mxu0 %v10703_v4  ;;  %v10767_v3 = vld [vmem:[%s14406_s1 + $0x1880] ss:$40 sps:$4 sm:$0xff]  }
 0x3d9   :  { %7907 = vmatprep.subr.bf16.mxu1 %v10706_v9  ;;  %v10770_v4 = vld [vmem:[%s14406_s1 + $0x1d80] ss:$40 sps:$4 sm:$0xff]   ;;  %v10775_v9 = vld [vmem:[%s14406_s1 + $0x1834] ss:$40 sps:$4 sm:$0xff]  }
 0x3db   :  { %7867 = vmatpush2.bf16.msra.mxu0 %v10701_v10  ;;  %v10778_v10 = vld [vmem:[%s14406_s1 + $0x1d34] ss:$40 sps:$4 sm:$0xff]  }
 0x3dc   :  { %7908 = vmatpush2.bf16.msra.mxu1 %v10704_v36  ;;  %7868 = vmatprep.subr.bf16.mxu0 %v10709_v37  ;;  %v10773_v36 = vld [vmem:[%s14406_s1 + $0x1830] ss:$40 sps:$4 sm:$0xff]  }
 0x3dd   :  { %7909 = vmatprep.subr.bf16.mxu1 %v10712_v12  ;;  %v10776_v37 = vld [vmem:[%s14406_s1 + $0x1d30] ss:$40 sps:$4 sm:$0xff]   ;;  %v10781_v12 = vld [vmem:[%s14406_s1 + $0x17e4] ss:$40 sps:$4 sm:$0xff]  }
 0x3df   :  { %7869 = vmatpush2.bf16.msra.mxu0 %v10707_v40  ;;  %v10784_v40 = vld [vmem:[%s14406_s1 + $0x1ce4] ss:$40 sps:$4 sm:$0xff]  }
 0x3e0   :  { %7910 = vmatpush2.bf16.msra.mxu1 %v10710_v41  ;;  %7920 = vmatprep.subr.bf16.mxu0 %v10715_v8  ;;  %v10779_v41 = vld [vmem:[%s14406_s1 + $0x17e0] ss:$40 sps:$4 sm:$0xff]  }
 0x3e1   :  { %7961 = vmatprep.subr.bf16.mxu1 %v10718_v56  ;;  %v10782_v8 = vld [vmem:[%s14406_s1 + $0x1ce0] ss:$40 sps:$4 sm:$0xff]   ;;  %v10787_v56 = vld [vmem:[%s14406_s1 + $0x1794] ss:$40 sps:$4 sm:$0xff]  }
 0x3e2   :  { %v14124_v60 = vpop.f32.mrf.mxu0  ;;  %7871 = vmatmul.mubr.bf16.vlgmr.msra.gmra.mxu0 %v11298_v16  ;;  %v10727_v16 = vld [vmem:[%s14406_s1 + $0x15b4] ss:$40 sps:$4 sm:$0xff]  }
 0x3e3   :  { %7912 = vmatmul.mubr.bf16.vlgmr.msra.gmra.mxu1 %v11308_v19  ;;  %7921 = vmatpush1.bf16.msra.mxu0 %v10713_v14  ;;  %v10730_v19 = vld [vmem:[%s14406_s1 + $0x1ab4] ss:$40 sps:$4 sm:$0xff]  }
 0x3e4   :  { %7962 = vmatpush1.bf16.msra.mxu1 %v10716_v17  ;;  %v14134_v33 = vpop.f32.mrf.mxu0  ;;  %7922 = vmatprep.subr.bf16.mxu0 %v10721_v18  ;;  %v10790_v14 = vld [vmem:[%s14406_s1 + $0x1c94] ss:$40 sps:$4 sm:$0xff]   ;;  %v10785_v17 = vld [vmem:[%s14406_s1 + $0x1790] ss:$40 sps:$4 sm:$0xff]  }
 0x3e5   :  { %7963 = vmatprep.subr.bf16.mxu1 %v10724_v21  ;;  %7952 = vmatprep.mubr.bf16.mxu0 %v11328_v24  ;;  %v10733_v24 = vld [vmem:[%s14406_s1 + $0x1564] ss:$40 sps:$4 sm:$0xff]   ;;  %v10788_v18 = vld [vmem:[%s14406_s1 + $0x1c90] ss:$40 sps:$4 sm:$0xff]  }
 0x3e6   :  { %7993 = vmatprep.mubr.bf16.mxu1 %v11332_v25  ;;  %v7630_v34 = vpop.f32.mrf.mxu0  ;;  %v10736_v25 = vld [vmem:[%s14406_s1 + $0x1a64] ss:$40 sps:$4 sm:$0xff]  }
 0x3e7   :  { %7923 = vmatpush1.bf16.msra.mxu0 %v10719_v30  ;;  %v10793_v21 = vld [vmem:[%s14406_s1 + $0x1744] ss:$40 sps:$4 sm:$0xff]   ;;  %v10802_v34 = vld [vmem:[%s14406_s1 + $0x1bf4] ss:$40 sps:$4 sm:$0xff]  }
 0x3e8   :  { %7964 = vmatpush1.bf16.msra.mxu1 %v10722_v31  ;;  %v7631_v47 = vpop.f32.mrf.mxu0  ;;  %7924 = vmatprep.subr.bf16.mxu0 %v10727_v16  ;;  %v10796_v30 = vld [vmem:[%s14406_s1 + $0x1c44] ss:$40 sps:$4 sm:$0xff]   ;;  %v10791_v31 = vld [vmem:[%s14406_s1 + $0x1740] ss:$40 sps:$4 sm:$0xff]  }
 0x3e9   :  { %7965 = vmatprep.subr.bf16.mxu1 %v10730_v19  ;;  %v10794_v16 = vld [vmem:[%s14406_s1 + $0x1c40] ss:$40 sps:$4 sm:$0xff]   ;;  %v10799_v19 = vld [vmem:[%s14406_s1 + $0x16f4] ss:$40 sps:$4 sm:$0xff]   ;;  %v10805_v47 = vld [vmem:[%s14406_s1 + $0x16a4] ss:$40 sps:$4 sm:$0xff]  }
 0x3eb   :  { %7925 = vmatpush1.bf16.msra.mxu0 %v10725_v38  ;;  %v10797_v38 = vld [vmem:[%s14406_s1 + $0x16f0] ss:$40 sps:$4 sm:$0xff]  }
 0x3ec   :  { %7966 = vmatpush1.bf16.msra.mxu1 %v10728_v11  ;;  %7926 = vmatprep.subr.bf16.mxu0 %v10733_v24  ;;  %v10800_v11 = vld [vmem:[%s14406_s1 + $0x1bf0] ss:$40 sps:$4 sm:$0xff]   ;;  %v10808_v24 = vld [vmem:[%s14406_s1 + $0x1ba4] ss:$40 sps:$4 sm:$0xff]  }
 0x3ed   :  { %7967 = vmatprep.subr.bf16.mxu1 %v10736_v25  ;;  %v10803_v25 = vld [vmem:[%s14406_s1 + $0x16a0] ss:$40 sps:$4 sm:$0xff]  }
 0x3ef   :  { %7927 = vmatpush1.bf16.msra.mxu0 %v10731_v51  ;;  %v10806_v51 = vld [vmem:[%s14406_s1 + $0x1ba0] ss:$40 sps:$4 sm:$0xff]  }
 0x3f0   :  { %7968 = vmatpush1.bf16.msra.mxu1 %v10734_v22  ;;  %7928 = vmatprep.subr.bf16.mxu0 %v10739_v15  ;;  %v10811_v22 = vld [vmem:[%s14406_s1 + $0x2054] ss:$40 sps:$4 sm:$0xff]   ;;  %v7627_v15 = vadd.f32 %v14124_v60, %v13976_v42 }
 0x3f1   :  { %7969 = vmatprep.subr.bf16.mxu1 %v10742_v43  ;;  %v10809_v43 = vld [vmem:[%s14406_s1 + $0x2050] ss:$40 sps:$4 sm:$0xff]  }
 0x3f3   :  { %v14180_v28 = vpop.f32.mrf.mxu1  ;;  %7929 = vmatpush1.bf16.msra.mxu0 %v10737_v26  ;;  %v10814_v26 = vld [vmem:[%s14406_s1 + $0x2004] ss:$40 sps:$4 sm:$0xff]  }
 0x3f4   :  { %7970 = vmatpush1.bf16.msra.mxu1 %v10740_v54  ;;  %7930 = vmatprep.subr.bf16.mxu0 %v10745_v44  ;;  %v7629_v54 = vadd.f32 %v14134_v33, %v13990_v52  ;;  %v7668_v44 = vadd.f32 %v14180_v28, %v7627_v15 }
 0x3f5   :  { %v14188_v59 = vpop.f32.mrf.mxu1  ;;  %7971 = vmatprep.subr.bf16.mxu1 %v10748_v61 }
 0x3f6   :  { %v7670_v60 = vadd.f32 %v14188_v59, %v7629_v54 }
 0x3f7   :  { %v7671_v53 = vpop.f32.mrf.mxu1  ;;  %7931 = vmatpush1.bf16.msra.mxu0 %v10743_v45 }
 0x3f8   :  { %7972 = vmatpush1.bf16.msra.mxu1 %v10746_v48  ;;  %7932 = vmatprep.subr.bf16.mxu0 %v10751_v5  ;;  %v10812_v48 = vld [vmem:[%s14406_s1 + $0x2000] ss:$40 sps:$4 sm:$0xff]   ;;  %v10815_v53 = vld [vmem:[%s14406_s1 + $0x1fb0] ss:$40 sps:$4 sm:$0xff]  }
 0x3f9   :  { %7973 = vmatprep.subr.bf16.mxu1 %v10754_v27  ;;  %v7672_v57 = vpop.f32.mrf.mxu1 }
 0x3fb   :  { %7933 = vmatpush1.bf16.msra.mxu0 %v10749_v29 }
 0x3fc   :  { %7974 = vmatpush1.bf16.msra.mxu1 %v10752_v1  ;;  %7934 = vmatprep.subr.bf16.mxu0 %v10757_v13 }
 0x3fd   :  { %7975 = vmatprep.subr.bf16.mxu1 %v10760_v46 }
 0x3ff   :  { %7935 = vmatpush1.bf16.msra.mxu0 %v10755_v62  ;;  %v10818_v62 = vld [vmem:[%s14406_s1 + $0x1f60] ss:$40 sps:$4 sm:$0xff]  }
 0x400   :  { %7976 = vmatpush1.bf16.msra.mxu1 %v10758_v63  ;;  %7936 = vmatprep.subr.bf16.mxu0 %v10763_v0  ;;  %v10823_v63 = vld [vmem:[%s14406_s1 + $0x1f14] ss:$40 sps:$4 sm:$0xff]   ;;  %v10821_v0 = vld [vmem:[%s14406_s1 + $0x1f10] ss:$40 sps:$4 sm:$0xff]  }
 0x401   :  { %7977 = vmatprep.subr.bf16.mxu1 %v10766_v20  ;;  %v10826_v20 = vld [vmem:[%s14406_s1 + $0x1ec4] ss:$40 sps:$4 sm:$0xff]  }
 0x403   :  { %7937 = vmatpush2.bf16.msra.mxu0 %v10761_v2  ;;  %v10824_v2 = vld [vmem:[%s14406_s1 + $0x1ec0] ss:$40 sps:$4 sm:$0xff]  }
 0x404   :  { %7978 = vmatpush2.bf16.msra.mxu1 %v10764_v6  ;;  %7938 = vmatprep.subr.bf16.mxu0 %v10769_v7  ;;  %v10829_v6 = vld [vmem:[%s14406_s1 + $0x1e74] ss:$40 sps:$4 sm:$0xff]   ;;  %v10827_v7 = vld [vmem:[%s14406_s1 + $0x1e70] ss:$40 sps:$4 sm:$0xff]  }
 0x405   :  { %7979 = vmatprep.subr.bf16.mxu1 %v10772_v50  ;;  %v10832_v50 = vld [vmem:[%s14406_s1 + $0x1e24] ss:$40 sps:$4 sm:$0xff]  }
 0x407   :  { %7939 = vmatpush2.bf16.msra.mxu0 %v10767_v3  ;;  %v10830_v3 = vld [vmem:[%s14406_s1 + $0x1e20] ss:$40 sps:$4 sm:$0xff]  }
 0x408   :  { %7980 = vmatpush2.bf16.msra.mxu1 %v10770_v4  ;;  %7940 = vmatprep.subr.bf16.mxu0 %v10775_v9  ;;  %v10835_v4 = vld [vmem:[%s14406_s1 + $0x2194] ss:$40 sps:$4 sm:$0xff]   ;;  %v10833_v9 = vld [vmem:[%s14406_s1 + $0x2190] ss:$40 sps:$4 sm:$0xff]  }
 0x409   :  { %7981 = vmatprep.subr.bf16.mxu1 %v10778_v10  ;;  %v10838_v10 = vld [vmem:[%s14406_s1 + $0x2144] ss:$40 sps:$4 sm:$0xff]  }
 0x40b   :  { %7941 = vmatpush2.bf16.msra.mxu0 %v10773_v36  ;;  %v10836_v36 = vld [vmem:[%s14406_s1 + $0x2140] ss:$40 sps:$4 sm:$0xff]  }
 0x40c   :  { %7982 = vmatpush2.bf16.msra.mxu1 %v10776_v37  ;;  %7942 = vmatprep.subr.bf16.mxu0 %v10781_v12  ;;  %v10841_v37 = vld [vmem:[%s14406_s1 + $0x20f4] ss:$40 sps:$4 sm:$0xff]   ;;  %v10839_v12 = vld [vmem:[%s14406_s1 + $0x20f0] ss:$40 sps:$4 sm:$0xff]  }
 0x40d   :  { %7983 = vmatprep.subr.bf16.mxu1 %v10784_v40  ;;  %v10844_v40 = vld [vmem:[%s14406_s1 + $0x20a4] ss:$40 sps:$4 sm:$0xff]  }
 0x40f   :  { %7943 = vmatpush2.bf16.msra.mxu0 %v10779_v41  ;;  %v10842_v41 = vld [vmem:[%s14406_s1 + $0x20a0] ss:$40 sps:$4 sm:$0xff]  }
 0x410   :  { %7984 = vmatpush2.bf16.msra.mxu1 %v10782_v8  ;;  %7944 = vmatprep.subr.bf16.mxu0 %v10787_v56  ;;  %v1103_v8 = vld [vmem:[%s14408_s2 + $0x8] sm:$0x3] }
 0x411   :  { %7985 = vmatprep.subr.bf16.mxu1 %v10790_v14  ;;  %v1141_v56 = vrot.slane %v1103_v8, %v1108_v55  ;;  %v1145_v14 = vrot.slane %v1103_v8, %v1112_v58 }
 0x413   :  { %7945 = vmatpush2.bf16.msra.mxu0 %v10785_v17 }
 0x414   :  { %7986 = vmatpush2.bf16.msra.mxu1 %v10788_v18  ;;  %7946 = vmatprep.subr.bf16.mxu0 %v10793_v21 }
 0x415   :  { %7987 = vmatprep.subr.bf16.mxu1 %v10796_v30 }
 0x417   :  { %7947 = vmatpush2.bf16.msra.mxu0 %v10791_v31 }
 0x418   :  { %7988 = vmatpush2.bf16.msra.mxu1 %v10794_v16  ;;  %7948 = vmatprep.subr.bf16.mxu0 %v10799_v19 }
 0x419   :  { %7989 = vmatprep.subr.bf16.mxu1 %v10802_v34 }
 0x41b   :  { %7949 = vmatpush2.bf16.msra.mxu0 %v10797_v38 }
 0x41c   :  { %7990 = vmatpush2.bf16.msra.mxu1 %v10800_v11  ;;  %7950 = vmatprep.subr.bf16.mxu0 %v10805_v47 }
 0x41d   :  { %7991 = vmatprep.subr.bf16.mxu1 %v10808_v24 }
 0x41f   :  { %7951 = vmatpush2.bf16.msra.mxu0 %v10803_v25 }
 0x420   :  { %7992 = vmatpush2.bf16.msra.mxu1 %v10806_v51  ;;  %8002 = vmatprep.subr.bf16.mxu0 %v10811_v22 }
 0x422   :  { %v7708_v61 = vpop.f32.mrf.mxu0  ;;  %7953 = vmatmul.mubr.bf16.vlgmr.msra.gmra.mxu0 %v11523_v35  ;;  %v10817_v35 = vld [vmem:[%s14406_s1 + $0x1fb4] ss:$40 sps:$4 sm:$0xff]  }
 0x423   :  { %v7749_v42 = vpop.f32.mrf.mxu1  ;;  %7994 = vmatmul.mubr.bf16.vlgmr.msra.gmra.mxu1 %v11530_v39  ;;  %v7709_v45 = vadd.f32 %v7708_v61, %v7668_v44  ;;  %8003 = vmatpush1.bf16.msra.mxu0 %v10809_v43 }
 0x424   :  { %9200 = vmatprep.mubr.msk.bf16.mxu0 %vm6604_vm0, %v11545_v23  ;;  %v7710_v52 = vpop.f32.mrf.mxu0  ;;  %8004 = vmatprep.subr.bf16.mxu0 %v10814_v26  ;;  %v10820_v23 = vld [vmem:[%s14406_s1 + $0x1f64] ss:$40 sps:$4 sm:$0xff]  }
 0x425   :  { %v7751_v33 = vpop.f32.mrf.mxu1  ;;  %v7711_v28 = vadd.f32 %v7710_v52, %v7670_v60  ;;  %v7750_v39 = vadd.f32 %v7749_v42, %v7709_v45 }
 0x426   :  { %v7712_v5 = vpop.f32.mrf.mxu0 }
 0x427   :  { %v7753_v59 = vpop.f32.mrf.mxu1  ;;  %v7752_v27 = vadd.f32 %v7751_v33, %v7711_v28  ;;  %8005 = vmatpush1.bf16.msra.mxu0 %v10812_v48  ;;  %v8049_v13 = vmax.f32 %v7750_v39, 0.0 }
 0x428   :  { %v7713_v29 = vpop.f32.mrf.mxu0  ;;  %8006 = vmatprep.subr.bf16.mxu0 %v10817_v35 }
 0x429   :  { %v7754_v1 = vpop.f32.mrf.mxu1  ;;  %v8050_v46 = vmax.f32 %v7752_v27, 0.0 }
 0x42b   :  { %v9209_v57 = vpack.c.bf16 %v8050_v46, %v8049_v13  ;;  %8007 = vmatpush1.bf16.msra.mxu0 %v10815_v53 }
 0x42c   :  { %8008 = vmatprep.subr.bf16.mxu0 %v10820_v23 }
 0x42d   :  { %8096 = vst [vmem:[%s14409_s3 + $0x18] sm:$0xff] %v9209_v57 }
 0x42f   :  { %8009 = vmatpush1.bf16.msra.mxu0 %v10818_v62 }
 0x430   :  { %8010 = vmatprep.subr.bf16.mxu0 %v10823_v63 }
 0x433   :  { %8011 = vmatpush1.bf16.msra.mxu0 %v10821_v0 }
 0x434   :  { %8012 = vmatprep.subr.bf16.mxu0 %v10826_v20 }
 0x437   :  { %8013 = vmatpush1.bf16.msra.mxu0 %v10824_v2 }
 0x438   :  { %8014 = vmatprep.subr.bf16.mxu0 %v10829_v6 }
 0x43b   :  { %8015 = vmatpush1.bf16.msra.mxu0 %v10827_v7 }
 0x43c   :  { %8016 = vmatprep.subr.bf16.mxu0 %v10832_v50 }
 0x43f   :  { %8017 = vmatpush1.bf16.msra.mxu0 %v10830_v3 }
 0x440   :  { %8026 = vmatprep.subr.bf16.mxu0 %v10835_v4 }
 0x443   :  { %8027 = vmatpush2.bf16.msra.mxu0 %v10833_v9 }
 0x444   :  { %8028 = vmatprep.subr.bf16.mxu0 %v10838_v10 }
 0x447   :  { %8029 = vmatpush2.bf16.msra.mxu0 %v10836_v36 }
 0x448   :  { %8030 = vmatprep.subr.bf16.mxu0 %v10841_v37 }
 0x44b   :  { %8031 = vmatpush2.bf16.msra.mxu0 %v10839_v12 }
 0x44c   :  { %8032 = vmatprep.subr.bf16.mxu0 %v10844_v40 }
 0x44f   :  { %8033 = vmatpush2.bf16.msra.mxu0 %v10842_v41 }
 0x452   :  { %8035 = vmatmul.mubr.bf16.vlgmr.msra.gmra.mxu0 %v11686_v32 }
 0x462   :  { %v7790_v17 = vpop.f32.mrf.mxu0 }
 0x463   :  { %v7831_v18 = vpop.f32.mrf.mxu1  ;;  %v7791_v21 = vadd.f32 %v7790_v17, %v1141_v56 }
 0x464   :  { %v7792_v30 = vpop.f32.mrf.mxu0 }
 0x465   :  { %v7833_v31 = vpop.f32.mrf.mxu1  ;;  %v7793_v16 = vadd.f32 %v7792_v30, %v1145_v14  ;;  %v7832_v19 = vadd.f32 %v7831_v18, %v7791_v21 }
 0x466   :  { %v7794_v34 = vpop.f32.mrf.mxu0 }
 0x467   :  { %v7835_v38 = vpop.f32.mrf.mxu1  ;;  %v7834_v32 = vadd.f32 %v7833_v31, %v7793_v16 }
 0x468   :  { %v7795_v11 = vpop.f32.mrf.mxu0 }
 0x469   :  { %v7836_v47 = vpop.f32.mrf.mxu1 }
 0x4a2   :  { %v7872_v24 = vpop.f32.mrf.mxu0 }
 0x4a3   :  { %v7913_v25 = vpop.f32.mrf.mxu1  ;;  %v7873_v51 = vadd.f32 %v7872_v24, %v7832_v19 }
 0x4a4   :  { %v7874_v22 = vpop.f32.mrf.mxu0 }
 0x4a5   :  { %v7915_v55 = vpop.f32.mrf.mxu1  ;;  %v7875_v15 = vadd.f32 %v7874_v22, %v7834_v32  ;;  %v7914_v49 = vadd.f32 %v7913_v25, %v7873_v51 }
 0x4a6   :  { %v7876_v58 = vpop.f32.mrf.mxu0 }
 0x4a7   :  { %v7917_v43 = vpop.f32.mrf.mxu1  ;;  %v7916_v26 = vadd.f32 %v7915_v55, %v7875_v15 }
 0x4a8   :  { %v7877_v54 = vpop.f32.mrf.mxu0 }
 0x4a9   :  { %v7918_v44 = vpop.f32.mrf.mxu1 }
 0x4e2   :  { %v7954_v61 = vpop.f32.mrf.mxu0 }
 0x4e3   :  { %v7995_v42 = vpop.f32.mrf.mxu1  ;;  %v7955_v28 = vadd.f32 %v7954_v61, %v7914_v49 }
 0x4e4   :  { %v7956_v60 = vpop.f32.mrf.mxu0 }
 0x4e5   :  { %v7997_v45 = vpop.f32.mrf.mxu1  ;;  %v7957_v39 = vadd.f32 %v7956_v60, %v7916_v26  ;;  %v7996_v5 = vadd.f32 %v7995_v42, %v7955_v28 }
 0x4e6   :  { %v7958_v48 = vpop.f32.mrf.mxu0 }
 0x4e7   :  { %v7999_v52 = vpop.f32.mrf.mxu1  ;;  %v7998_v27 = vadd.f32 %v7997_v45, %v7957_v39 }
 0x4e8   :  { %v7959_v33 = vpop.f32.mrf.mxu0 }
 0x4e9   :  { %v8000_v35 = vpop.f32.mrf.mxu1 }
 0x512   :  { %v8036_v59 = vpop.f32.mrf.mxu0 }
 0x513   :  { %v8037_v53 = vadd.f32 %v8036_v59, %v7996_v5 }
 0x514   :  { %v8038_v29 = vpop.f32.mrf.mxu0 }
 0x515   :  { %v8039_v23 = vadd.f32 %v8038_v29, %v7998_v27  ;;  %v8051_v13 = vmax.f32 %v8037_v53, 0.0 }
 0x516   :  { %v8040_v1 = vpop.f32.mrf.mxu0 }
 0x517   :  { %v8052_v46 = vmax.f32 %v8039_v23, 0.0 }
 0x518   :  { %v8041_v57 = vpop.f32.mrf.mxu0 }
 0x519   :  { %v9210_v62 = vpack.c.bf16 %v8052_v46, %v8051_v13 }
 0x51b   :  { %8097 = vst [vmem:[%s14409_s3 + $0x20] sm:$0xff] %v9210_v62 }

</bundles_post_ra>
